<compile_context>
chip_gen: v7x
topology: tpu7x:2x2x1
jax: 0.10.0
libtpu: 0.0.40
codegen_flags: <defaults>
</compile_context>

<pallas_src>
import functools

import jax
import jax.numpy as jnp
from jax.experimental import pallas as pl
from jax.experimental.pallas import tpu as pltpu


_LEAKY_SLOPE = 0.2
# True output channel counts (some weights are lane-padded at init).
_LAYER_COUT = {"conv1": 64, "conv2": 128, "conv3": 256, "conv4": 512, "conv5": 1}
# Lane padding applied to the weight matrices at init time.
_LAYER_COUT_PAD = {"conv1": 128, "conv2": 128, "conv3": 256, "conv4": 512, "conv5": 8}


# ----------------------------- in-kernel helpers -----------------------------

def _leaky(y):
    return jnp.where(y >= 0.0, y, _LEAKY_SLOPE * y)


def _stable_sigmoid(y):
    # exp of a non-positive argument only: no inf intermediate for large |y|.
    z = jnp.exp(-jnp.abs(y))
    return jnp.where(y >= 0.0, 1.0 / (1.0 + z), z / (1.0 + z))


# ------------------------------- Pallas GEMMs --------------------------------

def _gemm_act_kernel_1k(a_ref, b_ref, o_ref, *, act):
    """Single-K-step GEMM: full K fits in one tile, so no accumulator RMW."""
    y = jnp.dot(a_ref[...], b_ref[...], preferred_element_type=jnp.float32)
    if act == "leaky_relu":
        y = _leaky(y)
    o_ref[...] = y


def _gemm_act_kernel_multik(a_ref, b_ref, o_ref, *, act):
    """Fallback K-tiled GEMM, accumulating into the grid-invariant f32 block."""
    @pl.when(pl.program_id(2) == 0)
    def _():
        o_ref[...] = jnp.zeros_like(o_ref)

    o_ref[...] += jnp.dot(a_ref[...], b_ref[...],
                          preferred_element_type=jnp.float32)

    if act == "leaky_relu":
        @pl.when(pl.program_id(2) == pl.num_programs(2) - 1)
        def _():
            o_ref[...] = _leaky(o_ref[...])


def _gemm_sigmoid_kernel_1k(a_ref, b_ref, raw_ref, sig_ref):
    """conv5 GEMM: emits both raw logits and sigmoid(logits) in one pass."""
    y = jnp.dot(a_ref[...], b_ref[...], preferred_element_type=jnp.float32)
    raw_ref[...] = y
    sig_ref[...] = _stable_sigmoid(y)


def _gemm_sigmoid_kernel_multik(a_ref, b_ref, raw_ref, sig_ref):
    # NOTE: the output blocks are grid-invariant over k (same block index for
    # every k step), so writing sig only on the last step is safe; both are
    # still zero-initialized at k==0 for robustness against future re-tiling.
    @pl.when(pl.program_id(2) == 0)
    def _():
        raw_ref[...] = jnp.zeros_like(raw_ref)
        sig_ref[...] = jnp.zeros_like(sig_ref)

    raw_ref[...] += jnp.dot(a_ref[...], b_ref[...],
                            preferred_element_type=jnp.float32)

    @pl.when(pl.program_id(2) == pl.num_programs(2) - 1)
    def _():
        sig_ref[...] = _stable_sigmoid(raw_ref[...])


def _pick_tiles(M, K, N):
    """M is pre-padded to a multiple of 8; K, N come lane-padded from init."""
    # tn: lane-dense (multiple of 128) where possible; split N>=256 so there
    # are >=2 parallel tiles for a second TensorCore (v7x), capped at 256.
    if N % 128 != 0 or N <= 128:
        tn = N
    elif N % 256 == 0 and N >= 512:
        tn = 256
    else:
        tn = 128

    # tm: full M for small layers, otherwise the largest aligned divisor <=128.
    if M <= 128:
        tm = M
    else:
        tm = next((t for t in (128, 64, 32, 16, 8) if M % t == 0), M)
    # If the layer would get a single parallel tile, split M so a 2nd
    # TensorCore (v7x) has work; costs one extra (cheap) grid step elsewhere.
    if (M // tm) == 1 and (N // tn) == 1 and tm >= 16 and tm % 16 == 0:
        tm //= 2

    # tk: prefer full K (collapses the reduction grid) while the
    # double-buffered bf16 A/B tiles stay under ~6 MiB -> safe even with
    # v5e's 16 MiB default scoped VMEM (v6e/v7x default to 32 MiB scoped).
    budget = 6 * 1024 * 1024
    candidates = [K] + [d for d in (4096, 2048, 1024, 512, 256, 128)
                        if d < K and K % d == 0]
    tk = candidates[-1]
    for cand in candidates:
        if 2 * (tm + tn) * cand * 2 <= budget:
            tk = cand
            break
    return tm, tn, tk


def conv_gemm(cols, wmat, act):
    M, K = cols.shape
    Kb, N = wmat.shape
    assert K == Kb
    tm, tn, tk = _pick_tiles(M, K, N)
    if tk == K:
        grid = (M // tm, N // tn)
        in_specs = [pl.BlockSpec((tm, K), lambda i, j: (i, 0)),
                    pl.BlockSpec((K, tn), lambda i, j: (0, j))]
        out_spec = pl.BlockSpec((tm, tn), lambda i, j: (i, j))
        kernel = functools.partial(_gemm_act_kernel_1k, act=act)
        sem = ("parallel", "parallel")
    else:
        grid = (M // tm, N // tn, K // tk)
        in_specs = [pl.BlockSpec((tm, tk), lambda i, j, k: (i, k)),
                    pl.BlockSpec((tk, tn), lambda i, j, k: (k, j))]
        out_spec = pl.BlockSpec((tm, tn), lambda i, j, k: (i, j))
        kernel = functools.partial(_gemm_act_kernel_multik, act=act)
        sem = ("parallel", "parallel", "arbitrary")
    return pl.pallas_call(
        kernel,
        out_shape=jax.ShapeDtypeStruct((M, N), jnp.float32),
        grid_spec=pltpu.PrefetchScalarGridSpec(
            num_scalar_prefetch=0, grid=grid,
            in_specs=in_specs, out_specs=out_spec),
        compiler_params=pltpu.CompilerParams(dimension_semantics=sem),
    )(cols, wmat)


def conv_gemm_sigmoid(cols, wmat):
    M, K = cols.shape
    Kb, N = wmat.shape
    assert K == Kb
    tm, tn, tk = _pick_tiles(M, K, N)
    out_shapes = (jax.ShapeDtypeStruct((M, N), jnp.float32),
                  jax.ShapeDtypeStruct((M, N), jnp.float32))
    if tk == K:
        grid = (M // tm, N // tn)
        in_specs = [pl.BlockSpec((tm, K), lambda i, j: (i, 0)),
                    pl.BlockSpec((K, tn), lambda i, j: (0, j))]
        out_specs = [pl.BlockSpec((tm, tn), lambda i, j: (i, j)),
                     pl.BlockSpec((tm, tn), lambda i, j: (i, j))]
        kernel = _gemm_sigmoid_kernel_1k
        sem = ("parallel", "parallel")
    else:
        grid = (M // tm, N // tn, K // tk)
        in_specs = [pl.BlockSpec((tm, tk), lambda i, j, k: (i, k)),
                    pl.BlockSpec((tk, tn), lambda i, j, k: (k, j))]
        out_specs = [pl.BlockSpec((tm, tn), lambda i, j, k: (i, j)),
                     pl.BlockSpec((tm, tn), lambda i, j, k: (i, j))]
        kernel = _gemm_sigmoid_kernel_multik
        sem = ("parallel", "parallel", "arbitrary")
    raw, sig = pl.pallas_call(
        kernel,
        out_shape=out_shapes,
        grid_spec=pltpu.PrefetchScalarGridSpec(
            num_scalar_prefetch=0, grid=grid,
            in_specs=in_specs, out_specs=out_specs),
        compiler_params=pltpu.CompilerParams(dimension_semantics=sem),
    )(cols, wmat)
    return raw, sig


# ----------------------------- conv glue (NHWC) -------------------------------

def _im2col_nhwc(x, kh, kw, stride, padding):
    """NHWC im2col: K ordering is ((i*kw + j)*Cin + c), matching the weight
    matrices prepared at init."""
    if padding > 0:
        x = jnp.pad(x, ((0, 0), (padding, padding), (padding, padding), (0, 0)))
    n, h, w, c = x.shape
    oh = (h - kh) // stride + 1
    ow = (w - kw) // stride + 1
    taps = []
    for i in range(kh):
        for j in range(kw):
            taps.append(x[:, i:i + stride * (oh - 1) + 1:stride,
                            j:j + stride * (ow - 1) + 1:stride, :])
    cols = jnp.concatenate(taps, axis=-1)           # (n, oh, ow, kh*kw*c)
    return cols.reshape(n * oh * ow, kh * kw * c), oh, ow
    # TODO(synk): fold the im2col taps into the GEMM grid (in-kernel im2col)
    # so `cols` is never materialized in HBM at larger image sizes.


def _conv_layer(h, wmat, cout, stride, act):
    """Conv(k=4, pad=1, no bias) + fused activation; NHWC f32 in/out."""
    n = h.shape[0]
    cols, oh, ow = _im2col_nhwc(h, 4, 4, stride, 1)
    cols = cols.astype(jnp.bfloat16)                 # bf16 MXU operand
    m = cols.shape[0]
    mp = -(-m // 8) * 8                              # sublane-align rows
    if mp != m:
        cols = jnp.pad(cols, ((0, mp - m), (0, 0)))
    if act == "sigmoid_dual":
        raw, sig = conv_gemm_sigmoid(cols, wmat)
        raw = raw[:m, :cout].reshape(n, oh, ow, cout)
        sig = sig[:m, :cout].reshape(n, oh, ow, cout)
        return raw, sig
    out = conv_gemm(cols, wmat, act=act)
    return out[:m, :cout].reshape(n, oh, ow, cout)


# -------------------------------- parameters ----------------------------------

def _spectral_normalize(w, key, n_power_iterations=1, eps=1e-12):
    # Mirrors torch.nn.utils.spectral_norm forward semantics: W / sigma, with
    # sigma from power iteration on W reshaped to (Cout, -1).  Done once at
    # init (plain JAX preprocessing, not per-step kernel work).
    cout = w.shape[0]
    wm = w.reshape(cout, -1)
    u = jax.random.normal(key, (cout,), jnp.float32)
    u = u / (jnp.linalg.norm(u) + eps)
    v = jnp.zeros((wm.shape[1],), jnp.float32)
    for _ in range(max(n_power_iterations, 1)):
        v = wm.T @ u
        v = v / (jnp.linalg.norm(v) + eps)
        u = wm @ v
        u = u / (jnp.linalg.norm(u) + eps)
    sigma = u @ (wm @ v)
    return w / sigma


def init_params(key, in_channels=3, gain=0.02, use_spectral_norm=True):
    # BaseNetwork.init_weights('normal', 0.02): weight ~ N(0, 0.02); conv bias
    # is disabled when spectral norm is used (bias=not use_spectral_norm).
    cin_pad1 = -(-in_channels // 8) * 8   # conv1 input channels padded -> K % 128 == 0
    layer_shapes = {
        "conv1": (64, in_channels, 4, 4),
        "conv2": (128, 64, 4, 4),
        "conv3": (256, 128, 4, 4),
        "conv4": (512, 256, 4, 4),
        "conv5": (1, 512, 4, 4),
    }
    params = {}
    keys = jax.random.split(key, 2 * len(layer_shapes))
    for idx, (name, shp) in enumerate(layer_shapes.items()):
        cout, cin, kh, kw = shp
        w = jax.random.normal(keys[2 * idx], shp, jnp.float32) * gain
        if use_spectral_norm:
            w = _spectral_normalize(w, keys[2 * idx + 1])
        if name == "conv1" and cin_pad1 != cin:
            # Zero-pad the input-channel dim; matches the zero-padded
            # activation channels added at the forward boundary.
            w = jnp.pad(w, ((0, 0), (0, cin_pad1 - cin), (0, 0), (0, 0)))
        cin_eff = w.shape[1]
        # (Cout, Cin, kh, kw) -> (kh, kw, Cin, Cout) -> (kh*kw*Cin, Cout):
        # matches the im2col K ordering; done ONCE here, not per forward.
        wmat = jnp.transpose(w, (2, 3, 1, 0)).reshape(kh * kw * cin_eff, cout)
        cout_pad = _LAYER_COUT_PAD[name]
        if cout_pad != cout:
            wmat = jnp.pad(wmat, ((0, 0), (0, cout_pad - cout)))
        params[name] = wmat.astype(jnp.bfloat16)     # bf16 weight streaming
    return params


# ---------------------------------- forward -----------------------------------

def discriminator_forward(params, x, use_sigmoid=True):
    """x: NCHW float32 (PyTorch convention).  Returns (outputs, [c1..c5]) in
    NCHW, matching Discriminator.forward()."""
    h = jnp.transpose(x, (0, 2, 3, 1)).astype(jnp.float32)  # NCHW -> NHWC once
    cin = h.shape[-1]
    cin_pad = params["conv1"].shape[0] // 16                 # static at trace time
    if cin_pad != cin:
        h = jnp.pad(h, ((0, 0), (0, 0), (0, 0), (0, cin_pad - cin)))

    c1 = _conv_layer(h,  params["conv1"], _LAYER_COUT["conv1"], 2, "leaky_relu")
    c2 = _conv_layer(c1, params["conv2"], _LAYER_COUT["conv2"], 2, "leaky_relu")
    c3 = _conv_layer(c2, params["conv3"], _LAYER_COUT["conv3"], 2, "leaky_relu")
    c4 = _conv_layer(c3, params["conv4"], _LAYER_COUT["conv4"], 1, "leaky_relu")
    # TODO(synk): fold the tiny 1-channel conv5 into conv4's epilogue to drop
    # one pallas_call launch at these overhead-bound sizes.
    c5_raw, c5_sig = _conv_layer(c4, params["conv5"], _LAYER_COUT["conv5"], 1,
                                 "sigmoid_dual")

    outputs = c5_sig if use_sigmoid else c5_raw
    to_nchw = lambda t: jnp.transpose(t, (0, 3, 1, 2))
    return to_nchw(outputs), [to_nchw(c1), to_nchw(c2), to_nchw(c3),
                              to_nchw(c4), to_nchw(c5_raw)]


if __name__ == "__main__":
    key = jax.random.PRNGKey(0)
    pkey, xkey = jax.random.split(key)
    in_channels = 3
    params = init_params(pkey, in_channels=in_channels)
    # 32x32 input -> conv outputs 16 / 8 / 4 / 3 / 2 spatial (the k=4 stack
    # needs >=~32 to keep conv5's output non-empty, matching the PyTorch module).
    x = jax.random.normal(xkey, (2, in_channels, 32, 32), jnp.float32)

    fwd = jax.jit(functools.partial(discriminator_forward, use_sigmoid=True))
    outputs, feats = fwd(params, x)
    outputs = jax.block_until_ready(outputs)
    feats = [jax.block_until_ready(f) for f in feats]

    expected = [(2, 64, 16, 16), (2, 128, 8, 8), (2, 256, 4, 4),
                (2, 512, 3, 3), (2, 1, 2, 2)]
    assert outputs.shape == (2, 1, 2, 2), outputs.shape
    for f, s in zip(feats, expected):
        assert f.shape == s, (f.shape, s)
    assert bool(jnp.all(jnp.isfinite(outputs)))
    assert bool(jnp.all((outputs >= 0.0) & (outputs <= 1.0)))
    print("KERNEL_OK")
</pallas_src>

<mosaic_0001>
module attributes {stable_mosaic.version = 11 : i64} {
  func.func @_gemm_act_kernel_1k(%arg0: i32, %arg1: i32, %arg2: memref<128x128xbf16, #tpu.memory_space<vmem>>, %arg3: memref<128x128xbf16, #tpu.memory_space<vmem>>, %arg4: memref<128x128xf32, #tpu.memory_space<vmem>>) attributes {dimension_semantics = [#tpu.dimension_semantics<parallel>, #tpu.dimension_semantics<parallel>], iteration_bounds = array<i64: 4, 1>, scalar_prefetch = 0 : i64, scratch_operands = 0 : i64, tpu.core_type = #tpu.core_type<tc>, window_params = [{transform_indices = @transform_0, window_bounds = array<i64: 128, 128>}, {transform_indices = @transform_1, window_bounds = array<i64: 128, 128>}, {transform_indices = @transform_2, window_bounds = array<i64: 128, 128>}]} {
    %c0 = arith.constant 0 : index
    %c0_0 = arith.constant 0 : index
    %0 = vector.load %arg2[%c0, %c0_0] : memref<128x128xbf16, #tpu.memory_space<vmem>>, vector<128x128xbf16>
    %c0_1 = arith.constant 0 : index
    %c0_2 = arith.constant 0 : index
    %1 = vector.load %arg3[%c0_1, %c0_2] : memref<128x128xbf16, #tpu.memory_space<vmem>>, vector<128x128xbf16>
    %cst = arith.constant dense<0.000000e+00> : vector<128x128xf32>
    %2 = tpu.matmul %0, %1, %cst {dimension_numbers = #tpu.dot_dimension_numbers<[1], [0], [0], [1], [0, 0, 1, 1], [], []>} : vector<128x128xbf16>, vector<128x128xbf16>, vector<128x128xf32> -> vector<128x128xf32>
    %cst_3 = arith.constant 0.000000e+00 : f32
    %3 = vector.broadcast %cst_3 : f32 to vector<128x128xf32>
    %4 = arith.cmpf oge, %2, %3 : vector<128x128xf32>
    %cst_4 = arith.constant 2.000000e-01 : f32
    %5 = vector.broadcast %cst_4 : f32 to vector<128x128xf32>
    %6 = arith.mulf %5, %2 : vector<128x128xf32>
    %7 = arith.select %4, %2, %6 : vector<128x128xi1>, vector<128x128xf32>
    %c0_5 = arith.constant 0 : index
    %c0_6 = arith.constant 0 : index
    %8 = vector.load %arg4[%c0_5, %c0_6] : memref<128x128xf32, #tpu.memory_space<vmem>>, vector<128x128xf32>
    tpu.vector_store %arg4[%c0_5, %c0_6], %7 {strides = array<i32>} : memref<128x128xf32, #tpu.memory_space<vmem>>, vector<128x128xf32>,
    return
  }
  func.func @transform_0(%arg0: i32, %arg1: i32) -> (i32, i32) {
    %c0_i32 = arith.constant 0 : i32
    %c0_i32_0 = arith.constant 0 : i32
    return %arg0, %c0_i32 : i32, i32
  }
  func.func @transform_1(%arg0: i32, %arg1: i32) -> (i32, i32) {
    %c0_i32 = arith.constant 0 : i32
    %c0_i32_0 = arith.constant 0 : i32
    return %c0_i32, %arg1 : i32, i32
  }
  func.func @transform_2(%arg0: i32, %arg1: i32) -> (i32, i32) {
    %c0_i32 = arith.constant 0 : i32
    return %arg0, %arg1 : i32, i32
  }
}

module attributes {stable_mosaic.version = 11 : i64} {
  func.func @_gemm_act_kernel_1k(%arg0: i32, %arg1: i32, %arg2: memref<64x1024xbf16, #tpu.memory_space<vmem>>, %arg3: memref<1024x128xbf16, #tpu.memory_space<vmem>>, %arg4: memref<64x128xf32, #tpu.memory_space<vmem>>) attributes {dimension_semantics = [#tpu.dimension_semantics<parallel>, #tpu.dimension_semantics<parallel>], iteration_bounds = array<i64: 2, 1>, scalar_prefetch = 0 : i64, scratch_operands = 0 : i64, tpu.core_type = #tpu.core_type<tc>, window_params = [{transform_indices = @transform_0, window_bounds = array<i64: 64, 1024>}, {transform_indices = @transform_1, window_bounds = array<i64: 1024, 128>}, {transform_indices = @transform_2, window_bounds = array<i64: 64, 128>}]} {
    %c0 = arith.constant 0 : index
    %c0_0 = arith.constant 0 : index
    %0 = vector.load %arg2[%c0, %c0_0] : memref<64x1024xbf16, #tpu.memory_space<vmem>>, vector<64x1024xbf16>
    %c0_1 = arith.constant 0 : index
    %c0_2 = arith.constant 0 : index
    %1 = vector.load %arg3[%c0_1, %c0_2] : memref<1024x128xbf16, #tpu.memory_space<vmem>>, vector<1024x128xbf16>
    %cst = arith.constant dense<0.000000e+00> : vector<64x128xf32>
    %2 = tpu.matmul %0, %1, %cst {dimension_numbers = #tpu.dot_dimension_numbers<[1], [0], [0], [1], [0, 0, 1, 1], [], []>} : vector<64x1024xbf16>, vector<1024x128xbf16>, vector<64x128xf32> -> vector<64x128xf32>
    %cst_3 = arith.constant 0.000000e+00 : f32
    %3 = vector.broadcast %cst_3 : f32 to vector<64x128xf32>
    %4 = arith.cmpf oge, %2, %3 : vector<64x128xf32>
    %cst_4 = arith.constant 2.000000e-01 : f32
    %5 = vector.broadcast %cst_4 : f32 to vector<64x128xf32>
    %6 = arith.mulf %5, %2 : vector<64x128xf32>
    %7 = arith.select %4, %2, %6 : vector<64x128xi1>, vector<64x128xf32>
    %c0_5 = arith.constant 0 : index
    %c0_6 = arith.constant 0 : index
    %8 = vector.load %arg4[%c0_5, %c0_6] : memref<64x128xf32, #tpu.memory_space<vmem>>, vector<64x128xf32>
    tpu.vector_store %arg4[%c0_5, %c0_6], %7 {strides = array<i32>} : memref<64x128xf32, #tpu.memory_space<vmem>>, vector<64x128xf32>,
    return
  }
  func.func @transform_0(%arg0: i32, %arg1: i32) -> (i32, i32) {
    %c0_i32 = arith.constant 0 : i32
    %c0_i32_0 = arith.constant 0 : i32
    return %arg0, %c0_i32 : i32, i32
  }
  func.func @transform_1(%arg0: i32, %arg1: i32) -> (i32, i32) {
    %c0_i32 = arith.constant 0 : i32
    %c0_i32_0 = arith.constant 0 : i32
    return %c0_i32, %arg1 : i32, i32
  }
  func.func @transform_2(%arg0: i32, %arg1: i32) -> (i32, i32) {
    %c0_i32 = arith.constant 0 : i32
    return %arg0, %arg1 : i32, i32
  }
}

module attributes {stable_mosaic.version = 11 : i64} {
  func.func @_gemm_act_kernel_1k(%arg0: i32, %arg1: i32, %arg2: memref<32x2048xbf16, #tpu.memory_space<vmem>>, %arg3: memref<2048x128xbf16, #tpu.memory_space<vmem>>, %arg4: memref<32x128xf32, #tpu.memory_space<vmem>>) attributes {dimension_semantics = [#tpu.dimension_semantics<parallel>, #tpu.dimension_semantics<parallel>], iteration_bounds = array<i64: 1, 2>, scalar_prefetch = 0 : i64, scratch_operands = 0 : i64, tpu.core_type = #tpu.core_type<tc>, window_params = [{transform_indices = @transform_0, window_bounds = array<i64: 32, 2048>}, {transform_indices = @transform_1, window_bounds = array<i64: 2048, 128>}, {transform_indices = @transform_2, window_bounds = array<i64: 32, 128>}]} {
    %c0 = arith.constant 0 : index
    %c0_0 = arith.constant 0 : index
    %0 = vector.load %arg2[%c0, %c0_0] : memref<32x2048xbf16, #tpu.memory_space<vmem>>, vector<32x2048xbf16>
    %c0_1 = arith.constant 0 : index
    %c0_2 = arith.constant 0 : index
    %1 = vector.load %arg3[%c0_1, %c0_2] : memref<2048x128xbf16, #tpu.memory_space<vmem>>, vector<2048x128xbf16>
    %cst = arith.constant dense<0.000000e+00> : vector<32x128xf32>
    %2 = tpu.matmul %0, %1, %cst {dimension_numbers = #tpu.dot_dimension_numbers<[1], [0], [0], [1], [0, 0, 1, 1], [], []>} : vector<32x2048xbf16>, vector<2048x128xbf16>, vector<32x128xf32> -> vector<32x128xf32>
    %cst_3 = arith.constant 0.000000e+00 : f32
    %3 = vector.broadcast %cst_3 : f32 to vector<32x128xf32>
    %4 = arith.cmpf oge, %2, %3 : vector<32x128xf32>
    %cst_4 = arith.constant 2.000000e-01 : f32
    %5 = vector.broadcast %cst_4 : f32 to vector<32x128xf32>
    %6 = arith.mulf %5, %2 : vector<32x128xf32>
    %7 = arith.select %4, %2, %6 : vector<32x128xi1>, vector<32x128xf32>
    %c0_5 = arith.constant 0 : index
    %c0_6 = arith.constant 0 : index
    %8 = vector.load %arg4[%c0_5, %c0_6] : memref<32x128xf32, #tpu.memory_space<vmem>>, vector<32x128xf32>
    tpu.vector_store %arg4[%c0_5, %c0_6], %7 {strides = array<i32>} : memref<32x128xf32, #tpu.memory_space<vmem>>, vector<32x128xf32>,
    return
  }
  func.func @transform_0(%arg0: i32, %arg1: i32) -> (i32, i32) {
    %c0_i32 = arith.constant 0 : i32
    %c0_i32_0 = arith.constant 0 : i32
    return %arg0, %c0_i32 : i32, i32
  }
  func.func @transform_1(%arg0: i32, %arg1: i32) -> (i32, i32) {
    %c0_i32 = arith.constant 0 : i32
    %c0_i32_0 = arith.constant 0 : i32
    return %c0_i32, %arg1 : i32, i32
  }
  func.func @transform_2(%arg0: i32, %arg1: i32) -> (i32, i32) {
    %c0_i32 = arith.constant 0 : i32
    return %arg0, %arg1 : i32, i32
  }
}

module attributes {stable_mosaic.version = 11 : i64} {
  func.func @_gemm_act_kernel_1k(%arg0: i32, %arg1: i32, %arg2: memref<24x4096xbf16, #tpu.memory_space<vmem>>, %arg3: memref<4096x256xbf16, #tpu.memory_space<vmem>>, %arg4: memref<24x256xf32, #tpu.memory_space<vmem>>) attributes {dimension_semantics = [#tpu.dimension_semantics<parallel>, #tpu.dimension_semantics<parallel>], iteration_bounds = array<i64: 1, 2>, scalar_prefetch = 0 : i64, scratch_operands = 0 : i64, tpu.core_type = #tpu.core_type<tc>, window_params = [{transform_indices = @transform_0, window_bounds = array<i64: 24, 4096>}, {transform_indices = @transform_1, window_bounds = array<i64: 4096, 256>}, {transform_indices = @transform_2, window_bounds = array<i64: 24, 256>}]} {
    %c0 = arith.constant 0 : index
    %c0_0 = arith.constant 0 : index
    %0 = vector.load %arg2[%c0, %c0_0] : memref<24x4096xbf16, #tpu.memory_space<vmem>>, vector<24x4096xbf16>
    %c0_1 = arith.constant 0 : index
    %c0_2 = arith.constant 0 : index
    %1 = vector.load %arg3[%c0_1, %c0_2] : memref<4096x256xbf16, #tpu.memory_space<vmem>>, vector<4096x256xbf16>
    %cst = arith.constant dense<0.000000e+00> : vector<24x256xf32>
    %2 = tpu.matmul %0, %1, %cst {dimension_numbers = #tpu.dot_dimension_numbers<[1], [0], [0], [1], [0, 0, 1, 1], [], []>} : vector<24x4096xbf16>, vector<4096x256xbf16>, vector<24x256xf32> -> vector<24x256xf32>
    %cst_3 = arith.constant 0.000000e+00 : f32
    %3 = vector.broadcast %cst_3 : f32 to vector<24x256xf32>
    %4 = arith.cmpf oge, %2, %3 : vector<24x256xf32>
    %cst_4 = arith.constant 2.000000e-01 : f32
    %5 = vector.broadcast %cst_4 : f32 to vector<24x256xf32>
    %6 = arith.mulf %5, %2 : vector<24x256xf32>
    %7 = arith.select %4, %2, %6 : vector<24x256xi1>, vector<24x256xf32>
    %c0_5 = arith.constant 0 : index
    %c0_6 = arith.constant 0 : index
    %8 = vector.load %arg4[%c0_5, %c0_6] : memref<24x256xf32, #tpu.memory_space<vmem>>, vector<24x256xf32>
    tpu.vector_store %arg4[%c0_5, %c0_6], %7 {strides = array<i32>} : memref<24x256xf32, #tpu.memory_space<vmem>>, vector<24x256xf32>,
    return
  }
  func.func @transform_0(%arg0: i32, %arg1: i32) -> (i32, i32) {
    %c0_i32 = arith.constant 0 : i32
    %c0_i32_0 = arith.constant 0 : i32
    return %arg0, %c0_i32 : i32, i32
  }
  func.func @transform_1(%arg0: i32, %arg1: i32) -> (i32, i32) {
    %c0_i32 = arith.constant 0 : i32
    %c0_i32_0 = arith.constant 0 : i32
    return %c0_i32, %arg1 : i32, i32
  }
  func.func @transform_2(%arg0: i32, %arg1: i32) -> (i32, i32) {
    %c0_i32 = arith.constant 0 : i32
    return %arg0, %arg1 : i32, i32
  }
}

module attributes {stable_mosaic.version = 11 : i64} {
  func.func @_gemm_sigmoid_kernel_1k(%arg0: i32, %arg1: i32, %arg2: memref<8x8192xbf16, #tpu.memory_space<vmem>>, %arg3: memref<8192x8xbf16, #tpu.memory_space<vmem>>, %arg4: memref<8x8xf32, #tpu.memory_space<vmem>>, %arg5: memref<8x8xf32, #tpu.memory_space<vmem>>) attributes {dimension_semantics = [#tpu.dimension_semantics<parallel>, #tpu.dimension_semantics<parallel>], iteration_bounds = array<i64: 1, 1>, scalar_prefetch = 0 : i64, scratch_operands = 0 : i64, tpu.core_type = #tpu.core_type<tc>, window_params = [{transform_indices = @transform_0, window_bounds = array<i64: 8, 8192>}, {transform_indices = @transform_1, window_bounds = array<i64: 8192, 8>}, {transform_indices = @transform_2, window_bounds = array<i64: 8, 8>}, {transform_indices = @transform_3, window_bounds = array<i64: 8, 8>}]} {
    %c0 = arith.constant 0 : index
    %c0_0 = arith.constant 0 : index
    %0 = vector.load %arg2[%c0, %c0_0] : memref<8x8192xbf16, #tpu.memory_space<vmem>>, vector<8x8192xbf16>
    %c0_1 = arith.constant 0 : index
    %c0_2 = arith.constant 0 : index
    %1 = vector.load %arg3[%c0_1, %c0_2] : memref<8192x8xbf16, #tpu.memory_space<vmem>>, vector<8192x8xbf16>
    %cst = arith.constant dense<0.000000e+00> : vector<8x8xf32>
    %2 = tpu.matmul %0, %1, %cst {dimension_numbers = #tpu.dot_dimension_numbers<[1], [0], [0], [1], [0, 0, 1, 1], [], []>} : vector<8x8192xbf16>, vector<8192x8xbf16>, vector<8x8xf32> -> vector<8x8xf32>
    %c0_3 = arith.constant 0 : index
    %c0_4 = arith.constant 0 : index
    %3 = vector.load %arg4[%c0_3, %c0_4] : memref<8x8xf32, #tpu.memory_space<vmem>>, vector<8x8xf32>
    tpu.vector_store %arg4[%c0_3, %c0_4], %2 {strides = array<i32>} : memref<8x8xf32, #tpu.memory_space<vmem>>, vector<8x8xf32>,
    %4 = math.absf %2 : vector<8x8xf32>
    %cst_5 = arith.constant 0.000000e+00 : f32
    %5 = vector.broadcast %cst_5 : f32 to vector<8x8xf32>
    %6 = arith.subf %5, %4 : vector<8x8xf32>
    %7 = math.exp %6 : vector<8x8xf32>
    %cst_6 = arith.constant 0.000000e+00 : f32
    %8 = vector.broadcast %cst_6 : f32 to vector<8x8xf32>
    %9 = arith.cmpf oge, %2, %8 : vector<8x8xf32>
    %cst_7 = arith.constant 1.000000e+00 : f32
    %10 = vector.broadcast %cst_7 : f32 to vector<8x8xf32>
    %11 = arith.addf %10, %7 : vector<8x8xf32>
    %cst_8 = arith.constant 1.000000e+00 : f32
    %12 = vector.broadcast %cst_8 : f32 to vector<8x8xf32>
    %13 = arith.divf %12, %11 : vector<8x8xf32>
    %cst_9 = arith.constant 1.000000e+00 : f32
    %14 = vector.broadcast %cst_9 : f32 to vector<8x8xf32>
    %15 = arith.addf %14, %7 : vector<8x8xf32>
    %16 = arith.divf %7, %15 : vector<8x8xf32>
    %17 = arith.select %9, %13, %16 : vector<8x8xi1>, vector<8x8xf32>
    %c0_10 = arith.constant 0 : index
    %c0_11 = arith.constant 0 : index
    %18 = vector.load %arg5[%c0_10, %c0_11] : memref<8x8xf32, #tpu.memory_space<vmem>>, vector<8x8xf32>
    tpu.vector_store %arg5[%c0_10, %c0_11], %17 {strides = array<i32>} : memref<8x8xf32, #tpu.memory_space<vmem>>, vector<8x8xf32>,
    return
  }
  func.func @transform_0(%arg0: i32, %arg1: i32) -> (i32, i32) {
    %c0_i32 = arith.constant 0 : i32
    %c0_i32_0 = arith.constant 0 : i32
    return %arg0, %c0_i32 : i32, i32
  }
  func.func @transform_1(%arg0: i32, %arg1: i32) -> (i32, i32) {
    %c0_i32 = arith.constant 0 : i32
    %c0_i32_0 = arith.constant 0 : i32
    return %c0_i32, %arg1 : i32, i32
  }
  func.func @transform_2(%arg0: i32, %arg1: i32) -> (i32, i32) {
    %c0_i32 = arith.constant 0 : i32
    return %arg0, %arg1 : i32, i32
  }
  func.func @transform_3(%arg0: i32, %arg1: i32) -> (i32, i32) {
    %c0_i32 = arith.constant 0 : i32
    return %arg0, %arg1 : i32, i32
  }
}

</mosaic_0001>

<bundles_post_ra>
// kernel: discriminator_forward.5
= control target key start
LH: loop header
LB: loop body
LE: loop exit
PB: predicated region body
PF: predicated region fallthrough
CT: control target
= control target key end

     0   :  { %s735_s9 = smov 0   ;;  %s737_s10 = smov 0   ;;  %s824_s0 = inlined_call_operand.vmem [shape: bf16[512,128], index: 0, kind: input, shape index: {}]   ;;  %s825_s1 = inlined_call_operand.vmem [shape: bf16[128,128], index: 1, kind: input, shape index: {}]   ;;  %s826_s2 = inlined_call_operand.vmem [shape: f32[512,128], index: 2, kind: output, shape index: {}]  }
   0x1   :  { %s739_s11 = smov 0  }
   0x2 LB: > { %s24_s12 = sadd.s32 1, %s714_s10  ;;  %p569_p0 = scmp.ge.s32.totalorder %s718_s11, 1  ;;  %s718_s11 = sphi %s739_s11, %s12_s11   ;;  %s714_s10 = sphi %s737_s10, %s828_s10   ;;  %s710_s9 = sphi %s735_s9, %s827_s9  }
   0x3   : > { %p26_p1 = scmp.ge.s32.totalorder %s24_s12, 4  ;;  %p136_p2 = scmp.lt.s32.totalorder %s718_s11, 5 }
   0x5   : > { %s830_s12 = smov (%p26_p1, %s24_s12), 0  ;;  %p137_p3 = pnand %p569_p0, %p136_p2 }
   0x6   : > { %v680_v0 = vld [vmem:[%s825_s1] sm:$0xff] (!%p137_p3)   ;;  %s570_s15 = sshll.u32 (!%p137_p3), %s710_s9, 4  ;;  %v681_v1 = vld [vmem:[%s825_s1 + $0x8] sm:$0xff] (!%p137_p3)   ;;  %v682_v2 = vld [vmem:[%s825_s1 + $0x10] sm:$0xff] (!%p137_p3)  }
   0x7   : > { %140 = sbr.rel (%p137_p3) target bundleno = 269 (0x10d), region = 28  ;;  %p166_p4 = scmp.lt.s32.totalorder (!%p137_p3), %s570_s15, 63  ;;  %608 = vmatprep.subr.bf16.mxu0 (!%p137_p3), %v680_v0  ;;  %640 = vmatprep.subr.bf16.mxu1 (!%p137_p3), %v680_v0  ;;  %v683_v3 = vld [vmem:[%s825_s1 + $0x18] sm:$0xff] (!%p137_p3)   ;;  %v684_v6 = vld [vmem:[%s825_s1 + $0x20] sm:$0xff] (!%p137_p3)   ;;  %v685_v7 = vld [vmem:[%s825_s1 + $0x28] sm:$0xff] (!%p137_p3)  }
   0x8   : > { %609 = vmatpush3.bf16.msra.mxu0 (!%p137_p3), %v680_v0  ;;  %648 = vmatpush3.bf16.msra.mxu1 (!%p137_p3), %v680_v0  ;;  %v686_v8 = vld [vmem:[%s825_s1 + $0x30] sm:$0xff] (!%p137_p3)   ;;  %v687_v9 = vld [vmem:[%s825_s1 + $0x38] sm:$0xff] (!%p137_p3)  }
   0x9   : > { %610 = vmatprep.subr.bf16.mxu0 (!%p137_p3), %v681_v1  ;;  %641 = vmatprep.subr.bf16.mxu1 (!%p137_p3), %v681_v1 }
   0xc   : > { %611 = vmatpush3.bf16.msra.mxu0 (!%p137_p3), %v681_v1  ;;  %649 = vmatpush3.bf16.msra.mxu1 (!%p137_p3), %v681_v1 }
   0xd   : > { %612 = vmatprep.subr.bf16.mxu0 (!%p137_p3), %v682_v2  ;;  %642 = vmatprep.subr.bf16.mxu1 (!%p137_p3), %v682_v2 }
   0xe   : > { %s832_s15 = smov (!%p166_p4, %s570_s15), 63 }
   0xf   : > { %s571_s20 = sshll.u32 %s832_s15, 2  ;;  %s573_s6 = sshll.u32 %s832_s15, 3 }
  0x10   : > { %s768_s23 = scalar_lea.vmem %s824_s0, %s571_s20  ;;  %613 = vmatpush3.bf16.msra.mxu0 %v682_v2  ;;  %650 = vmatpush3.bf16.msra.mxu1 %v682_v2  ;;  %s797_s9 = scalar_lea.vmem %s826_s2, %s573_s6 }
  0x11   : > { %v688_v4 = vld [vmem:[%s768_s23] sm:$0xff]   ;;  %614 = vmatprep.subr.bf16.mxu0 %v683_v3  ;;  %643 = vmatprep.subr.bf16.mxu1 %v683_v3  ;;  %v690_v10 = vld [vmem:[%s768_s23 + $0x8] sm:$0xff]   ;;  %v692_v12 = vld [vmem:[%s768_s23 + $0x10] sm:$0xff]  }
  0x12   : > { %v689_v5 = vld [vmem:[%s768_s23 + $0x20] sm:$0xff]   ;;  %624 = vmatprep.mubr.bf16.mxu0 %v688_v4  ;;  %v691_v11 = vld [vmem:[%s768_s23 + $0x28] sm:$0xff]   ;;  %v693_v13 = vld [vmem:[%s768_s23 + $0x30] sm:$0xff]  }
  0x13   : > { %632 = vmatprep.mubr.bf16.mxu1 %v689_v5  ;;  %v694_v14 = vld [vmem:[%s768_s23 + $0x18] sm:$0xff]  }
  0x14   : > { %615 = vmatpush3.bf16.msra.mxu0 %v683_v3  ;;  %651 = vmatpush3.bf16.msra.mxu1 %v683_v3  ;;  %v695_v15 = vld [vmem:[%s768_s23 + $0x38] sm:$0xff]  }
  0x15   : > { %616 = vmatprep.subr.bf16.mxu0 %v684_v6  ;;  %644 = vmatprep.subr.bf16.mxu1 %v684_v6 }
  0x18   : > { %617 = vmatpush3.bf16.msra.mxu0 %v684_v6  ;;  %652 = vmatpush3.bf16.msra.mxu1 %v684_v6 }
  0x19   : > { %618 = vmatprep.subr.bf16.mxu0 %v685_v7  ;;  %645 = vmatprep.subr.bf16.mxu1 %v685_v7 }
  0x1c   : > { %619 = vmatpush3.bf16.msra.mxu0 %v685_v7  ;;  %653 = vmatpush3.bf16.msra.mxu1 %v685_v7 }
  0x1d   : > { %620 = vmatprep.subr.bf16.mxu0 %v686_v8  ;;  %646 = vmatprep.subr.bf16.mxu1 %v686_v8 }
  0x20   : > { %621 = vmatpush3.bf16.msra.mxu0 %v686_v8  ;;  %654 = vmatpush3.bf16.msra.mxu1 %v686_v8 }
  0x21   : > { %622 = vmatprep.subr.bf16.mxu0 %v687_v9  ;;  %647 = vmatprep.subr.bf16.mxu1 %v687_v9 }
  0x24   : > { %623 = vmatpush3.bf16.msra.mxu0 %v687_v9  ;;  %655 = vmatpush3.bf16.msra.mxu1 %v687_v9 }
  0x27   : > { %625 = vmatmul.mubr.bf16.vlgmr.msra.gmra.mrb[0].mxu0 %v690_v10  ;;  %633 = vmatmul.mubr.bf16.vlgmr.msra.gmra.mrb[0].mxu1 %v691_v11 }
  0x28   : > { %628 = vmatprep.mubr.bf16.mxu0 %v692_v12  ;;  %636 = vmatprep.mubr.bf16.mxu1 %v693_v13 }
  0x2f   : > { %629 = vmatmul.mubr.bf16.gmra.mrb[4].mxu0 %v694_v14  ;;  %637 = vmatmul.mubr.bf16.gmra.mrb[4].mxu1 %v695_v15 }
  0xfa   : > { %v626_v16 = vpop.f32.mrb[0].mxu0  ;;  %v634_v17 = vpop.f32.mrb[0].mxu1 }
  0xfb   : > { %vm412_vm0 = vcmp.ge.f32.partialorder %v626_v16, 0.0  ;;  %v428_v18 = vmul.f32 0.2, %v626_v16  ;;  %vm420_vm1 = vcmp.ge.f32.partialorder %v634_v17, 0.0  ;;  %v436_v19 = vmul.f32 0.2, %v634_v17 }
  0xfc   : > { %v347_v20 = vpop.f32.mrb[1].mxu0  ;;  %v379_v21 = vpop.f32.mrb[1].mxu1 }
  0xfd   : > { %v444_v22 = vsel %vm412_vm0, %v626_v16, %v428_v18  ;;  %v452_v23 = vsel %vm420_vm1, %v634_v17, %v436_v19  ;;  %vm410_vm2 = vcmp.ge.f32.partialorder %v347_v20, 0.0  ;;  %v426_v24 = vmul.f32 0.2, %v347_v20  ;;  %v627_v25 = vpop.f32.mrb[2].mxu0  ;;  %v635_v26 = vpop.f32.mrb[2].mxu1 }
  0xfe   : > { %460 = vst [vmem:[%s797_s9 + $0x10] sm:$0xff] %v444_v22  ;;  %468 = vst [vmem:[%s797_s9 + $0x50] sm:$0xff] %v452_v23  ;;  %vm418_vm3 = vcmp.ge.f32.partialorder %v379_v21, 0.0  ;;  %v434_v27 = vmul.f32 0.2, %v379_v21  ;;  %vm413_vm4 = vcmp.ge.f32.partialorder %v627_v25, 0.0 }
  0xff   : > { %v429_v28 = vmul.f32 0.2, %v627_v25  ;;  %v442_v29 = vsel %vm410_vm2, %v347_v20, %v426_v24  ;;  %vm421_vm5 = vcmp.ge.f32.partialorder %v635_v26, 0.0  ;;  %v437_v30 = vmul.f32 0.2, %v635_v26  ;;  %v350_v31 = vpop.f32.mrb[3].mxu0 }
 0x100   : > { %v382_v32 = vpop.f32.mrb[3].mxu1  ;;  %458 = vst [vmem:[%s797_s9] sm:$0xff] %v442_v29  ;;  %v450_v33 = vsel %vm418_vm3, %v379_v21, %v434_v27  ;;  %vm411_vm6 = vcmp.ge.f32.partialorder %v350_v31, 0.0  ;;  %v427_v35 = vmul.f32 0.2, %v350_v31 }
 0x101   : > { %v445_v34 = vsel %vm413_vm4, %v627_v25, %v429_v28  ;;  %466 = vst [vmem:[%s797_s9 + $0x40] sm:$0xff] %v450_v33  ;;  %v453_v36 = vsel %vm421_vm5, %v635_v26, %v437_v30  ;;  %vm419_vm7 = vcmp.ge.f32.partialorder %v382_v32, 0.0  ;;  %v435_v37 = vmul.f32 0.2, %v382_v32 }
 0x102   : > { %461 = vst [vmem:[%s797_s9 + $0x18] sm:$0xff] %v445_v34  ;;  %469 = vst [vmem:[%s797_s9 + $0x58] sm:$0xff] %v453_v36  ;;  %v443_v38 = vsel %vm411_vm6, %v350_v31, %v427_v35  ;;  %v630_v39 = vpop.f32.mrb[4].mxu0  ;;  %v638_v40 = vpop.f32.mrb[4].mxu1 }
 0x103   : > { %459 = vst [vmem:[%s797_s9 + $0x8] sm:$0xff] %v443_v38  ;;  %v451_v41 = vsel %vm419_vm7, %v382_v32, %v435_v37  ;;  %vm416_vm8 = vcmp.ge.f32.partialorder %v630_v39, 0.0  ;;  %v432_v42 = vmul.f32 0.2, %v630_v39  ;;  %vm424_vm9 = vcmp.ge.f32.partialorder %v638_v40, 0.0  ;;  %v363_v43 = vpop.f32.mrb[5].mxu0 }
 0x104   : > { %v395_v44 = vpop.f32.mrb[5].mxu1  ;;  %467 = vst [vmem:[%s797_s9 + $0x48] sm:$0xff] %v451_v41  ;;  %v440_v45 = vmul.f32 0.2, %v638_v40  ;;  %vm414_vm10 = vcmp.ge.f32.partialorder %v363_v43, 0.0  ;;  %v631_v49 = vpop.f32.mrb[6].mxu0 }
 0x105   : > { %v430_v46 = vmul.f32 0.2, %v363_v43  ;;  %vm422_vm11 = vcmp.ge.f32.partialorder %v395_v44, 0.0  ;;  %v448_v47 = vsel %vm416_vm8, %v630_v39, %v432_v42  ;;  %v438_v48 = vmul.f32 0.2, %v395_v44  ;;  %v639_v50 = vpop.f32.mrb[6].mxu1 }
 0x106   : > { %464 = vst [vmem:[%s797_s9 + $0x30] sm:$0xff] %v448_v47  ;;  %v456_v51 = vsel %vm424_vm9, %v638_v40, %v440_v45  ;;  %vm417_vm12 = vcmp.ge.f32.partialorder %v631_v49, 0.0  ;;  %v433_v53 = vmul.f32 0.2, %v631_v49  ;;  %v366_v54 = vpop.f32.mrb[7].mxu0  ;;  %v398_v55 = vpop.f32.mrb[7].mxu1 }
 0x107   : > { %v446_v52 = vsel %vm414_vm10, %v363_v43, %v430_v46  ;;  %472 = vst [vmem:[%s797_s9 + $0x70] sm:$0xff] %v456_v51  ;;  %v454_v56 = vsel %vm422_vm11, %v395_v44, %v438_v48  ;;  %vm425_vm13 = vcmp.ge.f32.partialorder %v639_v50, 0.0  ;;  %v441_v57 = vmul.f32 0.2, %v639_v50 }
 0x108   : > { %462 = vst [vmem:[%s797_s9 + $0x20] sm:$0xff] %v446_v52  ;;  %vm415_vm14 = vcmp.ge.f32.partialorder %v366_v54, 0.0  ;;  %470 = vst [vmem:[%s797_s9 + $0x60] sm:$0xff] %v454_v56  ;;  %v449_v58 = vsel %vm417_vm12, %v631_v49, %v433_v53  ;;  %v431_v59 = vmul.f32 0.2, %v366_v54  ;;  %vm423_vm15 = vcmp.ge.f32.partialorder %v398_v55, 0.0 }
 0x109   : > { %v439_v60 = vmul.f32 0.2, %v398_v55  ;;  %465 = vst [vmem:[%s797_s9 + $0x38] sm:$0xff] %v449_v58  ;;  %v457_v61 = vsel %vm425_vm13, %v639_v50, %v441_v57 }
 0x10a   : > { %473 = vst [vmem:[%s797_s9 + $0x78] sm:$0xff] %v457_v61  ;;  %v447_v62 = vsel %vm415_vm14, %v366_v54, %v431_v59 }
 0x10b   : > { %v455_v63 = vsel %vm423_vm15, %v398_v55, %v439_v60  ;;  %463 = vst [vmem:[%s797_s9 + $0x28] sm:$0xff] %v447_v62 }
 0x10c   : > { %471 = vst [vmem:[%s797_s9 + $0x68] sm:$0xff] %v455_v63 }
 0x10d PF: > { %s12_s11 = sadd.s32 1, %s718_s11   ;;  %s827_s9 = smov %s714_s10 }
 0x10e   : > { %p9_p5 = scmp.ge.s32.totalorder %s12_s11, 6   ;;  %s828_s10 = smov %s830_s12 }
 0x110   :  { %11 = sbr.rel (!%p9_p5) target bundleno = 2 (0x2), region = 61 }

// kernel: discriminator_forward.6
= control target key start
LH: loop header
LB: loop body
LE: loop exit
PB: predicated region body
PF: predicated region fallthrough
CT: control target
= control target key end

     0   :  { %s1671_s9 = smov 0   ;;  %s1673_s10 = smov 0   ;;  %s1965_s0 = inlined_call_operand.vmem [shape: bf16[128,1024], index: 0, kind: input, shape index: {}]   ;;  %s1966_s1 = inlined_call_operand.vmem [shape: bf16[1024,128], index: 1, kind: input, shape index: {}]   ;;  %s1967_s2 = inlined_call_operand.vmem [shape: f32[128,128], index: 2, kind: output, shape index: {}]  }
   0x1   :  { %s1675_s11 = smov 0  }
   0x2 LB: > { %s24_s12 = sadd.s32 1, %s1650_s10  ;;  %p1279_p0 = scmp.ge.s32.totalorder %s1654_s11, 1  ;;  %s1654_s11 = sphi %s1675_s11, %s12_s11   ;;  %s1650_s10 = sphi %s1673_s10, %s1969_s10   ;;  %s1646_s9 = sphi %s1671_s9, %s1968_s9  }
   0x3   : > { %p26_p1 = scmp.ge.s32.totalorder %s24_s12, 2  ;;  %p137_p2 = scmp.lt.s32.totalorder %s1654_s11, 3 }
   0x5   : > { %s1971_s12 = smov (%p26_p1, %s24_s12), 0  ;;  %p138_p3 = pnand %p1279_p0, %p137_p2 }
   0x6   : > { %v1568_v0 = vld [vmem:[%s1966_s1 + $0x40] sm:$0xff] (!%p138_p3)   ;;  %v1572_v4 = vld [vmem:[%s1966_s1 + $0x48] sm:$0xff] (!%p138_p3)   ;;  %v1576_v8 = vld [vmem:[%s1966_s1 + $0x50] sm:$0xff] (!%p138_p3)   ;;  %s1280_s21 = sshll.u32 (!%p138_p3), %s1646_s9, 3 }
   0x7   : > { %141 = sbr.rel (%p138_p3) target bundleno = 321 (0x141), region = 28  ;;  %v1569_v1 = vld [vmem:[%s1966_s1 + $0xc0] sm:$0xff] (!%p138_p3)   ;;  %1384 = vmatprep.subr.bf16.mxu0 (!%p138_p3), %v1568_v0  ;;  %v1573_v5 = vld [vmem:[%s1966_s1 + $0xc8] sm:$0xff] (!%p138_p3)   ;;  %v1577_v9 = vld [vmem:[%s1966_s1 + $0xd0] sm:$0xff] (!%p138_p3)   ;;  %p168_p4 = scmp.lt.s32.totalorder (!%p138_p3), %s1280_s21, 15 }
   0x8   : > { %v1570_v2 = vld [vmem:[%s1966_s1] sm:$0xff] (!%p138_p3)   ;;  %1424 = vmatprep.subr.bf16.mxu1 (!%p138_p3), %v1569_v1  ;;  %v1574_v6 = vld [vmem:[%s1966_s1 + $0x8] sm:$0xff] (!%p138_p3)   ;;  %v1578_v10 = vld [vmem:[%s1966_s1 + $0x10] sm:$0xff] (!%p138_p3)  }
   0x9   : > { %v1571_v3 = vld [vmem:[%s1966_s1 + $0x80] sm:$0xff] (!%p138_p3)   ;;  %1385 = vmatpush3.bf16.msra.mxu0 (!%p138_p3), %v1570_v2  ;;  %v1575_v7 = vld [vmem:[%s1966_s1 + $0x88] sm:$0xff] (!%p138_p3)   ;;  %v1579_v11 = vld [vmem:[%s1966_s1 + $0x90] sm:$0xff] (!%p138_p3)  }
   0xa   : > { %1425 = vmatpush3.bf16.msra.mxu1 (!%p138_p3), %v1571_v3  ;;  %1386 = vmatprep.subr.bf16.mxu0 (!%p138_p3), %v1572_v4  ;;  %v1580_v12 = vld [vmem:[%s1966_s1 + $0x58] sm:$0xff] (!%p138_p3)   ;;  %v1584_v16 = vld [vmem:[%s1966_s1 + $0x60] sm:$0xff] (!%p138_p3)   ;;  %v1588_v20 = vld [vmem:[%s1966_s1 + $0x68] sm:$0xff] (!%p138_p3)  }
   0xb   : > { %1426 = vmatprep.subr.bf16.mxu1 (!%p138_p3), %v1573_v5  ;;  %v1581_v13 = vld [vmem:[%s1966_s1 + $0xd8] sm:$0xff] (!%p138_p3)   ;;  %v1585_v17 = vld [vmem:[%s1966_s1 + $0xe0] sm:$0xff] (!%p138_p3)   ;;  %v1589_v21 = vld [vmem:[%s1966_s1 + $0xe8] sm:$0xff] (!%p138_p3)  }
   0xc   : > { %v1582_v14 = vld [vmem:[%s1966_s1 + $0x18] sm:$0xff] (!%p138_p3)   ;;  %v1586_v18 = vld [vmem:[%s1966_s1 + $0x20] sm:$0xff] (!%p138_p3)   ;;  %v1590_v22 = vld [vmem:[%s1966_s1 + $0x28] sm:$0xff] (!%p138_p3)  }
   0xd   : > { %1387 = vmatpush3.bf16.msra.mxu0 (!%p138_p3), %v1574_v6  ;;  %v1583_v15 = vld [vmem:[%s1966_s1 + $0x98] sm:$0xff] (!%p138_p3)   ;;  %v1587_v19 = vld [vmem:[%s1966_s1 + $0xa0] sm:$0xff] (!%p138_p3)   ;;  %v1591_v23 = vld [vmem:[%s1966_s1 + $0xa8] sm:$0xff] (!%p138_p3)  }
   0xe   : > { %1427 = vmatpush3.bf16.msra.mxu1 %v1575_v7  ;;  %1388 = vmatprep.subr.bf16.mxu0 %v1576_v8  ;;  %s1973_s21 = smov (!%p168_p4, %s1280_s21), 15  ;;  %v1592_v24 = vld [vmem:[%s1966_s1 + $0x70] sm:$0xff]   ;;  %v1596_v28 = vld [vmem:[%s1966_s1 + $0x78] sm:$0xff]   ;;  %v1600_v40 = vld [vmem:[%s1966_s1 + $0x140] sm:$0xff]  }
   0xf   : > { %1428 = vmatprep.subr.bf16.mxu1 %v1577_v9  ;;  %v1593_v25 = vld [vmem:[%s1966_s1 + $0xf0] sm:$0xff]   ;;  %s1383_s19 = sshll.u32 %s1973_s21, 5  ;;  %v1597_v29 = vld [vmem:[%s1966_s1 + $0xf8] sm:$0xff]   ;;  %v1601_v41 = vld [vmem:[%s1966_s1 + $0x1c0] sm:$0xff]  }
  0x10   : > { %v1594_v26 = vld [vmem:[%s1966_s1 + $0x30] sm:$0xff]   ;;  %s1788_s29 = scalar_lea.vmem %s1965_s0, %s1383_s19  ;;  %v1598_v30 = vld [vmem:[%s1966_s1 + $0x38] sm:$0xff]   ;;  %v1602_v42 = vld [vmem:[%s1966_s1 + $0x100] sm:$0xff]  }
  0x11   : > { %1389 = vmatpush3.bf16.msra.mxu0 %v1578_v10  ;;  %v1595_v27 = vld [vmem:[%s1966_s1 + $0xb0] sm:$0xff]   ;;  %v1599_v31 = vld [vmem:[%s1966_s1 + $0xb8] sm:$0xff]   ;;  %v188_v32 = vld [vmem:[%s1788_s29] sm:$0xff] }
  0x12   : > { %1429 = vmatpush3.bf16.msra.mxu1 %v1579_v11  ;;  %1390 = vmatprep.subr.bf16.mxu0 %v1580_v12  ;;  %v192_v33 = vld [vmem:[%s1788_s29 + $0x20] sm:$0xff]  ;;  %v189_v34 = vld [vmem:[%s1788_s29 + $0x8] sm:$0xff]  ;;  %v1608_v56 = vld [vmem:[%s1966_s1 + $0x150] sm:$0xff]  }
  0x13   : > { %1430 = vmatprep.subr.bf16.mxu1 %v1581_v13  ;;  %v1285_v35 = vcombine.low %v188_v32, %v192_v33  ;;  %v1286_v36 = vcombine.high %v188_v32, %v192_v33  ;;  %v193_v37 = vld [vmem:[%s1788_s29 + $0x28] sm:$0xff]  ;;  %v1603_v43 = vld [vmem:[%s1966_s1 + $0x180] sm:$0xff]   ;;  %v1609_v57 = vld [vmem:[%s1966_s1 + $0x1d0] sm:$0xff]  }
  0x14   : > { %v1287_v38 = vcombine.low %v189_v34, %v193_v37  ;;  %v1288_v39 = vcombine.high %v189_v34, %v193_v37  ;;  %v1604_v44 = vld [vmem:[%s1966_s1 + $0x148] sm:$0xff]   ;;  %v196_v48 = vld [vmem:[%s1788_s29 + $0x40] sm:$0xff]  ;;  %v1610_v58 = vld [vmem:[%s1966_s1 + $0x110] sm:$0xff]  }
  0x15   : > { %1391 = vmatpush3.bf16.msra.mxu0 %v1582_v14  ;;  %924 = vmatprep.mubr.bf16.mxu0 %v1286_v36  ;;  %v1605_v45 = vld [vmem:[%s1966_s1 + $0x1c8] sm:$0xff]   ;;  %v200_v49 = vld [vmem:[%s1788_s29 + $0x60] sm:$0xff]  ;;  %v1611_v59 = vld [vmem:[%s1966_s1 + $0x190] sm:$0xff]  }
  0x16   : > { %1431 = vmatpush3.bf16.msra.mxu1 %v1583_v15  ;;  %1392 = vmatprep.subr.bf16.mxu0 %v1584_v16  ;;  %v1606_v46 = vld [vmem:[%s1966_s1 + $0x108] sm:$0xff]   ;;  %v1294_v50 = vcombine.high %v196_v48, %v200_v49  ;;  %v1293_v53 = vcombine.low %v196_v48, %v200_v49  ;;  %v1612_v60 = vld [vmem:[%s1966_s1 + $0x158] sm:$0xff]   ;;  %v204_v0 = vld [vmem:[%s1788_s29 + $0x80] sm:$0xff] }
  0x17   : > { %1432 = vmatprep.subr.bf16.mxu1 %v1585_v17  ;;  %989 = vmatprep.mubr.bf16.mxu1 %v1288_v39  ;;  %v1607_v47 = vld [vmem:[%s1966_s1 + $0x188] sm:$0xff]   ;;  %v1613_v61 = vld [vmem:[%s1966_s1 + $0x1d8] sm:$0xff]   ;;  %v208_v1 = vld [vmem:[%s1788_s29 + $0xa0] sm:$0xff] }
  0x18   : > { %v197_v51 = vld [vmem:[%s1788_s29 + $0x48] sm:$0xff]  ;;  %v1614_v62 = vld [vmem:[%s1966_s1 + $0x118] sm:$0xff]   ;;  %v1302_v4 = vcombine.high %v204_v0, %v208_v1  ;;  %v1301_v6 = vcombine.low %v204_v0, %v208_v1  ;;  %v1616_v8 = vld [vmem:[%s1966_s1 + $0x160] sm:$0xff]  }
  0x19   : > { %1393 = vmatpush3.bf16.msra.mxu0 %v1586_v18  ;;  %v201_v52 = vld [vmem:[%s1788_s29 + $0x68] sm:$0xff]  ;;  %v1615_v63 = vld [vmem:[%s1966_s1 + $0x198] sm:$0xff]   ;;  %v1617_v9 = vld [vmem:[%s1966_s1 + $0x1e0] sm:$0xff]  }
  0x1a   : > { %1433 = vmatpush3.bf16.msra.mxu1 %v1587_v19  ;;  %1394 = vmatprep.subr.bf16.mxu0 %v1588_v20  ;;  %v1296_v54 = vcombine.high %v197_v51, %v201_v52  ;;  %v1295_v55 = vcombine.low %v197_v51, %v201_v52  ;;  %v205_v2 = vld [vmem:[%s1788_s29 + $0x88] sm:$0xff]  ;;  %v1618_v10 = vld [vmem:[%s1966_s1 + $0x120] sm:$0xff]   ;;  %v190_v32 = vld [vmem:[%s1788_s29 + $0x10] sm:$0xff] }
  0x1b   : > { %1434 = vmatprep.subr.bf16.mxu1 %v1589_v21  ;;  %v209_v3 = vld [vmem:[%s1788_s29 + $0xa8] sm:$0xff]  ;;  %v1619_v11 = vld [vmem:[%s1966_s1 + $0x1a0] sm:$0xff]   ;;  %v194_v33 = vld [vmem:[%s1788_s29 + $0x30] sm:$0xff] }
  0x1c   : > { %v1304_v5 = vcombine.high %v205_v2, %v209_v3  ;;  %v1303_v7 = vcombine.low %v205_v2, %v209_v3  ;;  %v1620_v12 = vld [vmem:[%s1966_s1 + $0x168] sm:$0xff]   ;;  %v212_v16 = vld [vmem:[%s1788_s29 + $0xc0] sm:$0xff]  ;;  %v1289_v34 = vcombine.low %v190_v32, %v194_v33  ;;  %v191_v36 = vld [vmem:[%s1788_s29 + $0x18] sm:$0xff] }
  0x1d   : > { %1395 = vmatpush3.bf16.msra.mxu0 %v1590_v22  ;;  %v1621_v13 = vld [vmem:[%s1966_s1 + $0x1e8] sm:$0xff]   ;;  %v216_v17 = vld [vmem:[%s1788_s29 + $0xe0] sm:$0xff]  ;;  %v195_v37 = vld [vmem:[%s1788_s29 + $0x38] sm:$0xff] }
  0x1e   : > { %1435 = vmatpush3.bf16.msra.mxu1 %v1591_v23  ;;  %1396 = vmatprep.subr.bf16.mxu0 %v1592_v24  ;;  %v1622_v14 = vld [vmem:[%s1966_s1 + $0x128] sm:$0xff]   ;;  %v1310_v19 = vcombine.high %v212_v16, %v216_v17  ;;  %v1309_v21 = vcombine.low %v212_v16, %v216_v17  ;;  %v1624_v24 = vld [vmem:[%s1966_s1 + $0x170] sm:$0xff]   ;;  %v1291_v39 = vcombine.low %v191_v36, %v195_v37  ;;  %v207_v48 = vld [vmem:[%s1788_s29 + $0x98] sm:$0xff] }
  0x1f   : > { %1436 = vmatprep.subr.bf16.mxu1 %v1593_v25  ;;  %v1623_v15 = vld [vmem:[%s1966_s1 + $0x1a8] sm:$0xff]   ;;  %v1625_v25 = vld [vmem:[%s1966_s1 + $0x1f0] sm:$0xff]   ;;  %v211_v49 = vld [vmem:[%s1788_s29 + $0xb8] sm:$0xff] }
  0x20   : > { %v213_v18 = vld [vmem:[%s1788_s29 + $0xc8] sm:$0xff] }
  0x21   : > { %1397 = vmatpush3.bf16.msra.mxu0 %v1594_v26  ;;  %v217_v20 = vld [vmem:[%s1788_s29 + $0xe8] sm:$0xff]  ;;  %v1626_v26 = vld [vmem:[%s1966_s1 + $0x130] sm:$0xff]  }
  0x22   : > { %1437 = vmatpush3.bf16.msra.mxu1 %v1595_v27  ;;  %1398 = vmatprep.subr.bf16.mxu0 %v1596_v28  ;;  %v1312_v22 = vcombine.high %v213_v18, %v217_v20  ;;  %v1311_v23 = vcombine.low %v213_v18, %v217_v20  ;;  %v1627_v27 = vld [vmem:[%s1966_s1 + $0x1b0] sm:$0xff]   ;;  %v1628_v28 = vld [vmem:[%s1966_s1 + $0x178] sm:$0xff]  }
  0x23   : > { %1438 = vmatprep.subr.bf16.mxu1 %v1597_v29  ;;  %v1629_v29 = vld [vmem:[%s1966_s1 + $0x1f8] sm:$0xff]  }
  0x25   : > { %1399 = vmatpush3.bf16.msra.mxu0 %v1598_v30  ;;  %v1630_v30 = vld [vmem:[%s1966_s1 + $0x138] sm:$0xff]  }
  0x26   : > { %1439 = vmatpush3.bf16.msra.mxu1 %v1599_v31  ;;  %1464 = vmatprep.subr.bf16.mxu0 %v1600_v40  ;;  %v1631_v31 = vld [vmem:[%s1966_s1 + $0x1b8] sm:$0xff]   ;;  %v1292_v40 = vcombine.high %v191_v36, %v195_v37 }
  0x27   : > { %1504 = vmatprep.subr.bf16.mxu1 %v1601_v41  ;;  %v202_v41 = vld [vmem:[%s1788_s29 + $0x70] sm:$0xff] }
  0x28   : > { %925 = vmatmul.mubr.bf16.vlgmr.msra.gmra.mrb[0].mxu0 %v1285_v35  ;;  %v1290_v35 = vcombine.high %v190_v32, %v194_v33 }
  0x29   : > { %990 = vmatmul.mubr.bf16.vlgmr.msra.gmra.mrb[0].mxu1 %v1287_v38  ;;  %1465 = vmatpush3.bf16.msra.mxu0 %v1602_v42  ;;  %v198_v38 = vld [vmem:[%s1788_s29 + $0x50] sm:$0xff]  ;;  %v199_v42 = vld [vmem:[%s1788_s29 + $0x58] sm:$0xff] }
  0x2a   : > { %1505 = vmatpush3.bf16.msra.mxu1 %v1603_v43  ;;  %1466 = vmatprep.subr.bf16.mxu0 %v1604_v44  ;;  %v203_v43 = vld [vmem:[%s1788_s29 + $0x78] sm:$0xff]  ;;  %v1298_v44 = vcombine.high %v198_v38, %v202_v41 }
  0x2b   : > { %1506 = vmatprep.subr.bf16.mxu1 %v1605_v45  ;;  %932 = vmatprep.mubr.bf16.mxu0 %v1294_v50  ;;  %v1300_v45 = vcombine.high %v199_v42, %v203_v43  ;;  %v1297_v50 = vcombine.low %v198_v38, %v202_v41  ;;  %v1299_v51 = vcombine.low %v199_v42, %v203_v43 }
  0x2c   : > { %997 = vmatprep.mubr.bf16.mxu1 %v1296_v54  ;;  %v214_v54 = vld [vmem:[%s1788_s29 + $0xd0] sm:$0xff] }
  0x2d   : > { %1467 = vmatpush3.bf16.msra.mxu0 %v1606_v46  ;;  %v206_v46 = vld [vmem:[%s1788_s29 + $0x90] sm:$0xff] }
  0x2e   : > { %1507 = vmatpush3.bf16.msra.mxu1 %v1607_v47  ;;  %1468 = vmatprep.subr.bf16.mxu0 %v1608_v56  ;;  %v210_v47 = vld [vmem:[%s1788_s29 + $0xb0] sm:$0xff]  ;;  %v215_v56 = vld [vmem:[%s1788_s29 + $0xd8] sm:$0xff] }
  0x2f   : > { %1508 = vmatprep.subr.bf16.mxu1 %v1609_v57  ;;  %v1306_v52 = vcombine.high %v206_v46, %v210_v47  ;;  %v219_v57 = vld [vmem:[%s1788_s29 + $0xf8] sm:$0xff] }
  0x30   : > { %933 = vmatmul.mubr.bf16.gmra.mrb[4].mxu0 %v1293_v53  ;;  %v1308_v53 = vcombine.high %v207_v48, %v211_v49 }
  0x31   : > { %998 = vmatmul.mubr.bf16.gmra.mrb[4].mxu1 %v1295_v55  ;;  %1469 = vmatpush3.bf16.msra.mxu0 %v1610_v58  ;;  %v218_v55 = vld [vmem:[%s1788_s29 + $0xf0] sm:$0xff]  ;;  %v1305_v58 = vcombine.low %v206_v46, %v210_v47  ;;  %s1284_s29 = sshll.u32 %s1973_s21, 3 }
  0x32   : > { %1509 = vmatpush3.bf16.msra.mxu1 %v1611_v59  ;;  %1470 = vmatprep.subr.bf16.mxu0 %v1612_v60  ;;  %v1307_v59 = vcombine.low %v207_v48, %v211_v49  ;;  %v1314_v60 = vcombine.high %v214_v54, %v218_v55  ;;  %s1940_s30 = scalar_lea.vmem %s1967_s2, %s1284_s29 }
  0x33   : > { %1510 = vmatprep.subr.bf16.mxu1 %v1613_v61  ;;  %940 = vmatprep.mubr.bf16.mxu0 %v1302_v4  ;;  %v1316_v61 = vcombine.high %v215_v56, %v219_v57 }
  0x34   : > { %1005 = vmatprep.mubr.bf16.mxu1 %v1304_v5 }
  0x35   : > { %1471 = vmatpush3.bf16.msra.mxu0 %v1614_v62  ;;  %v1313_v62 = vcombine.low %v214_v54, %v218_v55 }
  0x36   : > { %1511 = vmatpush3.bf16.msra.mxu1 %v1615_v63  ;;  %1472 = vmatprep.subr.bf16.mxu0 %v1616_v8  ;;  %v1315_v63 = vcombine.low %v215_v56, %v219_v57 }
  0x37   : > { %1512 = vmatprep.subr.bf16.mxu1 %v1617_v9 }
  0x38   : > { %941 = vmatmul.mubr.bf16.gmra.mrb[8].mxu0 %v1301_v6 }
  0x39   : > { %1006 = vmatmul.mubr.bf16.gmra.mrb[8].mxu1 %v1303_v7  ;;  %1473 = vmatpush3.bf16.msra.mxu0 %v1618_v10 }
  0x3a   : > { %1513 = vmatpush3.bf16.msra.mxu1 %v1619_v11  ;;  %1474 = vmatprep.subr.bf16.mxu0 %v1620_v12 }
  0x3b   : > { %1514 = vmatprep.subr.bf16.mxu1 %v1621_v13  ;;  %948 = vmatprep.mubr.bf16.mxu0 %v1310_v19 }
  0x3c   : > { %1013 = vmatprep.mubr.bf16.mxu1 %v1312_v22 }
  0x3d   : > { %1475 = vmatpush3.bf16.msra.mxu0 %v1622_v14 }
  0x3e   : > { %1515 = vmatpush3.bf16.msra.mxu1 %v1623_v15  ;;  %1476 = vmatprep.subr.bf16.mxu0 %v1624_v24 }
  0x3f   : > { %1516 = vmatprep.subr.bf16.mxu1 %v1625_v25 }
  0x40   : > { %949 = vmatmul.mubr.bf16.gmra.mrb[12].mxu0 %v1309_v21 }
  0x41   : > { %1014 = vmatmul.mubr.bf16.gmra.mrb[12].mxu1 %v1311_v23  ;;  %1477 = vmatpush3.bf16.msra.mxu0 %v1626_v26 }
  0x42   : > { %1517 = vmatpush3.bf16.msra.mxu1 %v1627_v27  ;;  %1478 = vmatprep.subr.bf16.mxu0 %v1628_v28 }
  0x43   : > { %1518 = vmatprep.subr.bf16.mxu1 %v1629_v29  ;;  %1054 = vmatprep.mubr.bf16.mxu0 %v1290_v35 }
  0x44   : > { %1119 = vmatprep.mubr.bf16.mxu1 %v1292_v40 }
  0x45   : > { %1479 = vmatpush3.bf16.msra.mxu0 %v1630_v30 }
  0x46   : > { %1519 = vmatpush3.bf16.msra.mxu1 %v1631_v31 }
  0x48   : > { %1055 = vmatmul.mubr.bf16.vlgmr.msra.gmra.mrb[16].mxu0 %v1289_v34 }
  0x49   : > { %1120 = vmatmul.mubr.bf16.vlgmr.msra.gmra.mrb[16].mxu1 %v1291_v39  ;;  %1062 = vmatprep.mubr.bf16.mxu0 %v1298_v44 }
  0x4a   : > { %1127 = vmatprep.mubr.bf16.mxu1 %v1300_v45 }
  0x50   : > { %1063 = vmatmul.mubr.bf16.gmra.mrb[20].mxu0 %v1297_v50 }
  0x51   : > { %1128 = vmatmul.mubr.bf16.gmra.mrb[20].mxu1 %v1299_v51  ;;  %1070 = vmatprep.mubr.bf16.mxu0 %v1306_v52 }
  0x52   : > { %1135 = vmatprep.mubr.bf16.mxu1 %v1308_v53 }
  0x58   : > { %1071 = vmatmul.mubr.bf16.gmra.mrb[24].mxu0 %v1305_v58 }
  0x59   : > { %1136 = vmatmul.mubr.bf16.gmra.mrb[24].mxu1 %v1307_v59  ;;  %1078 = vmatprep.mubr.bf16.mxu0 %v1314_v60 }
  0x5a   : > { %1143 = vmatprep.mubr.bf16.mxu1 %v1316_v61 }
  0x60   : > { %1079 = vmatmul.mubr.bf16.gmra.mrb[28].mxu0 %v1313_v62 }
  0x61   : > { %1144 = vmatmul.mubr.bf16.gmra.mrb[28].mxu1 %v1315_v63 }
  0xfb   : > { %v1400_v0 = vpop.f32.mrb[0].mxu0 }
  0xfc   : > { %v1440_v1 = vpop.f32.mrb[0].mxu1  ;;  %v1401_v2 = vpop.f32.mrb[1].mxu0 }
  0xfd   : > { %v1402_v3 = vadd.f32 %v1401_v2, %v1400_v0  ;;  %v1441_v4 = vpop.f32.mrb[1].mxu1  ;;  %v1403_v5 = vpop.f32.mrb[2].mxu0 }
  0xfe   : > { %v1442_v6 = vadd.f32 %v1441_v4, %v1440_v1  ;;  %v1443_v7 = vpop.f32.mrb[2].mxu1  ;;  %v1404_v8 = vpop.f32.mrb[3].mxu0 }
  0xff   : > { %v1405_v9 = vadd.f32 %v1404_v8, %v1403_v5  ;;  %v1444_v10 = vpop.f32.mrb[3].mxu1 }
 0x100   : > { %v992_v11 = vadd.f32 %v1442_v6, %v1402_v3  ;;  %v1445_v12 = vadd.f32 %v1444_v10, %v1443_v7 }
 0x102   : > { %v995_v13 = vadd.f32 %v1445_v12, %v1405_v9 }
 0x103   : > { %v1406_v14 = vpop.f32.mrb[4].mxu0 }
 0x104   : > { %v1446_v15 = vpop.f32.mrb[4].mxu1  ;;  %v1407_v16 = vpop.f32.mrb[5].mxu0 }
 0x105   : > { %v1408_v17 = vadd.f32 %v1407_v16, %v1406_v14  ;;  %v1447_v18 = vpop.f32.mrb[5].mxu1  ;;  %v1409_v19 = vpop.f32.mrb[6].mxu0 }
 0x106   : > { %v1448_v20 = vadd.f32 %v1447_v18, %v1446_v15  ;;  %v1449_v21 = vpop.f32.mrb[6].mxu1  ;;  %v1410_v22 = vpop.f32.mrb[7].mxu0 }
 0x107   : > { %v1411_v23 = vadd.f32 %v1410_v22, %v1409_v19  ;;  %v1450_v24 = vpop.f32.mrb[7].mxu1 }
 0x108   : > { %v1924_v25 = vadd.f32 %v1448_v20, %v1408_v17  ;;  %v1451_v26 = vadd.f32 %v1450_v24, %v1449_v21 }
 0x10a   : > { %v1926_v27 = vadd.f32 %v1451_v26, %v1411_v23 }
 0x10b   : > { %v1412_v28 = vpop.f32.mrb[8].mxu0 }
 0x10c   : > { %v1452_v29 = vpop.f32.mrb[8].mxu1  ;;  %v1413_v30 = vpop.f32.mrb[9].mxu0 }
 0x10d   : > { %v1453_v31 = vpop.f32.mrb[9].mxu1  ;;  %v1414_v32 = vadd.f32 %v1413_v30, %v1412_v28  ;;  %v1415_v34 = vpop.f32.mrb[10].mxu0 }
 0x10e   : > { %v1454_v33 = vadd.f32 %v1453_v31, %v1452_v29  ;;  %v1455_v35 = vpop.f32.mrb[10].mxu1  ;;  %v1416_v36 = vpop.f32.mrb[11].mxu0 }
 0x10f   : > { %v1456_v37 = vpop.f32.mrb[11].mxu1  ;;  %v1417_v39 = vadd.f32 %v1416_v36, %v1415_v34 }
 0x110   : > { %v1928_v38 = vadd.f32 %v1454_v33, %v1414_v32  ;;  %v1457_v40 = vadd.f32 %v1456_v37, %v1455_v35 }
 0x112   : > { %v1930_v41 = vadd.f32 %v1457_v40, %v1417_v39 }
 0x113   : > { %v1418_v42 = vpop.f32.mrb[12].mxu0 }
 0x114   : > { %v1458_v43 = vpop.f32.mrb[12].mxu1  ;;  %v1419_v44 = vpop.f32.mrb[13].mxu0 }
 0x115   : > { %v1420_v45 = vadd.f32 %v1419_v44, %v1418_v42  ;;  %v1459_v46 = vpop.f32.mrb[13].mxu1  ;;  %v1421_v47 = vpop.f32.mrb[14].mxu0 }
 0x116   : > { %v1460_v48 = vadd.f32 %v1459_v46, %v1458_v43  ;;  %v1461_v49 = vpop.f32.mrb[14].mxu1  ;;  %v1422_v50 = vpop.f32.mrb[15].mxu0 }
 0x117   : > { %v1423_v51 = vadd.f32 %v1422_v50, %v1421_v47  ;;  %v1462_v52 = vpop.f32.mrb[15].mxu1 }
 0x118   : > { %v1932_v53 = vadd.f32 %v1460_v48, %v1420_v45  ;;  %v1463_v54 = vadd.f32 %v1462_v52, %v1461_v49 }
 0x11a   : > { %v1934_v55 = vadd.f32 %v1463_v54, %v1423_v51 }
 0x11b   : > { %v1480_v56 = vpop.f32.mrb[16].mxu0 }
 0x11c   : > { %v1520_v57 = vpop.f32.mrb[16].mxu1  ;;  %v1481_v58 = vpop.f32.mrb[17].mxu0 }
 0x11d   : > { %v1482_v59 = vadd.f32 %v1481_v58, %v1480_v56  ;;  %v1521_v60 = vpop.f32.mrb[17].mxu1  ;;  %v1483_v61 = vpop.f32.mrb[18].mxu0 }
 0x11e   : > { %v1522_v62 = vadd.f32 %v1521_v60, %v1520_v57  ;;  %v1523_v63 = vpop.f32.mrb[18].mxu1  ;;  %v1484_v0 = vpop.f32.mrb[19].mxu0 }
 0x11f   : > { %v1057_v1 = vadd.f32 %v1482_v59, %v992_v11  ;;  %v1485_v2 = vadd.f32 %v1484_v0, %v1483_v61  ;;  %v1524_v3 = vpop.f32.mrb[19].mxu1 }
 0x120   : > { %v1525_v4 = vadd.f32 %v1524_v3, %v1523_v63 }
 0x121   : > { %v1122_v5 = vadd.f32 %v1522_v62, %v1057_v1  ;;  %v1060_v6 = vadd.f32 %v1485_v2, %v995_v13 }
 0x123   : > { %vm1152_vm0 = vcmp.ge.f32.partialorder %v1122_v5, 0.0  ;;  %v1160_v7 = vmul.f32 0.2, %v1122_v5  ;;  %v1125_v8 = vadd.f32 %v1525_v4, %v1060_v6  ;;  %v1486_v9 = vpop.f32.mrb[20].mxu0 }
 0x124   : > { %v1526_v10 = vpop.f32.mrb[20].mxu1  ;;  %v1487_v12 = vpop.f32.mrb[21].mxu0 }
 0x125   : > { %v1168_v11 = vsel %vm1152_vm0, %v1122_v5, %v1160_v7  ;;  %vm1153_vm1 = vcmp.ge.f32.partialorder %v1125_v8, 0.0  ;;  %v1161_v14 = vmul.f32 0.2, %v1125_v8  ;;  %v1488_v15 = vadd.f32 %v1487_v12, %v1486_v9  ;;  %v1527_v16 = vpop.f32.mrb[21].mxu1  ;;  %v1489_v17 = vpop.f32.mrb[22].mxu0 }
 0x126   : > { %1176 = vst [vmem:[%s1940_s30] sm:$0xff] %v1168_v11  ;;  %v1528_v13 = vadd.f32 %v1527_v16, %v1526_v10  ;;  %v1529_v18 = vpop.f32.mrb[22].mxu1  ;;  %v1490_v19 = vpop.f32.mrb[23].mxu0 }
 0x127   : > { %v1169_v20 = vsel %vm1153_vm1, %v1125_v8, %v1161_v14  ;;  %v1065_v21 = vadd.f32 %v1488_v15, %v1924_v25  ;;  %v1491_v22 = vadd.f32 %v1490_v19, %v1489_v17  ;;  %v1530_v23 = vpop.f32.mrb[23].mxu1 }
 0x128   : > { %1177 = vst [vmem:[%s1940_s30 + $0x8] sm:$0xff] %v1169_v20  ;;  %v1531_v24 = vadd.f32 %v1530_v23, %v1529_v18 }
 0x129   : > { %v1130_v26 = vadd.f32 %v1528_v13, %v1065_v21  ;;  %v1068_v28 = vadd.f32 %v1491_v22, %v1926_v27 }
 0x12b   : > { %vm1154_vm2 = vcmp.ge.f32.partialorder %v1130_v26, 0.0  ;;  %v1162_v29 = vmul.f32 0.2, %v1130_v26  ;;  %v1133_v30 = vadd.f32 %v1531_v24, %v1068_v28  ;;  %v1492_v31 = vpop.f32.mrb[24].mxu0 }
 0x12c   : > { %v1532_v32 = vpop.f32.mrb[24].mxu1  ;;  %v1493_v33 = vpop.f32.mrb[25].mxu0 }
 0x12d   : > { %v1170_v34 = vsel %vm1154_vm2, %v1130_v26, %v1162_v29  ;;  %vm1155_vm3 = vcmp.ge.f32.partialorder %v1133_v30, 0.0  ;;  %v1163_v35 = vmul.f32 0.2, %v1133_v30  ;;  %v1494_v36 = vadd.f32 %v1493_v33, %v1492_v31  ;;  %v1533_v25 = vpop.f32.mrb[25].mxu1  ;;  %v1495_v37 = vpop.f32.mrb[26].mxu0 }
 0x12e   : > { %1178 = vst [vmem:[%s1940_s30 + $0x10] sm:$0xff] %v1170_v34  ;;  %v1534_v39 = vadd.f32 %v1533_v25, %v1532_v32  ;;  %v1535_v40 = vpop.f32.mrb[26].mxu1  ;;  %v1496_v42 = vpop.f32.mrb[27].mxu0 }
 0x12f   : > { %v1171_v43 = vsel %vm1155_vm3, %v1133_v30, %v1163_v35  ;;  %v1073_v27 = vadd.f32 %v1494_v36, %v1928_v38  ;;  %v1497_v44 = vadd.f32 %v1496_v42, %v1495_v37  ;;  %v1536_v45 = vpop.f32.mrb[27].mxu1 }
 0x130   : > { %1179 = vst [vmem:[%s1940_s30 + $0x18] sm:$0xff] %v1171_v43  ;;  %v1537_v46 = vadd.f32 %v1536_v45, %v1535_v40 }
 0x131   : > { %v1138_v47 = vadd.f32 %v1534_v39, %v1073_v27  ;;  %v1076_v48 = vadd.f32 %v1497_v44, %v1930_v41 }
 0x133   : > { %vm1156_vm4 = vcmp.ge.f32.partialorder %v1138_v47, 0.0  ;;  %v1164_v49 = vmul.f32 0.2, %v1138_v47  ;;  %v1141_v50 = vadd.f32 %v1537_v46, %v1076_v48  ;;  %v1498_v51 = vpop.f32.mrb[28].mxu0 }
 0x134   : > { %v1538_v52 = vpop.f32.mrb[28].mxu1  ;;  %v1499_v54 = vpop.f32.mrb[29].mxu0 }
 0x135   : > { %v1172_v56 = vsel %vm1156_vm4, %v1138_v47, %v1164_v49  ;;  %vm1157_vm5 = vcmp.ge.f32.partialorder %v1141_v50, 0.0  ;;  %v1165_v57 = vmul.f32 0.2, %v1141_v50  ;;  %v1500_v58 = vadd.f32 %v1499_v54, %v1498_v51  ;;  %v1539_v38 = vpop.f32.mrb[29].mxu1  ;;  %v1501_v59 = vpop.f32.mrb[30].mxu0 }
 0x136   : > { %1180 = vst [vmem:[%s1940_s30 + $0x20] sm:$0xff] %v1172_v56  ;;  %v1540_v60 = vadd.f32 %v1539_v38, %v1538_v52  ;;  %v1541_v61 = vpop.f32.mrb[30].mxu1  ;;  %v1502_v62 = vpop.f32.mrb[31].mxu0 }
 0x137   : > { %v1173_v63 = vsel %vm1157_vm5, %v1141_v50, %v1165_v57  ;;  %v1081_v41 = vadd.f32 %v1500_v58, %v1932_v53  ;;  %v1503_v0 = vadd.f32 %v1502_v62, %v1501_v59  ;;  %v1542_v1 = vpop.f32.mrb[31].mxu1 }
 0x138   : > { %1181 = vst [vmem:[%s1940_s30 + $0x28] sm:$0xff] %v1173_v63  ;;  %v1543_v2 = vadd.f32 %v1542_v1, %v1541_v61 }
 0x139   : > { %v1146_v3 = vadd.f32 %v1540_v60, %v1081_v41  ;;  %v1084_v4 = vadd.f32 %v1503_v0, %v1934_v55 }
 0x13b   : > { %vm1158_vm6 = vcmp.ge.f32.partialorder %v1146_v3, 0.0  ;;  %v1166_v5 = vmul.f32 0.2, %v1146_v3  ;;  %v1149_v6 = vadd.f32 %v1543_v2, %v1084_v4 }
 0x13d   : > { %v1174_v7 = vsel %vm1158_vm6, %v1146_v3, %v1166_v5  ;;  %vm1159_vm7 = vcmp.ge.f32.partialorder %v1149_v6, 0.0  ;;  %v1167_v8 = vmul.f32 0.2, %v1149_v6 }
 0x13e   : > { %1182 = vst [vmem:[%s1940_s30 + $0x30] sm:$0xff] %v1174_v7 }
 0x13f   : > { %v1175_v9 = vsel %vm1159_vm7, %v1149_v6, %v1167_v8 }
 0x140   : > { %1183 = vst [vmem:[%s1940_s30 + $0x38] sm:$0xff] %v1175_v9 }
 0x141 PF: > { %s12_s11 = sadd.s32 1, %s1654_s11   ;;  %s1968_s9 = smov %s1650_s10 }
 0x142   : > { %p9_p5 = scmp.ge.s32.totalorder %s12_s11, 4   ;;  %s1969_s10 = smov %s1971_s12 }
 0x144   :  { %11 = sbr.rel (!%p9_p5) target bundleno = 2 (0x2), region = 61 }

// kernel: discriminator_forward.7
= control target key start
LH: loop header
LB: loop body
LE: loop exit
PB: predicated region body
PF: predicated region fallthrough
CT: control target
= control target key end

     0   :  { %s3623_s9 = smov 0   ;;  %s3625_s10 = smov 0   ;;  %s4457_s0 = inlined_call_operand.vmem [shape: bf16[32,2048], index: 0, kind: input, shape index: {}]   ;;  %s4458_s1 = inlined_call_operand.vmem [shape: bf16[2048,256], index: 1, kind: input, shape index: {}]   ;;  %s4459_s2 = inlined_call_operand.vmem [shape: f32[32,256], index: 2, kind: output, shape index: {}]  }
   0x1   :  { %s3627_s11 = smov 0   ;;  %s3629_s12 = smov 0  }
   0x2   :  { %s3631_s13 = smov 0  }
   0x3 LB: > { %s21_s14 = sadd.s32 1, %s3602_s12  ;;  %s3002_s15 = sadd.s32 4294967295, %s3606_s13   ;;  %s3606_s13 = sphi %s3631_s13, %s12_s13   ;;  %s3602_s12 = sphi %s3629_s12, %s4464_s12   ;;  %s3598_s11 = sphi %s3627_s11, %s4463_s11   ;;  %s3594_s10 = sphi %s3625_s10, %s4462_s10   ;;  %s3590_s9 = sphi %s3623_s9, %s4461_s9  }
   0x4   : > { %p22_p0 = scmp.ge.s32.totalorder %s21_s14, 2  ;;  %p64_p1 = scmp.ne.s32.totalorder %s3594_s10, %s3590_s9 }
   0x5   : > { %p65_p2 = scmp.eq.s32.totalorder %s3606_s13, 0  ;;  %p96_p4 = scmp.eq.s32.totalorder %s3002_s15, 1 }
   0x6   : > { %s4466_s14 = smov (%p22_p0, %s21_s14), 0  ;;  %s57_s17 = sadd.s32 1, %s3594_s10 }
   0x7   : > { %p66_p3 = por %p65_p2, %p64_p1  ;;  %s54_s16 = ssub.s32 %s3602_s12, %s4466_s14 }
   0x8   : > { %p55_p5 = scmp.eq.s32.totalorder %s54_s16, 0  ;;  %p3658_p6 = por %p96_p4, %p64_p1 }
   0x9   : > { %p3006_p7 = scmp.ge.s32.totalorder %s3606_s13, 2 }
   0xa   : > { %s3663_s19 = scalar_select %p55_p5, %s3594_s10, %s57_s17  }
   0xb   : > { %128 = sbr.rel (%p3006_p7) target bundleno = 192 (0xc0), region = 20 }
  0x12   : > { %131 = sbr.rel (!%p66_p3) target bundleno = 192 (0xc0), region = 24  ;;  %s133_s20 = sand.u32 (%p66_p3), 1, %s3594_s10  }
  0x13   : > { %s3008_s21 = sshll.u32 (%p66_p3), %s3602_s12, 2  ;;  %s3007_s22 = sshll.u32 (%p66_p3), %s133_s20, 10 }
  0x14   : > { %s3671_s25 = scalar_lea.vmem (%p66_p3), %s4458_s1, %s3008_s21  ;;  %s3675_s26 = scalar_lea.vmem (%p66_p3), [#allocation2], %s3007_s22 }
  0x15   : > { %v153_v0 = vld [vmem:[%s3671_s25] sm:$0xf] (%p66_p3)  ;;  %v155_v1 = vld [vmem:[%s3671_s25 + $0x8] sm:$0xf] (%p66_p3)  ;;  %v157_v2 = vld [vmem:[%s3671_s25 + $0x10] sm:$0xf] (%p66_p3) }
  0x16   : > { %154 = vst [vmem:[%s3675_s26] sm:$0xf] (%p66_p3), %v153_v0  ;;  %156 = vst [vmem:[%s3675_s26 + $0x4] sm:$0xf] (%p66_p3), %v155_v1  ;;  %v159_v3 = vld [vmem:[%s3671_s25 + $0x18] sm:$0xf] (%p66_p3) }
  0x17   : > { %v161_v4 = vld [vmem:[%s3671_s25 + $0x20] sm:$0xf] (%p66_p3)  ;;  %158 = vst [vmem:[%s3675_s26 + $0x8] sm:$0xf] (%p66_p3), %v157_v2  ;;  %160 = vst [vmem:[%s3675_s26 + $0xc] sm:$0xf] (%p66_p3), %v159_v3 }
  0x18   : > { %162 = vst [vmem:[%s3675_s26 + $0x10] sm:$0xf] (%p66_p3), %v161_v4  ;;  %v163_v5 = vld [vmem:[%s3671_s25 + $0x28] sm:$0xf] (%p66_p3)  ;;  %v165_v6 = vld [vmem:[%s3671_s25 + $0x30] sm:$0xf] (%p66_p3) }
  0x19   : > { %v167_v7 = vld [vmem:[%s3671_s25 + $0x38] sm:$0xf]  ;;  %164 = vst [vmem:[%s3675_s26 + $0x14] sm:$0xf] %v163_v5  ;;  %166 = vst [vmem:[%s3675_s26 + $0x18] sm:$0xf] %v165_v6 }
  0x1a   : > { %168 = vst [vmem:[%s3675_s26 + $0x1c] sm:$0xf] %v167_v7  ;;  %v169_v8 = vld [vmem:[%s3671_s25 + $0x40] sm:$0xf]  ;;  %v171_v9 = vld [vmem:[%s3671_s25 + $0x48] sm:$0xf] }
  0x1b   : > { %v173_v10 = vld [vmem:[%s3671_s25 + $0x50] sm:$0xf]  ;;  %170 = vst [vmem:[%s3675_s26 + $0x20] sm:$0xf] %v169_v8  ;;  %172 = vst [vmem:[%s3675_s26 + $0x24] sm:$0xf] %v171_v9 }
  0x1c   : > { %174 = vst [vmem:[%s3675_s26 + $0x28] sm:$0xf] %v173_v10  ;;  %v175_v11 = vld [vmem:[%s3671_s25 + $0x58] sm:$0xf]  ;;  %v177_v12 = vld [vmem:[%s3671_s25 + $0x60] sm:$0xf] }
  0x1d   : > { %v179_v13 = vld [vmem:[%s3671_s25 + $0x68] sm:$0xf]  ;;  %176 = vst [vmem:[%s3675_s26 + $0x2c] sm:$0xf] %v175_v11  ;;  %178 = vst [vmem:[%s3675_s26 + $0x30] sm:$0xf] %v177_v12 }
  0x1e   : > { %180 = vst [vmem:[%s3675_s26 + $0x34] sm:$0xf] %v179_v13  ;;  %v181_v14 = vld [vmem:[%s3671_s25 + $0x70] sm:$0xf]  ;;  %v183_v15 = vld [vmem:[%s3671_s25 + $0x78] sm:$0xf] }
  0x1f   : > { %v185_v16 = vld [vmem:[%s3671_s25 + $0x80] sm:$0xf]  ;;  %182 = vst [vmem:[%s3675_s26 + $0x38] sm:$0xf] %v181_v14  ;;  %184 = vst [vmem:[%s3675_s26 + $0x3c] sm:$0xf] %v183_v15 }
  0x20   : > { %186 = vst [vmem:[%s3675_s26 + $0x40] sm:$0xf] %v185_v16  ;;  %v187_v17 = vld [vmem:[%s3671_s25 + $0x88] sm:$0xf]  ;;  %v189_v18 = vld [vmem:[%s3671_s25 + $0x90] sm:$0xf] }
  0x21   : > { %v191_v19 = vld [vmem:[%s3671_s25 + $0x98] sm:$0xf]  ;;  %188 = vst [vmem:[%s3675_s26 + $0x44] sm:$0xf] %v187_v17  ;;  %190 = vst [vmem:[%s3675_s26 + $0x48] sm:$0xf] %v189_v18 }
  0x22   : > { %192 = vst [vmem:[%s3675_s26 + $0x4c] sm:$0xf] %v191_v19  ;;  %v193_v20 = vld [vmem:[%s3671_s25 + $0xa0] sm:$0xf]  ;;  %v195_v21 = vld [vmem:[%s3671_s25 + $0xa8] sm:$0xf] }
  0x23   : > { %v197_v22 = vld [vmem:[%s3671_s25 + $0xb0] sm:$0xf]  ;;  %194 = vst [vmem:[%s3675_s26 + $0x50] sm:$0xf] %v193_v20  ;;  %196 = vst [vmem:[%s3675_s26 + $0x54] sm:$0xf] %v195_v21 }
  0x24   : > { %198 = vst [vmem:[%s3675_s26 + $0x58] sm:$0xf] %v197_v22  ;;  %v199_v23 = vld [vmem:[%s3671_s25 + $0xb8] sm:$0xf]  ;;  %v201_v24 = vld [vmem:[%s3671_s25 + $0xc0] sm:$0xf] }
  0x25   : > { %v203_v25 = vld [vmem:[%s3671_s25 + $0xc8] sm:$0xf]  ;;  %200 = vst [vmem:[%s3675_s26 + $0x5c] sm:$0xf] %v199_v23  ;;  %202 = vst [vmem:[%s3675_s26 + $0x60] sm:$0xf] %v201_v24 }
  0x26   : > { %204 = vst [vmem:[%s3675_s26 + $0x64] sm:$0xf] %v203_v25  ;;  %v205_v26 = vld [vmem:[%s3671_s25 + $0xd0] sm:$0xf]  ;;  %v207_v27 = vld [vmem:[%s3671_s25 + $0xd8] sm:$0xf] }
  0x27   : > { %v209_v28 = vld [vmem:[%s3671_s25 + $0xe0] sm:$0xf]  ;;  %206 = vst [vmem:[%s3675_s26 + $0x68] sm:$0xf] %v205_v26  ;;  %208 = vst [vmem:[%s3675_s26 + $0x6c] sm:$0xf] %v207_v27 }
  0x28   : > { %210 = vst [vmem:[%s3675_s26 + $0x70] sm:$0xf] %v209_v28  ;;  %v211_v29 = vld [vmem:[%s3671_s25 + $0xe8] sm:$0xf]  ;;  %v213_v30 = vld [vmem:[%s3671_s25 + $0xf0] sm:$0xf] }
  0x29   : > { %v215_v31 = vld [vmem:[%s3671_s25 + $0xf8] sm:$0xf]  ;;  %212 = vst [vmem:[%s3675_s26 + $0x74] sm:$0xf] %v211_v29  ;;  %214 = vst [vmem:[%s3675_s26 + $0x78] sm:$0xf] %v213_v30 }
  0x2a   : > { %216 = vst [vmem:[%s3675_s26 + $0x7c] sm:$0xf] %v215_v31  ;;  %v217_v32 = vld [vmem:[%s3671_s25 + $0x100] sm:$0xf]  ;;  %v219_v33 = vld [vmem:[%s3671_s25 + $0x108] sm:$0xf] }
  0x2b   : > { %v221_v34 = vld [vmem:[%s3671_s25 + $0x110] sm:$0xf]  ;;  %218 = vst [vmem:[%s3675_s26 + $0x80] sm:$0xf] %v217_v32  ;;  %220 = vst [vmem:[%s3675_s26 + $0x84] sm:$0xf] %v219_v33 }
  0x2c   : > { %222 = vst [vmem:[%s3675_s26 + $0x88] sm:$0xf] %v221_v34  ;;  %v223_v35 = vld [vmem:[%s3671_s25 + $0x118] sm:$0xf]  ;;  %v225_v36 = vld [vmem:[%s3671_s25 + $0x120] sm:$0xf] }
  0x2d   : > { %v227_v37 = vld [vmem:[%s3671_s25 + $0x128] sm:$0xf]  ;;  %224 = vst [vmem:[%s3675_s26 + $0x8c] sm:$0xf] %v223_v35  ;;  %226 = vst [vmem:[%s3675_s26 + $0x90] sm:$0xf] %v225_v36 }
  0x2e   : > { %228 = vst [vmem:[%s3675_s26 + $0x94] sm:$0xf] %v227_v37  ;;  %v229_v38 = vld [vmem:[%s3671_s25 + $0x130] sm:$0xf]  ;;  %v231_v39 = vld [vmem:[%s3671_s25 + $0x138] sm:$0xf] }
  0x2f   : > { %v233_v40 = vld [vmem:[%s3671_s25 + $0x140] sm:$0xf]  ;;  %230 = vst [vmem:[%s3675_s26 + $0x98] sm:$0xf] %v229_v38  ;;  %232 = vst [vmem:[%s3675_s26 + $0x9c] sm:$0xf] %v231_v39 }
  0x30   : > { %234 = vst [vmem:[%s3675_s26 + $0xa0] sm:$0xf] %v233_v40  ;;  %v235_v41 = vld [vmem:[%s3671_s25 + $0x148] sm:$0xf]  ;;  %v237_v42 = vld [vmem:[%s3671_s25 + $0x150] sm:$0xf] }
  0x31   : > { %v239_v43 = vld [vmem:[%s3671_s25 + $0x158] sm:$0xf]  ;;  %236 = vst [vmem:[%s3675_s26 + $0xa4] sm:$0xf] %v235_v41  ;;  %238 = vst [vmem:[%s3675_s26 + $0xa8] sm:$0xf] %v237_v42 }
  0x32   : > { %240 = vst [vmem:[%s3675_s26 + $0xac] sm:$0xf] %v239_v43  ;;  %v241_v44 = vld [vmem:[%s3671_s25 + $0x160] sm:$0xf]  ;;  %v243_v45 = vld [vmem:[%s3671_s25 + $0x168] sm:$0xf] }
  0x33   : > { %v245_v46 = vld [vmem:[%s3671_s25 + $0x170] sm:$0xf]  ;;  %242 = vst [vmem:[%s3675_s26 + $0xb0] sm:$0xf] %v241_v44  ;;  %244 = vst [vmem:[%s3675_s26 + $0xb4] sm:$0xf] %v243_v45 }
  0x34   : > { %246 = vst [vmem:[%s3675_s26 + $0xb8] sm:$0xf] %v245_v46  ;;  %v247_v47 = vld [vmem:[%s3671_s25 + $0x178] sm:$0xf]  ;;  %v249_v48 = vld [vmem:[%s3671_s25 + $0x180] sm:$0xf] }
  0x35   : > { %v251_v49 = vld [vmem:[%s3671_s25 + $0x188] sm:$0xf]  ;;  %248 = vst [vmem:[%s3675_s26 + $0xbc] sm:$0xf] %v247_v47  ;;  %250 = vst [vmem:[%s3675_s26 + $0xc0] sm:$0xf] %v249_v48 }
  0x36   : > { %252 = vst [vmem:[%s3675_s26 + $0xc4] sm:$0xf] %v251_v49  ;;  %v253_v50 = vld [vmem:[%s3671_s25 + $0x190] sm:$0xf]  ;;  %v255_v51 = vld [vmem:[%s3671_s25 + $0x198] sm:$0xf] }
  0x37   : > { %v257_v52 = vld [vmem:[%s3671_s25 + $0x1a0] sm:$0xf]  ;;  %254 = vst [vmem:[%s3675_s26 + $0xc8] sm:$0xf] %v253_v50  ;;  %256 = vst [vmem:[%s3675_s26 + $0xcc] sm:$0xf] %v255_v51 }
  0x38   : > { %258 = vst [vmem:[%s3675_s26 + $0xd0] sm:$0xf] %v257_v52  ;;  %v259_v53 = vld [vmem:[%s3671_s25 + $0x1a8] sm:$0xf]  ;;  %v261_v54 = vld [vmem:[%s3671_s25 + $0x1b0] sm:$0xf] }
  0x39   : > { %v263_v55 = vld [vmem:[%s3671_s25 + $0x1b8] sm:$0xf]  ;;  %260 = vst [vmem:[%s3675_s26 + $0xd4] sm:$0xf] %v259_v53  ;;  %262 = vst [vmem:[%s3675_s26 + $0xd8] sm:$0xf] %v261_v54 }
  0x3a   : > { %264 = vst [vmem:[%s3675_s26 + $0xdc] sm:$0xf] %v263_v55  ;;  %v265_v56 = vld [vmem:[%s3671_s25 + $0x1c0] sm:$0xf]  ;;  %v267_v57 = vld [vmem:[%s3671_s25 + $0x1c8] sm:$0xf] }
  0x3b   : > { %v269_v58 = vld [vmem:[%s3671_s25 + $0x1d0] sm:$0xf]  ;;  %266 = vst [vmem:[%s3675_s26 + $0xe0] sm:$0xf] %v265_v56  ;;  %268 = vst [vmem:[%s3675_s26 + $0xe4] sm:$0xf] %v267_v57 }
  0x3c   : > { %270 = vst [vmem:[%s3675_s26 + $0xe8] sm:$0xf] %v269_v58  ;;  %v271_v59 = vld [vmem:[%s3671_s25 + $0x1d8] sm:$0xf]  ;;  %v273_v60 = vld [vmem:[%s3671_s25 + $0x1e0] sm:$0xf] }
  0x3d   : > { %v275_v61 = vld [vmem:[%s3671_s25 + $0x1e8] sm:$0xf]  ;;  %272 = vst [vmem:[%s3675_s26 + $0xec] sm:$0xf] %v271_v59  ;;  %274 = vst [vmem:[%s3675_s26 + $0xf0] sm:$0xf] %v273_v60 }
  0x3e   : > { %276 = vst [vmem:[%s3675_s26 + $0xf4] sm:$0xf] %v275_v61  ;;  %v277_v62 = vld [vmem:[%s3671_s25 + $0x1f0] sm:$0xf]  ;;  %v279_v63 = vld [vmem:[%s3671_s25 + $0x1f8] sm:$0xf] }
  0x3f   : > { %v281_v0 = vld [vmem:[%s3671_s25 + $0x200] sm:$0xf]  ;;  %278 = vst [vmem:[%s3675_s26 + $0xf8] sm:$0xf] %v277_v62  ;;  %280 = vst [vmem:[%s3675_s26 + $0xfc] sm:$0xf] %v279_v63 }
  0x40   : > { %282 = vst [vmem:[%s3675_s26 + $0x100] sm:$0xf] %v281_v0  ;;  %v283_v1 = vld [vmem:[%s3671_s25 + $0x208] sm:$0xf]  ;;  %v285_v2 = vld [vmem:[%s3671_s25 + $0x210] sm:$0xf] }
  0x41   : > { %v287_v3 = vld [vmem:[%s3671_s25 + $0x218] sm:$0xf]  ;;  %284 = vst [vmem:[%s3675_s26 + $0x104] sm:$0xf] %v283_v1  ;;  %286 = vst [vmem:[%s3675_s26 + $0x108] sm:$0xf] %v285_v2 }
  0x42   : > { %288 = vst [vmem:[%s3675_s26 + $0x10c] sm:$0xf] %v287_v3  ;;  %v289_v4 = vld [vmem:[%s3671_s25 + $0x220] sm:$0xf]  ;;  %v291_v5 = vld [vmem:[%s3671_s25 + $0x228] sm:$0xf] }
  0x43   : > { %v293_v6 = vld [vmem:[%s3671_s25 + $0x230] sm:$0xf]  ;;  %290 = vst [vmem:[%s3675_s26 + $0x110] sm:$0xf] %v289_v4  ;;  %292 = vst [vmem:[%s3675_s26 + $0x114] sm:$0xf] %v291_v5 }
  0x44   : > { %294 = vst [vmem:[%s3675_s26 + $0x118] sm:$0xf] %v293_v6  ;;  %v295_v7 = vld [vmem:[%s3671_s25 + $0x238] sm:$0xf]  ;;  %v297_v8 = vld [vmem:[%s3671_s25 + $0x240] sm:$0xf] }
  0x45   : > { %v299_v9 = vld [vmem:[%s3671_s25 + $0x248] sm:$0xf]  ;;  %296 = vst [vmem:[%s3675_s26 + $0x11c] sm:$0xf] %v295_v7  ;;  %298 = vst [vmem:[%s3675_s26 + $0x120] sm:$0xf] %v297_v8 }
  0x46   : > { %300 = vst [vmem:[%s3675_s26 + $0x124] sm:$0xf] %v299_v9  ;;  %v301_v10 = vld [vmem:[%s3671_s25 + $0x250] sm:$0xf]  ;;  %v303_v11 = vld [vmem:[%s3671_s25 + $0x258] sm:$0xf] }
  0x47   : > { %v305_v12 = vld [vmem:[%s3671_s25 + $0x260] sm:$0xf]  ;;  %302 = vst [vmem:[%s3675_s26 + $0x128] sm:$0xf] %v301_v10  ;;  %304 = vst [vmem:[%s3675_s26 + $0x12c] sm:$0xf] %v303_v11 }
  0x48   : > { %306 = vst [vmem:[%s3675_s26 + $0x130] sm:$0xf] %v305_v12  ;;  %v307_v13 = vld [vmem:[%s3671_s25 + $0x268] sm:$0xf]  ;;  %v309_v14 = vld [vmem:[%s3671_s25 + $0x270] sm:$0xf] }
  0x49   : > { %v311_v15 = vld [vmem:[%s3671_s25 + $0x278] sm:$0xf]  ;;  %308 = vst [vmem:[%s3675_s26 + $0x134] sm:$0xf] %v307_v13  ;;  %310 = vst [vmem:[%s3675_s26 + $0x138] sm:$0xf] %v309_v14 }
  0x4a   : > { %312 = vst [vmem:[%s3675_s26 + $0x13c] sm:$0xf] %v311_v15  ;;  %v313_v16 = vld [vmem:[%s3671_s25 + $0x280] sm:$0xf]  ;;  %v315_v17 = vld [vmem:[%s3671_s25 + $0x288] sm:$0xf] }
  0x4b   : > { %v317_v18 = vld [vmem:[%s3671_s25 + $0x290] sm:$0xf]  ;;  %314 = vst [vmem:[%s3675_s26 + $0x140] sm:$0xf] %v313_v16  ;;  %316 = vst [vmem:[%s3675_s26 + $0x144] sm:$0xf] %v315_v17 }
  0x4c   : > { %318 = vst [vmem:[%s3675_s26 + $0x148] sm:$0xf] %v317_v18  ;;  %v319_v19 = vld [vmem:[%s3671_s25 + $0x298] sm:$0xf]  ;;  %v321_v20 = vld [vmem:[%s3671_s25 + $0x2a0] sm:$0xf] }
  0x4d   : > { %v323_v21 = vld [vmem:[%s3671_s25 + $0x2a8] sm:$0xf]  ;;  %320 = vst [vmem:[%s3675_s26 + $0x14c] sm:$0xf] %v319_v19  ;;  %322 = vst [vmem:[%s3675_s26 + $0x150] sm:$0xf] %v321_v20 }
  0x4e   : > { %324 = vst [vmem:[%s3675_s26 + $0x154] sm:$0xf] %v323_v21  ;;  %v325_v22 = vld [vmem:[%s3671_s25 + $0x2b0] sm:$0xf]  ;;  %v327_v23 = vld [vmem:[%s3671_s25 + $0x2b8] sm:$0xf] }
  0x4f   : > { %v329_v24 = vld [vmem:[%s3671_s25 + $0x2c0] sm:$0xf]  ;;  %326 = vst [vmem:[%s3675_s26 + $0x158] sm:$0xf] %v325_v22  ;;  %328 = vst [vmem:[%s3675_s26 + $0x15c] sm:$0xf] %v327_v23 }
  0x50   : > { %330 = vst [vmem:[%s3675_s26 + $0x160] sm:$0xf] %v329_v24  ;;  %v331_v25 = vld [vmem:[%s3671_s25 + $0x2c8] sm:$0xf]  ;;  %v333_v26 = vld [vmem:[%s3671_s25 + $0x2d0] sm:$0xf] }
  0x51   : > { %v335_v27 = vld [vmem:[%s3671_s25 + $0x2d8] sm:$0xf]  ;;  %332 = vst [vmem:[%s3675_s26 + $0x164] sm:$0xf] %v331_v25  ;;  %334 = vst [vmem:[%s3675_s26 + $0x168] sm:$0xf] %v333_v26 }
  0x52   : > { %336 = vst [vmem:[%s3675_s26 + $0x16c] sm:$0xf] %v335_v27  ;;  %v337_v28 = vld [vmem:[%s3671_s25 + $0x2e0] sm:$0xf]  ;;  %v339_v29 = vld [vmem:[%s3671_s25 + $0x2e8] sm:$0xf] }
  0x53   : > { %v341_v30 = vld [vmem:[%s3671_s25 + $0x2f0] sm:$0xf]  ;;  %338 = vst [vmem:[%s3675_s26 + $0x170] sm:$0xf] %v337_v28  ;;  %340 = vst [vmem:[%s3675_s26 + $0x174] sm:$0xf] %v339_v29 }
  0x54   : > { %342 = vst [vmem:[%s3675_s26 + $0x178] sm:$0xf] %v341_v30  ;;  %v343_v31 = vld [vmem:[%s3671_s25 + $0x2f8] sm:$0xf]  ;;  %v345_v32 = vld [vmem:[%s3671_s25 + $0x300] sm:$0xf] }
  0x55   : > { %v347_v33 = vld [vmem:[%s3671_s25 + $0x308] sm:$0xf]  ;;  %344 = vst [vmem:[%s3675_s26 + $0x17c] sm:$0xf] %v343_v31  ;;  %346 = vst [vmem:[%s3675_s26 + $0x180] sm:$0xf] %v345_v32 }
  0x56   : > { %348 = vst [vmem:[%s3675_s26 + $0x184] sm:$0xf] %v347_v33  ;;  %v349_v34 = vld [vmem:[%s3671_s25 + $0x310] sm:$0xf]  ;;  %v351_v35 = vld [vmem:[%s3671_s25 + $0x318] sm:$0xf] }
  0x57   : > { %v353_v36 = vld [vmem:[%s3671_s25 + $0x320] sm:$0xf]  ;;  %350 = vst [vmem:[%s3675_s26 + $0x188] sm:$0xf] %v349_v34  ;;  %352 = vst [vmem:[%s3675_s26 + $0x18c] sm:$0xf] %v351_v35 }
  0x58   : > { %354 = vst [vmem:[%s3675_s26 + $0x190] sm:$0xf] %v353_v36  ;;  %v355_v37 = vld [vmem:[%s3671_s25 + $0x328] sm:$0xf]  ;;  %v357_v38 = vld [vmem:[%s3671_s25 + $0x330] sm:$0xf] }
  0x59   : > { %v359_v39 = vld [vmem:[%s3671_s25 + $0x338] sm:$0xf]  ;;  %356 = vst [vmem:[%s3675_s26 + $0x194] sm:$0xf] %v355_v37  ;;  %358 = vst [vmem:[%s3675_s26 + $0x198] sm:$0xf] %v357_v38 }
  0x5a   : > { %360 = vst [vmem:[%s3675_s26 + $0x19c] sm:$0xf] %v359_v39  ;;  %v361_v40 = vld [vmem:[%s3671_s25 + $0x340] sm:$0xf]  ;;  %v363_v41 = vld [vmem:[%s3671_s25 + $0x348] sm:$0xf] }
  0x5b   : > { %v365_v42 = vld [vmem:[%s3671_s25 + $0x350] sm:$0xf]  ;;  %362 = vst [vmem:[%s3675_s26 + $0x1a0] sm:$0xf] %v361_v40  ;;  %364 = vst [vmem:[%s3675_s26 + $0x1a4] sm:$0xf] %v363_v41 }
  0x5c   : > { %366 = vst [vmem:[%s3675_s26 + $0x1a8] sm:$0xf] %v365_v42  ;;  %v367_v43 = vld [vmem:[%s3671_s25 + $0x358] sm:$0xf]  ;;  %v369_v44 = vld [vmem:[%s3671_s25 + $0x360] sm:$0xf] }
  0x5d   : > { %v371_v45 = vld [vmem:[%s3671_s25 + $0x368] sm:$0xf]  ;;  %368 = vst [vmem:[%s3675_s26 + $0x1ac] sm:$0xf] %v367_v43  ;;  %370 = vst [vmem:[%s3675_s26 + $0x1b0] sm:$0xf] %v369_v44 }
  0x5e   : > { %372 = vst [vmem:[%s3675_s26 + $0x1b4] sm:$0xf] %v371_v45  ;;  %v373_v46 = vld [vmem:[%s3671_s25 + $0x370] sm:$0xf]  ;;  %v375_v47 = vld [vmem:[%s3671_s25 + $0x378] sm:$0xf] }
  0x5f   : > { %v377_v48 = vld [vmem:[%s3671_s25 + $0x380] sm:$0xf]  ;;  %374 = vst [vmem:[%s3675_s26 + $0x1b8] sm:$0xf] %v373_v46  ;;  %376 = vst [vmem:[%s3675_s26 + $0x1bc] sm:$0xf] %v375_v47 }
  0x60   : > { %378 = vst [vmem:[%s3675_s26 + $0x1c0] sm:$0xf] %v377_v48  ;;  %v379_v49 = vld [vmem:[%s3671_s25 + $0x388] sm:$0xf]  ;;  %v381_v50 = vld [vmem:[%s3671_s25 + $0x390] sm:$0xf] }
  0x61   : > { %v383_v51 = vld [vmem:[%s3671_s25 + $0x398] sm:$0xf]  ;;  %380 = vst [vmem:[%s3675_s26 + $0x1c4] sm:$0xf] %v379_v49  ;;  %382 = vst [vmem:[%s3675_s26 + $0x1c8] sm:$0xf] %v381_v50 }
  0x62   : > { %384 = vst [vmem:[%s3675_s26 + $0x1cc] sm:$0xf] %v383_v51  ;;  %v385_v52 = vld [vmem:[%s3671_s25 + $0x3a0] sm:$0xf]  ;;  %v387_v53 = vld [vmem:[%s3671_s25 + $0x3a8] sm:$0xf] }
  0x63   : > { %v389_v54 = vld [vmem:[%s3671_s25 + $0x3b0] sm:$0xf]  ;;  %386 = vst [vmem:[%s3675_s26 + $0x1d0] sm:$0xf] %v385_v52  ;;  %388 = vst [vmem:[%s3675_s26 + $0x1d4] sm:$0xf] %v387_v53 }
  0x64   : > { %390 = vst [vmem:[%s3675_s26 + $0x1d8] sm:$0xf] %v389_v54  ;;  %v391_v55 = vld [vmem:[%s3671_s25 + $0x3b8] sm:$0xf]  ;;  %v393_v56 = vld [vmem:[%s3671_s25 + $0x3c0] sm:$0xf] }
  0x65   : > { %v395_v57 = vld [vmem:[%s3671_s25 + $0x3c8] sm:$0xf]  ;;  %392 = vst [vmem:[%s3675_s26 + $0x1dc] sm:$0xf] %v391_v55  ;;  %394 = vst [vmem:[%s3675_s26 + $0x1e0] sm:$0xf] %v393_v56 }
  0x66   : > { %396 = vst [vmem:[%s3675_s26 + $0x1e4] sm:$0xf] %v395_v57  ;;  %v397_v58 = vld [vmem:[%s3671_s25 + $0x3d0] sm:$0xf]  ;;  %v399_v59 = vld [vmem:[%s3671_s25 + $0x3d8] sm:$0xf] }
  0x67   : > { %v401_v60 = vld [vmem:[%s3671_s25 + $0x3e0] sm:$0xf]  ;;  %398 = vst [vmem:[%s3675_s26 + $0x1e8] sm:$0xf] %v397_v58  ;;  %400 = vst [vmem:[%s3675_s26 + $0x1ec] sm:$0xf] %v399_v59 }
  0x68   : > { %402 = vst [vmem:[%s3675_s26 + $0x1f0] sm:$0xf] %v401_v60  ;;  %v403_v61 = vld [vmem:[%s3671_s25 + $0x3e8] sm:$0xf]  ;;  %v405_v62 = vld [vmem:[%s3671_s25 + $0x3f0] sm:$0xf] }
  0x69   : > { %v407_v63 = vld [vmem:[%s3671_s25 + $0x3f8] sm:$0xf]  ;;  %404 = vst [vmem:[%s3675_s26 + $0x1f4] sm:$0xf] %v403_v61  ;;  %406 = vst [vmem:[%s3675_s26 + $0x1f8] sm:$0xf] %v405_v62 }
  0x6a   : > { %408 = vst [vmem:[%s3675_s26 + $0x1fc] sm:$0xf] %v407_v63  ;;  %v409_v0 = vld [vmem:[%s3671_s25 + $0x400] sm:$0xf]  ;;  %v411_v1 = vld [vmem:[%s3671_s25 + $0x408] sm:$0xf] }
  0x6b   : > { %v413_v2 = vld [vmem:[%s3671_s25 + $0x410] sm:$0xf]  ;;  %410 = vst [vmem:[%s3675_s26 + $0x200] sm:$0xf] %v409_v0  ;;  %412 = vst [vmem:[%s3675_s26 + $0x204] sm:$0xf] %v411_v1 }
  0x6c   : > { %414 = vst [vmem:[%s3675_s26 + $0x208] sm:$0xf] %v413_v2  ;;  %v415_v3 = vld [vmem:[%s3671_s25 + $0x418] sm:$0xf]  ;;  %v417_v4 = vld [vmem:[%s3671_s25 + $0x420] sm:$0xf] }
  0x6d   : > { %v419_v5 = vld [vmem:[%s3671_s25 + $0x428] sm:$0xf]  ;;  %416 = vst [vmem:[%s3675_s26 + $0x20c] sm:$0xf] %v415_v3  ;;  %418 = vst [vmem:[%s3675_s26 + $0x210] sm:$0xf] %v417_v4 }
  0x6e   : > { %420 = vst [vmem:[%s3675_s26 + $0x214] sm:$0xf] %v419_v5  ;;  %v421_v6 = vld [vmem:[%s3671_s25 + $0x430] sm:$0xf]  ;;  %v423_v7 = vld [vmem:[%s3671_s25 + $0x438] sm:$0xf] }
  0x6f   : > { %v425_v8 = vld [vmem:[%s3671_s25 + $0x440] sm:$0xf]  ;;  %422 = vst [vmem:[%s3675_s26 + $0x218] sm:$0xf] %v421_v6  ;;  %424 = vst [vmem:[%s3675_s26 + $0x21c] sm:$0xf] %v423_v7 }
  0x70   : > { %426 = vst [vmem:[%s3675_s26 + $0x220] sm:$0xf] %v425_v8  ;;  %v427_v9 = vld [vmem:[%s3671_s25 + $0x448] sm:$0xf]  ;;  %v429_v10 = vld [vmem:[%s3671_s25 + $0x450] sm:$0xf] }
  0x71   : > { %v431_v11 = vld [vmem:[%s3671_s25 + $0x458] sm:$0xf]  ;;  %428 = vst [vmem:[%s3675_s26 + $0x224] sm:$0xf] %v427_v9  ;;  %430 = vst [vmem:[%s3675_s26 + $0x228] sm:$0xf] %v429_v10 }
  0x72   : > { %432 = vst [vmem:[%s3675_s26 + $0x22c] sm:$0xf] %v431_v11  ;;  %v433_v12 = vld [vmem:[%s3671_s25 + $0x460] sm:$0xf]  ;;  %v435_v13 = vld [vmem:[%s3671_s25 + $0x468] sm:$0xf] }
  0x73   : > { %v437_v14 = vld [vmem:[%s3671_s25 + $0x470] sm:$0xf]  ;;  %434 = vst [vmem:[%s3675_s26 + $0x230] sm:$0xf] %v433_v12  ;;  %436 = vst [vmem:[%s3675_s26 + $0x234] sm:$0xf] %v435_v13 }
  0x74   : > { %438 = vst [vmem:[%s3675_s26 + $0x238] sm:$0xf] %v437_v14  ;;  %v439_v15 = vld [vmem:[%s3671_s25 + $0x478] sm:$0xf]  ;;  %v441_v16 = vld [vmem:[%s3671_s25 + $0x480] sm:$0xf] }
  0x75   : > { %v443_v17 = vld [vmem:[%s3671_s25 + $0x488] sm:$0xf]  ;;  %440 = vst [vmem:[%s3675_s26 + $0x23c] sm:$0xf] %v439_v15  ;;  %442 = vst [vmem:[%s3675_s26 + $0x240] sm:$0xf] %v441_v16 }
  0x76   : > { %444 = vst [vmem:[%s3675_s26 + $0x244] sm:$0xf] %v443_v17  ;;  %v445_v18 = vld [vmem:[%s3671_s25 + $0x490] sm:$0xf]  ;;  %v447_v19 = vld [vmem:[%s3671_s25 + $0x498] sm:$0xf] }
  0x77   : > { %v449_v20 = vld [vmem:[%s3671_s25 + $0x4a0] sm:$0xf]  ;;  %446 = vst [vmem:[%s3675_s26 + $0x248] sm:$0xf] %v445_v18  ;;  %448 = vst [vmem:[%s3675_s26 + $0x24c] sm:$0xf] %v447_v19 }
  0x78   : > { %450 = vst [vmem:[%s3675_s26 + $0x250] sm:$0xf] %v449_v20  ;;  %v451_v21 = vld [vmem:[%s3671_s25 + $0x4a8] sm:$0xf]  ;;  %v453_v22 = vld [vmem:[%s3671_s25 + $0x4b0] sm:$0xf] }
  0x79   : > { %v455_v23 = vld [vmem:[%s3671_s25 + $0x4b8] sm:$0xf]  ;;  %452 = vst [vmem:[%s3675_s26 + $0x254] sm:$0xf] %v451_v21  ;;  %454 = vst [vmem:[%s3675_s26 + $0x258] sm:$0xf] %v453_v22 }
  0x7a   : > { %456 = vst [vmem:[%s3675_s26 + $0x25c] sm:$0xf] %v455_v23  ;;  %v457_v24 = vld [vmem:[%s3671_s25 + $0x4c0] sm:$0xf]  ;;  %v459_v25 = vld [vmem:[%s3671_s25 + $0x4c8] sm:$0xf] }
  0x7b   : > { %v461_v26 = vld [vmem:[%s3671_s25 + $0x4d0] sm:$0xf]  ;;  %458 = vst [vmem:[%s3675_s26 + $0x260] sm:$0xf] %v457_v24  ;;  %460 = vst [vmem:[%s3675_s26 + $0x264] sm:$0xf] %v459_v25 }
  0x7c   : > { %462 = vst [vmem:[%s3675_s26 + $0x268] sm:$0xf] %v461_v26  ;;  %v463_v27 = vld [vmem:[%s3671_s25 + $0x4d8] sm:$0xf]  ;;  %v465_v28 = vld [vmem:[%s3671_s25 + $0x4e0] sm:$0xf] }
  0x7d   : > { %v467_v29 = vld [vmem:[%s3671_s25 + $0x4e8] sm:$0xf]  ;;  %464 = vst [vmem:[%s3675_s26 + $0x26c] sm:$0xf] %v463_v27  ;;  %466 = vst [vmem:[%s3675_s26 + $0x270] sm:$0xf] %v465_v28 }
  0x7e   : > { %468 = vst [vmem:[%s3675_s26 + $0x274] sm:$0xf] %v467_v29  ;;  %v469_v30 = vld [vmem:[%s3671_s25 + $0x4f0] sm:$0xf]  ;;  %v471_v31 = vld [vmem:[%s3671_s25 + $0x4f8] sm:$0xf] }
  0x7f   : > { %v473_v32 = vld [vmem:[%s3671_s25 + $0x500] sm:$0xf]  ;;  %470 = vst [vmem:[%s3675_s26 + $0x278] sm:$0xf] %v469_v30  ;;  %472 = vst [vmem:[%s3675_s26 + $0x27c] sm:$0xf] %v471_v31 }
  0x80   : > { %474 = vst [vmem:[%s3675_s26 + $0x280] sm:$0xf] %v473_v32  ;;  %v475_v33 = vld [vmem:[%s3671_s25 + $0x508] sm:$0xf]  ;;  %v477_v34 = vld [vmem:[%s3671_s25 + $0x510] sm:$0xf] }
  0x81   : > { %v479_v35 = vld [vmem:[%s3671_s25 + $0x518] sm:$0xf]  ;;  %476 = vst [vmem:[%s3675_s26 + $0x284] sm:$0xf] %v475_v33  ;;  %478 = vst [vmem:[%s3675_s26 + $0x288] sm:$0xf] %v477_v34 }
  0x82   : > { %480 = vst [vmem:[%s3675_s26 + $0x28c] sm:$0xf] %v479_v35  ;;  %v481_v36 = vld [vmem:[%s3671_s25 + $0x520] sm:$0xf]  ;;  %v483_v37 = vld [vmem:[%s3671_s25 + $0x528] sm:$0xf] }
  0x83   : > { %v485_v38 = vld [vmem:[%s3671_s25 + $0x530] sm:$0xf]  ;;  %482 = vst [vmem:[%s3675_s26 + $0x290] sm:$0xf] %v481_v36  ;;  %484 = vst [vmem:[%s3675_s26 + $0x294] sm:$0xf] %v483_v37 }
  0x84   : > { %486 = vst [vmem:[%s3675_s26 + $0x298] sm:$0xf] %v485_v38  ;;  %v487_v39 = vld [vmem:[%s3671_s25 + $0x538] sm:$0xf]  ;;  %v489_v40 = vld [vmem:[%s3671_s25 + $0x540] sm:$0xf] }
  0x85   : > { %v491_v41 = vld [vmem:[%s3671_s25 + $0x548] sm:$0xf]  ;;  %488 = vst [vmem:[%s3675_s26 + $0x29c] sm:$0xf] %v487_v39  ;;  %490 = vst [vmem:[%s3675_s26 + $0x2a0] sm:$0xf] %v489_v40 }
  0x86   : > { %492 = vst [vmem:[%s3675_s26 + $0x2a4] sm:$0xf] %v491_v41  ;;  %v493_v42 = vld [vmem:[%s3671_s25 + $0x550] sm:$0xf]  ;;  %v495_v43 = vld [vmem:[%s3671_s25 + $0x558] sm:$0xf] }
  0x87   : > { %v497_v44 = vld [vmem:[%s3671_s25 + $0x560] sm:$0xf]  ;;  %494 = vst [vmem:[%s3675_s26 + $0x2a8] sm:$0xf] %v493_v42  ;;  %496 = vst [vmem:[%s3675_s26 + $0x2ac] sm:$0xf] %v495_v43 }
  0x88   : > { %498 = vst [vmem:[%s3675_s26 + $0x2b0] sm:$0xf] %v497_v44  ;;  %v499_v45 = vld [vmem:[%s3671_s25 + $0x568] sm:$0xf]  ;;  %v501_v46 = vld [vmem:[%s3671_s25 + $0x570] sm:$0xf] }
  0x89   : > { %v503_v47 = vld [vmem:[%s3671_s25 + $0x578] sm:$0xf]  ;;  %500 = vst [vmem:[%s3675_s26 + $0x2b4] sm:$0xf] %v499_v45  ;;  %502 = vst [vmem:[%s3675_s26 + $0x2b8] sm:$0xf] %v501_v46 }
  0x8a   : > { %504 = vst [vmem:[%s3675_s26 + $0x2bc] sm:$0xf] %v503_v47  ;;  %v505_v48 = vld [vmem:[%s3671_s25 + $0x580] sm:$0xf]  ;;  %v507_v49 = vld [vmem:[%s3671_s25 + $0x588] sm:$0xf] }
  0x8b   : > { %v509_v50 = vld [vmem:[%s3671_s25 + $0x590] sm:$0xf]  ;;  %506 = vst [vmem:[%s3675_s26 + $0x2c0] sm:$0xf] %v505_v48  ;;  %508 = vst [vmem:[%s3675_s26 + $0x2c4] sm:$0xf] %v507_v49 }
  0x8c   : > { %510 = vst [vmem:[%s3675_s26 + $0x2c8] sm:$0xf] %v509_v50  ;;  %v511_v51 = vld [vmem:[%s3671_s25 + $0x598] sm:$0xf]  ;;  %v513_v52 = vld [vmem:[%s3671_s25 + $0x5a0] sm:$0xf] }
  0x8d   : > { %v515_v53 = vld [vmem:[%s3671_s25 + $0x5a8] sm:$0xf]  ;;  %512 = vst [vmem:[%s3675_s26 + $0x2cc] sm:$0xf] %v511_v51  ;;  %514 = vst [vmem:[%s3675_s26 + $0x2d0] sm:$0xf] %v513_v52 }
  0x8e   : > { %516 = vst [vmem:[%s3675_s26 + $0x2d4] sm:$0xf] %v515_v53  ;;  %v517_v54 = vld [vmem:[%s3671_s25 + $0x5b0] sm:$0xf]  ;;  %v519_v55 = vld [vmem:[%s3671_s25 + $0x5b8] sm:$0xf] }
  0x8f   : > { %v521_v56 = vld [vmem:[%s3671_s25 + $0x5c0] sm:$0xf]  ;;  %518 = vst [vmem:[%s3675_s26 + $0x2d8] sm:$0xf] %v517_v54  ;;  %520 = vst [vmem:[%s3675_s26 + $0x2dc] sm:$0xf] %v519_v55 }
  0x90   : > { %522 = vst [vmem:[%s3675_s26 + $0x2e0] sm:$0xf] %v521_v56  ;;  %v523_v57 = vld [vmem:[%s3671_s25 + $0x5c8] sm:$0xf]  ;;  %v525_v58 = vld [vmem:[%s3671_s25 + $0x5d0] sm:$0xf] }
  0x91   : > { %v527_v59 = vld [vmem:[%s3671_s25 + $0x5d8] sm:$0xf]  ;;  %524 = vst [vmem:[%s3675_s26 + $0x2e4] sm:$0xf] %v523_v57  ;;  %526 = vst [vmem:[%s3675_s26 + $0x2e8] sm:$0xf] %v525_v58 }
  0x92   : > { %528 = vst [vmem:[%s3675_s26 + $0x2ec] sm:$0xf] %v527_v59  ;;  %v529_v60 = vld [vmem:[%s3671_s25 + $0x5e0] sm:$0xf]  ;;  %v531_v61 = vld [vmem:[%s3671_s25 + $0x5e8] sm:$0xf] }
  0x93   : > { %v533_v62 = vld [vmem:[%s3671_s25 + $0x5f0] sm:$0xf]  ;;  %530 = vst [vmem:[%s3675_s26 + $0x2f0] sm:$0xf] %v529_v60  ;;  %532 = vst [vmem:[%s3675_s26 + $0x2f4] sm:$0xf] %v531_v61 }
  0x94   : > { %534 = vst [vmem:[%s3675_s26 + $0x2f8] sm:$0xf] %v533_v62  ;;  %v535_v63 = vld [vmem:[%s3671_s25 + $0x5f8] sm:$0xf]  ;;  %v537_v0 = vld [vmem:[%s3671_s25 + $0x600] sm:$0xf] }
  0x95   : > { %v539_v1 = vld [vmem:[%s3671_s25 + $0x608] sm:$0xf]  ;;  %536 = vst [vmem:[%s3675_s26 + $0x2fc] sm:$0xf] %v535_v63  ;;  %538 = vst [vmem:[%s3675_s26 + $0x300] sm:$0xf] %v537_v0 }
  0x96   : > { %540 = vst [vmem:[%s3675_s26 + $0x304] sm:$0xf] %v539_v1  ;;  %v541_v2 = vld [vmem:[%s3671_s25 + $0x610] sm:$0xf]  ;;  %v543_v3 = vld [vmem:[%s3671_s25 + $0x618] sm:$0xf] }
  0x97   : > { %v545_v4 = vld [vmem:[%s3671_s25 + $0x620] sm:$0xf]  ;;  %542 = vst [vmem:[%s3675_s26 + $0x308] sm:$0xf] %v541_v2  ;;  %544 = vst [vmem:[%s3675_s26 + $0x30c] sm:$0xf] %v543_v3 }
  0x98   : > { %546 = vst [vmem:[%s3675_s26 + $0x310] sm:$0xf] %v545_v4  ;;  %v547_v5 = vld [vmem:[%s3671_s25 + $0x628] sm:$0xf]  ;;  %v549_v6 = vld [vmem:[%s3671_s25 + $0x630] sm:$0xf] }
  0x99   : > { %v551_v7 = vld [vmem:[%s3671_s25 + $0x638] sm:$0xf]  ;;  %548 = vst [vmem:[%s3675_s26 + $0x314] sm:$0xf] %v547_v5  ;;  %550 = vst [vmem:[%s3675_s26 + $0x318] sm:$0xf] %v549_v6 }
  0x9a   : > { %552 = vst [vmem:[%s3675_s26 + $0x31c] sm:$0xf] %v551_v7  ;;  %v553_v8 = vld [vmem:[%s3671_s25 + $0x640] sm:$0xf]  ;;  %v555_v9 = vld [vmem:[%s3671_s25 + $0x648] sm:$0xf] }
  0x9b   : > { %v557_v10 = vld [vmem:[%s3671_s25 + $0x650] sm:$0xf]  ;;  %554 = vst [vmem:[%s3675_s26 + $0x320] sm:$0xf] %v553_v8  ;;  %556 = vst [vmem:[%s3675_s26 + $0x324] sm:$0xf] %v555_v9 }
  0x9c   : > { %558 = vst [vmem:[%s3675_s26 + $0x328] sm:$0xf] %v557_v10  ;;  %v559_v11 = vld [vmem:[%s3671_s25 + $0x658] sm:$0xf]  ;;  %v561_v12 = vld [vmem:[%s3671_s25 + $0x660] sm:$0xf] }
  0x9d   : > { %v563_v13 = vld [vmem:[%s3671_s25 + $0x668] sm:$0xf]  ;;  %560 = vst [vmem:[%s3675_s26 + $0x32c] sm:$0xf] %v559_v11  ;;  %562 = vst [vmem:[%s3675_s26 + $0x330] sm:$0xf] %v561_v12 }
  0x9e   : > { %564 = vst [vmem:[%s3675_s26 + $0x334] sm:$0xf] %v563_v13  ;;  %v565_v14 = vld [vmem:[%s3671_s25 + $0x670] sm:$0xf]  ;;  %v567_v15 = vld [vmem:[%s3671_s25 + $0x678] sm:$0xf] }
  0x9f   : > { %v569_v16 = vld [vmem:[%s3671_s25 + $0x680] sm:$0xf]  ;;  %566 = vst [vmem:[%s3675_s26 + $0x338] sm:$0xf] %v565_v14  ;;  %568 = vst [vmem:[%s3675_s26 + $0x33c] sm:$0xf] %v567_v15 }
  0xa0   : > { %570 = vst [vmem:[%s3675_s26 + $0x340] sm:$0xf] %v569_v16  ;;  %v571_v17 = vld [vmem:[%s3671_s25 + $0x688] sm:$0xf]  ;;  %v573_v18 = vld [vmem:[%s3671_s25 + $0x690] sm:$0xf] }
  0xa1   : > { %v575_v19 = vld [vmem:[%s3671_s25 + $0x698] sm:$0xf]  ;;  %572 = vst [vmem:[%s3675_s26 + $0x344] sm:$0xf] %v571_v17  ;;  %574 = vst [vmem:[%s3675_s26 + $0x348] sm:$0xf] %v573_v18 }
  0xa2   : > { %576 = vst [vmem:[%s3675_s26 + $0x34c] sm:$0xf] %v575_v19  ;;  %v577_v20 = vld [vmem:[%s3671_s25 + $0x6a0] sm:$0xf]  ;;  %v579_v21 = vld [vmem:[%s3671_s25 + $0x6a8] sm:$0xf] }
  0xa3   : > { %v581_v22 = vld [vmem:[%s3671_s25 + $0x6b0] sm:$0xf]  ;;  %578 = vst [vmem:[%s3675_s26 + $0x350] sm:$0xf] %v577_v20  ;;  %580 = vst [vmem:[%s3675_s26 + $0x354] sm:$0xf] %v579_v21 }
  0xa4   : > { %582 = vst [vmem:[%s3675_s26 + $0x358] sm:$0xf] %v581_v22  ;;  %v583_v23 = vld [vmem:[%s3671_s25 + $0x6b8] sm:$0xf]  ;;  %v585_v24 = vld [vmem:[%s3671_s25 + $0x6c0] sm:$0xf] }
  0xa5   : > { %v587_v25 = vld [vmem:[%s3671_s25 + $0x6c8] sm:$0xf]  ;;  %584 = vst [vmem:[%s3675_s26 + $0x35c] sm:$0xf] %v583_v23  ;;  %586 = vst [vmem:[%s3675_s26 + $0x360] sm:$0xf] %v585_v24 }
  0xa6   : > { %588 = vst [vmem:[%s3675_s26 + $0x364] sm:$0xf] %v587_v25  ;;  %v589_v26 = vld [vmem:[%s3671_s25 + $0x6d0] sm:$0xf]  ;;  %v591_v27 = vld [vmem:[%s3671_s25 + $0x6d8] sm:$0xf] }
  0xa7   : > { %v593_v28 = vld [vmem:[%s3671_s25 + $0x6e0] sm:$0xf]  ;;  %590 = vst [vmem:[%s3675_s26 + $0x368] sm:$0xf] %v589_v26  ;;  %592 = vst [vmem:[%s3675_s26 + $0x36c] sm:$0xf] %v591_v27 }
  0xa8   : > { %594 = vst [vmem:[%s3675_s26 + $0x370] sm:$0xf] %v593_v28  ;;  %v595_v29 = vld [vmem:[%s3671_s25 + $0x6e8] sm:$0xf]  ;;  %v597_v30 = vld [vmem:[%s3671_s25 + $0x6f0] sm:$0xf] }
  0xa9   : > { %v599_v31 = vld [vmem:[%s3671_s25 + $0x6f8] sm:$0xf]  ;;  %596 = vst [vmem:[%s3675_s26 + $0x374] sm:$0xf] %v595_v29  ;;  %598 = vst [vmem:[%s3675_s26 + $0x378] sm:$0xf] %v597_v30 }
  0xaa   : > { %600 = vst [vmem:[%s3675_s26 + $0x37c] sm:$0xf] %v599_v31  ;;  %v601_v32 = vld [vmem:[%s3671_s25 + $0x700] sm:$0xf]  ;;  %v603_v33 = vld [vmem:[%s3671_s25 + $0x708] sm:$0xf] }
  0xab   : > { %v605_v34 = vld [vmem:[%s3671_s25 + $0x710] sm:$0xf]  ;;  %602 = vst [vmem:[%s3675_s26 + $0x380] sm:$0xf] %v601_v32  ;;  %604 = vst [vmem:[%s3675_s26 + $0x384] sm:$0xf] %v603_v33 }
  0xac   : > { %606 = vst [vmem:[%s3675_s26 + $0x388] sm:$0xf] %v605_v34  ;;  %v607_v35 = vld [vmem:[%s3671_s25 + $0x718] sm:$0xf]  ;;  %v609_v36 = vld [vmem:[%s3671_s25 + $0x720] sm:$0xf] }
  0xad   : > { %v611_v37 = vld [vmem:[%s3671_s25 + $0x728] sm:$0xf]  ;;  %608 = vst [vmem:[%s3675_s26 + $0x38c] sm:$0xf] %v607_v35  ;;  %610 = vst [vmem:[%s3675_s26 + $0x390] sm:$0xf] %v609_v36 }
  0xae   : > { %612 = vst [vmem:[%s3675_s26 + $0x394] sm:$0xf] %v611_v37  ;;  %v613_v38 = vld [vmem:[%s3671_s25 + $0x730] sm:$0xf]  ;;  %v615_v39 = vld [vmem:[%s3671_s25 + $0x738] sm:$0xf] }
  0xaf   : > { %v617_v40 = vld [vmem:[%s3671_s25 + $0x740] sm:$0xf]  ;;  %614 = vst [vmem:[%s3675_s26 + $0x398] sm:$0xf] %v613_v38  ;;  %616 = vst [vmem:[%s3675_s26 + $0x39c] sm:$0xf] %v615_v39 }
  0xb0   : > { %618 = vst [vmem:[%s3675_s26 + $0x3a0] sm:$0xf] %v617_v40  ;;  %v619_v41 = vld [vmem:[%s3671_s25 + $0x748] sm:$0xf]  ;;  %v621_v42 = vld [vmem:[%s3671_s25 + $0x750] sm:$0xf] }
  0xb1   : > { %v623_v43 = vld [vmem:[%s3671_s25 + $0x758] sm:$0xf]  ;;  %620 = vst [vmem:[%s3675_s26 + $0x3a4] sm:$0xf] %v619_v41  ;;  %622 = vst [vmem:[%s3675_s26 + $0x3a8] sm:$0xf] %v621_v42 }
  0xb2   : > { %624 = vst [vmem:[%s3675_s26 + $0x3ac] sm:$0xf] %v623_v43  ;;  %v625_v44 = vld [vmem:[%s3671_s25 + $0x760] sm:$0xf]  ;;  %v627_v45 = vld [vmem:[%s3671_s25 + $0x768] sm:$0xf] }
  0xb3   : > { %v629_v46 = vld [vmem:[%s3671_s25 + $0x770] sm:$0xf]  ;;  %626 = vst [vmem:[%s3675_s26 + $0x3b0] sm:$0xf] %v625_v44  ;;  %628 = vst [vmem:[%s3675_s26 + $0x3b4] sm:$0xf] %v627_v45 }
  0xb4   : > { %630 = vst [vmem:[%s3675_s26 + $0x3b8] sm:$0xf] %v629_v46  ;;  %v631_v47 = vld [vmem:[%s3671_s25 + $0x778] sm:$0xf]  ;;  %v633_v48 = vld [vmem:[%s3671_s25 + $0x780] sm:$0xf] }
  0xb5   : > { %v635_v49 = vld [vmem:[%s3671_s25 + $0x788] sm:$0xf]  ;;  %632 = vst [vmem:[%s3675_s26 + $0x3bc] sm:$0xf] %v631_v47  ;;  %634 = vst [vmem:[%s3675_s26 + $0x3c0] sm:$0xf] %v633_v48 }
  0xb6   : > { %636 = vst [vmem:[%s3675_s26 + $0x3c4] sm:$0xf] %v635_v49  ;;  %v637_v50 = vld [vmem:[%s3671_s25 + $0x790] sm:$0xf]  ;;  %v639_v51 = vld [vmem:[%s3671_s25 + $0x798] sm:$0xf] }
  0xb7   : > { %v641_v52 = vld [vmem:[%s3671_s25 + $0x7a0] sm:$0xf]  ;;  %638 = vst [vmem:[%s3675_s26 + $0x3c8] sm:$0xf] %v637_v50  ;;  %640 = vst [vmem:[%s3675_s26 + $0x3cc] sm:$0xf] %v639_v51 }
  0xb8   : > { %642 = vst [vmem:[%s3675_s26 + $0x3d0] sm:$0xf] %v641_v52  ;;  %v643_v53 = vld [vmem:[%s3671_s25 + $0x7a8] sm:$0xf]  ;;  %v645_v54 = vld [vmem:[%s3671_s25 + $0x7b0] sm:$0xf] }
  0xb9   : > { %v647_v55 = vld [vmem:[%s3671_s25 + $0x7b8] sm:$0xf]  ;;  %644 = vst [vmem:[%s3675_s26 + $0x3d4] sm:$0xf] %v643_v53  ;;  %646 = vst [vmem:[%s3675_s26 + $0x3d8] sm:$0xf] %v645_v54 }
  0xba   : > { %648 = vst [vmem:[%s3675_s26 + $0x3dc] sm:$0xf] %v647_v55  ;;  %v649_v56 = vld [vmem:[%s3671_s25 + $0x7c0] sm:$0xf]  ;;  %v651_v57 = vld [vmem:[%s3671_s25 + $0x7c8] sm:$0xf] }
  0xbb   : > { %v653_v58 = vld [vmem:[%s3671_s25 + $0x7d0] sm:$0xf]  ;;  %650 = vst [vmem:[%s3675_s26 + $0x3e0] sm:$0xf] %v649_v56  ;;  %652 = vst [vmem:[%s3675_s26 + $0x3e4] sm:$0xf] %v651_v57 }
  0xbc   : > { %654 = vst [vmem:[%s3675_s26 + $0x3e8] sm:$0xf] %v653_v58  ;;  %v655_v59 = vld [vmem:[%s3671_s25 + $0x7d8] sm:$0xf]  ;;  %v657_v60 = vld [vmem:[%s3671_s25 + $0x7e0] sm:$0xf] }
  0xbd   : > { %v659_v61 = vld [vmem:[%s3671_s25 + $0x7e8] sm:$0xf]  ;;  %656 = vst [vmem:[%s3675_s26 + $0x3ec] sm:$0xf] %v655_v59  ;;  %658 = vst [vmem:[%s3675_s26 + $0x3f0] sm:$0xf] %v657_v60 }
  0xbe   : > { %660 = vst [vmem:[%s3675_s26 + $0x3f4] sm:$0xf] %v659_v61  ;;  %v661_v62 = vld [vmem:[%s3671_s25 + $0x7f0] sm:$0xf]  ;;  %v663_v63 = vld [vmem:[%s3671_s25 + $0x7f8] sm:$0xf] }
  0xbf   : > { %662 = vst [vmem:[%s3675_s26 + $0x3f8] sm:$0xf] %v661_v62  ;;  %664 = vst [vmem:[%s3675_s26 + $0x3fc] sm:$0xf] %v663_v63 }
  0xc0 PF: > { %p3009_p8 = scmp.ge.s32.totalorder %s3606_s13, 1  ;;  %p1198_p9 = scmp.lt.s32.totalorder %s3606_s13, 3 }
  0xc2   : > { %p1199_p10 = pnand %p3009_p8, %p1198_p9 }
  0xc3   : > { %s1205_s27 = sand.u32 (!%p1199_p10), 1, %s3590_s9   ;;  %v4193_v0 = vld [vmem:[%s4457_s0] sm:$0xff] (!%p1199_p10)  ;;  %v4203_v2 = vld [vmem:[%s4457_s0 + $0x8] sm:$0xff] (!%p1199_p10) }
  0xc4   : > { %1202 = sbr.rel (%p1199_p10) target bundleno = 569 (0x239), region = 65  ;;  %v4198_v1 = vld [vmem:[%s4457_s0 + $0x40] sm:$0xff] (!%p1199_p10)  ;;  %s3010_s6 = sshll.u32 (!%p1199_p10), %s1205_s27, 10  ;;  %v4212_v4 = vld [vmem:[%s4457_s0 + $0x48] sm:$0xff] (!%p1199_p10) }
  0xc5   : > { %v3013_v3 = vcombine.high (!%p1199_p10), %v4193_v0, %v4198_v1  ;;  %v3015_v5 = vcombine.high (!%p1199_p10), %v4203_v2, %v4212_v4  ;;  %s4216_s15 = scalar_lea.vmem (!%p1199_p10), [#allocation2], %s3010_s6  ;;  %v1256_v35 = vld [vmem:[%s4457_s0 + $0x80] sm:$0xff] (!%p1199_p10)  ;;  %v1257_v38 = vld [vmem:[%s4457_s0 + $0x88] sm:$0xff] (!%p1199_p10)  ;;  %v3012_v42 = vcombine.low (!%p1199_p10), %v4193_v0, %v4198_v1  ;;  %v3014_v43 = vcombine.low (!%p1199_p10), %v4203_v2, %v4212_v4  ;;  %s3011_s17 = sshll.u32 (!%p1199_p10), %s1205_s27, 5 }
  0xc6   : > { %v3440_v6 = vld [vmem:[%s4216_s15 + $0x40] sm:$0xff] (!%p1199_p10)   ;;  %v3444_v10 = vld [vmem:[%s4216_s15 + $0x48] sm:$0xff] (!%p1199_p10)   ;;  %v3448_v14 = vld [vmem:[%s4216_s15 + $0x50] sm:$0xff] (!%p1199_p10)   ;;  %s1230_s20 = scalar_lea.vmem (!%p1199_p10), [#allocation3], %s3011_s17 }
  0xc7   : > { %2488 = vmatprep.mubr.bf16.mxu0 (!%p1199_p10), %v3013_v3  ;;  %v3441_v7 = vld [vmem:[%s4216_s15 + $0xc0] sm:$0xff] (!%p1199_p10)   ;;  %2537 = vmatprep.mubr.bf16.mxu1 (!%p1199_p10), %v3015_v5  ;;  %v3445_v11 = vld [vmem:[%s4216_s15 + $0xc8] sm:$0xff] (!%p1199_p10)   ;;  %v3449_v15 = vld [vmem:[%s4216_s15 + $0xd0] sm:$0xff] (!%p1199_p10)  }
  0xc8   : > { %3176 = vmatprep.subr.bf16.mxu0 (!%p1199_p10), %v3440_v6  ;;  %v3442_v8 = vld [vmem:[%s4216_s15] sm:$0xff] (!%p1199_p10)   ;;  %3204 = vmatprep.subr.bf16.mxu1 (!%p1199_p10), %v3441_v7  ;;  %v3446_v12 = vld [vmem:[%s4216_s15 + $0x8] sm:$0xff] (!%p1199_p10)   ;;  %v3450_v16 = vld [vmem:[%s4216_s15 + $0x10] sm:$0xff] (!%p1199_p10)  }
  0xc9   : > { %v3443_v9 = vld [vmem:[%s4216_s15 + $0x80] sm:$0xff] (!%p1199_p10)   ;;  %3177 = vmatpush3.bf16.msra.mxu0 (!%p1199_p10), %v3442_v8  ;;  %v3447_v13 = vld [vmem:[%s4216_s15 + $0x88] sm:$0xff] (!%p1199_p10)   ;;  %v3451_v17 = vld [vmem:[%s4216_s15 + $0x90] sm:$0xff] (!%p1199_p10)  }
  0xca   : > { %3205 = vmatpush3.bf16.msra.mxu1 (!%p1199_p10), %v3443_v9  ;;  %3178 = vmatprep.subr.bf16.mxu0 (!%p1199_p10), %v3444_v10  ;;  %v3452_v18 = vld [vmem:[%s4216_s15 + $0x58] sm:$0xff] (!%p1199_p10)   ;;  %v3456_v22 = vld [vmem:[%s4216_s15 + $0x60] sm:$0xff] (!%p1199_p10)   ;;  %v3460_v26 = vld [vmem:[%s4216_s15 + $0x68] sm:$0xff] (!%p1199_p10)  }
  0xcb   : > { %3206 = vmatprep.subr.bf16.mxu1 %v3445_v11  ;;  %v3453_v19 = vld [vmem:[%s4216_s15 + $0xd8] sm:$0xff]   ;;  %v3457_v23 = vld [vmem:[%s4216_s15 + $0xe0] sm:$0xff]   ;;  %v3461_v27 = vld [vmem:[%s4216_s15 + $0xe8] sm:$0xff]   ;;  %s3173_s9 = sshll.u32 (%p3658_p6), %s3598_s11, 3 }
  0xcc   : > { %v3454_v20 = vld [vmem:[%s4216_s15 + $0x18] sm:$0xff]   ;;  %v3458_v24 = vld [vmem:[%s4216_s15 + $0x20] sm:$0xff]   ;;  %v3462_v28 = vld [vmem:[%s4216_s15 + $0x28] sm:$0xff]   ;;  %s2875_s22 = scalar_lea.vmem (%p3658_p6), %s4459_s2, %s3173_s9 }
  0xcd   : > { %3179 = vmatpush3.bf16.msra.mxu0 %v3446_v12  ;;  %v3455_v21 = vld [vmem:[%s4216_s15 + $0x98] sm:$0xff]   ;;  %v3459_v25 = vld [vmem:[%s4216_s15 + $0xa0] sm:$0xff]   ;;  %v3463_v29 = vld [vmem:[%s4216_s15 + $0xa8] sm:$0xff]  }
  0xce   : > { %3207 = vmatpush3.bf16.msra.mxu1 %v3447_v13  ;;  %3180 = vmatprep.subr.bf16.mxu0 %v3448_v14  ;;  %v3464_v30 = vld [vmem:[%s4216_s15 + $0x70] sm:$0xff]   ;;  %v3468_v34 = vld [vmem:[%s4216_s15 + $0x78] sm:$0xff]   ;;  %v1264_v36 = vld [vmem:[%s4457_s0 + $0xc0] sm:$0xff] }
  0xcf   : > { %3208 = vmatprep.subr.bf16.mxu1 %v3449_v15  ;;  %v3465_v31 = vld [vmem:[%s4216_s15 + $0xf0] sm:$0xff]   ;;  %v3469_v37 = vld [vmem:[%s4216_s15 + $0xf8] sm:$0xff]   ;;  %v1265_v39 = vld [vmem:[%s4457_s0 + $0xc8] sm:$0xff]  ;;  %v3029_v46 = vcombine.high %v1256_v35, %v1264_v36  ;;  %v3028_v54 = vcombine.low %v1256_v35, %v1264_v36 }
  0xd0   : > { %v3466_v32 = vld [vmem:[%s4216_s15 + $0x30] sm:$0xff]   ;;  %v3470_v40 = vld [vmem:[%s4216_s15 + $0x38] sm:$0xff]   ;;  %v3472_v44 = vld [vmem:[%s4216_s15 + $0x140] sm:$0xff]   ;;  %v3031_v48 = vcombine.high %v1257_v38, %v1265_v39  ;;  %v3030_v56 = vcombine.low %v1257_v38, %v1265_v39 }
  0xd1   : > { %3181 = vmatpush3.bf16.msra.mxu0 %v3450_v16  ;;  %v3467_v33 = vld [vmem:[%s4216_s15 + $0xb0] sm:$0xff]   ;;  %v3471_v41 = vld [vmem:[%s4216_s15 + $0xb8] sm:$0xff]   ;;  %v3473_v45 = vld [vmem:[%s4216_s15 + $0x1c0] sm:$0xff]  }
  0xd2   : > { %3209 = vmatpush3.bf16.msra.mxu1 %v3451_v17  ;;  %3182 = vmatprep.subr.bf16.mxu0 %v3452_v18  ;;  %v3474_v47 = vld [vmem:[%s4216_s15 + $0x100] sm:$0xff]   ;;  %v3476_v50 = vld [vmem:[%s4216_s15 + $0x148] sm:$0xff]   ;;  %v3480_v55 = vld [vmem:[%s4216_s15 + $0x150] sm:$0xff]  }
  0xd3   : > { %3210 = vmatprep.subr.bf16.mxu1 %v3453_v19  ;;  %v3475_v49 = vld [vmem:[%s4216_s15 + $0x180] sm:$0xff]   ;;  %v3477_v51 = vld [vmem:[%s4216_s15 + $0x1c8] sm:$0xff]   ;;  %v3481_v57 = vld [vmem:[%s4216_s15 + $0x1d0] sm:$0xff]  }
  0xd4   : > { %v3478_v52 = vld [vmem:[%s4216_s15 + $0x108] sm:$0xff]   ;;  %v3482_v58 = vld [vmem:[%s4216_s15 + $0x110] sm:$0xff]   ;;  %v3484_v60 = vld [vmem:[%s4216_s15 + $0x158] sm:$0xff]  }
  0xd5   : > { %3183 = vmatpush3.bf16.msra.mxu0 %v3454_v20  ;;  %v3479_v53 = vld [vmem:[%s4216_s15 + $0x188] sm:$0xff]   ;;  %v3483_v59 = vld [vmem:[%s4216_s15 + $0x190] sm:$0xff]   ;;  %v3485_v61 = vld [vmem:[%s4216_s15 + $0x1d8] sm:$0xff]  }
  0xd6   : > { %3211 = vmatpush3.bf16.msra.mxu1 %v3455_v21  ;;  %3184 = vmatprep.subr.bf16.mxu0 %v3456_v22  ;;  %v3486_v62 = vld [vmem:[%s4216_s15 + $0x118] sm:$0xff]   ;;  %v3488_v0 = vld [vmem:[%s4216_s15 + $0x160] sm:$0xff]   ;;  %v3492_v4 = vld [vmem:[%s4216_s15 + $0x168] sm:$0xff]  }
  0xd7   : > { %3212 = vmatprep.subr.bf16.mxu1 %v3457_v23  ;;  %v3487_v63 = vld [vmem:[%s4216_s15 + $0x198] sm:$0xff]   ;;  %v3489_v1 = vld [vmem:[%s4216_s15 + $0x1e0] sm:$0xff]   ;;  %v3493_v5 = vld [vmem:[%s4216_s15 + $0x1e8] sm:$0xff]  }
  0xd8   : > { %v3490_v2 = vld [vmem:[%s4216_s15 + $0x120] sm:$0xff]   ;;  %v3494_v6 = vld [vmem:[%s4216_s15 + $0x128] sm:$0xff]   ;;  %v3496_v8 = vld [vmem:[%s4216_s15 + $0x170] sm:$0xff]  }
  0xd9   : > { %3185 = vmatpush3.bf16.msra.mxu0 %v3458_v24  ;;  %v3491_v3 = vld [vmem:[%s4216_s15 + $0x1a0] sm:$0xff]   ;;  %v3495_v7 = vld [vmem:[%s4216_s15 + $0x1a8] sm:$0xff]   ;;  %v3497_v9 = vld [vmem:[%s4216_s15 + $0x1f0] sm:$0xff]  }
  0xda   : > { %3213 = vmatpush3.bf16.msra.mxu1 %v3459_v25  ;;  %3186 = vmatprep.subr.bf16.mxu0 %v3460_v26  ;;  %v3498_v10 = vld [vmem:[%s4216_s15 + $0x130] sm:$0xff]   ;;  %v3500_v12 = vld [vmem:[%s4216_s15 + $0x178] sm:$0xff]   ;;  %v3504_v24 = vld [vmem:[%s4216_s15 + $0x240] sm:$0xff]  }
  0xdb   : > { %3214 = vmatprep.subr.bf16.mxu1 %v3461_v27  ;;  %v3499_v11 = vld [vmem:[%s4216_s15 + $0x1b0] sm:$0xff]   ;;  %v3501_v14 = vld [vmem:[%s4216_s15 + $0x1f8] sm:$0xff]   ;;  %v3505_v25 = vld [vmem:[%s4216_s15 + $0x2c0] sm:$0xff]  }
  0xdc   : > { %v1242_v13 = vld [vmem:[%s4457_s0 + $0x10] sm:$0xff]  ;;  %v3502_v15 = vld [vmem:[%s4216_s15 + $0x138] sm:$0xff]   ;;  %v3506_v26 = vld [vmem:[%s4216_s15 + $0x200] sm:$0xff]  }
  0xdd   : > { %3187 = vmatpush3.bf16.msra.mxu0 %v3462_v28  ;;  %v3503_v16 = vld [vmem:[%s4216_s15 + $0x1b8] sm:$0xff]   ;;  %v1250_v17 = vld [vmem:[%s4457_s0 + $0x50] sm:$0xff]  ;;  %v3507_v27 = vld [vmem:[%s4216_s15 + $0x280] sm:$0xff]  }
  0xde   : > { %3215 = vmatpush3.bf16.msra.mxu1 %v3463_v29  ;;  %3188 = vmatprep.subr.bf16.mxu0 %v3464_v30  ;;  %v1243_v18 = vld [vmem:[%s4457_s0 + $0x18] sm:$0xff]  ;;  %v3016_v20 = vcombine.low %v1242_v13, %v1250_v17  ;;  %v3017_v21 = vcombine.high %v1242_v13, %v1250_v17  ;;  %v3508_v28 = vld [vmem:[%s4216_s15 + $0x248] sm:$0xff]   ;;  %v3512_v36 = vld [vmem:[%s4216_s15 + $0x250] sm:$0xff]  }
  0xdf   : > { %3216 = vmatprep.subr.bf16.mxu1 %v3465_v31  ;;  %v1251_v19 = vld [vmem:[%s4457_s0 + $0x58] sm:$0xff]  ;;  %v3509_v29 = vld [vmem:[%s4216_s15 + $0x2c8] sm:$0xff]   ;;  %v1268_v17 = vld [vmem:[%s4457_s0 + $0xe0] sm:$0xff] }
  0xe0   : > { %v3018_v22 = vcombine.low %v1243_v18, %v1251_v19  ;;  %v3019_v23 = vcombine.high %v1243_v18, %v1251_v19  ;;  %v3510_v30 = vld [vmem:[%s4216_s15 + $0x208] sm:$0xff]   ;;  %v1259_v38 = vld [vmem:[%s4457_s0 + $0x98] sm:$0xff] }
  0xe1   : > { %3189 = vmatpush3.bf16.msra.mxu0 %v3466_v32  ;;  %v3511_v31 = vld [vmem:[%s4216_s15 + $0x288] sm:$0xff]   ;;  %v1258_v32 = vld [vmem:[%s4457_s0 + $0x90] sm:$0xff]  ;;  %v1267_v39 = vld [vmem:[%s4457_s0 + $0xd8] sm:$0xff] }
  0xe2   : > { %3217 = vmatpush3.bf16.msra.mxu1 %v3467_v33  ;;  %3190 = vmatprep.subr.bf16.mxu0 %v3468_v34  ;;  %v1266_v33 = vld [vmem:[%s4457_s0 + $0xd0] sm:$0xff]  ;;  %v3541_v13 = vld [vmem:[%s4216_s15 + $0x3c8] sm:$0xff]  }
  0xe3   : > { %3218 = vmatprep.subr.bf16.mxu1 %v3469_v37  ;;  %v3033_v34 = vcombine.high %v1258_v32, %v1266_v33  ;;  %v3032_v35 = vcombine.low %v1258_v32, %v1266_v33  ;;  %v3513_v37 = vld [vmem:[%s4216_s15 + $0x2d0] sm:$0xff]   ;;  %v3552_v32 = vld [vmem:[%s4216_s15 + $0x360] sm:$0xff]  }
  0xe4   : > { %v3553_v33 = vld [vmem:[%s4216_s15 + $0x3e0] sm:$0xff]  }
  0xe5   : > { %3191 = vmatpush3.bf16.msra.mxu0 %v3470_v40  ;;  %v3035_v40 = vcombine.high %v1259_v38, %v1267_v39 }
  0xe6   : > { %3219 = vmatpush3.bf16.msra.mxu1 %v3471_v41  ;;  %3232 = vmatprep.subr.bf16.mxu0 %v3472_v44  ;;  %v3514_v41 = vld [vmem:[%s4216_s15 + $0x210] sm:$0xff]   ;;  %v3516_v44 = vld [vmem:[%s4216_s15 + $0x258] sm:$0xff]  }
  0xe7   : > { %3260 = vmatprep.subr.bf16.mxu1 %v3473_v45  ;;  %v3517_v45 = vld [vmem:[%s4216_s15 + $0x2d8] sm:$0xff]  }
  0xe8   : > { %2489 = vmatmul.mubr.bf16.vlgmr.msra.gmra.mrb[0].mxu0 %v3012_v42  ;;  %v3034_v42 = vcombine.low %v1259_v38, %v1267_v39  ;;  %v3558_v38 = vld [vmem:[%s4216_s15 + $0x328] sm:$0xff]  }
  0xe9   : > { %2538 = vmatmul.mubr.bf16.vlgmr.msra.gmra.mrb[0].mxu1 %v3014_v43  ;;  %3233 = vmatpush3.bf16.msra.mxu0 %v3474_v47  ;;  %v3515_v43 = vld [vmem:[%s4216_s15 + $0x290] sm:$0xff]   ;;  %v3519_v47 = vld [vmem:[%s4216_s15 + $0x298] sm:$0xff]   ;;  %v3559_v39 = vld [vmem:[%s4216_s15 + $0x3a8] sm:$0xff]  }
  0xea   : > { %3261 = vmatpush3.bf16.msra.mxu1 %v3475_v49  ;;  %2496 = vmatprep.mubr.bf16.mxu0 %v3029_v46  ;;  %v3518_v46 = vld [vmem:[%s4216_s15 + $0x218] sm:$0xff]   ;;  %v3521_v49 = vld [vmem:[%s4216_s15 + $0x2e0] sm:$0xff]  }
  0xeb   : > { %3234 = vmatprep.subr.bf16.mxu0 %v3476_v50  ;;  %2545 = vmatprep.mubr.bf16.mxu1 %v3031_v48  ;;  %v3520_v48 = vld [vmem:[%s4216_s15 + $0x260] sm:$0xff]  }
  0xec   : > { %3262 = vmatprep.subr.bf16.mxu1 %v3477_v51  ;;  %v3522_v50 = vld [vmem:[%s4216_s15 + $0x220] sm:$0xff]  }
  0xed   : > { %3235 = vmatpush3.bf16.msra.mxu0 %v3478_v52  ;;  %v3523_v51 = vld [vmem:[%s4216_s15 + $0x2a0] sm:$0xff]   ;;  %v3524_v52 = vld [vmem:[%s4216_s15 + $0x268] sm:$0xff]  }
  0xee   : > { %3263 = vmatpush3.bf16.msra.mxu1 %v3479_v53  ;;  %3236 = vmatprep.subr.bf16.mxu0 %v3480_v55  ;;  %v3525_v53 = vld [vmem:[%s4216_s15 + $0x2e8] sm:$0xff]  }
  0xef   : > { %3264 = vmatprep.subr.bf16.mxu1 %v3481_v57  ;;  %v3527_v55 = vld [vmem:[%s4216_s15 + $0x2a8] sm:$0xff]   ;;  %v3529_v57 = vld [vmem:[%s4216_s15 + $0x2f0] sm:$0xff]  }
  0xf0   : > { %2497 = vmatmul.mubr.bf16.gmra.mrb[4].mxu0 %v3028_v54  ;;  %v3526_v54 = vld [vmem:[%s4216_s15 + $0x228] sm:$0xff]  }
  0xf1   : > { %3237 = vmatpush3.bf16.msra.mxu0 %v3482_v58  ;;  %2546 = vmatmul.mubr.bf16.gmra.mrb[4].mxu1 %v3030_v56  ;;  %v3528_v56 = vld [vmem:[%s4216_s15 + $0x270] sm:$0xff]  }
  0xf2   : > { %3265 = vmatpush3.bf16.msra.mxu1 %v3483_v59  ;;  %3238 = vmatprep.subr.bf16.mxu0 %v3484_v60  ;;  %v3530_v58 = vld [vmem:[%s4216_s15 + $0x230] sm:$0xff]   ;;  %v3532_v60 = vld [vmem:[%s4216_s15 + $0x278] sm:$0xff]  }
  0xf3   : > { %3266 = vmatprep.subr.bf16.mxu1 %v3485_v61  ;;  %2586 = vmatprep.mubr.bf16.mxu0 %v3017_v21  ;;  %v3531_v59 = vld [vmem:[%s4216_s15 + $0x2b0] sm:$0xff]   ;;  %v3533_v61 = vld [vmem:[%s4216_s15 + $0x2f8] sm:$0xff]  }
  0xf4   : > { %2635 = vmatprep.mubr.bf16.mxu1 %v3019_v23  ;;  %v3545_v21 = vld [vmem:[%s4216_s15 + $0x3d0] sm:$0xff]   ;;  %v1269_v23 = vld [vmem:[%s4457_s0 + $0xe8] sm:$0xff] }
  0xf5   : > { %3239 = vmatpush3.bf16.msra.mxu0 %v3486_v62  ;;  %v3534_v62 = vld [vmem:[%s4216_s15 + $0x238] sm:$0xff]  }
  0xf6   : > { %3267 = vmatpush3.bf16.msra.mxu1 %v3487_v63  ;;  %3240 = vmatprep.subr.bf16.mxu0 %v3488_v0  ;;  %v3535_v63 = vld [vmem:[%s4216_s15 + $0x2b8] sm:$0xff]   ;;  %v1244_v0 = vld [vmem:[%s4457_s0 + $0x20] sm:$0xff] }
  0xf7   : > { %3268 = vmatprep.subr.bf16.mxu1 %v3489_v1  ;;  %v1252_v1 = vld [vmem:[%s4457_s0 + $0x60] sm:$0xff] }
  0xf9   : > { %3241 = vmatpush3.bf16.msra.mxu0 %v3490_v2  ;;  %v3020_v2 = vcombine.low %v1244_v0, %v1252_v1 }
  0xfa   : > { %3269 = vmatpush3.bf16.msra.mxu1 %v3491_v3  ;;  %3242 = vmatprep.subr.bf16.mxu0 %v3492_v4  ;;  %v3021_v3 = vcombine.high %v1244_v0, %v1252_v1  ;;  %v1245_v4 = vld [vmem:[%s4457_s0 + $0x28] sm:$0xff] }
  0xfb   : > { %3270 = vmatprep.subr.bf16.mxu1 %v3493_v5  ;;  %v1253_v5 = vld [vmem:[%s4457_s0 + $0x68] sm:$0xff] }
  0xfd   : > { %3243 = vmatpush3.bf16.msra.mxu0 %v3494_v6  ;;  %v3022_v6 = vcombine.low %v1245_v4, %v1253_v5 }
  0xfe   : > { %3271 = vmatpush3.bf16.msra.mxu1 %v3495_v7  ;;  %3244 = vmatprep.subr.bf16.mxu0 %v3496_v8  ;;  %v3023_v7 = vcombine.high %v1245_v4, %v1253_v5  ;;  %v3536_v8 = vld [vmem:[%s4216_s15 + $0x340] sm:$0xff]  }
  0xff   : > { %3272 = vmatprep.subr.bf16.mxu1 %v3497_v9  ;;  %v3537_v9 = vld [vmem:[%s4216_s15 + $0x3c0] sm:$0xff]  }
 0x101   : > { %3245 = vmatpush3.bf16.msra.mxu0 %v3498_v10  ;;  %v3538_v10 = vld [vmem:[%s4216_s15 + $0x300] sm:$0xff]  }
 0x102   : > { %3273 = vmatpush3.bf16.msra.mxu1 %v3499_v11  ;;  %3246 = vmatprep.subr.bf16.mxu0 %v3500_v12  ;;  %v3539_v11 = vld [vmem:[%s4216_s15 + $0x380] sm:$0xff]   ;;  %v3540_v12 = vld [vmem:[%s4216_s15 + $0x348] sm:$0xff]  }
 0x103   : > { %3274 = vmatprep.subr.bf16.mxu1 %v3501_v14  ;;  %v3542_v14 = vld [vmem:[%s4216_s15 + $0x308] sm:$0xff]  }
 0x105   : > { %3247 = vmatpush3.bf16.msra.mxu0 %v3502_v15  ;;  %v3543_v15 = vld [vmem:[%s4216_s15 + $0x388] sm:$0xff]  }
 0x106   : > { %3275 = vmatpush3.bf16.msra.mxu1 %v3503_v16  ;;  %3288 = vmatprep.subr.bf16.mxu0 %v3504_v24  ;;  %v1260_v16 = vld [vmem:[%s4457_s0 + $0xa0] sm:$0xff] }
 0x107   : > { %3316 = vmatprep.subr.bf16.mxu1 %v3505_v25  ;;  %v3037_v18 = vcombine.high %v1260_v16, %v1268_v17  ;;  %v3036_v19 = vcombine.low %v1260_v16, %v1268_v17  ;;  %v3546_v25 = vld [vmem:[%s4216_s15 + $0x310] sm:$0xff]  }
 0x108   : > { %2587 = vmatmul.mubr.bf16.vlgmr.msra.gmra.mrb[8].mxu0 %v3016_v20  ;;  %v3544_v20 = vld [vmem:[%s4216_s15 + $0x350] sm:$0xff]  }
 0x109   : > { %2636 = vmatmul.mubr.bf16.vlgmr.msra.gmra.mrb[8].mxu1 %v3018_v22  ;;  %3289 = vmatpush3.bf16.msra.mxu0 %v3506_v26  ;;  %v1261_v22 = vld [vmem:[%s4457_s0 + $0xa8] sm:$0xff] }
 0x10a   : > { %3317 = vmatpush3.bf16.msra.mxu1 %v3507_v27  ;;  %3290 = vmatprep.subr.bf16.mxu0 %v3508_v28  ;;  %v3039_v24 = vcombine.high %v1261_v22, %v1269_v23  ;;  %v3038_v26 = vcombine.low %v1261_v22, %v1269_v23  ;;  %v3547_v27 = vld [vmem:[%s4216_s15 + $0x390] sm:$0xff]   ;;  %v3548_v28 = vld [vmem:[%s4216_s15 + $0x358] sm:$0xff]  }
 0x10b   : > { %3318 = vmatprep.subr.bf16.mxu1 %v3509_v29  ;;  %2594 = vmatprep.mubr.bf16.mxu0 %v3033_v34  ;;  %v3549_v29 = vld [vmem:[%s4216_s15 + $0x3d8] sm:$0xff]   ;;  %v3554_v34 = vld [vmem:[%s4216_s15 + $0x320] sm:$0xff]  }
 0x10c   : > { %2643 = vmatprep.mubr.bf16.mxu1 %v3035_v40  ;;  %v3560_v40 = vld [vmem:[%s4216_s15 + $0x370] sm:$0xff]  }
 0x10d   : > { %3291 = vmatpush3.bf16.msra.mxu0 %v3510_v30  ;;  %v3550_v30 = vld [vmem:[%s4216_s15 + $0x318] sm:$0xff]  }
 0x10e   : > { %3319 = vmatpush3.bf16.msra.mxu1 %v3511_v31  ;;  %3292 = vmatprep.subr.bf16.mxu0 %v3512_v36  ;;  %v3551_v31 = vld [vmem:[%s4216_s15 + $0x398] sm:$0xff]   ;;  %v3556_v36 = vld [vmem:[%s4216_s15 + $0x368] sm:$0xff]  }
 0x10f   : > { %3320 = vmatprep.subr.bf16.mxu1 %v3513_v37  ;;  %v3557_v37 = vld [vmem:[%s4216_s15 + $0x3e8] sm:$0xff]  }
 0x110   : > { %2595 = vmatmul.mubr.bf16.gmra.mrb[12].mxu0 %v3032_v35  ;;  %v3555_v35 = vld [vmem:[%s4216_s15 + $0x3a0] sm:$0xff]  }
 0x111   : > { %3293 = vmatpush3.bf16.msra.mxu0 %v3514_v41  ;;  %2644 = vmatmul.mubr.bf16.gmra.mrb[12].mxu1 %v3034_v42  ;;  %v3561_v41 = vld [vmem:[%s4216_s15 + $0x3f0] sm:$0xff]  }
 0x112   : > { %3321 = vmatpush3.bf16.msra.mxu1 %v3515_v43  ;;  %3294 = vmatprep.subr.bf16.mxu0 %v3516_v44  ;;  %v3562_v42 = vld [vmem:[%s4216_s15 + $0x330] sm:$0xff]   ;;  %v3564_v44 = vld [vmem:[%s4216_s15 + $0x378] sm:$0xff]  }
 0x113   : > { %3322 = vmatprep.subr.bf16.mxu1 %v3517_v45  ;;  %2684 = vmatprep.mubr.bf16.mxu0 %v3021_v3  ;;  %v3563_v43 = vld [vmem:[%s4216_s15 + $0x3b0] sm:$0xff]   ;;  %v3565_v45 = vld [vmem:[%s4216_s15 + $0x3f8] sm:$0xff]  }
 0x114   : > { %2733 = vmatprep.mubr.bf16.mxu1 %v3023_v7 }
 0x115   : > { %3295 = vmatpush3.bf16.msra.mxu0 %v3518_v46  ;;  %v3566_v46 = vld [vmem:[%s4216_s15 + $0x338] sm:$0xff]  }
 0x116   : > { %3323 = vmatpush3.bf16.msra.mxu1 %v3519_v47  ;;  %3296 = vmatprep.subr.bf16.mxu0 %v3520_v48  ;;  %v3567_v47 = vld [vmem:[%s4216_s15 + $0x3b8] sm:$0xff]   ;;  %v1246_v48 = vld [vmem:[%s4457_s0 + $0x30] sm:$0xff] }
 0x117   : > { %3324 = vmatprep.subr.bf16.mxu1 %v3521_v49  ;;  %v1254_v49 = vld [vmem:[%s4457_s0 + $0x70] sm:$0xff] }
 0x119   : > { %3297 = vmatpush3.bf16.msra.mxu0 %v3522_v50  ;;  %v1247_v50 = vld [vmem:[%s4457_s0 + $0x38] sm:$0xff] }
 0x11a   : > { %3325 = vmatpush3.bf16.msra.mxu1 %v3523_v51  ;;  %3298 = vmatprep.subr.bf16.mxu0 %v3524_v52  ;;  %v3024_v51 = vcombine.low %v1246_v48, %v1254_v49  ;;  %v3025_v52 = vcombine.high %v1246_v48, %v1254_v49 }
 0x11b   : > { %3326 = vmatprep.subr.bf16.mxu1 %v3525_v53  ;;  %v1255_v53 = vld [vmem:[%s4457_s0 + $0x78] sm:$0xff] }
 0x11d   : > { %3299 = vmatpush3.bf16.msra.mxu0 %v3526_v54  ;;  %v1262_v54 = vld [vmem:[%s4457_s0 + $0xb0] sm:$0xff] }
 0x11e   : > { %3327 = vmatpush3.bf16.msra.mxu1 %v3527_v55  ;;  %3300 = vmatprep.subr.bf16.mxu0 %v3528_v56  ;;  %v1270_v55 = vld [vmem:[%s4457_s0 + $0xf0] sm:$0xff]  ;;  %v3026_v56 = vcombine.low %v1247_v50, %v1255_v53 }
 0x11f   : > { %3328 = vmatprep.subr.bf16.mxu1 %v3529_v57  ;;  %v3027_v57 = vcombine.high %v1247_v50, %v1255_v53 }
 0x121   : > { %3301 = vmatpush3.bf16.msra.mxu0 %v3530_v58  ;;  %v3041_v58 = vcombine.high %v1262_v54, %v1270_v55 }
 0x122   : > { %3329 = vmatpush3.bf16.msra.mxu1 %v3531_v59  ;;  %3302 = vmatprep.subr.bf16.mxu0 %v3532_v60  ;;  %v1263_v59 = vld [vmem:[%s4457_s0 + $0xb8] sm:$0xff] }
 0x123   : > { %3330 = vmatprep.subr.bf16.mxu1 %v3533_v61  ;;  %v1271_v60 = vld [vmem:[%s4457_s0 + $0xf8] sm:$0xff] }
 0x124   : > { %v3043_v61 = vcombine.high %v1263_v59, %v1271_v60 }
 0x125   : > { %3303 = vmatpush3.bf16.msra.mxu0 %v3534_v62  ;;  %v3040_v62 = vcombine.low %v1262_v54, %v1270_v55 }
 0x126   : > { %3331 = vmatpush3.bf16.msra.mxu1 %v3535_v63  ;;  %3344 = vmatprep.subr.bf16.mxu0 %v3536_v8  ;;  %v3042_v63 = vcombine.low %v1263_v59, %v1271_v60 }
 0x127   : > { %3372 = vmatprep.subr.bf16.mxu1 %v3537_v9 }
 0x128   : > { %2685 = vmatmul.mubr.bf16.vlgmr.msra.gmra.mrb[16].mxu0 %v3020_v2 }
 0x129   : > { %2734 = vmatmul.mubr.bf16.vlgmr.msra.gmra.mrb[16].mxu1 %v3022_v6  ;;  %3345 = vmatpush3.bf16.msra.mxu0 %v3538_v10 }
 0x12a   : > { %3373 = vmatpush3.bf16.msra.mxu1 %v3539_v11  ;;  %3346 = vmatprep.subr.bf16.mxu0 %v3540_v12 }
 0x12b   : > { %3374 = vmatprep.subr.bf16.mxu1 %v3541_v13  ;;  %2692 = vmatprep.mubr.bf16.mxu0 %v3037_v18 }
 0x12c   : > { %2741 = vmatprep.mubr.bf16.mxu1 %v3039_v24 }
 0x12d   : > { %3347 = vmatpush3.bf16.msra.mxu0 %v3542_v14 }
 0x12e   : > { %3375 = vmatpush3.bf16.msra.mxu1 %v3543_v15  ;;  %3348 = vmatprep.subr.bf16.mxu0 %v3544_v20 }
 0x12f   : > { %3376 = vmatprep.subr.bf16.mxu1 %v3545_v21 }
 0x130   : > { %2693 = vmatmul.mubr.bf16.gmra.mrb[20].mxu0 %v3036_v19 }
 0x131   : > { %3349 = vmatpush3.bf16.msra.mxu0 %v3546_v25  ;;  %2742 = vmatmul.mubr.bf16.gmra.mrb[20].mxu1 %v3038_v26 }
 0x132   : > { %3377 = vmatpush3.bf16.msra.mxu1 %v3547_v27  ;;  %3350 = vmatprep.subr.bf16.mxu0 %v3548_v28 }
 0x133   : > { %3378 = vmatprep.subr.bf16.mxu1 %v3549_v29  ;;  %2782 = vmatprep.mubr.bf16.mxu0 %v3025_v52 }
 0x134   : > { %2831 = vmatprep.mubr.bf16.mxu1 %v3027_v57 }
 0x135   : > { %3351 = vmatpush3.bf16.msra.mxu0 %v3550_v30 }
 0x136   : > { %3379 = vmatpush3.bf16.msra.mxu1 %v3551_v31  ;;  %3352 = vmatprep.subr.bf16.mxu0 %v3552_v32 }
 0x137   : > { %3380 = vmatprep.subr.bf16.mxu1 %v3553_v33 }
 0x139   : > { %3353 = vmatpush3.bf16.msra.mxu0 %v3554_v34 }
 0x13a   : > { %3381 = vmatpush3.bf16.msra.mxu1 %v3555_v35  ;;  %3354 = vmatprep.subr.bf16.mxu0 %v3556_v36 }
 0x13b   : > { %3382 = vmatprep.subr.bf16.mxu1 %v3557_v37 }
 0x13d   : > { %3355 = vmatpush3.bf16.msra.mxu0 %v3558_v38 }
 0x13e   : > { %3383 = vmatpush3.bf16.msra.mxu1 %v3559_v39  ;;  %3356 = vmatprep.subr.bf16.mxu0 %v3560_v40 }
 0x13f   : > { %3384 = vmatprep.subr.bf16.mxu1 %v3561_v41 }
 0x141   : > { %3357 = vmatpush3.bf16.msra.mxu0 %v3562_v42 }
 0x142   : > { %3385 = vmatpush3.bf16.msra.mxu1 %v3563_v43  ;;  %3358 = vmatprep.subr.bf16.mxu0 %v3564_v44 }
 0x143   : > { %3386 = vmatprep.subr.bf16.mxu1 %v3565_v45 }
 0x145   : > { %3359 = vmatpush3.bf16.msra.mxu0 %v3566_v46 }
 0x146   : > { %3387 = vmatpush3.bf16.msra.mxu1 %v3567_v47 }
 0x148   : > { %2783 = vmatmul.mubr.bf16.vlgmr.msra.gmra.mrb[24].mxu0 %v3024_v51 }
 0x149   : > { %2832 = vmatmul.mubr.bf16.vlgmr.msra.gmra.mrb[24].mxu1 %v3026_v56  ;;  %2790 = vmatprep.mubr.bf16.mxu0 %v3041_v58 }
 0x14a   : > { %2839 = vmatprep.mubr.bf16.mxu1 %v3043_v61 }
 0x150   : > { %2791 = vmatmul.mubr.bf16.gmra.mrb[28].mxu0 %v3040_v62 }
 0x151   : > { %2840 = vmatmul.mubr.bf16.gmra.mrb[28].mxu1 %v3042_v63 }
 0x1bb   : > { %v3192_v0 = vpop.f32.mrb[0].mxu0 }
 0x1bc   : > { %v3220_v1 = vpop.f32.mrb[0].mxu1  ;;  %v3193_v2 = vpop.f32.mrb[1].mxu0 }
 0x1bd   : > { %v3194_v3 = vadd.f32 %v3193_v2, %v3192_v0  ;;  %v3221_v4 = vpop.f32.mrb[1].mxu1  ;;  %v3195_v5 = vpop.f32.mrb[2].mxu0 }
 0x1be   : > { %v3222_v6 = vadd.f32 %v3221_v4, %v3220_v1  ;;  %v3223_v7 = vpop.f32.mrb[2].mxu1  ;;  %v3196_v8 = vpop.f32.mrb[3].mxu0 }
 0x1bf   : > { %v3197_v9 = vadd.f32 %v3196_v8, %v3195_v5  ;;  %v3224_v10 = vpop.f32.mrb[3].mxu1 }
 0x1c0   : > { %v2540_v11 = vadd.f32 %v3222_v6, %v3194_v3  ;;  %v3225_v12 = vadd.f32 %v3224_v10, %v3223_v7 }
 0x1c2   : > { %v2543_v13 = vadd.f32 %v3225_v12, %v3197_v9 }
 0x1c3   : > { %v3198_v14 = vpop.f32.mrb[4].mxu0 }
 0x1c4   : > { %v3226_v15 = vpop.f32.mrb[4].mxu1  ;;  %v3199_v16 = vpop.f32.mrb[5].mxu0 }
 0x1c5   : > { %v3200_v17 = vadd.f32 %v3199_v16, %v3198_v14  ;;  %v3227_v18 = vpop.f32.mrb[5].mxu1  ;;  %v3201_v19 = vpop.f32.mrb[6].mxu0 }
 0x1c6   : > { %v3228_v20 = vadd.f32 %v3227_v18, %v3226_v15  ;;  %v3229_v21 = vpop.f32.mrb[6].mxu1  ;;  %v3202_v22 = vpop.f32.mrb[7].mxu0 }
 0x1c7   : > { %v3203_v23 = vadd.f32 %v3202_v22, %v3201_v19  ;;  %v3230_v24 = vpop.f32.mrb[7].mxu1 }
 0x1c8   : > { %v2548_v25 = vadd.f32 %v3228_v20, %v3200_v17  ;;  %v3231_v26 = vadd.f32 %v3230_v24, %v3229_v21 }
 0x1ca   : > { %v2551_v27 = vadd.f32 %v3231_v26, %v3203_v23 }
 0x1db   : > { %v3248_v28 = vpop.f32.mrb[8].mxu0 }
 0x1dc   : > { %v3276_v29 = vpop.f32.mrb[8].mxu1  ;;  %v3249_v30 = vpop.f32.mrb[9].mxu0 }
 0x1dd   : > { %v3277_v31 = vpop.f32.mrb[9].mxu1  ;;  %v3250_v32 = vadd.f32 %v3249_v30, %v3248_v28  ;;  %v3251_v34 = vpop.f32.mrb[10].mxu0 }
 0x1de   : > { %v3278_v33 = vadd.f32 %v3277_v31, %v3276_v29  ;;  %v3279_v35 = vpop.f32.mrb[10].mxu1  ;;  %v3252_v36 = vpop.f32.mrb[11].mxu0 }
 0x1df   : > { %v3280_v37 = vpop.f32.mrb[11].mxu1  ;;  %v2589_v38 = vadd.f32 %v3250_v32, %v2540_v11  ;;  %v3253_v39 = vadd.f32 %v3252_v36, %v3251_v34 }
 0x1e0   : > { %v3281_v40 = vadd.f32 %v3280_v37, %v3279_v35 }
 0x1e1   : > { %v2638_v41 = vadd.f32 %v3278_v33, %v2589_v38  ;;  %v2592_v42 = vadd.f32 %v3253_v39, %v2543_v13 }
 0x1e3   : > { %v2641_v43 = vadd.f32 %v3281_v40, %v2592_v42  ;;  %v3254_v44 = vpop.f32.mrb[12].mxu0 }
 0x1e4   : > { %v3255_v45 = vpop.f32.mrb[13].mxu0  ;;  %v3282_v50 = vpop.f32.mrb[12].mxu1 }
 0x1e5   : > { %v3256_v46 = vadd.f32 %v3255_v45, %v3254_v44  ;;  %v3257_v47 = vpop.f32.mrb[14].mxu0  ;;  %v3283_v52 = vpop.f32.mrb[13].mxu1 }
 0x1e6   : > { %v3258_v48 = vpop.f32.mrb[15].mxu0  ;;  %v3284_v54 = vadd.f32 %v3283_v52, %v3282_v50  ;;  %v3285_v55 = vpop.f32.mrb[14].mxu1 }
 0x1e7   : > { %v2597_v49 = vadd.f32 %v3256_v46, %v2548_v25  ;;  %v3259_v51 = vadd.f32 %v3258_v48, %v3257_v47  ;;  %v3286_v56 = vpop.f32.mrb[15].mxu1 }
 0x1e8   : > { %v3287_v58 = vadd.f32 %v3286_v56, %v3285_v55 }
 0x1e9   : > { %v2600_v53 = vadd.f32 %v3259_v51, %v2551_v27  ;;  %v2646_v57 = vadd.f32 %v3284_v54, %v2597_v49 }
 0x1eb   : > { %v2649_v59 = vadd.f32 %v3287_v58, %v2600_v53 }
 0x1fb   : > { %v3304_v60 = vpop.f32.mrb[16].mxu0 }
 0x1fc   : > { %v3332_v61 = vpop.f32.mrb[16].mxu1  ;;  %v3305_v62 = vpop.f32.mrb[17].mxu0 }
 0x1fd   : > { %v3306_v63 = vadd.f32 %v3305_v62, %v3304_v60  ;;  %v3333_v0 = vpop.f32.mrb[17].mxu1  ;;  %v3307_v1 = vpop.f32.mrb[18].mxu0 }
 0x1fe   : > { %v3334_v2 = vadd.f32 %v3333_v0, %v3332_v61  ;;  %v3335_v3 = vpop.f32.mrb[18].mxu1  ;;  %v3308_v4 = vpop.f32.mrb[19].mxu0 }
 0x1ff   : > { %v2687_v5 = vadd.f32 %v3306_v63, %v2638_v41  ;;  %v3309_v6 = vadd.f32 %v3308_v4, %v3307_v1  ;;  %v3336_v7 = vpop.f32.mrb[19].mxu1 }
 0x200   : > { %v3337_v8 = vadd.f32 %v3336_v7, %v3335_v3 }
 0x201   : > { %v2736_v9 = vadd.f32 %v3334_v2, %v2687_v5  ;;  %v2690_v10 = vadd.f32 %v3309_v6, %v2641_v43 }
 0x203   : > { %v2739_v11 = vadd.f32 %v3337_v8, %v2690_v10  ;;  %v3310_v12 = vpop.f32.mrb[20].mxu0 }
 0x204   : > { %v3311_v13 = vpop.f32.mrb[21].mxu0  ;;  %v3338_v16 = vpop.f32.mrb[20].mxu1 }
 0x205   : > { %v3312_v14 = vadd.f32 %v3311_v13, %v3310_v12  ;;  %v3313_v15 = vpop.f32.mrb[22].mxu0  ;;  %v3339_v20 = vpop.f32.mrb[21].mxu1 }
 0x206   : > { %v3314_v17 = vpop.f32.mrb[23].mxu0  ;;  %v3340_v21 = vadd.f32 %v3339_v20, %v3338_v16  ;;  %v3341_v22 = vpop.f32.mrb[22].mxu1 }
 0x207   : > { %v2695_v18 = vadd.f32 %v3312_v14, %v2646_v57  ;;  %v3315_v19 = vadd.f32 %v3314_v17, %v3313_v15  ;;  %v3342_v24 = vpop.f32.mrb[23].mxu1 }
 0x208   : > { %v3343_v26 = vadd.f32 %v3342_v24, %v3341_v22 }
 0x209   : > { %v2698_v23 = vadd.f32 %v3315_v19, %v2649_v59  ;;  %v2744_v25 = vadd.f32 %v3340_v21, %v2695_v18 }
 0x20b   : > { %v2747_v27 = vadd.f32 %v3343_v26, %v2698_v23 }
 0x21b   : > { %v3360_v28 = vpop.f32.mrb[24].mxu0 }
 0x21c   : > { %v3388_v29 = vpop.f32.mrb[24].mxu1  ;;  %v3361_v30 = vpop.f32.mrb[25].mxu0 }
 0x21d   : > { %v3362_v31 = vadd.f32 %v3361_v30, %v3360_v28  ;;  %v3389_v32 = vpop.f32.mrb[25].mxu1  ;;  %v3363_v33 = vpop.f32.mrb[26].mxu0 }
 0x21e   : > { %v3390_v34 = vadd.f32 %v3389_v32, %v3388_v29  ;;  %v3391_v35 = vpop.f32.mrb[26].mxu1  ;;  %v3364_v36 = vpop.f32.mrb[27].mxu0 }
 0x21f   : > { %v2785_v37 = vadd.f32 %v3362_v31, %v2736_v9  ;;  %v3365_v38 = vadd.f32 %v3364_v36, %v3363_v33  ;;  %v3392_v39 = vpop.f32.mrb[27].mxu1 }
 0x220   : > { %v3393_v40 = vadd.f32 %v3392_v39, %v3391_v35 }
 0x221   : > { %v2834_v41 = vadd.f32 %v3390_v34, %v2785_v37  ;;  %v2788_v42 = vadd.f32 %v3365_v38, %v2739_v11 }
 0x223   : > { %vm2848_vm0 = vcmp.ge.f32.partialorder %v2834_v41, 0.0  ;;  %v2852_v43 = vmul.f32 0.2, %v2834_v41  ;;  %v2837_v44 = vadd.f32 %v3393_v40, %v2788_v42  ;;  %v3366_v45 = vpop.f32.mrb[28].mxu0 }
 0x224   : > { %v3394_v46 = vpop.f32.mrb[28].mxu1  ;;  %v3367_v47 = vpop.f32.mrb[29].mxu0 }
 0x225   : > { %v2856_v48 = vsel %vm2848_vm0, %v2834_v41, %v2852_v43  ;;  %vm2849_vm1 = vcmp.ge.f32.partialorder %v2837_v44, 0.0  ;;  %v2853_v49 = vmul.f32 0.2, %v2837_v44  ;;  %v3368_v50 = vadd.f32 %v3367_v47, %v3366_v45  ;;  %v3395_v51 = vpop.f32.mrb[29].mxu1  ;;  %v3369_v52 = vpop.f32.mrb[30].mxu0 }
 0x226   : > { %2860 = vst [vmem:[%s1230_s20] sm:$0xff] %v2856_v48  ;;  %v3396_v53 = vadd.f32 %v3395_v51, %v3394_v46  ;;  %v3397_v54 = vpop.f32.mrb[30].mxu1  ;;  %v3370_v55 = vpop.f32.mrb[31].mxu0 }
 0x227   : > { %v2857_v56 = vsel %vm2849_vm1, %v2837_v44, %v2853_v49  ;;  %v2793_v57 = vadd.f32 %v3368_v50, %v2744_v25  ;;  %v3371_v58 = vadd.f32 %v3370_v55, %v3369_v52  ;;  %v3398_v59 = vpop.f32.mrb[31].mxu1 }
 0x228   : > { %2861 = vst [vmem:[%s1230_s20 + $0x8] sm:$0xff] %v2857_v56  ;;  %v3399_v60 = vadd.f32 %v3398_v59, %v3397_v54 }
 0x229   : > { %v2842_v61 = vadd.f32 %v3396_v53, %v2793_v57  ;;  %v2796_v62 = vadd.f32 %v3371_v58, %v2747_v27 }
 0x22a   : > { %2870 = sbr.rel (!%p3658_p6) target bundleno = 569 (0x239), region = 73 }
 0x22b   : > { %vm2850_vm2 = vcmp.ge.f32.partialorder %v2842_v61, 0.0  ;;  %v2854_v63 = vmul.f32 0.2, %v2842_v61  ;;  %v2845_v0 = vadd.f32 %v3399_v60, %v2796_v62 }
 0x22d   : > { %v2858_v1 = vsel %vm2850_vm2, %v2842_v61, %v2854_v63  ;;  %vm2851_vm3 = vcmp.ge.f32.partialorder %v2845_v0, 0.0  ;;  %v2855_v2 = vmul.f32 0.2, %v2845_v0  ;;  %v2909_v4 = vld [vmem:[%s1230_s20] sm:$0xff] (%p3658_p6) }
 0x22e   : > { %2862 = vst [vmem:[%s1230_s20 + $0x10] sm:$0xff] %v2858_v1  ;;  %2910 = vst [vmem:[%s2875_s22] sm:$0xff] (%p3658_p6), %v2909_v4 }
 0x22f   : > { %v2859_v3 = vsel %vm2851_vm3, %v2845_v0, %v2855_v2  ;;  %v2911_v5 = vld [vmem:[%s1230_s20 + $0x8] sm:$0xff] (%p3658_p6) }
 0x230   : > { %2863 = vst [vmem:[%s1230_s20 + $0x18] sm:$0xff] %v2859_v3  ;;  %2912 = vst [vmem:[%s2875_s22 + $0x10] sm:$0xff] (%p3658_p6), %v2911_v5 }
 0x235   : > { %v2913_v6 = vld [vmem:[%s1230_s20 + $0x10] sm:$0xff] }
 0x236   : > { %2914 = vst [vmem:[%s2875_s22 + $0x20] sm:$0xff] %v2913_v6 }
 0x237   : > { %v2915_v7 = vld [vmem:[%s1230_s20 + $0x18] sm:$0xff] }
 0x238   : > { %2916 = vst [vmem:[%s2875_s22 + $0x30] sm:$0xff] %v2915_v7 }
 0x239 PF: > { %s12_s13 = sadd.s32 1, %s3606_s13   ;;  %s4461_s9 = smov %s3594_s10 }
 0x23a   : > { %p9_p11 = scmp.ge.s32.totalorder %s12_s13, 4   ;;  %s4462_s10 = smov %s3663_s19 }
 0x23b   : > { %s4463_s11 = smov %s3602_s12  ;;  %s4464_s12 = smov %s4466_s14 }
 0x23c   :  { %11 = sbr.rel (!%p9_p11) target bundleno = 3 (0x3), region = 145 }

// kernel: discriminator_forward.8
= control target key start
LH: loop header
LB: loop body
LE: loop exit
PB: predicated region body
PF: predicated region fallthrough
CT: control target
= control target key end

     0   :  { %s10316_s9 = smov 0   ;;  %s10318_s10 = smov 0   ;;  %s12226_s0 = inlined_call_operand.vmem [shape: bf16[24,4096], index: 0, kind: input, shape index: {}]   ;;  %s12227_s1 = inlined_call_operand.vmem [shape: bf16[4096,512], index: 1, kind: input, shape index: {}]   ;;  %s12228_s2 = inlined_call_operand.vmem [shape: f32[24,512], index: 2, kind: output, shape index: {}]  }
   0x1   :  { %s10320_s11 = smov 0   ;;  %s10322_s12 = smov 0  }
   0x2   :  { %s10324_s13 = smov 0  }
   0x3 LB: > { %s21_s14 = sadd.s32 1, %s10295_s12  ;;  %s8710_s15 = sadd.s32 4294967295, %s10299_s13   ;;  %s10299_s13 = sphi %s10324_s13, %s12_s13   ;;  %s10295_s12 = sphi %s10322_s12, %s12233_s12   ;;  %s10291_s11 = sphi %s10320_s11, %s12232_s11   ;;  %s10287_s10 = sphi %s10318_s10, %s12231_s10   ;;  %s10283_s9 = sphi %s10316_s9, %s12230_s9  }
   0x4   : > { %p22_p0 = scmp.ge.s32.totalorder %s21_s14, 2  ;;  %p64_p1 = scmp.ne.s32.totalorder %s10287_s10, %s10283_s9 }
   0x5   : > { %p65_p2 = scmp.eq.s32.totalorder %s10299_s13, 0  ;;  %p96_p4 = scmp.eq.s32.totalorder %s8710_s15, 1 }
   0x6   : > { %s12235_s14 = smov (%p22_p0, %s21_s14), 0  ;;  %s57_s17 = sadd.s32 1, %s10287_s10 }
   0x7   : > { %p66_p3 = por %p65_p2, %p64_p1  ;;  %s54_s16 = ssub.s32 %s10295_s12, %s12235_s14 }
   0x8   : > { %p55_p5 = scmp.eq.s32.totalorder %s54_s16, 0  ;;  %p10351_p6 = por %p96_p4, %p64_p1 }
   0x9   : > { %p8714_p7 = scmp.ge.s32.totalorder %s10299_s13, 2 }
   0xa   : > { %s10356_s19 = scalar_select %p55_p5, %s10287_s10, %s57_s17  }
   0xb   : > { %128 = sbr.rel (%p8714_p7) target bundleno = 278 (0x116), region = 20 }
  0x12   : > { %131 = sbr.rel (!%p66_p3) target bundleno = 278 (0x116), region = 24  ;;  %s133_s20 = sand.u32 (%p66_p3), 1, %s10287_s10  }
  0x13   : > { %s9300_s21 = sshll.u32 (%p66_p3), %s10295_s12, 3  ;;  %s8715_s22 = sshll.u32 (%p66_p3), %s133_s20, 12 }
  0x14   : > { %s10364_s25 = scalar_lea.vmem (%p66_p3), %s12227_s1, %s9300_s21  ;;  %s10369_s26 = scalar_lea.vmem (%p66_p3), [#allocation2], %s8715_s22 }
  0x15   : > { %v1191_v0 = vld [vmem:[%s10364_s25] sm:$0xff] (%p66_p3)  ;;  %v1193_v1 = vld [vmem:[%s10364_s25 + $0x10] sm:$0xff] (%p66_p3) }
  0x16   : > { %v1195_v2 = vld [vmem:[%s10364_s25 + $0x20] sm:$0xff] (%p66_p3)  ;;  %1192 = vst [vmem:[%s10369_s26] sm:$0xff] (%p66_p3), %v1191_v0  ;;  %1194 = vst [vmem:[%s10369_s26 + $0x8] sm:$0xff] (%p66_p3), %v1193_v1  ;;  %v1197_v3 = vld [vmem:[%s10364_s25 + $0x30] sm:$0xff] (%p66_p3) }
  0x17   : > { %1196 = vst [vmem:[%s10369_s26 + $0x10] sm:$0xff] (%p66_p3), %v1195_v2  ;;  %v1199_v4 = vld [vmem:[%s10364_s25 + $0x40] sm:$0xff] (%p66_p3)  ;;  %v1201_v5 = vld [vmem:[%s10364_s25 + $0x50] sm:$0xff] (%p66_p3)  ;;  %1198 = vst [vmem:[%s10369_s26 + $0x18] sm:$0xff] (%p66_p3), %v1197_v3 }
  0x18   : > { %1200 = vst [vmem:[%s10369_s26 + $0x20] sm:$0xff] (%p66_p3), %v1199_v4  ;;  %1202 = vst [vmem:[%s10369_s26 + $0x28] sm:$0xff] (%p66_p3), %v1201_v5  ;;  %v1203_v6 = vld [vmem:[%s10364_s25 + $0x60] sm:$0xff] (%p66_p3)  ;;  %v1205_v7 = vld [vmem:[%s10364_s25 + $0x70] sm:$0xff] (%p66_p3) }
  0x19   : > { %v1207_v8 = vld [vmem:[%s10364_s25 + $0x80] sm:$0xff]  ;;  %1204 = vst [vmem:[%s10369_s26 + $0x30] sm:$0xff] %v1203_v6  ;;  %1206 = vst [vmem:[%s10369_s26 + $0x38] sm:$0xff] %v1205_v7  ;;  %v1209_v9 = vld [vmem:[%s10364_s25 + $0x90] sm:$0xff] }
  0x1a   : > { %1208 = vst [vmem:[%s10369_s26 + $0x40] sm:$0xff] %v1207_v8  ;;  %v1211_v10 = vld [vmem:[%s10364_s25 + $0xa0] sm:$0xff]  ;;  %v1213_v11 = vld [vmem:[%s10364_s25 + $0xb0] sm:$0xff]  ;;  %1210 = vst [vmem:[%s10369_s26 + $0x48] sm:$0xff] %v1209_v9 }
  0x1b   : > { %1212 = vst [vmem:[%s10369_s26 + $0x50] sm:$0xff] %v1211_v10  ;;  %1214 = vst [vmem:[%s10369_s26 + $0x58] sm:$0xff] %v1213_v11  ;;  %v1215_v12 = vld [vmem:[%s10364_s25 + $0xc0] sm:$0xff]  ;;  %v1217_v13 = vld [vmem:[%s10364_s25 + $0xd0] sm:$0xff] }
  0x1c   : > { %v1219_v14 = vld [vmem:[%s10364_s25 + $0xe0] sm:$0xff]  ;;  %1216 = vst [vmem:[%s10369_s26 + $0x60] sm:$0xff] %v1215_v12  ;;  %1218 = vst [vmem:[%s10369_s26 + $0x68] sm:$0xff] %v1217_v13  ;;  %v1221_v15 = vld [vmem:[%s10364_s25 + $0xf0] sm:$0xff] }
  0x1d   : > { %1220 = vst [vmem:[%s10369_s26 + $0x70] sm:$0xff] %v1219_v14  ;;  %v1223_v16 = vld [vmem:[%s10364_s25 + $0x100] sm:$0xff]  ;;  %v1225_v17 = vld [vmem:[%s10364_s25 + $0x110] sm:$0xff]  ;;  %1222 = vst [vmem:[%s10369_s26 + $0x78] sm:$0xff] %v1221_v15 }
  0x1e   : > { %1224 = vst [vmem:[%s10369_s26 + $0x80] sm:$0xff] %v1223_v16  ;;  %1226 = vst [vmem:[%s10369_s26 + $0x88] sm:$0xff] %v1225_v17  ;;  %v1227_v18 = vld [vmem:[%s10364_s25 + $0x120] sm:$0xff]  ;;  %v1229_v19 = vld [vmem:[%s10364_s25 + $0x130] sm:$0xff] }
  0x1f   : > { %v1231_v20 = vld [vmem:[%s10364_s25 + $0x140] sm:$0xff]  ;;  %1228 = vst [vmem:[%s10369_s26 + $0x90] sm:$0xff] %v1227_v18  ;;  %1230 = vst [vmem:[%s10369_s26 + $0x98] sm:$0xff] %v1229_v19  ;;  %v1233_v21 = vld [vmem:[%s10364_s25 + $0x150] sm:$0xff] }
  0x20   : > { %1232 = vst [vmem:[%s10369_s26 + $0xa0] sm:$0xff] %v1231_v20  ;;  %v1235_v22 = vld [vmem:[%s10364_s25 + $0x160] sm:$0xff]  ;;  %v1237_v23 = vld [vmem:[%s10364_s25 + $0x170] sm:$0xff]  ;;  %1234 = vst [vmem:[%s10369_s26 + $0xa8] sm:$0xff] %v1233_v21 }
  0x21   : > { %1236 = vst [vmem:[%s10369_s26 + $0xb0] sm:$0xff] %v1235_v22  ;;  %1238 = vst [vmem:[%s10369_s26 + $0xb8] sm:$0xff] %v1237_v23  ;;  %v1239_v24 = vld [vmem:[%s10364_s25 + $0x180] sm:$0xff]  ;;  %v1241_v25 = vld [vmem:[%s10364_s25 + $0x190] sm:$0xff] }
  0x22   : > { %v1243_v26 = vld [vmem:[%s10364_s25 + $0x1a0] sm:$0xff]  ;;  %1240 = vst [vmem:[%s10369_s26 + $0xc0] sm:$0xff] %v1239_v24  ;;  %1242 = vst [vmem:[%s10369_s26 + $0xc8] sm:$0xff] %v1241_v25  ;;  %v1245_v27 = vld [vmem:[%s10364_s25 + $0x1b0] sm:$0xff] }
  0x23   : > { %1244 = vst [vmem:[%s10369_s26 + $0xd0] sm:$0xff] %v1243_v26  ;;  %v1247_v28 = vld [vmem:[%s10364_s25 + $0x1c0] sm:$0xff]  ;;  %v1249_v29 = vld [vmem:[%s10364_s25 + $0x1d0] sm:$0xff]  ;;  %1246 = vst [vmem:[%s10369_s26 + $0xd8] sm:$0xff] %v1245_v27 }
  0x24   : > { %1248 = vst [vmem:[%s10369_s26 + $0xe0] sm:$0xff] %v1247_v28  ;;  %1250 = vst [vmem:[%s10369_s26 + $0xe8] sm:$0xff] %v1249_v29  ;;  %v1251_v30 = vld [vmem:[%s10364_s25 + $0x1e0] sm:$0xff]  ;;  %v1253_v31 = vld [vmem:[%s10364_s25 + $0x1f0] sm:$0xff] }
  0x25   : > { %v1255_v32 = vld [vmem:[%s10364_s25 + $0x200] sm:$0xff]  ;;  %1252 = vst [vmem:[%s10369_s26 + $0xf0] sm:$0xff] %v1251_v30  ;;  %1254 = vst [vmem:[%s10369_s26 + $0xf8] sm:$0xff] %v1253_v31  ;;  %v1257_v33 = vld [vmem:[%s10364_s25 + $0x210] sm:$0xff] }
  0x26   : > { %1256 = vst [vmem:[%s10369_s26 + $0x100] sm:$0xff] %v1255_v32  ;;  %v1259_v34 = vld [vmem:[%s10364_s25 + $0x220] sm:$0xff]  ;;  %v1261_v35 = vld [vmem:[%s10364_s25 + $0x230] sm:$0xff]  ;;  %1258 = vst [vmem:[%s10369_s26 + $0x108] sm:$0xff] %v1257_v33 }
  0x27   : > { %1260 = vst [vmem:[%s10369_s26 + $0x110] sm:$0xff] %v1259_v34  ;;  %1262 = vst [vmem:[%s10369_s26 + $0x118] sm:$0xff] %v1261_v35  ;;  %v1263_v36 = vld [vmem:[%s10364_s25 + $0x240] sm:$0xff]  ;;  %v1265_v37 = vld [vmem:[%s10364_s25 + $0x250] sm:$0xff] }
  0x28   : > { %v1267_v38 = vld [vmem:[%s10364_s25 + $0x260] sm:$0xff]  ;;  %1264 = vst [vmem:[%s10369_s26 + $0x120] sm:$0xff] %v1263_v36  ;;  %1266 = vst [vmem:[%s10369_s26 + $0x128] sm:$0xff] %v1265_v37  ;;  %v1269_v39 = vld [vmem:[%s10364_s25 + $0x270] sm:$0xff] }
  0x29   : > { %1268 = vst [vmem:[%s10369_s26 + $0x130] sm:$0xff] %v1267_v38  ;;  %v1271_v40 = vld [vmem:[%s10364_s25 + $0x280] sm:$0xff]  ;;  %v1273_v41 = vld [vmem:[%s10364_s25 + $0x290] sm:$0xff]  ;;  %1270 = vst [vmem:[%s10369_s26 + $0x138] sm:$0xff] %v1269_v39 }
  0x2a   : > { %1272 = vst [vmem:[%s10369_s26 + $0x140] sm:$0xff] %v1271_v40  ;;  %1274 = vst [vmem:[%s10369_s26 + $0x148] sm:$0xff] %v1273_v41  ;;  %v1275_v42 = vld [vmem:[%s10364_s25 + $0x2a0] sm:$0xff]  ;;  %v1277_v43 = vld [vmem:[%s10364_s25 + $0x2b0] sm:$0xff] }
  0x2b   : > { %v1279_v44 = vld [vmem:[%s10364_s25 + $0x2c0] sm:$0xff]  ;;  %1276 = vst [vmem:[%s10369_s26 + $0x150] sm:$0xff] %v1275_v42  ;;  %1278 = vst [vmem:[%s10369_s26 + $0x158] sm:$0xff] %v1277_v43  ;;  %v1281_v45 = vld [vmem:[%s10364_s25 + $0x2d0] sm:$0xff] }
  0x2c   : > { %1280 = vst [vmem:[%s10369_s26 + $0x160] sm:$0xff] %v1279_v44  ;;  %v1283_v46 = vld [vmem:[%s10364_s25 + $0x2e0] sm:$0xff]  ;;  %v1285_v47 = vld [vmem:[%s10364_s25 + $0x2f0] sm:$0xff]  ;;  %1282 = vst [vmem:[%s10369_s26 + $0x168] sm:$0xff] %v1281_v45 }
  0x2d   : > { %1284 = vst [vmem:[%s10369_s26 + $0x170] sm:$0xff] %v1283_v46  ;;  %1286 = vst [vmem:[%s10369_s26 + $0x178] sm:$0xff] %v1285_v47  ;;  %v1287_v48 = vld [vmem:[%s10364_s25 + $0x300] sm:$0xff]  ;;  %v1289_v49 = vld [vmem:[%s10364_s25 + $0x310] sm:$0xff] }
  0x2e   : > { %v1291_v50 = vld [vmem:[%s10364_s25 + $0x320] sm:$0xff]  ;;  %1288 = vst [vmem:[%s10369_s26 + $0x180] sm:$0xff] %v1287_v48  ;;  %1290 = vst [vmem:[%s10369_s26 + $0x188] sm:$0xff] %v1289_v49  ;;  %v1293_v51 = vld [vmem:[%s10364_s25 + $0x330] sm:$0xff] }
  0x2f   : > { %1292 = vst [vmem:[%s10369_s26 + $0x190] sm:$0xff] %v1291_v50  ;;  %v1295_v52 = vld [vmem:[%s10364_s25 + $0x340] sm:$0xff]  ;;  %v1297_v53 = vld [vmem:[%s10364_s25 + $0x350] sm:$0xff]  ;;  %1294 = vst [vmem:[%s10369_s26 + $0x198] sm:$0xff] %v1293_v51 }
  0x30   : > { %1296 = vst [vmem:[%s10369_s26 + $0x1a0] sm:$0xff] %v1295_v52  ;;  %1298 = vst [vmem:[%s10369_s26 + $0x1a8] sm:$0xff] %v1297_v53  ;;  %v1299_v54 = vld [vmem:[%s10364_s25 + $0x360] sm:$0xff]  ;;  %v1301_v55 = vld [vmem:[%s10364_s25 + $0x370] sm:$0xff] }
  0x31   : > { %v1303_v56 = vld [vmem:[%s10364_s25 + $0x380] sm:$0xff]  ;;  %1300 = vst [vmem:[%s10369_s26 + $0x1b0] sm:$0xff] %v1299_v54  ;;  %1302 = vst [vmem:[%s10369_s26 + $0x1b8] sm:$0xff] %v1301_v55  ;;  %v1305_v57 = vld [vmem:[%s10364_s25 + $0x390] sm:$0xff] }
  0x32   : > { %1304 = vst [vmem:[%s10369_s26 + $0x1c0] sm:$0xff] %v1303_v56  ;;  %v1307_v58 = vld [vmem:[%s10364_s25 + $0x3a0] sm:$0xff]  ;;  %v1309_v59 = vld [vmem:[%s10364_s25 + $0x3b0] sm:$0xff]  ;;  %1306 = vst [vmem:[%s10369_s26 + $0x1c8] sm:$0xff] %v1305_v57 }
  0x33   : > { %1308 = vst [vmem:[%s10369_s26 + $0x1d0] sm:$0xff] %v1307_v58  ;;  %1310 = vst [vmem:[%s10369_s26 + $0x1d8] sm:$0xff] %v1309_v59  ;;  %v1311_v60 = vld [vmem:[%s10364_s25 + $0x3c0] sm:$0xff]  ;;  %v1313_v61 = vld [vmem:[%s10364_s25 + $0x3d0] sm:$0xff] }
  0x34   : > { %v1315_v62 = vld [vmem:[%s10364_s25 + $0x3e0] sm:$0xff]  ;;  %1312 = vst [vmem:[%s10369_s26 + $0x1e0] sm:$0xff] %v1311_v60  ;;  %1314 = vst [vmem:[%s10369_s26 + $0x1e8] sm:$0xff] %v1313_v61  ;;  %v1317_v63 = vld [vmem:[%s10364_s25 + $0x3f0] sm:$0xff] }
  0x35   : > { %1316 = vst [vmem:[%s10369_s26 + $0x1f0] sm:$0xff] %v1315_v62  ;;  %v1319_v0 = vld [vmem:[%s10364_s25 + $0x400] sm:$0xff]  ;;  %v1321_v1 = vld [vmem:[%s10364_s25 + $0x410] sm:$0xff]  ;;  %1318 = vst [vmem:[%s10369_s26 + $0x1f8] sm:$0xff] %v1317_v63 }
  0x36   : > { %1320 = vst [vmem:[%s10369_s26 + $0x200] sm:$0xff] %v1319_v0  ;;  %1322 = vst [vmem:[%s10369_s26 + $0x208] sm:$0xff] %v1321_v1  ;;  %v1323_v2 = vld [vmem:[%s10364_s25 + $0x420] sm:$0xff]  ;;  %v1325_v3 = vld [vmem:[%s10364_s25 + $0x430] sm:$0xff] }
  0x37   : > { %v1327_v4 = vld [vmem:[%s10364_s25 + $0x440] sm:$0xff]  ;;  %1324 = vst [vmem:[%s10369_s26 + $0x210] sm:$0xff] %v1323_v2  ;;  %1326 = vst [vmem:[%s10369_s26 + $0x218] sm:$0xff] %v1325_v3  ;;  %v1329_v5 = vld [vmem:[%s10364_s25 + $0x450] sm:$0xff] }
  0x38   : > { %1328 = vst [vmem:[%s10369_s26 + $0x220] sm:$0xff] %v1327_v4  ;;  %v1331_v6 = vld [vmem:[%s10364_s25 + $0x460] sm:$0xff]  ;;  %v1333_v7 = vld [vmem:[%s10364_s25 + $0x470] sm:$0xff]  ;;  %1330 = vst [vmem:[%s10369_s26 + $0x228] sm:$0xff] %v1329_v5 }
  0x39   : > { %1332 = vst [vmem:[%s10369_s26 + $0x230] sm:$0xff] %v1331_v6  ;;  %1334 = vst [vmem:[%s10369_s26 + $0x238] sm:$0xff] %v1333_v7  ;;  %v1335_v8 = vld [vmem:[%s10364_s25 + $0x480] sm:$0xff]  ;;  %v1337_v9 = vld [vmem:[%s10364_s25 + $0x490] sm:$0xff] }
  0x3a   : > { %v1339_v10 = vld [vmem:[%s10364_s25 + $0x4a0] sm:$0xff]  ;;  %1336 = vst [vmem:[%s10369_s26 + $0x240] sm:$0xff] %v1335_v8  ;;  %1338 = vst [vmem:[%s10369_s26 + $0x248] sm:$0xff] %v1337_v9  ;;  %v1341_v11 = vld [vmem:[%s10364_s25 + $0x4b0] sm:$0xff] }
  0x3b   : > { %1340 = vst [vmem:[%s10369_s26 + $0x250] sm:$0xff] %v1339_v10  ;;  %v1343_v12 = vld [vmem:[%s10364_s25 + $0x4c0] sm:$0xff]  ;;  %v1345_v13 = vld [vmem:[%s10364_s25 + $0x4d0] sm:$0xff]  ;;  %1342 = vst [vmem:[%s10369_s26 + $0x258] sm:$0xff] %v1341_v11 }
  0x3c   : > { %1344 = vst [vmem:[%s10369_s26 + $0x260] sm:$0xff] %v1343_v12  ;;  %1346 = vst [vmem:[%s10369_s26 + $0x268] sm:$0xff] %v1345_v13  ;;  %v1347_v14 = vld [vmem:[%s10364_s25 + $0x4e0] sm:$0xff]  ;;  %v1349_v15 = vld [vmem:[%s10364_s25 + $0x4f0] sm:$0xff] }
  0x3d   : > { %v1351_v16 = vld [vmem:[%s10364_s25 + $0x500] sm:$0xff]  ;;  %1348 = vst [vmem:[%s10369_s26 + $0x270] sm:$0xff] %v1347_v14  ;;  %1350 = vst [vmem:[%s10369_s26 + $0x278] sm:$0xff] %v1349_v15  ;;  %v1353_v17 = vld [vmem:[%s10364_s25 + $0x510] sm:$0xff] }
  0x3e   : > { %1352 = vst [vmem:[%s10369_s26 + $0x280] sm:$0xff] %v1351_v16  ;;  %v1355_v18 = vld [vmem:[%s10364_s25 + $0x520] sm:$0xff]  ;;  %v1357_v19 = vld [vmem:[%s10364_s25 + $0x530] sm:$0xff]  ;;  %1354 = vst [vmem:[%s10369_s26 + $0x288] sm:$0xff] %v1353_v17 }
  0x3f   : > { %1356 = vst [vmem:[%s10369_s26 + $0x290] sm:$0xff] %v1355_v18  ;;  %1358 = vst [vmem:[%s10369_s26 + $0x298] sm:$0xff] %v1357_v19  ;;  %v1359_v20 = vld [vmem:[%s10364_s25 + $0x540] sm:$0xff]  ;;  %v1361_v21 = vld [vmem:[%s10364_s25 + $0x550] sm:$0xff] }
  0x40   : > { %v1363_v22 = vld [vmem:[%s10364_s25 + $0x560] sm:$0xff]  ;;  %1360 = vst [vmem:[%s10369_s26 + $0x2a0] sm:$0xff] %v1359_v20  ;;  %1362 = vst [vmem:[%s10369_s26 + $0x2a8] sm:$0xff] %v1361_v21  ;;  %v1365_v23 = vld [vmem:[%s10364_s25 + $0x570] sm:$0xff] }
  0x41   : > { %1364 = vst [vmem:[%s10369_s26 + $0x2b0] sm:$0xff] %v1363_v22  ;;  %v1367_v24 = vld [vmem:[%s10364_s25 + $0x580] sm:$0xff]  ;;  %v1369_v25 = vld [vmem:[%s10364_s25 + $0x590] sm:$0xff]  ;;  %1366 = vst [vmem:[%s10369_s26 + $0x2b8] sm:$0xff] %v1365_v23 }
  0x42   : > { %1368 = vst [vmem:[%s10369_s26 + $0x2c0] sm:$0xff] %v1367_v24  ;;  %1370 = vst [vmem:[%s10369_s26 + $0x2c8] sm:$0xff] %v1369_v25  ;;  %v1371_v26 = vld [vmem:[%s10364_s25 + $0x5a0] sm:$0xff]  ;;  %v1373_v27 = vld [vmem:[%s10364_s25 + $0x5b0] sm:$0xff] }
  0x43   : > { %v1375_v28 = vld [vmem:[%s10364_s25 + $0x5c0] sm:$0xff]  ;;  %1372 = vst [vmem:[%s10369_s26 + $0x2d0] sm:$0xff] %v1371_v26  ;;  %1374 = vst [vmem:[%s10369_s26 + $0x2d8] sm:$0xff] %v1373_v27  ;;  %v1377_v29 = vld [vmem:[%s10364_s25 + $0x5d0] sm:$0xff] }
  0x44   : > { %1376 = vst [vmem:[%s10369_s26 + $0x2e0] sm:$0xff] %v1375_v28  ;;  %v1379_v30 = vld [vmem:[%s10364_s25 + $0x5e0] sm:$0xff]  ;;  %v1381_v31 = vld [vmem:[%s10364_s25 + $0x5f0] sm:$0xff]  ;;  %1378 = vst [vmem:[%s10369_s26 + $0x2e8] sm:$0xff] %v1377_v29 }
  0x45   : > { %1380 = vst [vmem:[%s10369_s26 + $0x2f0] sm:$0xff] %v1379_v30  ;;  %1382 = vst [vmem:[%s10369_s26 + $0x2f8] sm:$0xff] %v1381_v31  ;;  %v1383_v32 = vld [vmem:[%s10364_s25 + $0x600] sm:$0xff]  ;;  %v1385_v33 = vld [vmem:[%s10364_s25 + $0x610] sm:$0xff] }
  0x46   : > { %v1387_v34 = vld [vmem:[%s10364_s25 + $0x620] sm:$0xff]  ;;  %1384 = vst [vmem:[%s10369_s26 + $0x300] sm:$0xff] %v1383_v32  ;;  %1386 = vst [vmem:[%s10369_s26 + $0x308] sm:$0xff] %v1385_v33  ;;  %v1389_v35 = vld [vmem:[%s10364_s25 + $0x630] sm:$0xff] }
  0x47   : > { %1388 = vst [vmem:[%s10369_s26 + $0x310] sm:$0xff] %v1387_v34  ;;  %v1391_v36 = vld [vmem:[%s10364_s25 + $0x640] sm:$0xff]  ;;  %v1393_v37 = vld [vmem:[%s10364_s25 + $0x650] sm:$0xff]  ;;  %1390 = vst [vmem:[%s10369_s26 + $0x318] sm:$0xff] %v1389_v35 }
  0x48   : > { %1392 = vst [vmem:[%s10369_s26 + $0x320] sm:$0xff] %v1391_v36  ;;  %1394 = vst [vmem:[%s10369_s26 + $0x328] sm:$0xff] %v1393_v37  ;;  %v1395_v38 = vld [vmem:[%s10364_s25 + $0x660] sm:$0xff]  ;;  %v1397_v39 = vld [vmem:[%s10364_s25 + $0x670] sm:$0xff] }
  0x49   : > { %v1399_v40 = vld [vmem:[%s10364_s25 + $0x680] sm:$0xff]  ;;  %1396 = vst [vmem:[%s10369_s26 + $0x330] sm:$0xff] %v1395_v38  ;;  %1398 = vst [vmem:[%s10369_s26 + $0x338] sm:$0xff] %v1397_v39  ;;  %v1401_v41 = vld [vmem:[%s10364_s25 + $0x690] sm:$0xff] }
  0x4a   : > { %1400 = vst [vmem:[%s10369_s26 + $0x340] sm:$0xff] %v1399_v40  ;;  %v1403_v42 = vld [vmem:[%s10364_s25 + $0x6a0] sm:$0xff]  ;;  %v1405_v43 = vld [vmem:[%s10364_s25 + $0x6b0] sm:$0xff]  ;;  %1402 = vst [vmem:[%s10369_s26 + $0x348] sm:$0xff] %v1401_v41 }
  0x4b   : > { %1404 = vst [vmem:[%s10369_s26 + $0x350] sm:$0xff] %v1403_v42  ;;  %1406 = vst [vmem:[%s10369_s26 + $0x358] sm:$0xff] %v1405_v43  ;;  %v1407_v44 = vld [vmem:[%s10364_s25 + $0x6c0] sm:$0xff]  ;;  %v1409_v45 = vld [vmem:[%s10364_s25 + $0x6d0] sm:$0xff] }
  0x4c   : > { %v1411_v46 = vld [vmem:[%s10364_s25 + $0x6e0] sm:$0xff]  ;;  %1408 = vst [vmem:[%s10369_s26 + $0x360] sm:$0xff] %v1407_v44  ;;  %1410 = vst [vmem:[%s10369_s26 + $0x368] sm:$0xff] %v1409_v45  ;;  %v1413_v47 = vld [vmem:[%s10364_s25 + $0x6f0] sm:$0xff] }
  0x4d   : > { %1412 = vst [vmem:[%s10369_s26 + $0x370] sm:$0xff] %v1411_v46  ;;  %v1415_v48 = vld [vmem:[%s10364_s25 + $0x700] sm:$0xff]  ;;  %v1417_v49 = vld [vmem:[%s10364_s25 + $0x710] sm:$0xff]  ;;  %1414 = vst [vmem:[%s10369_s26 + $0x378] sm:$0xff] %v1413_v47 }
  0x4e   : > { %1416 = vst [vmem:[%s10369_s26 + $0x380] sm:$0xff] %v1415_v48  ;;  %1418 = vst [vmem:[%s10369_s26 + $0x388] sm:$0xff] %v1417_v49  ;;  %v1419_v50 = vld [vmem:[%s10364_s25 + $0x720] sm:$0xff]  ;;  %v1421_v51 = vld [vmem:[%s10364_s25 + $0x730] sm:$0xff] }
  0x4f   : > { %v1423_v52 = vld [vmem:[%s10364_s25 + $0x740] sm:$0xff]  ;;  %1420 = vst [vmem:[%s10369_s26 + $0x390] sm:$0xff] %v1419_v50  ;;  %1422 = vst [vmem:[%s10369_s26 + $0x398] sm:$0xff] %v1421_v51  ;;  %v1425_v53 = vld [vmem:[%s10364_s25 + $0x750] sm:$0xff] }
  0x50   : > { %1424 = vst [vmem:[%s10369_s26 + $0x3a0] sm:$0xff] %v1423_v52  ;;  %v1427_v54 = vld [vmem:[%s10364_s25 + $0x760] sm:$0xff]  ;;  %v1429_v55 = vld [vmem:[%s10364_s25 + $0x770] sm:$0xff]  ;;  %1426 = vst [vmem:[%s10369_s26 + $0x3a8] sm:$0xff] %v1425_v53 }
  0x51   : > { %1428 = vst [vmem:[%s10369_s26 + $0x3b0] sm:$0xff] %v1427_v54  ;;  %1430 = vst [vmem:[%s10369_s26 + $0x3b8] sm:$0xff] %v1429_v55  ;;  %v1431_v56 = vld [vmem:[%s10364_s25 + $0x780] sm:$0xff]  ;;  %v1433_v57 = vld [vmem:[%s10364_s25 + $0x790] sm:$0xff] }
  0x52   : > { %v1435_v58 = vld [vmem:[%s10364_s25 + $0x7a0] sm:$0xff]  ;;  %1432 = vst [vmem:[%s10369_s26 + $0x3c0] sm:$0xff] %v1431_v56  ;;  %1434 = vst [vmem:[%s10369_s26 + $0x3c8] sm:$0xff] %v1433_v57  ;;  %v1437_v59 = vld [vmem:[%s10364_s25 + $0x7b0] sm:$0xff] }
  0x53   : > { %1436 = vst [vmem:[%s10369_s26 + $0x3d0] sm:$0xff] %v1435_v58  ;;  %v1439_v60 = vld [vmem:[%s10364_s25 + $0x7c0] sm:$0xff]  ;;  %v1441_v61 = vld [vmem:[%s10364_s25 + $0x7d0] sm:$0xff]  ;;  %1438 = vst [vmem:[%s10369_s26 + $0x3d8] sm:$0xff] %v1437_v59 }
  0x54   : > { %1440 = vst [vmem:[%s10369_s26 + $0x3e0] sm:$0xff] %v1439_v60  ;;  %1442 = vst [vmem:[%s10369_s26 + $0x3e8] sm:$0xff] %v1441_v61  ;;  %v1443_v62 = vld [vmem:[%s10364_s25 + $0x7e0] sm:$0xff]  ;;  %v1445_v63 = vld [vmem:[%s10364_s25 + $0x7f0] sm:$0xff] }
  0x55   : > { %v1447_v0 = vld [vmem:[%s10364_s25 + $0x800] sm:$0xff]  ;;  %1444 = vst [vmem:[%s10369_s26 + $0x3f0] sm:$0xff] %v1443_v62  ;;  %1446 = vst [vmem:[%s10369_s26 + $0x3f8] sm:$0xff] %v1445_v63  ;;  %v1449_v1 = vld [vmem:[%s10364_s25 + $0x810] sm:$0xff] }
  0x56   : > { %1448 = vst [vmem:[%s10369_s26 + $0x400] sm:$0xff] %v1447_v0  ;;  %v1451_v2 = vld [vmem:[%s10364_s25 + $0x820] sm:$0xff]  ;;  %v1453_v3 = vld [vmem:[%s10364_s25 + $0x830] sm:$0xff]  ;;  %1450 = vst [vmem:[%s10369_s26 + $0x408] sm:$0xff] %v1449_v1 }
  0x57   : > { %1452 = vst [vmem:[%s10369_s26 + $0x410] sm:$0xff] %v1451_v2  ;;  %1454 = vst [vmem:[%s10369_s26 + $0x418] sm:$0xff] %v1453_v3  ;;  %v1455_v4 = vld [vmem:[%s10364_s25 + $0x840] sm:$0xff]  ;;  %v1457_v5 = vld [vmem:[%s10364_s25 + $0x850] sm:$0xff] }
  0x58   : > { %v1459_v6 = vld [vmem:[%s10364_s25 + $0x860] sm:$0xff]  ;;  %1456 = vst [vmem:[%s10369_s26 + $0x420] sm:$0xff] %v1455_v4  ;;  %1458 = vst [vmem:[%s10369_s26 + $0x428] sm:$0xff] %v1457_v5  ;;  %v1461_v7 = vld [vmem:[%s10364_s25 + $0x870] sm:$0xff] }
  0x59   : > { %1460 = vst [vmem:[%s10369_s26 + $0x430] sm:$0xff] %v1459_v6  ;;  %v1463_v8 = vld [vmem:[%s10364_s25 + $0x880] sm:$0xff]  ;;  %v1465_v9 = vld [vmem:[%s10364_s25 + $0x890] sm:$0xff]  ;;  %1462 = vst [vmem:[%s10369_s26 + $0x438] sm:$0xff] %v1461_v7 }
  0x5a   : > { %1464 = vst [vmem:[%s10369_s26 + $0x440] sm:$0xff] %v1463_v8  ;;  %1466 = vst [vmem:[%s10369_s26 + $0x448] sm:$0xff] %v1465_v9  ;;  %v1467_v10 = vld [vmem:[%s10364_s25 + $0x8a0] sm:$0xff]  ;;  %v1469_v11 = vld [vmem:[%s10364_s25 + $0x8b0] sm:$0xff] }
  0x5b   : > { %v1471_v12 = vld [vmem:[%s10364_s25 + $0x8c0] sm:$0xff]  ;;  %1468 = vst [vmem:[%s10369_s26 + $0x450] sm:$0xff] %v1467_v10  ;;  %1470 = vst [vmem:[%s10369_s26 + $0x458] sm:$0xff] %v1469_v11  ;;  %v1473_v13 = vld [vmem:[%s10364_s25 + $0x8d0] sm:$0xff] }
  0x5c   : > { %1472 = vst [vmem:[%s10369_s26 + $0x460] sm:$0xff] %v1471_v12  ;;  %v1475_v14 = vld [vmem:[%s10364_s25 + $0x8e0] sm:$0xff]  ;;  %v1477_v15 = vld [vmem:[%s10364_s25 + $0x8f0] sm:$0xff]  ;;  %1474 = vst [vmem:[%s10369_s26 + $0x468] sm:$0xff] %v1473_v13 }
  0x5d   : > { %1476 = vst [vmem:[%s10369_s26 + $0x470] sm:$0xff] %v1475_v14  ;;  %1478 = vst [vmem:[%s10369_s26 + $0x478] sm:$0xff] %v1477_v15  ;;  %v1479_v16 = vld [vmem:[%s10364_s25 + $0x900] sm:$0xff]  ;;  %v1481_v17 = vld [vmem:[%s10364_s25 + $0x910] sm:$0xff] }
  0x5e   : > { %v1483_v18 = vld [vmem:[%s10364_s25 + $0x920] sm:$0xff]  ;;  %1480 = vst [vmem:[%s10369_s26 + $0x480] sm:$0xff] %v1479_v16  ;;  %1482 = vst [vmem:[%s10369_s26 + $0x488] sm:$0xff] %v1481_v17  ;;  %v1485_v19 = vld [vmem:[%s10364_s25 + $0x930] sm:$0xff] }
  0x5f   : > { %1484 = vst [vmem:[%s10369_s26 + $0x490] sm:$0xff] %v1483_v18  ;;  %v1487_v20 = vld [vmem:[%s10364_s25 + $0x940] sm:$0xff]  ;;  %v1489_v21 = vld [vmem:[%s10364_s25 + $0x950] sm:$0xff]  ;;  %1486 = vst [vmem:[%s10369_s26 + $0x498] sm:$0xff] %v1485_v19 }
  0x60   : > { %1488 = vst [vmem:[%s10369_s26 + $0x4a0] sm:$0xff] %v1487_v20  ;;  %1490 = vst [vmem:[%s10369_s26 + $0x4a8] sm:$0xff] %v1489_v21  ;;  %v1491_v22 = vld [vmem:[%s10364_s25 + $0x960] sm:$0xff]  ;;  %v1493_v23 = vld [vmem:[%s10364_s25 + $0x970] sm:$0xff] }
  0x61   : > { %v1495_v24 = vld [vmem:[%s10364_s25 + $0x980] sm:$0xff]  ;;  %1492 = vst [vmem:[%s10369_s26 + $0x4b0] sm:$0xff] %v1491_v22  ;;  %1494 = vst [vmem:[%s10369_s26 + $0x4b8] sm:$0xff] %v1493_v23  ;;  %v1497_v25 = vld [vmem:[%s10364_s25 + $0x990] sm:$0xff] }
  0x62   : > { %1496 = vst [vmem:[%s10369_s26 + $0x4c0] sm:$0xff] %v1495_v24  ;;  %v1499_v26 = vld [vmem:[%s10364_s25 + $0x9a0] sm:$0xff]  ;;  %v1501_v27 = vld [vmem:[%s10364_s25 + $0x9b0] sm:$0xff]  ;;  %1498 = vst [vmem:[%s10369_s26 + $0x4c8] sm:$0xff] %v1497_v25 }
  0x63   : > { %1500 = vst [vmem:[%s10369_s26 + $0x4d0] sm:$0xff] %v1499_v26  ;;  %1502 = vst [vmem:[%s10369_s26 + $0x4d8] sm:$0xff] %v1501_v27  ;;  %v1503_v28 = vld [vmem:[%s10364_s25 + $0x9c0] sm:$0xff]  ;;  %v1505_v29 = vld [vmem:[%s10364_s25 + $0x9d0] sm:$0xff] }
  0x64   : > { %v1507_v30 = vld [vmem:[%s10364_s25 + $0x9e0] sm:$0xff]  ;;  %1504 = vst [vmem:[%s10369_s26 + $0x4e0] sm:$0xff] %v1503_v28  ;;  %1506 = vst [vmem:[%s10369_s26 + $0x4e8] sm:$0xff] %v1505_v29  ;;  %v1509_v31 = vld [vmem:[%s10364_s25 + $0x9f0] sm:$0xff] }
  0x65   : > { %1508 = vst [vmem:[%s10369_s26 + $0x4f0] sm:$0xff] %v1507_v30  ;;  %v1511_v32 = vld [vmem:[%s10364_s25 + $0xa00] sm:$0xff]  ;;  %v1513_v33 = vld [vmem:[%s10364_s25 + $0xa10] sm:$0xff]  ;;  %1510 = vst [vmem:[%s10369_s26 + $0x4f8] sm:$0xff] %v1509_v31 }
  0x66   : > { %1512 = vst [vmem:[%s10369_s26 + $0x500] sm:$0xff] %v1511_v32  ;;  %1514 = vst [vmem:[%s10369_s26 + $0x508] sm:$0xff] %v1513_v33  ;;  %v1515_v34 = vld [vmem:[%s10364_s25 + $0xa20] sm:$0xff]  ;;  %v1517_v35 = vld [vmem:[%s10364_s25 + $0xa30] sm:$0xff] }
  0x67   : > { %v1519_v36 = vld [vmem:[%s10364_s25 + $0xa40] sm:$0xff]  ;;  %1516 = vst [vmem:[%s10369_s26 + $0x510] sm:$0xff] %v1515_v34  ;;  %1518 = vst [vmem:[%s10369_s26 + $0x518] sm:$0xff] %v1517_v35  ;;  %v1521_v37 = vld [vmem:[%s10364_s25 + $0xa50] sm:$0xff] }
  0x68   : > { %1520 = vst [vmem:[%s10369_s26 + $0x520] sm:$0xff] %v1519_v36  ;;  %v1523_v38 = vld [vmem:[%s10364_s25 + $0xa60] sm:$0xff]  ;;  %v1525_v39 = vld [vmem:[%s10364_s25 + $0xa70] sm:$0xff]  ;;  %1522 = vst [vmem:[%s10369_s26 + $0x528] sm:$0xff] %v1521_v37 }
  0x69   : > { %1524 = vst [vmem:[%s10369_s26 + $0x530] sm:$0xff] %v1523_v38  ;;  %1526 = vst [vmem:[%s10369_s26 + $0x538] sm:$0xff] %v1525_v39  ;;  %v1527_v40 = vld [vmem:[%s10364_s25 + $0xa80] sm:$0xff]  ;;  %v1529_v41 = vld [vmem:[%s10364_s25 + $0xa90] sm:$0xff] }
  0x6a   : > { %v1531_v42 = vld [vmem:[%s10364_s25 + $0xaa0] sm:$0xff]  ;;  %1528 = vst [vmem:[%s10369_s26 + $0x540] sm:$0xff] %v1527_v40  ;;  %1530 = vst [vmem:[%s10369_s26 + $0x548] sm:$0xff] %v1529_v41  ;;  %v1533_v43 = vld [vmem:[%s10364_s25 + $0xab0] sm:$0xff] }
  0x6b   : > { %1532 = vst [vmem:[%s10369_s26 + $0x550] sm:$0xff] %v1531_v42  ;;  %v1535_v44 = vld [vmem:[%s10364_s25 + $0xac0] sm:$0xff]  ;;  %v1537_v45 = vld [vmem:[%s10364_s25 + $0xad0] sm:$0xff]  ;;  %1534 = vst [vmem:[%s10369_s26 + $0x558] sm:$0xff] %v1533_v43 }
  0x6c   : > { %1536 = vst [vmem:[%s10369_s26 + $0x560] sm:$0xff] %v1535_v44  ;;  %1538 = vst [vmem:[%s10369_s26 + $0x568] sm:$0xff] %v1537_v45  ;;  %v1539_v46 = vld [vmem:[%s10364_s25 + $0xae0] sm:$0xff]  ;;  %v1541_v47 = vld [vmem:[%s10364_s25 + $0xaf0] sm:$0xff] }
  0x6d   : > { %v1543_v48 = vld [vmem:[%s10364_s25 + $0xb00] sm:$0xff]  ;;  %1540 = vst [vmem:[%s10369_s26 + $0x570] sm:$0xff] %v1539_v46  ;;  %1542 = vst [vmem:[%s10369_s26 + $0x578] sm:$0xff] %v1541_v47  ;;  %v1545_v49 = vld [vmem:[%s10364_s25 + $0xb10] sm:$0xff] }
  0x6e   : > { %1544 = vst [vmem:[%s10369_s26 + $0x580] sm:$0xff] %v1543_v48  ;;  %v1547_v50 = vld [vmem:[%s10364_s25 + $0xb20] sm:$0xff]  ;;  %v1549_v51 = vld [vmem:[%s10364_s25 + $0xb30] sm:$0xff]  ;;  %1546 = vst [vmem:[%s10369_s26 + $0x588] sm:$0xff] %v1545_v49 }
  0x6f   : > { %1548 = vst [vmem:[%s10369_s26 + $0x590] sm:$0xff] %v1547_v50  ;;  %1550 = vst [vmem:[%s10369_s26 + $0x598] sm:$0xff] %v1549_v51  ;;  %v1551_v52 = vld [vmem:[%s10364_s25 + $0xb40] sm:$0xff]  ;;  %v1553_v53 = vld [vmem:[%s10364_s25 + $0xb50] sm:$0xff] }
  0x70   : > { %v1555_v54 = vld [vmem:[%s10364_s25 + $0xb60] sm:$0xff]  ;;  %1552 = vst [vmem:[%s10369_s26 + $0x5a0] sm:$0xff] %v1551_v52  ;;  %1554 = vst [vmem:[%s10369_s26 + $0x5a8] sm:$0xff] %v1553_v53  ;;  %v1557_v55 = vld [vmem:[%s10364_s25 + $0xb70] sm:$0xff] }
  0x71   : > { %1556 = vst [vmem:[%s10369_s26 + $0x5b0] sm:$0xff] %v1555_v54  ;;  %v1559_v56 = vld [vmem:[%s10364_s25 + $0xb80] sm:$0xff]  ;;  %v1561_v57 = vld [vmem:[%s10364_s25 + $0xb90] sm:$0xff]  ;;  %1558 = vst [vmem:[%s10369_s26 + $0x5b8] sm:$0xff] %v1557_v55 }
  0x72   : > { %1560 = vst [vmem:[%s10369_s26 + $0x5c0] sm:$0xff] %v1559_v56  ;;  %1562 = vst [vmem:[%s10369_s26 + $0x5c8] sm:$0xff] %v1561_v57  ;;  %v1563_v58 = vld [vmem:[%s10364_s25 + $0xba0] sm:$0xff]  ;;  %v1565_v59 = vld [vmem:[%s10364_s25 + $0xbb0] sm:$0xff] }
  0x73   : > { %v1567_v60 = vld [vmem:[%s10364_s25 + $0xbc0] sm:$0xff]  ;;  %1564 = vst [vmem:[%s10369_s26 + $0x5d0] sm:$0xff] %v1563_v58  ;;  %1566 = vst [vmem:[%s10369_s26 + $0x5d8] sm:$0xff] %v1565_v59  ;;  %v1569_v61 = vld [vmem:[%s10364_s25 + $0xbd0] sm:$0xff] }
  0x74   : > { %1568 = vst [vmem:[%s10369_s26 + $0x5e0] sm:$0xff] %v1567_v60  ;;  %v1571_v62 = vld [vmem:[%s10364_s25 + $0xbe0] sm:$0xff]  ;;  %v1573_v63 = vld [vmem:[%s10364_s25 + $0xbf0] sm:$0xff]  ;;  %1570 = vst [vmem:[%s10369_s26 + $0x5e8] sm:$0xff] %v1569_v61 }
  0x75   : > { %1572 = vst [vmem:[%s10369_s26 + $0x5f0] sm:$0xff] %v1571_v62  ;;  %1574 = vst [vmem:[%s10369_s26 + $0x5f8] sm:$0xff] %v1573_v63  ;;  %v1575_v0 = vld [vmem:[%s10364_s25 + $0xc00] sm:$0xff]  ;;  %v1577_v1 = vld [vmem:[%s10364_s25 + $0xc10] sm:$0xff] }
  0x76   : > { %v1579_v2 = vld [vmem:[%s10364_s25 + $0xc20] sm:$0xff]  ;;  %1576 = vst [vmem:[%s10369_s26 + $0x600] sm:$0xff] %v1575_v0  ;;  %1578 = vst [vmem:[%s10369_s26 + $0x608] sm:$0xff] %v1577_v1  ;;  %v1581_v3 = vld [vmem:[%s10364_s25 + $0xc30] sm:$0xff] }
  0x77   : > { %1580 = vst [vmem:[%s10369_s26 + $0x610] sm:$0xff] %v1579_v2  ;;  %v1583_v4 = vld [vmem:[%s10364_s25 + $0xc40] sm:$0xff]  ;;  %v1585_v5 = vld [vmem:[%s10364_s25 + $0xc50] sm:$0xff]  ;;  %1582 = vst [vmem:[%s10369_s26 + $0x618] sm:$0xff] %v1581_v3 }
  0x78   : > { %1584 = vst [vmem:[%s10369_s26 + $0x620] sm:$0xff] %v1583_v4  ;;  %1586 = vst [vmem:[%s10369_s26 + $0x628] sm:$0xff] %v1585_v5  ;;  %v1587_v6 = vld [vmem:[%s10364_s25 + $0xc60] sm:$0xff]  ;;  %v1589_v7 = vld [vmem:[%s10364_s25 + $0xc70] sm:$0xff] }
  0x79   : > { %v1591_v8 = vld [vmem:[%s10364_s25 + $0xc80] sm:$0xff]  ;;  %1588 = vst [vmem:[%s10369_s26 + $0x630] sm:$0xff] %v1587_v6  ;;  %1590 = vst [vmem:[%s10369_s26 + $0x638] sm:$0xff] %v1589_v7  ;;  %v1593_v9 = vld [vmem:[%s10364_s25 + $0xc90] sm:$0xff] }
  0x7a   : > { %1592 = vst [vmem:[%s10369_s26 + $0x640] sm:$0xff] %v1591_v8  ;;  %v1595_v10 = vld [vmem:[%s10364_s25 + $0xca0] sm:$0xff]  ;;  %v1597_v11 = vld [vmem:[%s10364_s25 + $0xcb0] sm:$0xff]  ;;  %1594 = vst [vmem:[%s10369_s26 + $0x648] sm:$0xff] %v1593_v9 }
  0x7b   : > { %1596 = vst [vmem:[%s10369_s26 + $0x650] sm:$0xff] %v1595_v10  ;;  %1598 = vst [vmem:[%s10369_s26 + $0x658] sm:$0xff] %v1597_v11  ;;  %v1599_v12 = vld [vmem:[%s10364_s25 + $0xcc0] sm:$0xff]  ;;  %v1601_v13 = vld [vmem:[%s10364_s25 + $0xcd0] sm:$0xff] }
  0x7c   : > { %v1603_v14 = vld [vmem:[%s10364_s25 + $0xce0] sm:$0xff]  ;;  %1600 = vst [vmem:[%s10369_s26 + $0x660] sm:$0xff] %v1599_v12  ;;  %1602 = vst [vmem:[%s10369_s26 + $0x668] sm:$0xff] %v1601_v13  ;;  %v1605_v15 = vld [vmem:[%s10364_s25 + $0xcf0] sm:$0xff] }
  0x7d   : > { %1604 = vst [vmem:[%s10369_s26 + $0x670] sm:$0xff] %v1603_v14  ;;  %v1607_v16 = vld [vmem:[%s10364_s25 + $0xd00] sm:$0xff]  ;;  %v1609_v17 = vld [vmem:[%s10364_s25 + $0xd10] sm:$0xff]  ;;  %1606 = vst [vmem:[%s10369_s26 + $0x678] sm:$0xff] %v1605_v15 }
  0x7e   : > { %1608 = vst [vmem:[%s10369_s26 + $0x680] sm:$0xff] %v1607_v16  ;;  %1610 = vst [vmem:[%s10369_s26 + $0x688] sm:$0xff] %v1609_v17  ;;  %v1611_v18 = vld [vmem:[%s10364_s25 + $0xd20] sm:$0xff]  ;;  %v1613_v19 = vld [vmem:[%s10364_s25 + $0xd30] sm:$0xff] }
  0x7f   : > { %v1615_v20 = vld [vmem:[%s10364_s25 + $0xd40] sm:$0xff]  ;;  %1612 = vst [vmem:[%s10369_s26 + $0x690] sm:$0xff] %v1611_v18  ;;  %1614 = vst [vmem:[%s10369_s26 + $0x698] sm:$0xff] %v1613_v19  ;;  %v1617_v21 = vld [vmem:[%s10364_s25 + $0xd50] sm:$0xff] }
  0x80   : > { %1616 = vst [vmem:[%s10369_s26 + $0x6a0] sm:$0xff] %v1615_v20  ;;  %v1619_v22 = vld [vmem:[%s10364_s25 + $0xd60] sm:$0xff]  ;;  %v1621_v23 = vld [vmem:[%s10364_s25 + $0xd70] sm:$0xff]  ;;  %1618 = vst [vmem:[%s10369_s26 + $0x6a8] sm:$0xff] %v1617_v21 }
  0x81   : > { %1620 = vst [vmem:[%s10369_s26 + $0x6b0] sm:$0xff] %v1619_v22  ;;  %1622 = vst [vmem:[%s10369_s26 + $0x6b8] sm:$0xff] %v1621_v23  ;;  %v1623_v24 = vld [vmem:[%s10364_s25 + $0xd80] sm:$0xff]  ;;  %v1625_v25 = vld [vmem:[%s10364_s25 + $0xd90] sm:$0xff] }
  0x82   : > { %v1627_v26 = vld [vmem:[%s10364_s25 + $0xda0] sm:$0xff]  ;;  %1624 = vst [vmem:[%s10369_s26 + $0x6c0] sm:$0xff] %v1623_v24  ;;  %1626 = vst [vmem:[%s10369_s26 + $0x6c8] sm:$0xff] %v1625_v25  ;;  %v1629_v27 = vld [vmem:[%s10364_s25 + $0xdb0] sm:$0xff] }
  0x83   : > { %1628 = vst [vmem:[%s10369_s26 + $0x6d0] sm:$0xff] %v1627_v26  ;;  %v1631_v28 = vld [vmem:[%s10364_s25 + $0xdc0] sm:$0xff]  ;;  %v1633_v29 = vld [vmem:[%s10364_s25 + $0xdd0] sm:$0xff]  ;;  %1630 = vst [vmem:[%s10369_s26 + $0x6d8] sm:$0xff] %v1629_v27 }
  0x84   : > { %1632 = vst [vmem:[%s10369_s26 + $0x6e0] sm:$0xff] %v1631_v28  ;;  %1634 = vst [vmem:[%s10369_s26 + $0x6e8] sm:$0xff] %v1633_v29  ;;  %v1635_v30 = vld [vmem:[%s10364_s25 + $0xde0] sm:$0xff]  ;;  %v1637_v31 = vld [vmem:[%s10364_s25 + $0xdf0] sm:$0xff] }
  0x85   : > { %v1639_v32 = vld [vmem:[%s10364_s25 + $0xe00] sm:$0xff]  ;;  %1636 = vst [vmem:[%s10369_s26 + $0x6f0] sm:$0xff] %v1635_v30  ;;  %1638 = vst [vmem:[%s10369_s26 + $0x6f8] sm:$0xff] %v1637_v31  ;;  %v1641_v33 = vld [vmem:[%s10364_s25 + $0xe10] sm:$0xff] }
  0x86   : > { %1640 = vst [vmem:[%s10369_s26 + $0x700] sm:$0xff] %v1639_v32  ;;  %v1643_v34 = vld [vmem:[%s10364_s25 + $0xe20] sm:$0xff]  ;;  %v1645_v35 = vld [vmem:[%s10364_s25 + $0xe30] sm:$0xff]  ;;  %1642 = vst [vmem:[%s10369_s26 + $0x708] sm:$0xff] %v1641_v33 }
  0x87   : > { %1644 = vst [vmem:[%s10369_s26 + $0x710] sm:$0xff] %v1643_v34  ;;  %1646 = vst [vmem:[%s10369_s26 + $0x718] sm:$0xff] %v1645_v35  ;;  %v1647_v36 = vld [vmem:[%s10364_s25 + $0xe40] sm:$0xff]  ;;  %v1649_v37 = vld [vmem:[%s10364_s25 + $0xe50] sm:$0xff] }
  0x88   : > { %v1651_v38 = vld [vmem:[%s10364_s25 + $0xe60] sm:$0xff]  ;;  %1648 = vst [vmem:[%s10369_s26 + $0x720] sm:$0xff] %v1647_v36  ;;  %1650 = vst [vmem:[%s10369_s26 + $0x728] sm:$0xff] %v1649_v37  ;;  %v1653_v39 = vld [vmem:[%s10364_s25 + $0xe70] sm:$0xff] }
  0x89   : > { %1652 = vst [vmem:[%s10369_s26 + $0x730] sm:$0xff] %v1651_v38  ;;  %v1655_v40 = vld [vmem:[%s10364_s25 + $0xe80] sm:$0xff]  ;;  %v1657_v41 = vld [vmem:[%s10364_s25 + $0xe90] sm:$0xff]  ;;  %1654 = vst [vmem:[%s10369_s26 + $0x738] sm:$0xff] %v1653_v39 }
  0x8a   : > { %1656 = vst [vmem:[%s10369_s26 + $0x740] sm:$0xff] %v1655_v40  ;;  %1658 = vst [vmem:[%s10369_s26 + $0x748] sm:$0xff] %v1657_v41  ;;  %v1659_v42 = vld [vmem:[%s10364_s25 + $0xea0] sm:$0xff]  ;;  %v1661_v43 = vld [vmem:[%s10364_s25 + $0xeb0] sm:$0xff] }
  0x8b   : > { %v1663_v44 = vld [vmem:[%s10364_s25 + $0xec0] sm:$0xff]  ;;  %1660 = vst [vmem:[%s10369_s26 + $0x750] sm:$0xff] %v1659_v42  ;;  %1662 = vst [vmem:[%s10369_s26 + $0x758] sm:$0xff] %v1661_v43  ;;  %v1665_v45 = vld [vmem:[%s10364_s25 + $0xed0] sm:$0xff] }
  0x8c   : > { %1664 = vst [vmem:[%s10369_s26 + $0x760] sm:$0xff] %v1663_v44  ;;  %v1667_v46 = vld [vmem:[%s10364_s25 + $0xee0] sm:$0xff]  ;;  %v1669_v47 = vld [vmem:[%s10364_s25 + $0xef0] sm:$0xff]  ;;  %1666 = vst [vmem:[%s10369_s26 + $0x768] sm:$0xff] %v1665_v45 }
  0x8d   : > { %1668 = vst [vmem:[%s10369_s26 + $0x770] sm:$0xff] %v1667_v46  ;;  %1670 = vst [vmem:[%s10369_s26 + $0x778] sm:$0xff] %v1669_v47  ;;  %v1671_v48 = vld [vmem:[%s10364_s25 + $0xf00] sm:$0xff]  ;;  %v1673_v49 = vld [vmem:[%s10364_s25 + $0xf10] sm:$0xff] }
  0x8e   : > { %v1675_v50 = vld [vmem:[%s10364_s25 + $0xf20] sm:$0xff]  ;;  %1672 = vst [vmem:[%s10369_s26 + $0x780] sm:$0xff] %v1671_v48  ;;  %1674 = vst [vmem:[%s10369_s26 + $0x788] sm:$0xff] %v1673_v49  ;;  %v1677_v51 = vld [vmem:[%s10364_s25 + $0xf30] sm:$0xff] }
  0x8f   : > { %1676 = vst [vmem:[%s10369_s26 + $0x790] sm:$0xff] %v1675_v50  ;;  %v1679_v52 = vld [vmem:[%s10364_s25 + $0xf40] sm:$0xff]  ;;  %v1681_v53 = vld [vmem:[%s10364_s25 + $0xf50] sm:$0xff]  ;;  %1678 = vst [vmem:[%s10369_s26 + $0x798] sm:$0xff] %v1677_v51 }
  0x90   : > { %1680 = vst [vmem:[%s10369_s26 + $0x7a0] sm:$0xff] %v1679_v52  ;;  %1682 = vst [vmem:[%s10369_s26 + $0x7a8] sm:$0xff] %v1681_v53  ;;  %v1683_v54 = vld [vmem:[%s10364_s25 + $0xf60] sm:$0xff]  ;;  %v1685_v55 = vld [vmem:[%s10364_s25 + $0xf70] sm:$0xff] }
  0x91   : > { %v1687_v56 = vld [vmem:[%s10364_s25 + $0xf80] sm:$0xff]  ;;  %1684 = vst [vmem:[%s10369_s26 + $0x7b0] sm:$0xff] %v1683_v54  ;;  %1686 = vst [vmem:[%s10369_s26 + $0x7b8] sm:$0xff] %v1685_v55  ;;  %v1689_v57 = vld [vmem:[%s10364_s25 + $0xf90] sm:$0xff] }
  0x92   : > { %1688 = vst [vmem:[%s10369_s26 + $0x7c0] sm:$0xff] %v1687_v56  ;;  %v1691_v58 = vld [vmem:[%s10364_s25 + $0xfa0] sm:$0xff]  ;;  %v1693_v59 = vld [vmem:[%s10364_s25 + $0xfb0] sm:$0xff]  ;;  %1690 = vst [vmem:[%s10369_s26 + $0x7c8] sm:$0xff] %v1689_v57 }
  0x93   : > { %1692 = vst [vmem:[%s10369_s26 + $0x7d0] sm:$0xff] %v1691_v58  ;;  %1694 = vst [vmem:[%s10369_s26 + $0x7d8] sm:$0xff] %v1693_v59  ;;  %v1695_v60 = vld [vmem:[%s10364_s25 + $0xfc0] sm:$0xff]  ;;  %v1697_v61 = vld [vmem:[%s10364_s25 + $0xfd0] sm:$0xff] }
  0x94   : > { %v1699_v62 = vld [vmem:[%s10364_s25 + $0xfe0] sm:$0xff]  ;;  %1696 = vst [vmem:[%s10369_s26 + $0x7e0] sm:$0xff] %v1695_v60  ;;  %1698 = vst [vmem:[%s10369_s26 + $0x7e8] sm:$0xff] %v1697_v61  ;;  %v1701_v63 = vld [vmem:[%s10364_s25 + $0xff0] sm:$0xff] }
  0x95   : > { %1700 = vst [vmem:[%s10369_s26 + $0x7f0] sm:$0xff] %v1699_v62  ;;  %v1703_v0 = vld [vmem:[%s10364_s25 + $0x1000] sm:$0xff]  ;;  %v1705_v1 = vld [vmem:[%s10364_s25 + $0x1010] sm:$0xff]  ;;  %1702 = vst [vmem:[%s10369_s26 + $0x7f8] sm:$0xff] %v1701_v63 }
  0x96   : > { %1704 = vst [vmem:[%s10369_s26 + $0x800] sm:$0xff] %v1703_v0  ;;  %1706 = vst [vmem:[%s10369_s26 + $0x808] sm:$0xff] %v1705_v1  ;;  %v1707_v2 = vld [vmem:[%s10364_s25 + $0x1020] sm:$0xff]  ;;  %v1709_v3 = vld [vmem:[%s10364_s25 + $0x1030] sm:$0xff] }
  0x97   : > { %v1711_v4 = vld [vmem:[%s10364_s25 + $0x1040] sm:$0xff]  ;;  %1708 = vst [vmem:[%s10369_s26 + $0x810] sm:$0xff] %v1707_v2  ;;  %1710 = vst [vmem:[%s10369_s26 + $0x818] sm:$0xff] %v1709_v3  ;;  %v1713_v5 = vld [vmem:[%s10364_s25 + $0x1050] sm:$0xff] }
  0x98   : > { %1712 = vst [vmem:[%s10369_s26 + $0x820] sm:$0xff] %v1711_v4  ;;  %v1715_v6 = vld [vmem:[%s10364_s25 + $0x1060] sm:$0xff]  ;;  %v1717_v7 = vld [vmem:[%s10364_s25 + $0x1070] sm:$0xff]  ;;  %1714 = vst [vmem:[%s10369_s26 + $0x828] sm:$0xff] %v1713_v5 }
  0x99   : > { %1716 = vst [vmem:[%s10369_s26 + $0x830] sm:$0xff] %v1715_v6  ;;  %1718 = vst [vmem:[%s10369_s26 + $0x838] sm:$0xff] %v1717_v7  ;;  %v1719_v8 = vld [vmem:[%s10364_s25 + $0x1080] sm:$0xff]  ;;  %v1721_v9 = vld [vmem:[%s10364_s25 + $0x1090] sm:$0xff] }
  0x9a   : > { %v1723_v10 = vld [vmem:[%s10364_s25 + $0x10a0] sm:$0xff]  ;;  %1720 = vst [vmem:[%s10369_s26 + $0x840] sm:$0xff] %v1719_v8  ;;  %1722 = vst [vmem:[%s10369_s26 + $0x848] sm:$0xff] %v1721_v9  ;;  %v1725_v11 = vld [vmem:[%s10364_s25 + $0x10b0] sm:$0xff] }
  0x9b   : > { %1724 = vst [vmem:[%s10369_s26 + $0x850] sm:$0xff] %v1723_v10  ;;  %v1727_v12 = vld [vmem:[%s10364_s25 + $0x10c0] sm:$0xff]  ;;  %v1729_v13 = vld [vmem:[%s10364_s25 + $0x10d0] sm:$0xff]  ;;  %1726 = vst [vmem:[%s10369_s26 + $0x858] sm:$0xff] %v1725_v11 }
  0x9c   : > { %1728 = vst [vmem:[%s10369_s26 + $0x860] sm:$0xff] %v1727_v12  ;;  %1730 = vst [vmem:[%s10369_s26 + $0x868] sm:$0xff] %v1729_v13  ;;  %v1731_v14 = vld [vmem:[%s10364_s25 + $0x10e0] sm:$0xff]  ;;  %v1733_v15 = vld [vmem:[%s10364_s25 + $0x10f0] sm:$0xff] }
  0x9d   : > { %v1735_v16 = vld [vmem:[%s10364_s25 + $0x1100] sm:$0xff]  ;;  %1732 = vst [vmem:[%s10369_s26 + $0x870] sm:$0xff] %v1731_v14  ;;  %1734 = vst [vmem:[%s10369_s26 + $0x878] sm:$0xff] %v1733_v15  ;;  %v1737_v17 = vld [vmem:[%s10364_s25 + $0x1110] sm:$0xff] }
  0x9e   : > { %1736 = vst [vmem:[%s10369_s26 + $0x880] sm:$0xff] %v1735_v16  ;;  %v1739_v18 = vld [vmem:[%s10364_s25 + $0x1120] sm:$0xff]  ;;  %v1741_v19 = vld [vmem:[%s10364_s25 + $0x1130] sm:$0xff]  ;;  %1738 = vst [vmem:[%s10369_s26 + $0x888] sm:$0xff] %v1737_v17 }
  0x9f   : > { %1740 = vst [vmem:[%s10369_s26 + $0x890] sm:$0xff] %v1739_v18  ;;  %1742 = vst [vmem:[%s10369_s26 + $0x898] sm:$0xff] %v1741_v19  ;;  %v1743_v20 = vld [vmem:[%s10364_s25 + $0x1140] sm:$0xff]  ;;  %v1745_v21 = vld [vmem:[%s10364_s25 + $0x1150] sm:$0xff] }
  0xa0   : > { %v1747_v22 = vld [vmem:[%s10364_s25 + $0x1160] sm:$0xff]  ;;  %1744 = vst [vmem:[%s10369_s26 + $0x8a0] sm:$0xff] %v1743_v20  ;;  %1746 = vst [vmem:[%s10369_s26 + $0x8a8] sm:$0xff] %v1745_v21  ;;  %v1749_v23 = vld [vmem:[%s10364_s25 + $0x1170] sm:$0xff] }
  0xa1   : > { %1748 = vst [vmem:[%s10369_s26 + $0x8b0] sm:$0xff] %v1747_v22  ;;  %v1751_v24 = vld [vmem:[%s10364_s25 + $0x1180] sm:$0xff]  ;;  %v1753_v25 = vld [vmem:[%s10364_s25 + $0x1190] sm:$0xff]  ;;  %1750 = vst [vmem:[%s10369_s26 + $0x8b8] sm:$0xff] %v1749_v23 }
  0xa2   : > { %1752 = vst [vmem:[%s10369_s26 + $0x8c0] sm:$0xff] %v1751_v24  ;;  %1754 = vst [vmem:[%s10369_s26 + $0x8c8] sm:$0xff] %v1753_v25  ;;  %v1755_v26 = vld [vmem:[%s10364_s25 + $0x11a0] sm:$0xff]  ;;  %v1757_v27 = vld [vmem:[%s10364_s25 + $0x11b0] sm:$0xff] }
  0xa3   : > { %v1759_v28 = vld [vmem:[%s10364_s25 + $0x11c0] sm:$0xff]  ;;  %1756 = vst [vmem:[%s10369_s26 + $0x8d0] sm:$0xff] %v1755_v26  ;;  %1758 = vst [vmem:[%s10369_s26 + $0x8d8] sm:$0xff] %v1757_v27  ;;  %v1761_v29 = vld [vmem:[%s10364_s25 + $0x11d0] sm:$0xff] }
  0xa4   : > { %1760 = vst [vmem:[%s10369_s26 + $0x8e0] sm:$0xff] %v1759_v28  ;;  %v1763_v30 = vld [vmem:[%s10364_s25 + $0x11e0] sm:$0xff]  ;;  %v1765_v31 = vld [vmem:[%s10364_s25 + $0x11f0] sm:$0xff]  ;;  %1762 = vst [vmem:[%s10369_s26 + $0x8e8] sm:$0xff] %v1761_v29 }
  0xa5   : > { %1764 = vst [vmem:[%s10369_s26 + $0x8f0] sm:$0xff] %v1763_v30  ;;  %1766 = vst [vmem:[%s10369_s26 + $0x8f8] sm:$0xff] %v1765_v31  ;;  %v1767_v32 = vld [vmem:[%s10364_s25 + $0x1200] sm:$0xff]  ;;  %v1769_v33 = vld [vmem:[%s10364_s25 + $0x1210] sm:$0xff] }
  0xa6   : > { %v1771_v34 = vld [vmem:[%s10364_s25 + $0x1220] sm:$0xff]  ;;  %1768 = vst [vmem:[%s10369_s26 + $0x900] sm:$0xff] %v1767_v32  ;;  %1770 = vst [vmem:[%s10369_s26 + $0x908] sm:$0xff] %v1769_v33  ;;  %v1773_v35 = vld [vmem:[%s10364_s25 + $0x1230] sm:$0xff] }
  0xa7   : > { %1772 = vst [vmem:[%s10369_s26 + $0x910] sm:$0xff] %v1771_v34  ;;  %v1775_v36 = vld [vmem:[%s10364_s25 + $0x1240] sm:$0xff]  ;;  %v1777_v37 = vld [vmem:[%s10364_s25 + $0x1250] sm:$0xff]  ;;  %1774 = vst [vmem:[%s10369_s26 + $0x918] sm:$0xff] %v1773_v35 }
  0xa8   : > { %1776 = vst [vmem:[%s10369_s26 + $0x920] sm:$0xff] %v1775_v36  ;;  %1778 = vst [vmem:[%s10369_s26 + $0x928] sm:$0xff] %v1777_v37  ;;  %v1779_v38 = vld [vmem:[%s10364_s25 + $0x1260] sm:$0xff]  ;;  %v1781_v39 = vld [vmem:[%s10364_s25 + $0x1270] sm:$0xff] }
  0xa9   : > { %v1783_v40 = vld [vmem:[%s10364_s25 + $0x1280] sm:$0xff]  ;;  %1780 = vst [vmem:[%s10369_s26 + $0x930] sm:$0xff] %v1779_v38  ;;  %1782 = vst [vmem:[%s10369_s26 + $0x938] sm:$0xff] %v1781_v39  ;;  %v1785_v41 = vld [vmem:[%s10364_s25 + $0x1290] sm:$0xff] }
  0xaa   : > { %1784 = vst [vmem:[%s10369_s26 + $0x940] sm:$0xff] %v1783_v40  ;;  %v1787_v42 = vld [vmem:[%s10364_s25 + $0x12a0] sm:$0xff]  ;;  %v1789_v43 = vld [vmem:[%s10364_s25 + $0x12b0] sm:$0xff]  ;;  %1786 = vst [vmem:[%s10369_s26 + $0x948] sm:$0xff] %v1785_v41 }
  0xab   : > { %1788 = vst [vmem:[%s10369_s26 + $0x950] sm:$0xff] %v1787_v42  ;;  %1790 = vst [vmem:[%s10369_s26 + $0x958] sm:$0xff] %v1789_v43  ;;  %v1791_v44 = vld [vmem:[%s10364_s25 + $0x12c0] sm:$0xff]  ;;  %v1793_v45 = vld [vmem:[%s10364_s25 + $0x12d0] sm:$0xff] }
  0xac   : > { %v1795_v46 = vld [vmem:[%s10364_s25 + $0x12e0] sm:$0xff]  ;;  %1792 = vst [vmem:[%s10369_s26 + $0x960] sm:$0xff] %v1791_v44  ;;  %1794 = vst [vmem:[%s10369_s26 + $0x968] sm:$0xff] %v1793_v45  ;;  %v1797_v47 = vld [vmem:[%s10364_s25 + $0x12f0] sm:$0xff] }
  0xad   : > { %1796 = vst [vmem:[%s10369_s26 + $0x970] sm:$0xff] %v1795_v46  ;;  %v1799_v48 = vld [vmem:[%s10364_s25 + $0x1300] sm:$0xff]  ;;  %v1801_v49 = vld [vmem:[%s10364_s25 + $0x1310] sm:$0xff]  ;;  %1798 = vst [vmem:[%s10369_s26 + $0x978] sm:$0xff] %v1797_v47 }
  0xae   : > { %1800 = vst [vmem:[%s10369_s26 + $0x980] sm:$0xff] %v1799_v48  ;;  %1802 = vst [vmem:[%s10369_s26 + $0x988] sm:$0xff] %v1801_v49  ;;  %v1803_v50 = vld [vmem:[%s10364_s25 + $0x1320] sm:$0xff]  ;;  %v1805_v51 = vld [vmem:[%s10364_s25 + $0x1330] sm:$0xff] }
  0xaf   : > { %v1807_v52 = vld [vmem:[%s10364_s25 + $0x1340] sm:$0xff]  ;;  %1804 = vst [vmem:[%s10369_s26 + $0x990] sm:$0xff] %v1803_v50  ;;  %1806 = vst [vmem:[%s10369_s26 + $0x998] sm:$0xff] %v1805_v51  ;;  %v1809_v53 = vld [vmem:[%s10364_s25 + $0x1350] sm:$0xff] }
  0xb0   : > { %1808 = vst [vmem:[%s10369_s26 + $0x9a0] sm:$0xff] %v1807_v52  ;;  %v1811_v54 = vld [vmem:[%s10364_s25 + $0x1360] sm:$0xff]  ;;  %v1813_v55 = vld [vmem:[%s10364_s25 + $0x1370] sm:$0xff]  ;;  %1810 = vst [vmem:[%s10369_s26 + $0x9a8] sm:$0xff] %v1809_v53 }
  0xb1   : > { %1812 = vst [vmem:[%s10369_s26 + $0x9b0] sm:$0xff] %v1811_v54  ;;  %1814 = vst [vmem:[%s10369_s26 + $0x9b8] sm:$0xff] %v1813_v55  ;;  %v1815_v56 = vld [vmem:[%s10364_s25 + $0x1380] sm:$0xff]  ;;  %v1817_v57 = vld [vmem:[%s10364_s25 + $0x1390] sm:$0xff] }
  0xb2   : > { %v1819_v58 = vld [vmem:[%s10364_s25 + $0x13a0] sm:$0xff]  ;;  %1816 = vst [vmem:[%s10369_s26 + $0x9c0] sm:$0xff] %v1815_v56  ;;  %1818 = vst [vmem:[%s10369_s26 + $0x9c8] sm:$0xff] %v1817_v57  ;;  %v1821_v59 = vld [vmem:[%s10364_s25 + $0x13b0] sm:$0xff] }
  0xb3   : > { %1820 = vst [vmem:[%s10369_s26 + $0x9d0] sm:$0xff] %v1819_v58  ;;  %v1823_v60 = vld [vmem:[%s10364_s25 + $0x13c0] sm:$0xff]  ;;  %v1825_v61 = vld [vmem:[%s10364_s25 + $0x13d0] sm:$0xff]  ;;  %1822 = vst [vmem:[%s10369_s26 + $0x9d8] sm:$0xff] %v1821_v59 }
  0xb4   : > { %1824 = vst [vmem:[%s10369_s26 + $0x9e0] sm:$0xff] %v1823_v60  ;;  %1826 = vst [vmem:[%s10369_s26 + $0x9e8] sm:$0xff] %v1825_v61  ;;  %v1827_v62 = vld [vmem:[%s10364_s25 + $0x13e0] sm:$0xff]  ;;  %v1829_v63 = vld [vmem:[%s10364_s25 + $0x13f0] sm:$0xff] }
  0xb5   : > { %v1831_v0 = vld [vmem:[%s10364_s25 + $0x1400] sm:$0xff]  ;;  %1828 = vst [vmem:[%s10369_s26 + $0x9f0] sm:$0xff] %v1827_v62  ;;  %1830 = vst [vmem:[%s10369_s26 + $0x9f8] sm:$0xff] %v1829_v63  ;;  %v1833_v1 = vld [vmem:[%s10364_s25 + $0x1410] sm:$0xff] }
  0xb6   : > { %1832 = vst [vmem:[%s10369_s26 + $0xa00] sm:$0xff] %v1831_v0  ;;  %v1835_v2 = vld [vmem:[%s10364_s25 + $0x1420] sm:$0xff]  ;;  %v1837_v3 = vld [vmem:[%s10364_s25 + $0x1430] sm:$0xff]  ;;  %1834 = vst [vmem:[%s10369_s26 + $0xa08] sm:$0xff] %v1833_v1 }
  0xb7   : > { %1836 = vst [vmem:[%s10369_s26 + $0xa10] sm:$0xff] %v1835_v2  ;;  %1838 = vst [vmem:[%s10369_s26 + $0xa18] sm:$0xff] %v1837_v3  ;;  %v1839_v4 = vld [vmem:[%s10364_s25 + $0x1440] sm:$0xff]  ;;  %v1841_v5 = vld [vmem:[%s10364_s25 + $0x1450] sm:$0xff] }
  0xb8   : > { %v1843_v6 = vld [vmem:[%s10364_s25 + $0x1460] sm:$0xff]  ;;  %1840 = vst [vmem:[%s10369_s26 + $0xa20] sm:$0xff] %v1839_v4  ;;  %1842 = vst [vmem:[%s10369_s26 + $0xa28] sm:$0xff] %v1841_v5  ;;  %v1845_v7 = vld [vmem:[%s10364_s25 + $0x1470] sm:$0xff] }
  0xb9   : > { %1844 = vst [vmem:[%s10369_s26 + $0xa30] sm:$0xff] %v1843_v6  ;;  %v1847_v8 = vld [vmem:[%s10364_s25 + $0x1480] sm:$0xff]  ;;  %v1849_v9 = vld [vmem:[%s10364_s25 + $0x1490] sm:$0xff]  ;;  %1846 = vst [vmem:[%s10369_s26 + $0xa38] sm:$0xff] %v1845_v7 }
  0xba   : > { %1848 = vst [vmem:[%s10369_s26 + $0xa40] sm:$0xff] %v1847_v8  ;;  %1850 = vst [vmem:[%s10369_s26 + $0xa48] sm:$0xff] %v1849_v9  ;;  %v1851_v10 = vld [vmem:[%s10364_s25 + $0x14a0] sm:$0xff]  ;;  %v1853_v11 = vld [vmem:[%s10364_s25 + $0x14b0] sm:$0xff] }
  0xbb   : > { %v1855_v12 = vld [vmem:[%s10364_s25 + $0x14c0] sm:$0xff]  ;;  %1852 = vst [vmem:[%s10369_s26 + $0xa50] sm:$0xff] %v1851_v10  ;;  %1854 = vst [vmem:[%s10369_s26 + $0xa58] sm:$0xff] %v1853_v11  ;;  %v1857_v13 = vld [vmem:[%s10364_s25 + $0x14d0] sm:$0xff] }
  0xbc   : > { %1856 = vst [vmem:[%s10369_s26 + $0xa60] sm:$0xff] %v1855_v12  ;;  %v1859_v14 = vld [vmem:[%s10364_s25 + $0x14e0] sm:$0xff]  ;;  %v1861_v15 = vld [vmem:[%s10364_s25 + $0x14f0] sm:$0xff]  ;;  %1858 = vst [vmem:[%s10369_s26 + $0xa68] sm:$0xff] %v1857_v13 }
  0xbd   : > { %1860 = vst [vmem:[%s10369_s26 + $0xa70] sm:$0xff] %v1859_v14  ;;  %1862 = vst [vmem:[%s10369_s26 + $0xa78] sm:$0xff] %v1861_v15  ;;  %v1863_v16 = vld [vmem:[%s10364_s25 + $0x1500] sm:$0xff]  ;;  %v1865_v17 = vld [vmem:[%s10364_s25 + $0x1510] sm:$0xff] }
  0xbe   : > { %v1867_v18 = vld [vmem:[%s10364_s25 + $0x1520] sm:$0xff]  ;;  %1864 = vst [vmem:[%s10369_s26 + $0xa80] sm:$0xff] %v1863_v16  ;;  %1866 = vst [vmem:[%s10369_s26 + $0xa88] sm:$0xff] %v1865_v17  ;;  %v1869_v19 = vld [vmem:[%s10364_s25 + $0x1530] sm:$0xff] }
  0xbf   : > { %1868 = vst [vmem:[%s10369_s26 + $0xa90] sm:$0xff] %v1867_v18  ;;  %v1871_v20 = vld [vmem:[%s10364_s25 + $0x1540] sm:$0xff]  ;;  %v1873_v21 = vld [vmem:[%s10364_s25 + $0x1550] sm:$0xff]  ;;  %1870 = vst [vmem:[%s10369_s26 + $0xa98] sm:$0xff] %v1869_v19 }
  0xc0   : > { %1872 = vst [vmem:[%s10369_s26 + $0xaa0] sm:$0xff] %v1871_v20  ;;  %1874 = vst [vmem:[%s10369_s26 + $0xaa8] sm:$0xff] %v1873_v21  ;;  %v1875_v22 = vld [vmem:[%s10364_s25 + $0x1560] sm:$0xff]  ;;  %v1877_v23 = vld [vmem:[%s10364_s25 + $0x1570] sm:$0xff] }
  0xc1   : > { %v1879_v24 = vld [vmem:[%s10364_s25 + $0x1580] sm:$0xff]  ;;  %1876 = vst [vmem:[%s10369_s26 + $0xab0] sm:$0xff] %v1875_v22  ;;  %1878 = vst [vmem:[%s10369_s26 + $0xab8] sm:$0xff] %v1877_v23  ;;  %v1881_v25 = vld [vmem:[%s10364_s25 + $0x1590] sm:$0xff] }
  0xc2   : > { %1880 = vst [vmem:[%s10369_s26 + $0xac0] sm:$0xff] %v1879_v24  ;;  %v1883_v26 = vld [vmem:[%s10364_s25 + $0x15a0] sm:$0xff]  ;;  %v1885_v27 = vld [vmem:[%s10364_s25 + $0x15b0] sm:$0xff]  ;;  %1882 = vst [vmem:[%s10369_s26 + $0xac8] sm:$0xff] %v1881_v25 }
  0xc3   : > { %1884 = vst [vmem:[%s10369_s26 + $0xad0] sm:$0xff] %v1883_v26  ;;  %1886 = vst [vmem:[%s10369_s26 + $0xad8] sm:$0xff] %v1885_v27  ;;  %v1887_v28 = vld [vmem:[%s10364_s25 + $0x15c0] sm:$0xff]  ;;  %v1889_v29 = vld [vmem:[%s10364_s25 + $0x15d0] sm:$0xff] }
  0xc4   : > { %v1891_v30 = vld [vmem:[%s10364_s25 + $0x15e0] sm:$0xff]  ;;  %1888 = vst [vmem:[%s10369_s26 + $0xae0] sm:$0xff] %v1887_v28  ;;  %1890 = vst [vmem:[%s10369_s26 + $0xae8] sm:$0xff] %v1889_v29  ;;  %v1893_v31 = vld [vmem:[%s10364_s25 + $0x15f0] sm:$0xff] }
  0xc5   : > { %1892 = vst [vmem:[%s10369_s26 + $0xaf0] sm:$0xff] %v1891_v30  ;;  %v1895_v32 = vld [vmem:[%s10364_s25 + $0x1600] sm:$0xff]  ;;  %v1897_v33 = vld [vmem:[%s10364_s25 + $0x1610] sm:$0xff]  ;;  %1894 = vst [vmem:[%s10369_s26 + $0xaf8] sm:$0xff] %v1893_v31 }
  0xc6   : > { %1896 = vst [vmem:[%s10369_s26 + $0xb00] sm:$0xff] %v1895_v32  ;;  %1898 = vst [vmem:[%s10369_s26 + $0xb08] sm:$0xff] %v1897_v33  ;;  %v1899_v34 = vld [vmem:[%s10364_s25 + $0x1620] sm:$0xff]  ;;  %v1901_v35 = vld [vmem:[%s10364_s25 + $0x1630] sm:$0xff] }
  0xc7   : > { %v1903_v36 = vld [vmem:[%s10364_s25 + $0x1640] sm:$0xff]  ;;  %1900 = vst [vmem:[%s10369_s26 + $0xb10] sm:$0xff] %v1899_v34  ;;  %1902 = vst [vmem:[%s10369_s26 + $0xb18] sm:$0xff] %v1901_v35  ;;  %v1905_v37 = vld [vmem:[%s10364_s25 + $0x1650] sm:$0xff] }
  0xc8   : > { %1904 = vst [vmem:[%s10369_s26 + $0xb20] sm:$0xff] %v1903_v36  ;;  %v1907_v38 = vld [vmem:[%s10364_s25 + $0x1660] sm:$0xff]  ;;  %v1909_v39 = vld [vmem:[%s10364_s25 + $0x1670] sm:$0xff]  ;;  %1906 = vst [vmem:[%s10369_s26 + $0xb28] sm:$0xff] %v1905_v37 }
  0xc9   : > { %1908 = vst [vmem:[%s10369_s26 + $0xb30] sm:$0xff] %v1907_v38  ;;  %1910 = vst [vmem:[%s10369_s26 + $0xb38] sm:$0xff] %v1909_v39  ;;  %v1911_v40 = vld [vmem:[%s10364_s25 + $0x1680] sm:$0xff]  ;;  %v1913_v41 = vld [vmem:[%s10364_s25 + $0x1690] sm:$0xff] }
  0xca   : > { %v1915_v42 = vld [vmem:[%s10364_s25 + $0x16a0] sm:$0xff]  ;;  %1912 = vst [vmem:[%s10369_s26 + $0xb40] sm:$0xff] %v1911_v40  ;;  %1914 = vst [vmem:[%s10369_s26 + $0xb48] sm:$0xff] %v1913_v41  ;;  %v1917_v43 = vld [vmem:[%s10364_s25 + $0x16b0] sm:$0xff] }
  0xcb   : > { %1916 = vst [vmem:[%s10369_s26 + $0xb50] sm:$0xff] %v1915_v42  ;;  %v1919_v44 = vld [vmem:[%s10364_s25 + $0x16c0] sm:$0xff]  ;;  %v1921_v45 = vld [vmem:[%s10364_s25 + $0x16d0] sm:$0xff]  ;;  %1918 = vst [vmem:[%s10369_s26 + $0xb58] sm:$0xff] %v1917_v43 }
  0xcc   : > { %1920 = vst [vmem:[%s10369_s26 + $0xb60] sm:$0xff] %v1919_v44  ;;  %1922 = vst [vmem:[%s10369_s26 + $0xb68] sm:$0xff] %v1921_v45  ;;  %v1923_v46 = vld [vmem:[%s10364_s25 + $0x16e0] sm:$0xff]  ;;  %v1925_v47 = vld [vmem:[%s10364_s25 + $0x16f0] sm:$0xff] }
  0xcd   : > { %v1927_v48 = vld [vmem:[%s10364_s25 + $0x1700] sm:$0xff]  ;;  %1924 = vst [vmem:[%s10369_s26 + $0xb70] sm:$0xff] %v1923_v46  ;;  %1926 = vst [vmem:[%s10369_s26 + $0xb78] sm:$0xff] %v1925_v47  ;;  %v1929_v49 = vld [vmem:[%s10364_s25 + $0x1710] sm:$0xff] }
  0xce   : > { %1928 = vst [vmem:[%s10369_s26 + $0xb80] sm:$0xff] %v1927_v48  ;;  %v1931_v50 = vld [vmem:[%s10364_s25 + $0x1720] sm:$0xff]  ;;  %v1933_v51 = vld [vmem:[%s10364_s25 + $0x1730] sm:$0xff]  ;;  %1930 = vst [vmem:[%s10369_s26 + $0xb88] sm:$0xff] %v1929_v49 }
  0xcf   : > { %1932 = vst [vmem:[%s10369_s26 + $0xb90] sm:$0xff] %v1931_v50  ;;  %1934 = vst [vmem:[%s10369_s26 + $0xb98] sm:$0xff] %v1933_v51  ;;  %v1935_v52 = vld [vmem:[%s10364_s25 + $0x1740] sm:$0xff]  ;;  %v1937_v53 = vld [vmem:[%s10364_s25 + $0x1750] sm:$0xff] }
  0xd0   : > { %v1939_v54 = vld [vmem:[%s10364_s25 + $0x1760] sm:$0xff]  ;;  %1936 = vst [vmem:[%s10369_s26 + $0xba0] sm:$0xff] %v1935_v52  ;;  %1938 = vst [vmem:[%s10369_s26 + $0xba8] sm:$0xff] %v1937_v53  ;;  %v1941_v55 = vld [vmem:[%s10364_s25 + $0x1770] sm:$0xff] }
  0xd1   : > { %1940 = vst [vmem:[%s10369_s26 + $0xbb0] sm:$0xff] %v1939_v54  ;;  %v1943_v56 = vld [vmem:[%s10364_s25 + $0x1780] sm:$0xff]  ;;  %v1945_v57 = vld [vmem:[%s10364_s25 + $0x1790] sm:$0xff]  ;;  %1942 = vst [vmem:[%s10369_s26 + $0xbb8] sm:$0xff] %v1941_v55 }
  0xd2   : > { %1944 = vst [vmem:[%s10369_s26 + $0xbc0] sm:$0xff] %v1943_v56  ;;  %1946 = vst [vmem:[%s10369_s26 + $0xbc8] sm:$0xff] %v1945_v57  ;;  %v1947_v58 = vld [vmem:[%s10364_s25 + $0x17a0] sm:$0xff]  ;;  %v1949_v59 = vld [vmem:[%s10364_s25 + $0x17b0] sm:$0xff] }
  0xd3   : > { %v1951_v60 = vld [vmem:[%s10364_s25 + $0x17c0] sm:$0xff]  ;;  %1948 = vst [vmem:[%s10369_s26 + $0xbd0] sm:$0xff] %v1947_v58  ;;  %1950 = vst [vmem:[%s10369_s26 + $0xbd8] sm:$0xff] %v1949_v59  ;;  %v1953_v61 = vld [vmem:[%s10364_s25 + $0x17d0] sm:$0xff] }
  0xd4   : > { %1952 = vst [vmem:[%s10369_s26 + $0xbe0] sm:$0xff] %v1951_v60  ;;  %v1955_v62 = vld [vmem:[%s10364_s25 + $0x17e0] sm:$0xff]  ;;  %v1957_v63 = vld [vmem:[%s10364_s25 + $0x17f0] sm:$0xff]  ;;  %1954 = vst [vmem:[%s10369_s26 + $0xbe8] sm:$0xff] %v1953_v61 }
  0xd5   : > { %1956 = vst [vmem:[%s10369_s26 + $0xbf0] sm:$0xff] %v1955_v62  ;;  %1958 = vst [vmem:[%s10369_s26 + $0xbf8] sm:$0xff] %v1957_v63  ;;  %v1959_v0 = vld [vmem:[%s10364_s25 + $0x1800] sm:$0xff]  ;;  %v1961_v1 = vld [vmem:[%s10364_s25 + $0x1810] sm:$0xff] }
  0xd6   : > { %v1963_v2 = vld [vmem:[%s10364_s25 + $0x1820] sm:$0xff]  ;;  %1960 = vst [vmem:[%s10369_s26 + $0xc00] sm:$0xff] %v1959_v0  ;;  %1962 = vst [vmem:[%s10369_s26 + $0xc08] sm:$0xff] %v1961_v1  ;;  %v1965_v3 = vld [vmem:[%s10364_s25 + $0x1830] sm:$0xff] }
  0xd7   : > { %1964 = vst [vmem:[%s10369_s26 + $0xc10] sm:$0xff] %v1963_v2  ;;  %v1967_v4 = vld [vmem:[%s10364_s25 + $0x1840] sm:$0xff]  ;;  %v1969_v5 = vld [vmem:[%s10364_s25 + $0x1850] sm:$0xff]  ;;  %1966 = vst [vmem:[%s10369_s26 + $0xc18] sm:$0xff] %v1965_v3 }
  0xd8   : > { %1968 = vst [vmem:[%s10369_s26 + $0xc20] sm:$0xff] %v1967_v4  ;;  %1970 = vst [vmem:[%s10369_s26 + $0xc28] sm:$0xff] %v1969_v5  ;;  %v1971_v6 = vld [vmem:[%s10364_s25 + $0x1860] sm:$0xff]  ;;  %v1973_v7 = vld [vmem:[%s10364_s25 + $0x1870] sm:$0xff] }
  0xd9   : > { %v1975_v8 = vld [vmem:[%s10364_s25 + $0x1880] sm:$0xff]  ;;  %1972 = vst [vmem:[%s10369_s26 + $0xc30] sm:$0xff] %v1971_v6  ;;  %1974 = vst [vmem:[%s10369_s26 + $0xc38] sm:$0xff] %v1973_v7  ;;  %v1977_v9 = vld [vmem:[%s10364_s25 + $0x1890] sm:$0xff] }
  0xda   : > { %1976 = vst [vmem:[%s10369_s26 + $0xc40] sm:$0xff] %v1975_v8  ;;  %v1979_v10 = vld [vmem:[%s10364_s25 + $0x18a0] sm:$0xff]  ;;  %v1981_v11 = vld [vmem:[%s10364_s25 + $0x18b0] sm:$0xff]  ;;  %1978 = vst [vmem:[%s10369_s26 + $0xc48] sm:$0xff] %v1977_v9 }
  0xdb   : > { %1980 = vst [vmem:[%s10369_s26 + $0xc50] sm:$0xff] %v1979_v10  ;;  %1982 = vst [vmem:[%s10369_s26 + $0xc58] sm:$0xff] %v1981_v11  ;;  %v1983_v12 = vld [vmem:[%s10364_s25 + $0x18c0] sm:$0xff]  ;;  %v1985_v13 = vld [vmem:[%s10364_s25 + $0x18d0] sm:$0xff] }
  0xdc   : > { %v1987_v14 = vld [vmem:[%s10364_s25 + $0x18e0] sm:$0xff]  ;;  %1984 = vst [vmem:[%s10369_s26 + $0xc60] sm:$0xff] %v1983_v12  ;;  %1986 = vst [vmem:[%s10369_s26 + $0xc68] sm:$0xff] %v1985_v13  ;;  %v1989_v15 = vld [vmem:[%s10364_s25 + $0x18f0] sm:$0xff] }
  0xdd   : > { %1988 = vst [vmem:[%s10369_s26 + $0xc70] sm:$0xff] %v1987_v14  ;;  %v1991_v16 = vld [vmem:[%s10364_s25 + $0x1900] sm:$0xff]  ;;  %v1993_v17 = vld [vmem:[%s10364_s25 + $0x1910] sm:$0xff]  ;;  %1990 = vst [vmem:[%s10369_s26 + $0xc78] sm:$0xff] %v1989_v15 }
  0xde   : > { %1992 = vst [vmem:[%s10369_s26 + $0xc80] sm:$0xff] %v1991_v16  ;;  %1994 = vst [vmem:[%s10369_s26 + $0xc88] sm:$0xff] %v1993_v17  ;;  %v1995_v18 = vld [vmem:[%s10364_s25 + $0x1920] sm:$0xff]  ;;  %v1997_v19 = vld [vmem:[%s10364_s25 + $0x1930] sm:$0xff] }
  0xdf   : > { %v1999_v20 = vld [vmem:[%s10364_s25 + $0x1940] sm:$0xff]  ;;  %1996 = vst [vmem:[%s10369_s26 + $0xc90] sm:$0xff] %v1995_v18  ;;  %1998 = vst [vmem:[%s10369_s26 + $0xc98] sm:$0xff] %v1997_v19  ;;  %v2001_v21 = vld [vmem:[%s10364_s25 + $0x1950] sm:$0xff] }
  0xe0   : > { %2000 = vst [vmem:[%s10369_s26 + $0xca0] sm:$0xff] %v1999_v20  ;;  %v2003_v22 = vld [vmem:[%s10364_s25 + $0x1960] sm:$0xff]  ;;  %v2005_v23 = vld [vmem:[%s10364_s25 + $0x1970] sm:$0xff]  ;;  %2002 = vst [vmem:[%s10369_s26 + $0xca8] sm:$0xff] %v2001_v21 }
  0xe1   : > { %2004 = vst [vmem:[%s10369_s26 + $0xcb0] sm:$0xff] %v2003_v22  ;;  %2006 = vst [vmem:[%s10369_s26 + $0xcb8] sm:$0xff] %v2005_v23  ;;  %v2007_v24 = vld [vmem:[%s10364_s25 + $0x1980] sm:$0xff]  ;;  %v2009_v25 = vld [vmem:[%s10364_s25 + $0x1990] sm:$0xff] }
  0xe2   : > { %v2011_v26 = vld [vmem:[%s10364_s25 + $0x19a0] sm:$0xff]  ;;  %2008 = vst [vmem:[%s10369_s26 + $0xcc0] sm:$0xff] %v2007_v24  ;;  %2010 = vst [vmem:[%s10369_s26 + $0xcc8] sm:$0xff] %v2009_v25  ;;  %v2013_v27 = vld [vmem:[%s10364_s25 + $0x19b0] sm:$0xff] }
  0xe3   : > { %2012 = vst [vmem:[%s10369_s26 + $0xcd0] sm:$0xff] %v2011_v26  ;;  %v2015_v28 = vld [vmem:[%s10364_s25 + $0x19c0] sm:$0xff]  ;;  %v2017_v29 = vld [vmem:[%s10364_s25 + $0x19d0] sm:$0xff]  ;;  %2014 = vst [vmem:[%s10369_s26 + $0xcd8] sm:$0xff] %v2013_v27 }
  0xe4   : > { %2016 = vst [vmem:[%s10369_s26 + $0xce0] sm:$0xff] %v2015_v28  ;;  %2018 = vst [vmem:[%s10369_s26 + $0xce8] sm:$0xff] %v2017_v29  ;;  %v2019_v30 = vld [vmem:[%s10364_s25 + $0x19e0] sm:$0xff]  ;;  %v2021_v31 = vld [vmem:[%s10364_s25 + $0x19f0] sm:$0xff] }
  0xe5   : > { %v2023_v32 = vld [vmem:[%s10364_s25 + $0x1a00] sm:$0xff]  ;;  %2020 = vst [vmem:[%s10369_s26 + $0xcf0] sm:$0xff] %v2019_v30  ;;  %2022 = vst [vmem:[%s10369_s26 + $0xcf8] sm:$0xff] %v2021_v31  ;;  %v2025_v33 = vld [vmem:[%s10364_s25 + $0x1a10] sm:$0xff] }
  0xe6   : > { %2024 = vst [vmem:[%s10369_s26 + $0xd00] sm:$0xff] %v2023_v32  ;;  %v2027_v34 = vld [vmem:[%s10364_s25 + $0x1a20] sm:$0xff]  ;;  %v2029_v35 = vld [vmem:[%s10364_s25 + $0x1a30] sm:$0xff]  ;;  %2026 = vst [vmem:[%s10369_s26 + $0xd08] sm:$0xff] %v2025_v33 }
  0xe7   : > { %2028 = vst [vmem:[%s10369_s26 + $0xd10] sm:$0xff] %v2027_v34  ;;  %2030 = vst [vmem:[%s10369_s26 + $0xd18] sm:$0xff] %v2029_v35  ;;  %v2031_v36 = vld [vmem:[%s10364_s25 + $0x1a40] sm:$0xff]  ;;  %v2033_v37 = vld [vmem:[%s10364_s25 + $0x1a50] sm:$0xff] }
  0xe8   : > { %v2035_v38 = vld [vmem:[%s10364_s25 + $0x1a60] sm:$0xff]  ;;  %2032 = vst [vmem:[%s10369_s26 + $0xd20] sm:$0xff] %v2031_v36  ;;  %2034 = vst [vmem:[%s10369_s26 + $0xd28] sm:$0xff] %v2033_v37  ;;  %v2037_v39 = vld [vmem:[%s10364_s25 + $0x1a70] sm:$0xff] }
  0xe9   : > { %2036 = vst [vmem:[%s10369_s26 + $0xd30] sm:$0xff] %v2035_v38  ;;  %v2039_v40 = vld [vmem:[%s10364_s25 + $0x1a80] sm:$0xff]  ;;  %v2041_v41 = vld [vmem:[%s10364_s25 + $0x1a90] sm:$0xff]  ;;  %2038 = vst [vmem:[%s10369_s26 + $0xd38] sm:$0xff] %v2037_v39 }
  0xea   : > { %2040 = vst [vmem:[%s10369_s26 + $0xd40] sm:$0xff] %v2039_v40  ;;  %2042 = vst [vmem:[%s10369_s26 + $0xd48] sm:$0xff] %v2041_v41  ;;  %v2043_v42 = vld [vmem:[%s10364_s25 + $0x1aa0] sm:$0xff]  ;;  %v2045_v43 = vld [vmem:[%s10364_s25 + $0x1ab0] sm:$0xff] }
  0xeb   : > { %v2047_v44 = vld [vmem:[%s10364_s25 + $0x1ac0] sm:$0xff]  ;;  %2044 = vst [vmem:[%s10369_s26 + $0xd50] sm:$0xff] %v2043_v42  ;;  %2046 = vst [vmem:[%s10369_s26 + $0xd58] sm:$0xff] %v2045_v43  ;;  %v2049_v45 = vld [vmem:[%s10364_s25 + $0x1ad0] sm:$0xff] }
  0xec   : > { %2048 = vst [vmem:[%s10369_s26 + $0xd60] sm:$0xff] %v2047_v44  ;;  %v2051_v46 = vld [vmem:[%s10364_s25 + $0x1ae0] sm:$0xff]  ;;  %v2053_v47 = vld [vmem:[%s10364_s25 + $0x1af0] sm:$0xff]  ;;  %2050 = vst [vmem:[%s10369_s26 + $0xd68] sm:$0xff] %v2049_v45 }
  0xed   : > { %2052 = vst [vmem:[%s10369_s26 + $0xd70] sm:$0xff] %v2051_v46  ;;  %2054 = vst [vmem:[%s10369_s26 + $0xd78] sm:$0xff] %v2053_v47  ;;  %v2055_v48 = vld [vmem:[%s10364_s25 + $0x1b00] sm:$0xff]  ;;  %v2057_v49 = vld [vmem:[%s10364_s25 + $0x1b10] sm:$0xff] }
  0xee   : > { %v2059_v50 = vld [vmem:[%s10364_s25 + $0x1b20] sm:$0xff]  ;;  %2056 = vst [vmem:[%s10369_s26 + $0xd80] sm:$0xff] %v2055_v48  ;;  %2058 = vst [vmem:[%s10369_s26 + $0xd88] sm:$0xff] %v2057_v49  ;;  %v2061_v51 = vld [vmem:[%s10364_s25 + $0x1b30] sm:$0xff] }
  0xef   : > { %2060 = vst [vmem:[%s10369_s26 + $0xd90] sm:$0xff] %v2059_v50  ;;  %v2063_v52 = vld [vmem:[%s10364_s25 + $0x1b40] sm:$0xff]  ;;  %v2065_v53 = vld [vmem:[%s10364_s25 + $0x1b50] sm:$0xff]  ;;  %2062 = vst [vmem:[%s10369_s26 + $0xd98] sm:$0xff] %v2061_v51 }
  0xf0   : > { %2064 = vst [vmem:[%s10369_s26 + $0xda0] sm:$0xff] %v2063_v52  ;;  %2066 = vst [vmem:[%s10369_s26 + $0xda8] sm:$0xff] %v2065_v53  ;;  %v2067_v54 = vld [vmem:[%s10364_s25 + $0x1b60] sm:$0xff]  ;;  %v2069_v55 = vld [vmem:[%s10364_s25 + $0x1b70] sm:$0xff] }
  0xf1   : > { %v2071_v56 = vld [vmem:[%s10364_s25 + $0x1b80] sm:$0xff]  ;;  %2068 = vst [vmem:[%s10369_s26 + $0xdb0] sm:$0xff] %v2067_v54  ;;  %2070 = vst [vmem:[%s10369_s26 + $0xdb8] sm:$0xff] %v2069_v55  ;;  %v2073_v57 = vld [vmem:[%s10364_s25 + $0x1b90] sm:$0xff] }
  0xf2   : > { %2072 = vst [vmem:[%s10369_s26 + $0xdc0] sm:$0xff] %v2071_v56  ;;  %v2075_v58 = vld [vmem:[%s10364_s25 + $0x1ba0] sm:$0xff]  ;;  %v2077_v59 = vld [vmem:[%s10364_s25 + $0x1bb0] sm:$0xff]  ;;  %2074 = vst [vmem:[%s10369_s26 + $0xdc8] sm:$0xff] %v2073_v57 }
  0xf3   : > { %2076 = vst [vmem:[%s10369_s26 + $0xdd0] sm:$0xff] %v2075_v58  ;;  %2078 = vst [vmem:[%s10369_s26 + $0xdd8] sm:$0xff] %v2077_v59  ;;  %v2079_v60 = vld [vmem:[%s10364_s25 + $0x1bc0] sm:$0xff]  ;;  %v2081_v61 = vld [vmem:[%s10364_s25 + $0x1bd0] sm:$0xff] }
  0xf4   : > { %v2083_v62 = vld [vmem:[%s10364_s25 + $0x1be0] sm:$0xff]  ;;  %2080 = vst [vmem:[%s10369_s26 + $0xde0] sm:$0xff] %v2079_v60  ;;  %2082 = vst [vmem:[%s10369_s26 + $0xde8] sm:$0xff] %v2081_v61  ;;  %v2085_v63 = vld [vmem:[%s10364_s25 + $0x1bf0] sm:$0xff] }
  0xf5   : > { %2084 = vst [vmem:[%s10369_s26 + $0xdf0] sm:$0xff] %v2083_v62  ;;  %v2087_v0 = vld [vmem:[%s10364_s25 + $0x1c00] sm:$0xff]  ;;  %v2089_v1 = vld [vmem:[%s10364_s25 + $0x1c10] sm:$0xff]  ;;  %2086 = vst [vmem:[%s10369_s26 + $0xdf8] sm:$0xff] %v2085_v63 }
  0xf6   : > { %2088 = vst [vmem:[%s10369_s26 + $0xe00] sm:$0xff] %v2087_v0  ;;  %2090 = vst [vmem:[%s10369_s26 + $0xe08] sm:$0xff] %v2089_v1  ;;  %v2091_v2 = vld [vmem:[%s10364_s25 + $0x1c20] sm:$0xff]  ;;  %v2093_v3 = vld [vmem:[%s10364_s25 + $0x1c30] sm:$0xff] }
  0xf7   : > { %v2095_v4 = vld [vmem:[%s10364_s25 + $0x1c40] sm:$0xff]  ;;  %2092 = vst [vmem:[%s10369_s26 + $0xe10] sm:$0xff] %v2091_v2  ;;  %2094 = vst [vmem:[%s10369_s26 + $0xe18] sm:$0xff] %v2093_v3  ;;  %v2097_v5 = vld [vmem:[%s10364_s25 + $0x1c50] sm:$0xff] }
  0xf8   : > { %2096 = vst [vmem:[%s10369_s26 + $0xe20] sm:$0xff] %v2095_v4  ;;  %v2099_v6 = vld [vmem:[%s10364_s25 + $0x1c60] sm:$0xff]  ;;  %v2101_v7 = vld [vmem:[%s10364_s25 + $0x1c70] sm:$0xff]  ;;  %2098 = vst [vmem:[%s10369_s26 + $0xe28] sm:$0xff] %v2097_v5 }
  0xf9   : > { %2100 = vst [vmem:[%s10369_s26 + $0xe30] sm:$0xff] %v2099_v6  ;;  %2102 = vst [vmem:[%s10369_s26 + $0xe38] sm:$0xff] %v2101_v7  ;;  %v2103_v8 = vld [vmem:[%s10364_s25 + $0x1c80] sm:$0xff]  ;;  %v2105_v9 = vld [vmem:[%s10364_s25 + $0x1c90] sm:$0xff] }
  0xfa   : > { %v2107_v10 = vld [vmem:[%s10364_s25 + $0x1ca0] sm:$0xff]  ;;  %2104 = vst [vmem:[%s10369_s26 + $0xe40] sm:$0xff] %v2103_v8  ;;  %2106 = vst [vmem:[%s10369_s26 + $0xe48] sm:$0xff] %v2105_v9  ;;  %v2109_v11 = vld [vmem:[%s10364_s25 + $0x1cb0] sm:$0xff] }
  0xfb   : > { %2108 = vst [vmem:[%s10369_s26 + $0xe50] sm:$0xff] %v2107_v10  ;;  %v2111_v12 = vld [vmem:[%s10364_s25 + $0x1cc0] sm:$0xff]  ;;  %v2113_v13 = vld [vmem:[%s10364_s25 + $0x1cd0] sm:$0xff]  ;;  %2110 = vst [vmem:[%s10369_s26 + $0xe58] sm:$0xff] %v2109_v11 }
  0xfc   : > { %2112 = vst [vmem:[%s10369_s26 + $0xe60] sm:$0xff] %v2111_v12  ;;  %2114 = vst [vmem:[%s10369_s26 + $0xe68] sm:$0xff] %v2113_v13  ;;  %v2115_v14 = vld [vmem:[%s10364_s25 + $0x1ce0] sm:$0xff]  ;;  %v2117_v15 = vld [vmem:[%s10364_s25 + $0x1cf0] sm:$0xff] }
  0xfd   : > { %v2119_v16 = vld [vmem:[%s10364_s25 + $0x1d00] sm:$0xff]  ;;  %2116 = vst [vmem:[%s10369_s26 + $0xe70] sm:$0xff] %v2115_v14  ;;  %2118 = vst [vmem:[%s10369_s26 + $0xe78] sm:$0xff] %v2117_v15  ;;  %v2121_v17 = vld [vmem:[%s10364_s25 + $0x1d10] sm:$0xff] }
  0xfe   : > { %2120 = vst [vmem:[%s10369_s26 + $0xe80] sm:$0xff] %v2119_v16  ;;  %v2123_v18 = vld [vmem:[%s10364_s25 + $0x1d20] sm:$0xff]  ;;  %v2125_v19 = vld [vmem:[%s10364_s25 + $0x1d30] sm:$0xff]  ;;  %2122 = vst [vmem:[%s10369_s26 + $0xe88] sm:$0xff] %v2121_v17 }
  0xff   : > { %2124 = vst [vmem:[%s10369_s26 + $0xe90] sm:$0xff] %v2123_v18  ;;  %2126 = vst [vmem:[%s10369_s26 + $0xe98] sm:$0xff] %v2125_v19  ;;  %v2127_v20 = vld [vmem:[%s10364_s25 + $0x1d40] sm:$0xff]  ;;  %v2129_v21 = vld [vmem:[%s10364_s25 + $0x1d50] sm:$0xff] }
 0x100   : > { %v2131_v22 = vld [vmem:[%s10364_s25 + $0x1d60] sm:$0xff]  ;;  %2128 = vst [vmem:[%s10369_s26 + $0xea0] sm:$0xff] %v2127_v20  ;;  %2130 = vst [vmem:[%s10369_s26 + $0xea8] sm:$0xff] %v2129_v21  ;;  %v2133_v23 = vld [vmem:[%s10364_s25 + $0x1d70] sm:$0xff] }
 0x101   : > { %2132 = vst [vmem:[%s10369_s26 + $0xeb0] sm:$0xff] %v2131_v22  ;;  %v2135_v24 = vld [vmem:[%s10364_s25 + $0x1d80] sm:$0xff]  ;;  %v2137_v25 = vld [vmem:[%s10364_s25 + $0x1d90] sm:$0xff]  ;;  %2134 = vst [vmem:[%s10369_s26 + $0xeb8] sm:$0xff] %v2133_v23 }
 0x102   : > { %2136 = vst [vmem:[%s10369_s26 + $0xec0] sm:$0xff] %v2135_v24  ;;  %2138 = vst [vmem:[%s10369_s26 + $0xec8] sm:$0xff] %v2137_v25  ;;  %v2139_v26 = vld [vmem:[%s10364_s25 + $0x1da0] sm:$0xff]  ;;  %v2141_v27 = vld [vmem:[%s10364_s25 + $0x1db0] sm:$0xff] }
 0x103   : > { %v2143_v28 = vld [vmem:[%s10364_s25 + $0x1dc0] sm:$0xff]  ;;  %2140 = vst [vmem:[%s10369_s26 + $0xed0] sm:$0xff] %v2139_v26  ;;  %2142 = vst [vmem:[%s10369_s26 + $0xed8] sm:$0xff] %v2141_v27  ;;  %v2145_v29 = vld [vmem:[%s10364_s25 + $0x1dd0] sm:$0xff] }
 0x104   : > { %2144 = vst [vmem:[%s10369_s26 + $0xee0] sm:$0xff] %v2143_v28  ;;  %v2147_v30 = vld [vmem:[%s10364_s25 + $0x1de0] sm:$0xff]  ;;  %v2149_v31 = vld [vmem:[%s10364_s25 + $0x1df0] sm:$0xff]  ;;  %2146 = vst [vmem:[%s10369_s26 + $0xee8] sm:$0xff] %v2145_v29 }
 0x105   : > { %2148 = vst [vmem:[%s10369_s26 + $0xef0] sm:$0xff] %v2147_v30  ;;  %2150 = vst [vmem:[%s10369_s26 + $0xef8] sm:$0xff] %v2149_v31  ;;  %v2151_v32 = vld [vmem:[%s10364_s25 + $0x1e00] sm:$0xff]  ;;  %v2153_v33 = vld [vmem:[%s10364_s25 + $0x1e10] sm:$0xff] }
 0x106   : > { %v2155_v34 = vld [vmem:[%s10364_s25 + $0x1e20] sm:$0xff]  ;;  %2152 = vst [vmem:[%s10369_s26 + $0xf00] sm:$0xff] %v2151_v32  ;;  %2154 = vst [vmem:[%s10369_s26 + $0xf08] sm:$0xff] %v2153_v33  ;;  %v2157_v35 = vld [vmem:[%s10364_s25 + $0x1e30] sm:$0xff] }
 0x107   : > { %2156 = vst [vmem:[%s10369_s26 + $0xf10] sm:$0xff] %v2155_v34  ;;  %v2159_v36 = vld [vmem:[%s10364_s25 + $0x1e40] sm:$0xff]  ;;  %v2161_v37 = vld [vmem:[%s10364_s25 + $0x1e50] sm:$0xff]  ;;  %2158 = vst [vmem:[%s10369_s26 + $0xf18] sm:$0xff] %v2157_v35 }
 0x108   : > { %2160 = vst [vmem:[%s10369_s26 + $0xf20] sm:$0xff] %v2159_v36  ;;  %2162 = vst [vmem:[%s10369_s26 + $0xf28] sm:$0xff] %v2161_v37  ;;  %v2163_v38 = vld [vmem:[%s10364_s25 + $0x1e60] sm:$0xff]  ;;  %v2165_v39 = vld [vmem:[%s10364_s25 + $0x1e70] sm:$0xff] }
 0x109   : > { %v2167_v40 = vld [vmem:[%s10364_s25 + $0x1e80] sm:$0xff]  ;;  %2164 = vst [vmem:[%s10369_s26 + $0xf30] sm:$0xff] %v2163_v38  ;;  %2166 = vst [vmem:[%s10369_s26 + $0xf38] sm:$0xff] %v2165_v39  ;;  %v2169_v41 = vld [vmem:[%s10364_s25 + $0x1e90] sm:$0xff] }
 0x10a   : > { %2168 = vst [vmem:[%s10369_s26 + $0xf40] sm:$0xff] %v2167_v40  ;;  %v2171_v42 = vld [vmem:[%s10364_s25 + $0x1ea0] sm:$0xff]  ;;  %v2173_v43 = vld [vmem:[%s10364_s25 + $0x1eb0] sm:$0xff]  ;;  %2170 = vst [vmem:[%s10369_s26 + $0xf48] sm:$0xff] %v2169_v41 }
 0x10b   : > { %2172 = vst [vmem:[%s10369_s26 + $0xf50] sm:$0xff] %v2171_v42  ;;  %2174 = vst [vmem:[%s10369_s26 + $0xf58] sm:$0xff] %v2173_v43  ;;  %v2175_v44 = vld [vmem:[%s10364_s25 + $0x1ec0] sm:$0xff]  ;;  %v2177_v45 = vld [vmem:[%s10364_s25 + $0x1ed0] sm:$0xff] }
 0x10c   : > { %v2179_v46 = vld [vmem:[%s10364_s25 + $0x1ee0] sm:$0xff]  ;;  %2176 = vst [vmem:[%s10369_s26 + $0xf60] sm:$0xff] %v2175_v44  ;;  %2178 = vst [vmem:[%s10369_s26 + $0xf68] sm:$0xff] %v2177_v45  ;;  %v2181_v47 = vld [vmem:[%s10364_s25 + $0x1ef0] sm:$0xff] }
 0x10d   : > { %2180 = vst [vmem:[%s10369_s26 + $0xf70] sm:$0xff] %v2179_v46  ;;  %v2183_v48 = vld [vmem:[%s10364_s25 + $0x1f00] sm:$0xff]  ;;  %v2185_v49 = vld [vmem:[%s10364_s25 + $0x1f10] sm:$0xff]  ;;  %2182 = vst [vmem:[%s10369_s26 + $0xf78] sm:$0xff] %v2181_v47 }
 0x10e   : > { %2184 = vst [vmem:[%s10369_s26 + $0xf80] sm:$0xff] %v2183_v48  ;;  %2186 = vst [vmem:[%s10369_s26 + $0xf88] sm:$0xff] %v2185_v49  ;;  %v2187_v50 = vld [vmem:[%s10364_s25 + $0x1f20] sm:$0xff]  ;;  %v2189_v51 = vld [vmem:[%s10364_s25 + $0x1f30] sm:$0xff] }
 0x10f   : > { %v2191_v52 = vld [vmem:[%s10364_s25 + $0x1f40] sm:$0xff]  ;;  %2188 = vst [vmem:[%s10369_s26 + $0xf90] sm:$0xff] %v2187_v50  ;;  %2190 = vst [vmem:[%s10369_s26 + $0xf98] sm:$0xff] %v2189_v51  ;;  %v2193_v53 = vld [vmem:[%s10364_s25 + $0x1f50] sm:$0xff] }
 0x110   : > { %2192 = vst [vmem:[%s10369_s26 + $0xfa0] sm:$0xff] %v2191_v52  ;;  %v2195_v54 = vld [vmem:[%s10364_s25 + $0x1f60] sm:$0xff]  ;;  %v2197_v55 = vld [vmem:[%s10364_s25 + $0x1f70] sm:$0xff]  ;;  %2194 = vst [vmem:[%s10369_s26 + $0xfa8] sm:$0xff] %v2193_v53 }
 0x111   : > { %2196 = vst [vmem:[%s10369_s26 + $0xfb0] sm:$0xff] %v2195_v54  ;;  %2198 = vst [vmem:[%s10369_s26 + $0xfb8] sm:$0xff] %v2197_v55  ;;  %v2199_v56 = vld [vmem:[%s10364_s25 + $0x1f80] sm:$0xff]  ;;  %v2201_v57 = vld [vmem:[%s10364_s25 + $0x1f90] sm:$0xff] }
 0x112   : > { %v2203_v58 = vld [vmem:[%s10364_s25 + $0x1fa0] sm:$0xff]  ;;  %2200 = vst [vmem:[%s10369_s26 + $0xfc0] sm:$0xff] %v2199_v56  ;;  %2202 = vst [vmem:[%s10369_s26 + $0xfc8] sm:$0xff] %v2201_v57  ;;  %v2205_v59 = vld [vmem:[%s10364_s25 + $0x1fb0] sm:$0xff] }
 0x113   : > { %2204 = vst [vmem:[%s10369_s26 + $0xfd0] sm:$0xff] %v2203_v58  ;;  %v2207_v60 = vld [vmem:[%s10364_s25 + $0x1fc0] sm:$0xff]  ;;  %v2209_v61 = vld [vmem:[%s10364_s25 + $0x1fd0] sm:$0xff]  ;;  %2206 = vst [vmem:[%s10369_s26 + $0xfd8] sm:$0xff] %v2205_v59 }
 0x114   : > { %2208 = vst [vmem:[%s10369_s26 + $0xfe0] sm:$0xff] %v2207_v60  ;;  %2210 = vst [vmem:[%s10369_s26 + $0xfe8] sm:$0xff] %v2209_v61  ;;  %v2211_v62 = vld [vmem:[%s10364_s25 + $0x1fe0] sm:$0xff]  ;;  %v2213_v63 = vld [vmem:[%s10364_s25 + $0x1ff0] sm:$0xff] }
 0x115   : > { %2212 = vst [vmem:[%s10369_s26 + $0xff0] sm:$0xff] %v2211_v62  ;;  %2214 = vst [vmem:[%s10369_s26 + $0xff8] sm:$0xff] %v2213_v63 }
 0x116 PF: > { %p8718_p8 = scmp.ge.s32.totalorder %s10299_s13, 1  ;;  %p4303_p9 = scmp.lt.s32.totalorder %s10299_s13, 3 }
 0x118   : > { %p4304_p10 = pnand %p8718_p8, %p4303_p9 }
 0x119   : > { %s4310_s27 = sand.u32 (!%p4304_p10), 1, %s10283_s9   ;;  %v11398_v0 = vld [vmem:[%s12226_s0] sm:$0xff] (!%p4304_p10) }
 0x11a   : > { %4307 = sbr.rel (%p4304_p10) target bundleno = 1034 (0x40a), region = 76  ;;  %v11403_v1 = vld [vmem:[%s12226_s0 + $0x80] sm:$0xff] (!%p4304_p10)  ;;  %s8719_s6 = sshll.u32 (!%p4304_p10), %s4310_s27, 12 }
 0x11b   : > { %v11408_v2 = vld [vmem:[%s12226_s0 + $0x40] sm:$0xff] (!%p4304_p10)  ;;  %v8720_v3 = vcombine.low (!%p4304_p10), %v11398_v0, %v11403_v1  ;;  %v8721_v4 = vcombine.high (!%p4304_p10), %v11398_v0, %v11403_v1  ;;  %s11425_s15 = scalar_lea.vmem (!%p4304_p10), [#allocation2], %s8719_s6 }
 0x11c   : > { %v11419_v5 = vld [vmem:[%s12226_s0 + $0xc0] sm:$0xff] (!%p4304_p10)  ;;  %v9467_v12 = vld [vmem:[%s11425_s15 + $0x14] ss:$8 sps:$4 sm:$0xff] (!%p4304_p10)   ;;  %v9471_v14 = vld [vmem:[%s11425_s15 + $0x10] ss:$8 sps:$4 sm:$0xff] (!%p4304_p10)  }
 0x11d   : > { %v8736_v6 = vcombine.low (!%p4304_p10), %v11408_v2, %v11419_v5  ;;  %v8737_v7 = vcombine.high (!%p4304_p10), %v11408_v2, %v11419_v5  ;;  %v9461_v8 = vld [vmem:[%s11425_s15 + $0x4] ss:$8 sps:$4 sm:$0xff] (!%p4304_p10)   ;;  %7770 = vmatprep.mubr.bf16.mxu1 (!%p4304_p10), %v8721_v4  ;;  %v9465_v10 = vld [vmem:[%s11425_s15] ss:$8 sps:$4 sm:$0xff] (!%p4304_p10)   ;;  %v9469_v13 = vld [vmem:[%s11425_s15 + $0x814] ss:$8 sps:$4 sm:$0xff] (!%p4304_p10)  }
 0x11e   : > { %v9463_v9 = vld [vmem:[%s11425_s15 + $0x804] ss:$8 sps:$4 sm:$0xff] (!%p4304_p10)   ;;  %7738 = vmatprep.subr.bf16.mxu1 (!%p4304_p10), %v9461_v8  ;;  %v9466_v11 = vld [vmem:[%s11425_s15 + $0x800] ss:$8 sps:$4 sm:$0xff] (!%p4304_p10)   ;;  %v9472_v15 = vld [vmem:[%s11425_s15 + $0x810] ss:$8 sps:$4 sm:$0xff] (!%p4304_p10)  }
 0x11f   : > { %8178 = vmatprep.mubr.bf16.mxu0 (!%p4304_p10), %v8737_v7  ;;  %8146 = vmatprep.subr.bf16.mxu0 (!%p4304_p10), %v9463_v9  ;;  %v9473_v16 = vld [vmem:[%s11425_s15 + $0x24] ss:$8 sps:$4 sm:$0xff] (!%p4304_p10)   ;;  %v9477_v18 = vld [vmem:[%s11425_s15 + $0x20] ss:$8 sps:$4 sm:$0xff] (!%p4304_p10)   ;;  %v9479_v20 = vld [vmem:[%s11425_s15 + $0x34] ss:$8 sps:$4 sm:$0xff] (!%p4304_p10)  }
 0x120   : > { %7739 = vmatpush1.bf16.msra.mxu1 (!%p4304_p10), %v9465_v10  ;;  %8147 = vmatpush1.bf16.msra.mxu0 (!%p4304_p10), %v9466_v11  ;;  %v9475_v17 = vld [vmem:[%s11425_s15 + $0x824] ss:$8 sps:$4 sm:$0xff] (!%p4304_p10)   ;;  %v9478_v19 = vld [vmem:[%s11425_s15 + $0x820] ss:$8 sps:$4 sm:$0xff] (!%p4304_p10)   ;;  %v9481_v21 = vld [vmem:[%s11425_s15 + $0x834] ss:$8 sps:$4 sm:$0xff] (!%p4304_p10)  }
 0x121   : > { %7740 = vmatprep.subr.bf16.mxu1 %v9467_v12  ;;  %8148 = vmatprep.subr.bf16.mxu0 %v9469_v13  ;;  %v9483_v22 = vld [vmem:[%s11425_s15 + $0x30] ss:$8 sps:$4 sm:$0xff]   ;;  %v9485_v24 = vld [vmem:[%s11425_s15 + $0x44] ss:$8 sps:$4 sm:$0xff]   ;;  %v9489_v26 = vld [vmem:[%s11425_s15 + $0x40] ss:$8 sps:$4 sm:$0xff]  }
 0x122   : > { %v9484_v23 = vld [vmem:[%s11425_s15 + $0x830] ss:$8 sps:$4 sm:$0xff]   ;;  %v9487_v25 = vld [vmem:[%s11425_s15 + $0x844] ss:$8 sps:$4 sm:$0xff]   ;;  %v9490_v27 = vld [vmem:[%s11425_s15 + $0x840] ss:$8 sps:$4 sm:$0xff]  }
 0x123   : > { %v9491_v28 = vld [vmem:[%s11425_s15 + $0x54] ss:$8 sps:$4 sm:$0xff]   ;;  %v9495_v30 = vld [vmem:[%s11425_s15 + $0x50] ss:$8 sps:$4 sm:$0xff]   ;;  %v9497_v32 = vld [vmem:[%s11425_s15 + $0x64] ss:$8 sps:$4 sm:$0xff]  }
 0x124   : > { %7741 = vmatpush1.bf16.msra.mxu1 %v9471_v14  ;;  %8149 = vmatpush1.bf16.msra.mxu0 %v9472_v15  ;;  %v9493_v29 = vld [vmem:[%s11425_s15 + $0x854] ss:$8 sps:$4 sm:$0xff]   ;;  %v9496_v31 = vld [vmem:[%s11425_s15 + $0x850] ss:$8 sps:$4 sm:$0xff]   ;;  %v9499_v33 = vld [vmem:[%s11425_s15 + $0x864] ss:$8 sps:$4 sm:$0xff]  }
 0x125   : > { %7742 = vmatprep.subr.bf16.mxu1 %v9473_v16  ;;  %8150 = vmatprep.subr.bf16.mxu0 %v9475_v17  ;;  %v9501_v34 = vld [vmem:[%s11425_s15 + $0x60] ss:$8 sps:$4 sm:$0xff]   ;;  %v9503_v36 = vld [vmem:[%s11425_s15 + $0x74] ss:$8 sps:$4 sm:$0xff]   ;;  %v9507_v38 = vld [vmem:[%s11425_s15 + $0x70] ss:$8 sps:$4 sm:$0xff]  }
 0x126   : > { %v9502_v35 = vld [vmem:[%s11425_s15 + $0x860] ss:$8 sps:$4 sm:$0xff]   ;;  %v9505_v37 = vld [vmem:[%s11425_s15 + $0x874] ss:$8 sps:$4 sm:$0xff]   ;;  %v9508_v39 = vld [vmem:[%s11425_s15 + $0x870] ss:$8 sps:$4 sm:$0xff]  }
 0x127   : > { %v9509_v40 = vld [vmem:[%s11425_s15 + $0x84] ss:$8 sps:$4 sm:$0xff]   ;;  %v9513_v42 = vld [vmem:[%s11425_s15 + $0x80] ss:$8 sps:$4 sm:$0xff]   ;;  %v9515_v44 = vld [vmem:[%s11425_s15 + $0x94] ss:$8 sps:$4 sm:$0xff]  }
 0x128   : > { %7743 = vmatpush1.bf16.msra.mxu1 %v9477_v18  ;;  %8151 = vmatpush1.bf16.msra.mxu0 %v9478_v19  ;;  %v9511_v41 = vld [vmem:[%s11425_s15 + $0x884] ss:$8 sps:$4 sm:$0xff]   ;;  %v9514_v43 = vld [vmem:[%s11425_s15 + $0x880] ss:$8 sps:$4 sm:$0xff]   ;;  %v9517_v45 = vld [vmem:[%s11425_s15 + $0x894] ss:$8 sps:$4 sm:$0xff]  }
 0x129   : > { %7744 = vmatprep.subr.bf16.mxu1 %v9479_v20  ;;  %8152 = vmatprep.subr.bf16.mxu0 %v9481_v21  ;;  %v9519_v46 = vld [vmem:[%s11425_s15 + $0x90] ss:$8 sps:$4 sm:$0xff]   ;;  %v9521_v48 = vld [vmem:[%s11425_s15 + $0xa4] ss:$8 sps:$4 sm:$0xff]   ;;  %v9525_v50 = vld [vmem:[%s11425_s15 + $0xa0] ss:$8 sps:$4 sm:$0xff]  }
 0x12a   : > { %v9520_v47 = vld [vmem:[%s11425_s15 + $0x890] ss:$8 sps:$4 sm:$0xff]   ;;  %v9523_v49 = vld [vmem:[%s11425_s15 + $0x8a4] ss:$8 sps:$4 sm:$0xff]   ;;  %v9526_v51 = vld [vmem:[%s11425_s15 + $0x8a0] ss:$8 sps:$4 sm:$0xff]  }
 0x12b   : > { %v9527_v52 = vld [vmem:[%s11425_s15 + $0xb4] ss:$8 sps:$4 sm:$0xff]   ;;  %v9531_v54 = vld [vmem:[%s11425_s15 + $0xb0] ss:$8 sps:$4 sm:$0xff]   ;;  %v9533_v56 = vld [vmem:[%s11425_s15 + $0xc4] ss:$8 sps:$4 sm:$0xff]  }
 0x12c   : > { %7745 = vmatpush1.bf16.msra.mxu1 %v9483_v22  ;;  %8153 = vmatpush1.bf16.msra.mxu0 %v9484_v23  ;;  %v9529_v53 = vld [vmem:[%s11425_s15 + $0x8b4] ss:$8 sps:$4 sm:$0xff]   ;;  %v9532_v55 = vld [vmem:[%s11425_s15 + $0x8b0] ss:$8 sps:$4 sm:$0xff]   ;;  %v9535_v57 = vld [vmem:[%s11425_s15 + $0x8c4] ss:$8 sps:$4 sm:$0xff]  }
 0x12d   : > { %7746 = vmatprep.subr.bf16.mxu1 %v9485_v24  ;;  %8154 = vmatprep.subr.bf16.mxu0 %v9487_v25  ;;  %v9537_v58 = vld [vmem:[%s11425_s15 + $0xc0] ss:$8 sps:$4 sm:$0xff]   ;;  %v9539_v60 = vld [vmem:[%s11425_s15 + $0xd4] ss:$8 sps:$4 sm:$0xff]   ;;  %v9543_v62 = vld [vmem:[%s11425_s15 + $0xd0] ss:$8 sps:$4 sm:$0xff]  }
 0x12e   : > { %v9538_v59 = vld [vmem:[%s11425_s15 + $0x8c0] ss:$8 sps:$4 sm:$0xff]   ;;  %v9541_v61 = vld [vmem:[%s11425_s15 + $0x8d4] ss:$8 sps:$4 sm:$0xff]   ;;  %v9544_v63 = vld [vmem:[%s11425_s15 + $0x8d0] ss:$8 sps:$4 sm:$0xff]  }
 0x12f   : > { %v9545_v4 = vld [vmem:[%s11425_s15 + $0xe4] ss:$8 sps:$4 sm:$0xff]   ;;  %v9549_v8 = vld [vmem:[%s11425_s15 + $0xe0] ss:$8 sps:$4 sm:$0xff]   ;;  %v9551_v10 = vld [vmem:[%s11425_s15 + $0xf4] ss:$8 sps:$4 sm:$0xff]  }
 0x130   : > { %7747 = vmatpush1.bf16.msra.mxu1 %v9489_v26  ;;  %8155 = vmatpush1.bf16.msra.mxu0 %v9490_v27  ;;  %v9547_v7 = vld [vmem:[%s11425_s15 + $0x8e4] ss:$8 sps:$4 sm:$0xff]   ;;  %v9550_v9 = vld [vmem:[%s11425_s15 + $0x8e0] ss:$8 sps:$4 sm:$0xff]   ;;  %v9553_v11 = vld [vmem:[%s11425_s15 + $0x8f4] ss:$8 sps:$4 sm:$0xff]  }
 0x131   : > { %7748 = vmatprep.subr.bf16.mxu1 %v9491_v28  ;;  %8156 = vmatprep.subr.bf16.mxu0 %v9493_v29  ;;  %v9555_v12 = vld [vmem:[%s11425_s15 + $0xf0] ss:$8 sps:$4 sm:$0xff]   ;;  %v9559_v14 = vld [vmem:[%s11425_s15 + $0x104] ss:$8 sps:$4 sm:$0xff]   ;;  %v9557_v18 = vld [vmem:[%s11425_s15 + $0x100] ss:$8 sps:$4 sm:$0xff]  }
 0x132   : > { %v9556_v13 = vld [vmem:[%s11425_s15 + $0x8f0] ss:$8 sps:$4 sm:$0xff]   ;;  %v9562_v15 = vld [vmem:[%s11425_s15 + $0x904] ss:$8 sps:$4 sm:$0xff]   ;;  %v9560_v19 = vld [vmem:[%s11425_s15 + $0x900] ss:$8 sps:$4 sm:$0xff]  }
 0x133   : > { %v4378_v16 = vld [vmem:[%s12226_s0 + $0x100] sm:$0xff]  ;;  %v9565_v20 = vld [vmem:[%s11425_s15 + $0x114] ss:$8 sps:$4 sm:$0xff]   ;;  %v9563_v24 = vld [vmem:[%s11425_s15 + $0x110] ss:$8 sps:$4 sm:$0xff]  }
 0x134   : > { %7749 = vmatpush1.bf16.msra.mxu1 %v9495_v30  ;;  %8157 = vmatpush1.bf16.msra.mxu0 %v9496_v31  ;;  %v4386_v17 = vld [vmem:[%s12226_s0 + $0x140] sm:$0xff]  ;;  %v9568_v21 = vld [vmem:[%s11425_s15 + $0x914] ss:$8 sps:$4 sm:$0xff]   ;;  %v8753_v22 = vcombine.high %v4378_v16, %v4378_v16  ;;  %v9566_v25 = vld [vmem:[%s11425_s15 + $0x910] ss:$8 sps:$4 sm:$0xff]  }
 0x135   : > { %7750 = vmatprep.subr.bf16.mxu1 %v9497_v32  ;;  %8158 = vmatprep.subr.bf16.mxu0 %v9499_v33  ;;  %v8769_v23 = vcombine.high %v4386_v17, %v4386_v17  ;;  %v9571_v26 = vld [vmem:[%s11425_s15 + $0x124] ss:$8 sps:$4 sm:$0xff]   ;;  %v9569_v0 = vld [vmem:[%s11425_s15 + $0x120] ss:$8 sps:$4 sm:$0xff]   ;;  %v8768_v2 = vcombine.low %v4386_v17, %v4386_v17  ;;  %v9577_v5 = vld [vmem:[%s11425_s15 + $0x134] ss:$8 sps:$4 sm:$0xff]  }
 0x136   : > { %v9574_v27 = vld [vmem:[%s11425_s15 + $0x924] ss:$8 sps:$4 sm:$0xff]   ;;  %v9572_v1 = vld [vmem:[%s11425_s15 + $0x920] ss:$8 sps:$4 sm:$0xff]   ;;  %v9575_v28 = vld [vmem:[%s11425_s15 + $0x130] ss:$8 sps:$4 sm:$0xff]  }
 0x137   : > { %v9578_v29 = vld [vmem:[%s11425_s15 + $0x930] ss:$8 sps:$4 sm:$0xff]   ;;  %v9583_v30 = vld [vmem:[%s11425_s15 + $0x144] ss:$8 sps:$4 sm:$0xff]   ;;  %v9581_v32 = vld [vmem:[%s11425_s15 + $0x140] ss:$8 sps:$4 sm:$0xff]  }
 0x138   : > { %7751 = vmatpush1.bf16.msra.mxu1 %v9501_v34  ;;  %8159 = vmatpush1.bf16.msra.mxu0 %v9502_v35  ;;  %v9586_v31 = vld [vmem:[%s11425_s15 + $0x944] ss:$8 sps:$4 sm:$0xff]   ;;  %v9584_v33 = vld [vmem:[%s11425_s15 + $0x940] ss:$8 sps:$4 sm:$0xff]   ;;  %v9589_v34 = vld [vmem:[%s11425_s15 + $0x154] ss:$8 sps:$4 sm:$0xff]  }
 0x139   : > { %7752 = vmatprep.subr.bf16.mxu1 %v9503_v36  ;;  %8160 = vmatprep.subr.bf16.mxu0 %v9505_v37  ;;  %v9592_v35 = vld [vmem:[%s11425_s15 + $0x954] ss:$8 sps:$4 sm:$0xff]   ;;  %v9587_v36 = vld [vmem:[%s11425_s15 + $0x150] ss:$8 sps:$4 sm:$0xff]  }
 0x13a   : > { %v9590_v37 = vld [vmem:[%s11425_s15 + $0x950] ss:$8 sps:$4 sm:$0xff]  }
 0x13b   : > { %v9638_v17 = vld [vmem:[%s11425_s15 + $0x9d0] ss:$8 sps:$4 sm:$0xff]  }
 0x13c   : > { %7753 = vmatpush1.bf16.msra.mxu1 %v9507_v38  ;;  %8161 = vmatpush1.bf16.msra.mxu0 %v9508_v39  ;;  %v9595_v38 = vld [vmem:[%s11425_s15 + $0x164] ss:$8 sps:$4 sm:$0xff]  }
 0x13d   : > { %7754 = vmatprep.subr.bf16.mxu1 %v9509_v40  ;;  %8162 = vmatprep.subr.bf16.mxu0 %v9511_v41  ;;  %v9598_v39 = vld [vmem:[%s11425_s15 + $0x964] ss:$8 sps:$4 sm:$0xff]  }
 0x13e   : > { %v11532_v40 = vld [vmem:[%s12226_s0 + $0x8] sm:$0xff] }
 0x13f   : > { %v11537_v41 = vld [vmem:[%s12226_s0 + $0x88] sm:$0xff] }
 0x140   : > { %7755 = vmatpush1.bf16.msra.mxu1 %v9513_v42  ;;  %8163 = vmatpush1.bf16.msra.mxu0 %v9514_v43  ;;  %v9593_v42 = vld [vmem:[%s11425_s15 + $0x160] ss:$8 sps:$4 sm:$0xff]   ;;  %v8723_v43 = vcombine.high %v11532_v40, %v11537_v41 }
 0x141   : > { %7756 = vmatprep.subr.bf16.mxu1 %v9515_v44  ;;  %8164 = vmatprep.subr.bf16.mxu0 %v9517_v45  ;;  %v9596_v44 = vld [vmem:[%s11425_s15 + $0x960] ss:$8 sps:$4 sm:$0xff]  }
 0x142   : > { %v11546_v45 = vld [vmem:[%s12226_s0 + $0x48] sm:$0xff] }
 0x144   : > { %7757 = vmatpush1.bf16.msra.mxu1 %v9519_v46  ;;  %8165 = vmatpush1.bf16.msra.mxu0 %v9520_v47  ;;  %v11551_v46 = vld [vmem:[%s12226_s0 + $0xc8] sm:$0xff]  ;;  %v9601_v47 = vld [vmem:[%s11425_s15 + $0x174] ss:$8 sps:$4 sm:$0xff]  }
 0x145   : > { %7758 = vmatprep.subr.bf16.mxu1 %v9521_v48  ;;  %8166 = vmatprep.subr.bf16.mxu0 %v9523_v49  ;;  %v8739_v48 = vcombine.high %v11546_v45, %v11551_v46  ;;  %v9604_v49 = vld [vmem:[%s11425_s15 + $0x974] ss:$8 sps:$4 sm:$0xff]  }
 0x148   : > { %7759 = vmatpush1.bf16.msra.mxu1 %v9525_v50  ;;  %8167 = vmatpush1.bf16.msra.mxu0 %v9526_v51  ;;  %v9599_v50 = vld [vmem:[%s11425_s15 + $0x170] ss:$8 sps:$4 sm:$0xff]  }
 0x149   : > { %7760 = vmatprep.subr.bf16.mxu1 %v9527_v52  ;;  %8168 = vmatprep.subr.bf16.mxu0 %v9529_v53  ;;  %v9602_v51 = vld [vmem:[%s11425_s15 + $0x970] ss:$8 sps:$4 sm:$0xff]   ;;  %v9607_v52 = vld [vmem:[%s11425_s15 + $0x184] ss:$8 sps:$4 sm:$0xff]  }
 0x14a   : > { %v9610_v53 = vld [vmem:[%s11425_s15 + $0x984] ss:$8 sps:$4 sm:$0xff]  }
 0x14c   : > { %7761 = vmatpush1.bf16.msra.mxu1 %v9531_v54  ;;  %8169 = vmatpush1.bf16.msra.mxu0 %v9532_v55  ;;  %v9605_v54 = vld [vmem:[%s11425_s15 + $0x180] ss:$8 sps:$4 sm:$0xff]  }
 0x14d   : > { %7762 = vmatprep.subr.bf16.mxu1 %v9533_v56  ;;  %8170 = vmatprep.subr.bf16.mxu0 %v9535_v57  ;;  %v9608_v55 = vld [vmem:[%s11425_s15 + $0x980] ss:$8 sps:$4 sm:$0xff]   ;;  %v9613_v56 = vld [vmem:[%s11425_s15 + $0x194] ss:$8 sps:$4 sm:$0xff]  }
 0x14e   : > { %v9616_v57 = vld [vmem:[%s11425_s15 + $0x994] ss:$8 sps:$4 sm:$0xff]  }
 0x150   : > { %7763 = vmatpush1.bf16.msra.mxu1 %v9537_v58  ;;  %8171 = vmatpush1.bf16.msra.mxu0 %v9538_v59  ;;  %v9611_v58 = vld [vmem:[%s11425_s15 + $0x190] ss:$8 sps:$4 sm:$0xff]  }
 0x151   : > { %7764 = vmatprep.subr.bf16.mxu1 %v9539_v60  ;;  %8172 = vmatprep.subr.bf16.mxu0 %v9541_v61  ;;  %v9614_v59 = vld [vmem:[%s11425_s15 + $0x990] ss:$8 sps:$4 sm:$0xff]   ;;  %v9619_v60 = vld [vmem:[%s11425_s15 + $0x1a4] ss:$8 sps:$4 sm:$0xff]  }
 0x152   : > { %v9622_v61 = vld [vmem:[%s11425_s15 + $0x9a4] ss:$8 sps:$4 sm:$0xff]  }
 0x154   : > { %7765 = vmatpush1.bf16.msra.mxu1 %v9543_v62  ;;  %8173 = vmatpush1.bf16.msra.mxu0 %v9544_v63  ;;  %v9617_v62 = vld [vmem:[%s11425_s15 + $0x1a0] ss:$8 sps:$4 sm:$0xff]  }
 0x155   : > { %7766 = vmatprep.subr.bf16.mxu1 %v9545_v4  ;;  %8174 = vmatprep.subr.bf16.mxu0 %v9547_v7  ;;  %v9620_v63 = vld [vmem:[%s11425_s15 + $0x9a0] ss:$8 sps:$4 sm:$0xff]   ;;  %v9625_v4 = vld [vmem:[%s11425_s15 + $0x1b4] ss:$8 sps:$4 sm:$0xff]  }
 0x156   : > { %v9628_v7 = vld [vmem:[%s11425_s15 + $0x9b4] ss:$8 sps:$4 sm:$0xff]  }
 0x158   : > { %7767 = vmatpush1.bf16.msra.mxu1 %v9549_v8  ;;  %8175 = vmatpush1.bf16.msra.mxu0 %v9550_v9  ;;  %v9623_v8 = vld [vmem:[%s11425_s15 + $0x1b0] ss:$8 sps:$4 sm:$0xff]  }
 0x159   : > { %7768 = vmatprep.subr.bf16.mxu1 %v9551_v10  ;;  %8176 = vmatprep.subr.bf16.mxu0 %v9553_v11  ;;  %v9626_v9 = vld [vmem:[%s11425_s15 + $0x9b0] ss:$8 sps:$4 sm:$0xff]   ;;  %v9631_v10 = vld [vmem:[%s11425_s15 + $0x1c4] ss:$8 sps:$4 sm:$0xff]  }
 0x15a   : > { %v9634_v11 = vld [vmem:[%s11425_s15 + $0x9c4] ss:$8 sps:$4 sm:$0xff]  }
 0x15c   : > { %7769 = vmatpush1.bf16.msra.mxu1 %v9555_v12  ;;  %8177 = vmatpush1.bf16.msra.mxu0 %v9556_v13  ;;  %v9629_v12 = vld [vmem:[%s11425_s15 + $0x1c0] ss:$8 sps:$4 sm:$0xff]  }
 0x15d   : > { %7789 = vmatprep.subr.bf16.mxu1 %v9559_v14  ;;  %8197 = vmatprep.subr.bf16.mxu0 %v9562_v15  ;;  %v9632_v13 = vld [vmem:[%s11425_s15 + $0x9c0] ss:$8 sps:$4 sm:$0xff]   ;;  %v9637_v14 = vld [vmem:[%s11425_s15 + $0x1d4] ss:$8 sps:$4 sm:$0xff]  }
 0x15e   : > { %v9640_v15 = vld [vmem:[%s11425_s15 + $0x9d4] ss:$8 sps:$4 sm:$0xff]  }
 0x15f   : > { %7771 = vmatmul.mubr.bf16.vlgmr.msra.gmra.mrb[0].mxu1 %v8720_v3  ;;  %8179 = vmatmul.mubr.bf16.vlgmr.msra.gmra.mrb[0].mxu0 %v8736_v6  ;;  %v8752_v3 = vcombine.low %v4378_v16, %v4378_v16  ;;  %v9580_v6 = vld [vmem:[%s11425_s15 + $0x934] ss:$8 sps:$4 sm:$0xff]   ;;  %v9635_v16 = vld [vmem:[%s11425_s15 + $0x1d0] ss:$8 sps:$4 sm:$0xff]  }
 0x160   : > { %7790 = vmatpush1.bf16.msra.mxu1 %v9557_v18  ;;  %8198 = vmatpush1.bf16.msra.mxu0 %v9560_v19  ;;  %v9644_v18 = vld [vmem:[%s11425_s15 + $0x1e4] ss:$8 sps:$4 sm:$0xff]  }
 0x161   : > { %7791 = vmatprep.subr.bf16.mxu1 %v9565_v20  ;;  %8199 = vmatprep.subr.bf16.mxu0 %v9568_v21  ;;  %v9648_v19 = vld [vmem:[%s11425_s15 + $0x9e4] ss:$8 sps:$4 sm:$0xff]   ;;  %v9642_v20 = vld [vmem:[%s11425_s15 + $0x1e0] ss:$8 sps:$4 sm:$0xff]  }
 0x162   : > { %7780 = vmatprep.mubr.bf16.mxu1 %v8753_v22  ;;  %8188 = vmatprep.mubr.bf16.mxu0 %v8769_v23  ;;  %v9646_v21 = vld [vmem:[%s11425_s15 + $0x9e0] ss:$8 sps:$4 sm:$0xff]   ;;  %v9653_v22 = vld [vmem:[%s11425_s15 + $0x1f4] ss:$8 sps:$4 sm:$0xff]  }
 0x163   : > { %v9656_v23 = vld [vmem:[%s11425_s15 + $0x9f4] ss:$8 sps:$4 sm:$0xff]  }
 0x164   : > { %7792 = vmatpush1.bf16.msra.mxu1 %v9563_v24  ;;  %8200 = vmatpush1.bf16.msra.mxu0 %v9566_v25  ;;  %v9651_v24 = vld [vmem:[%s11425_s15 + $0x1f0] ss:$8 sps:$4 sm:$0xff]  }
 0x165   : > { %7793 = vmatprep.subr.bf16.mxu1 %v9571_v26  ;;  %8201 = vmatprep.subr.bf16.mxu0 %v9574_v27  ;;  %v9654_v25 = vld [vmem:[%s11425_s15 + $0x9f0] ss:$8 sps:$4 sm:$0xff]   ;;  %v9659_v26 = vld [vmem:[%s11425_s15 + $0x204] ss:$8 sps:$4 sm:$0xff]  }
 0x166   : > { %v9662_v27 = vld [vmem:[%s11425_s15 + $0xa04] ss:$8 sps:$4 sm:$0xff]  }
 0x167   : > { %7781 = vmatmul.mubr.bf16.gmra.mrb[4].mxu1 %v8752_v3  ;;  %8189 = vmatmul.mubr.bf16.gmra.mrb[4].mxu0 %v8768_v2  ;;  %v8738_v3 = vcombine.low %v11546_v45, %v11551_v46  ;;  %v4387_v2 = vld [vmem:[%s12226_s0 + $0x148] sm:$0xff]  ;;  %v9680_v45 = vld [vmem:[%s11425_s15 + $0xa34] ss:$8 sps:$4 sm:$0xff]  }
 0x168   : > { %7794 = vmatpush1.bf16.msra.mxu1 %v9569_v0  ;;  %8202 = vmatpush1.bf16.msra.mxu0 %v9572_v1  ;;  %v4379_v0 = vld [vmem:[%s12226_s0 + $0x108] sm:$0xff]  ;;  %v8722_v1 = vcombine.low %v11532_v40, %v11537_v41  ;;  %v8770_v40 = vcombine.low %v4387_v2, %v4387_v2  ;;  %v11629_v41 = vld [vmem:[%s12226_s0 + $0xd0] sm:$0xff] }
 0x169   : > { %7795 = vmatprep.subr.bf16.mxu1 %v9577_v5  ;;  %8203 = vmatprep.subr.bf16.mxu0 %v9580_v6  ;;  %v9657_v5 = vld [vmem:[%s11425_s15 + $0x200] ss:$8 sps:$4 sm:$0xff]  }
 0x16a   : > { %7821 = vmatprep.mubr.bf16.mxu1 %v8723_v43  ;;  %8229 = vmatprep.mubr.bf16.mxu0 %v8739_v48  ;;  %v9660_v6 = vld [vmem:[%s11425_s15 + $0xa00] ss:$8 sps:$4 sm:$0xff]   ;;  %v9675_v48 = vld [vmem:[%s11425_s15 + $0x230] ss:$8 sps:$4 sm:$0xff]  }
 0x16b   : > { %v9672_v43 = vld [vmem:[%s11425_s15 + $0xa20] ss:$8 sps:$4 sm:$0xff]  }
 0x16c   : > { %7796 = vmatpush1.bf16.msra.mxu1 %v9575_v28  ;;  %8204 = vmatpush1.bf16.msra.mxu0 %v9578_v29  ;;  %v9665_v28 = vld [vmem:[%s11425_s15 + $0x214] ss:$8 sps:$4 sm:$0xff]  }
 0x16d   : > { %7797 = vmatprep.subr.bf16.mxu1 %v9583_v30  ;;  %8205 = vmatprep.subr.bf16.mxu0 %v9586_v31  ;;  %v9668_v29 = vld [vmem:[%s11425_s15 + $0xa14] ss:$8 sps:$4 sm:$0xff]   ;;  %v8755_v30 = vcombine.high %v4379_v0, %v4379_v0  ;;  %v8771_v31 = vcombine.high %v4387_v2, %v4387_v2  ;;  %v9738_v2 = vld [vmem:[%s11425_s15 + $0xad0] ss:$8 sps:$4 sm:$0xff]  }
 0x170   : > { %7798 = vmatpush1.bf16.msra.mxu1 %v9581_v32  ;;  %8206 = vmatpush1.bf16.msra.mxu0 %v9584_v33  ;;  %v9663_v32 = vld [vmem:[%s11425_s15 + $0x210] ss:$8 sps:$4 sm:$0xff]  }
 0x171   : > { %7799 = vmatprep.subr.bf16.mxu1 %v9589_v34  ;;  %8207 = vmatprep.subr.bf16.mxu0 %v9592_v35  ;;  %v9666_v33 = vld [vmem:[%s11425_s15 + $0xa10] ss:$8 sps:$4 sm:$0xff]   ;;  %v9671_v34 = vld [vmem:[%s11425_s15 + $0x224] ss:$8 sps:$4 sm:$0xff]  }
 0x172   : > { %v9674_v35 = vld [vmem:[%s11425_s15 + $0xa24] ss:$8 sps:$4 sm:$0xff]  }
 0x174   : > { %7800 = vmatpush1.bf16.msra.mxu1 %v9587_v36  ;;  %8208 = vmatpush1.bf16.msra.mxu0 %v9590_v37  ;;  %v11614_v36 = vld [vmem:[%s12226_s0 + $0x10] sm:$0xff] }
 0x175   : > { %7801 = vmatprep.subr.bf16.mxu1 %v9595_v38  ;;  %8209 = vmatprep.subr.bf16.mxu0 %v9598_v39  ;;  %v11619_v37 = vld [vmem:[%s12226_s0 + $0x90] sm:$0xff]  ;;  %v8754_v39 = vcombine.low %v4379_v0, %v4379_v0 }
 0x176   : > { %v11624_v38 = vld [vmem:[%s12226_s0 + $0x50] sm:$0xff]  ;;  %v8725_v46 = vcombine.high %v11614_v36, %v11619_v37 }
 0x177   : > { %v9737_v0 = vld [vmem:[%s11425_s15 + $0x2d4] ss:$8 sps:$4 sm:$0xff]  }
 0x178   : > { %7802 = vmatpush1.bf16.msra.mxu1 %v9593_v42  ;;  %8210 = vmatpush1.bf16.msra.mxu0 %v9596_v44  ;;  %v9669_v42 = vld [vmem:[%s11425_s15 + $0x220] ss:$8 sps:$4 sm:$0xff]   ;;  %v9677_v44 = vld [vmem:[%s11425_s15 + $0x234] ss:$8 sps:$4 sm:$0xff]  }
 0x179   : > { %7803 = vmatprep.subr.bf16.mxu1 %v9601_v47  ;;  %8211 = vmatprep.subr.bf16.mxu0 %v9604_v49  ;;  %v8741_v47 = vcombine.high %v11624_v38, %v11629_v41  ;;  %v9678_v49 = vld [vmem:[%s11425_s15 + $0xa30] ss:$8 sps:$4 sm:$0xff]  }
 0x17c   : > { %7804 = vmatpush1.bf16.msra.mxu1 %v9599_v50  ;;  %8212 = vmatpush1.bf16.msra.mxu0 %v9602_v51  ;;  %v9683_v50 = vld [vmem:[%s11425_s15 + $0x244] ss:$8 sps:$4 sm:$0xff]  }
 0x17d   : > { %7805 = vmatprep.subr.bf16.mxu1 %v9607_v52  ;;  %8213 = vmatprep.subr.bf16.mxu0 %v9610_v53  ;;  %v9686_v51 = vld [vmem:[%s11425_s15 + $0xa44] ss:$8 sps:$4 sm:$0xff]   ;;  %v9681_v52 = vld [vmem:[%s11425_s15 + $0x240] ss:$8 sps:$4 sm:$0xff]  }
 0x17e   : > { %v9684_v53 = vld [vmem:[%s11425_s15 + $0xa40] ss:$8 sps:$4 sm:$0xff]  }
 0x180   : > { %7806 = vmatpush1.bf16.msra.mxu1 %v9605_v54  ;;  %8214 = vmatpush1.bf16.msra.mxu0 %v9608_v55  ;;  %v9689_v54 = vld [vmem:[%s11425_s15 + $0x254] ss:$8 sps:$4 sm:$0xff]  }
 0x181   : > { %7807 = vmatprep.subr.bf16.mxu1 %v9613_v56  ;;  %8215 = vmatprep.subr.bf16.mxu0 %v9616_v57  ;;  %v9692_v55 = vld [vmem:[%s11425_s15 + $0xa54] ss:$8 sps:$4 sm:$0xff]   ;;  %v9687_v56 = vld [vmem:[%s11425_s15 + $0x250] ss:$8 sps:$4 sm:$0xff]  }
 0x182   : > { %v9690_v57 = vld [vmem:[%s11425_s15 + $0xa50] ss:$8 sps:$4 sm:$0xff]  }
 0x184   : > { %7808 = vmatpush1.bf16.msra.mxu1 %v9611_v58  ;;  %8216 = vmatpush1.bf16.msra.mxu0 %v9614_v59  ;;  %v9695_v58 = vld [vmem:[%s11425_s15 + $0x264] ss:$8 sps:$4 sm:$0xff]  }
 0x185   : > { %7809 = vmatprep.subr.bf16.mxu1 %v9619_v60  ;;  %8217 = vmatprep.subr.bf16.mxu0 %v9622_v61  ;;  %v9698_v59 = vld [vmem:[%s11425_s15 + $0xa64] ss:$8 sps:$4 sm:$0xff]   ;;  %v9693_v60 = vld [vmem:[%s11425_s15 + $0x260] ss:$8 sps:$4 sm:$0xff]  }
 0x186   : > { %v9696_v61 = vld [vmem:[%s11425_s15 + $0xa60] ss:$8 sps:$4 sm:$0xff]  }
 0x188   : > { %7810 = vmatpush1.bf16.msra.mxu1 %v9617_v62  ;;  %8218 = vmatpush1.bf16.msra.mxu0 %v9620_v63  ;;  %v9701_v62 = vld [vmem:[%s11425_s15 + $0x274] ss:$8 sps:$4 sm:$0xff]  }
 0x189   : > { %7811 = vmatprep.subr.bf16.mxu1 %v9625_v4  ;;  %8219 = vmatprep.subr.bf16.mxu0 %v9628_v7  ;;  %v9704_v63 = vld [vmem:[%s11425_s15 + $0xa74] ss:$8 sps:$4 sm:$0xff]   ;;  %v9699_v4 = vld [vmem:[%s11425_s15 + $0x270] ss:$8 sps:$4 sm:$0xff]  }
 0x18a   : > { %v9702_v7 = vld [vmem:[%s11425_s15 + $0xa70] ss:$8 sps:$4 sm:$0xff]  }
 0x18c   : > { %7812 = vmatpush1.bf16.msra.mxu1 %v9623_v8  ;;  %8220 = vmatpush1.bf16.msra.mxu0 %v9626_v9  ;;  %v9707_v8 = vld [vmem:[%s11425_s15 + $0x284] ss:$8 sps:$4 sm:$0xff]  }
 0x18d   : > { %7813 = vmatprep.subr.bf16.mxu1 %v9631_v10  ;;  %8221 = vmatprep.subr.bf16.mxu0 %v9634_v11  ;;  %v9710_v9 = vld [vmem:[%s11425_s15 + $0xa84] ss:$8 sps:$4 sm:$0xff]   ;;  %v9705_v10 = vld [vmem:[%s11425_s15 + $0x280] ss:$8 sps:$4 sm:$0xff]  }
 0x18e   : > { %v9708_v11 = vld [vmem:[%s11425_s15 + $0xa80] ss:$8 sps:$4 sm:$0xff]  }
 0x190   : > { %7814 = vmatpush1.bf16.msra.mxu1 %v9629_v12  ;;  %8222 = vmatpush1.bf16.msra.mxu0 %v9632_v13  ;;  %v9713_v12 = vld [vmem:[%s11425_s15 + $0x294] ss:$8 sps:$4 sm:$0xff]  }
 0x191   : > { %7815 = vmatprep.subr.bf16.mxu1 %v9637_v14  ;;  %8223 = vmatprep.subr.bf16.mxu0 %v9640_v15  ;;  %v9716_v13 = vld [vmem:[%s11425_s15 + $0xa94] ss:$8 sps:$4 sm:$0xff]   ;;  %v9711_v14 = vld [vmem:[%s11425_s15 + $0x290] ss:$8 sps:$4 sm:$0xff]  }
 0x192   : > { %v9714_v15 = vld [vmem:[%s11425_s15 + $0xa90] ss:$8 sps:$4 sm:$0xff]  }
 0x194   : > { %7816 = vmatpush1.bf16.msra.mxu1 %v9635_v16  ;;  %8224 = vmatpush1.bf16.msra.mxu0 %v9638_v17  ;;  %v9719_v16 = vld [vmem:[%s11425_s15 + $0x2a4] ss:$8 sps:$4 sm:$0xff]  }
 0x195   : > { %7817 = vmatprep.subr.bf16.mxu1 %v9644_v18  ;;  %8225 = vmatprep.subr.bf16.mxu0 %v9648_v19  ;;  %v9722_v17 = vld [vmem:[%s11425_s15 + $0xaa4] ss:$8 sps:$4 sm:$0xff]   ;;  %v9717_v18 = vld [vmem:[%s11425_s15 + $0x2a0] ss:$8 sps:$4 sm:$0xff]  }
 0x196   : > { %v9720_v19 = vld [vmem:[%s11425_s15 + $0xaa0] ss:$8 sps:$4 sm:$0xff]  }
 0x198   : > { %7818 = vmatpush1.bf16.msra.mxu1 %v9642_v20  ;;  %8226 = vmatpush1.bf16.msra.mxu0 %v9646_v21  ;;  %v9725_v20 = vld [vmem:[%s11425_s15 + $0x2b4] ss:$8 sps:$4 sm:$0xff]  }
 0x199   : > { %7819 = vmatprep.subr.bf16.mxu1 %v9653_v22  ;;  %8227 = vmatprep.subr.bf16.mxu0 %v9656_v23  ;;  %v9728_v21 = vld [vmem:[%s11425_s15 + $0xab4] ss:$8 sps:$4 sm:$0xff]   ;;  %v9723_v22 = vld [vmem:[%s11425_s15 + $0x2b0] ss:$8 sps:$4 sm:$0xff]  }
 0x19a   : > { %v9726_v23 = vld [vmem:[%s11425_s15 + $0xab0] ss:$8 sps:$4 sm:$0xff]  }
 0x19c   : > { %7820 = vmatpush1.bf16.msra.mxu1 %v9651_v24  ;;  %8228 = vmatpush1.bf16.msra.mxu0 %v9654_v25  ;;  %v9731_v24 = vld [vmem:[%s11425_s15 + $0x2c4] ss:$8 sps:$4 sm:$0xff]  }
 0x19d   : > { %7840 = vmatprep.subr.bf16.mxu1 %v9659_v26  ;;  %8248 = vmatprep.subr.bf16.mxu0 %v9662_v27  ;;  %v9734_v25 = vld [vmem:[%s11425_s15 + $0xac4] ss:$8 sps:$4 sm:$0xff]   ;;  %v9729_v26 = vld [vmem:[%s11425_s15 + $0x2c0] ss:$8 sps:$4 sm:$0xff]  }
 0x19e   : > { %v9732_v27 = vld [vmem:[%s11425_s15 + $0xac0] ss:$8 sps:$4 sm:$0xff]  }
 0x19f   : > { %7822 = vmatmul.mubr.bf16.vlgmr.msra.gmra.mrb[0].mxu1 %v8722_v1  ;;  %8230 = vmatmul.mubr.bf16.vlgmr.msra.gmra.mrb[0].mxu0 %v8738_v3  ;;  %v9740_v1 = vld [vmem:[%s11425_s15 + $0xad4] ss:$8 sps:$4 sm:$0xff]   ;;  %v9735_v3 = vld [vmem:[%s11425_s15 + $0x2d0] ss:$8 sps:$4 sm:$0xff]  }
 0x1a0   : > { %7841 = vmatpush1.bf16.msra.mxu1 %v9657_v5  ;;  %8249 = vmatpush1.bf16.msra.mxu0 %v9660_v6  ;;  %v9744_v5 = vld [vmem:[%s11425_s15 + $0x2e4] ss:$8 sps:$4 sm:$0xff]  }
 0x1a1   : > { %7842 = vmatprep.subr.bf16.mxu1 %v9665_v28  ;;  %8250 = vmatprep.subr.bf16.mxu0 %v9668_v29  ;;  %v9748_v6 = vld [vmem:[%s11425_s15 + $0xae4] ss:$8 sps:$4 sm:$0xff]   ;;  %v9742_v28 = vld [vmem:[%s11425_s15 + $0x2e0] ss:$8 sps:$4 sm:$0xff]  }
 0x1a2   : > { %7831 = vmatprep.mubr.bf16.mxu1 %v8755_v30  ;;  %8239 = vmatprep.mubr.bf16.mxu0 %v8771_v31  ;;  %v9746_v29 = vld [vmem:[%s11425_s15 + $0xae0] ss:$8 sps:$4 sm:$0xff]   ;;  %v9753_v30 = vld [vmem:[%s11425_s15 + $0x2f4] ss:$8 sps:$4 sm:$0xff]  }
 0x1a3   : > { %v9756_v31 = vld [vmem:[%s11425_s15 + $0xaf4] ss:$8 sps:$4 sm:$0xff]  }
 0x1a4   : > { %7843 = vmatpush1.bf16.msra.mxu1 %v9663_v32  ;;  %8251 = vmatpush1.bf16.msra.mxu0 %v9666_v33  ;;  %v9751_v32 = vld [vmem:[%s11425_s15 + $0x2f0] ss:$8 sps:$4 sm:$0xff]  }
 0x1a5   : > { %7844 = vmatprep.subr.bf16.mxu1 %v9671_v34  ;;  %8252 = vmatprep.subr.bf16.mxu0 %v9674_v35  ;;  %v9754_v33 = vld [vmem:[%s11425_s15 + $0xaf0] ss:$8 sps:$4 sm:$0xff]   ;;  %v9759_v34 = vld [vmem:[%s11425_s15 + $0x304] ss:$8 sps:$4 sm:$0xff]  }
 0x1a6   : > { %v9762_v35 = vld [vmem:[%s11425_s15 + $0xb04] ss:$8 sps:$4 sm:$0xff]  }
 0x1a7   : > { %7832 = vmatmul.mubr.bf16.gmra.mrb[4].mxu1 %v8754_v39  ;;  %8240 = vmatmul.mubr.bf16.gmra.mrb[4].mxu0 %v8770_v40  ;;  %v9757_v39 = vld [vmem:[%s11425_s15 + $0x300] ss:$8 sps:$4 sm:$0xff]  }
 0x1a8   : > { %7845 = vmatpush1.bf16.msra.mxu1 %v9669_v42  ;;  %8253 = vmatpush1.bf16.msra.mxu0 %v9672_v43  ;;  %v9760_v40 = vld [vmem:[%s11425_s15 + $0xb00] ss:$8 sps:$4 sm:$0xff]   ;;  %v8724_v42 = vcombine.low %v11614_v36, %v11619_v37  ;;  %v8740_v43 = vcombine.low %v11624_v38, %v11629_v41  ;;  %v9768_v36 = vld [vmem:[%s11425_s15 + $0xb14] ss:$8 sps:$4 sm:$0xff]   ;;  %v9763_v41 = vld [vmem:[%s11425_s15 + $0x310] ss:$8 sps:$4 sm:$0xff]  }
 0x1a9   : > { %7846 = vmatprep.subr.bf16.mxu1 %v9677_v44  ;;  %8254 = vmatprep.subr.bf16.mxu0 %v9680_v45  ;;  %v4380_v44 = vld [vmem:[%s12226_s0 + $0x110] sm:$0xff] }
 0x1aa   : > { %7872 = vmatprep.mubr.bf16.mxu1 %v8725_v46  ;;  %8280 = vmatprep.mubr.bf16.mxu0 %v8741_v47  ;;  %v4388_v45 = vld [vmem:[%s12226_s0 + $0x150] sm:$0xff]  ;;  %v8757_v37 = vcombine.high %v4380_v44, %v4380_v44 }
 0x1ab   : > { %v9765_v46 = vld [vmem:[%s11425_s15 + $0x314] ss:$8 sps:$4 sm:$0xff]   ;;  %v8773_v38 = vcombine.high %v4388_v45, %v4388_v45  ;;  %v9766_v47 = vld [vmem:[%s11425_s15 + $0xb10] ss:$8 sps:$4 sm:$0xff]  }
 0x1ac   : > { %7847 = vmatpush1.bf16.msra.mxu1 %v9675_v48  ;;  %8255 = vmatpush1.bf16.msra.mxu0 %v9678_v49  ;;  %v9771_v48 = vld [vmem:[%s11425_s15 + $0x324] ss:$8 sps:$4 sm:$0xff]  }
 0x1ad   : > { %7848 = vmatprep.subr.bf16.mxu1 %v9683_v50  ;;  %8256 = vmatprep.subr.bf16.mxu0 %v9686_v51  ;;  %v9774_v49 = vld [vmem:[%s11425_s15 + $0xb24] ss:$8 sps:$4 sm:$0xff]   ;;  %v9769_v50 = vld [vmem:[%s11425_s15 + $0x320] ss:$8 sps:$4 sm:$0xff]  }
 0x1ae   : > { %v9772_v51 = vld [vmem:[%s11425_s15 + $0xb20] ss:$8 sps:$4 sm:$0xff]  }
 0x1b0   : > { %7849 = vmatpush1.bf16.msra.mxu1 %v9681_v52  ;;  %8257 = vmatpush1.bf16.msra.mxu0 %v9684_v53  ;;  %v11714_v52 = vld [vmem:[%s12226_s0 + $0x18] sm:$0xff] }
 0x1b1   : > { %7850 = vmatprep.subr.bf16.mxu1 %v9689_v54  ;;  %8258 = vmatprep.subr.bf16.mxu0 %v9692_v55  ;;  %v11719_v53 = vld [vmem:[%s12226_s0 + $0x98] sm:$0xff]  ;;  %v8756_v54 = vcombine.low %v4380_v44, %v4380_v44  ;;  %v8772_v55 = vcombine.low %v4388_v45, %v4388_v45  ;;  %v9844_v44 = vld [vmem:[%s11425_s15 + $0x3e4] ss:$8 sps:$4 sm:$0xff]  }
 0x1b2   : > { %v9848_v45 = vld [vmem:[%s11425_s15 + $0xbe4] ss:$8 sps:$4 sm:$0xff]  }
 0x1b4   : > { %7851 = vmatpush1.bf16.msra.mxu1 %v9687_v56  ;;  %8259 = vmatpush1.bf16.msra.mxu0 %v9690_v57  ;;  %v11724_v56 = vld [vmem:[%s12226_s0 + $0x58] sm:$0xff] }
 0x1b5   : > { %7852 = vmatprep.subr.bf16.mxu1 %v9695_v58  ;;  %8260 = vmatprep.subr.bf16.mxu0 %v9698_v59  ;;  %v11729_v57 = vld [vmem:[%s12226_s0 + $0xd8] sm:$0xff] }
 0x1b6   : > { %v9777_v58 = vld [vmem:[%s11425_s15 + $0x334] ss:$8 sps:$4 sm:$0xff]  }
 0x1b7   : > { %v9780_v59 = vld [vmem:[%s11425_s15 + $0xb34] ss:$8 sps:$4 sm:$0xff]  }
 0x1b8   : > { %7853 = vmatpush1.bf16.msra.mxu1 %v9693_v60  ;;  %8261 = vmatpush1.bf16.msra.mxu0 %v9696_v61  ;;  %v8727_v60 = vcombine.high %v11714_v52, %v11719_v53  ;;  %v8743_v61 = vcombine.high %v11724_v56, %v11729_v57 }
 0x1b9   : > { %7854 = vmatprep.subr.bf16.mxu1 %v9701_v62  ;;  %8262 = vmatprep.subr.bf16.mxu0 %v9704_v63  ;;  %v9775_v62 = vld [vmem:[%s11425_s15 + $0x330] ss:$8 sps:$4 sm:$0xff]  }
 0x1ba   : > { %v9778_v63 = vld [vmem:[%s11425_s15 + $0xb30] ss:$8 sps:$4 sm:$0xff]  }
 0x1bc   : > { %7855 = vmatpush1.bf16.msra.mxu1 %v9699_v4  ;;  %8263 = vmatpush1.bf16.msra.mxu0 %v9702_v7  ;;  %v9783_v4 = vld [vmem:[%s11425_s15 + $0x344] ss:$8 sps:$4 sm:$0xff]  }
 0x1bd   : > { %7856 = vmatprep.subr.bf16.mxu1 %v9707_v8  ;;  %8264 = vmatprep.subr.bf16.mxu0 %v9710_v9  ;;  %v9786_v7 = vld [vmem:[%s11425_s15 + $0xb44] ss:$8 sps:$4 sm:$0xff]   ;;  %v9781_v8 = vld [vmem:[%s11425_s15 + $0x340] ss:$8 sps:$4 sm:$0xff]  }
 0x1be   : > { %v9784_v9 = vld [vmem:[%s11425_s15 + $0xb40] ss:$8 sps:$4 sm:$0xff]  }
 0x1c0   : > { %7857 = vmatpush1.bf16.msra.mxu1 %v9705_v10  ;;  %8265 = vmatpush1.bf16.msra.mxu0 %v9708_v11  ;;  %v9789_v10 = vld [vmem:[%s11425_s15 + $0x354] ss:$8 sps:$4 sm:$0xff]  }
 0x1c1   : > { %7858 = vmatprep.subr.bf16.mxu1 %v9713_v12  ;;  %8266 = vmatprep.subr.bf16.mxu0 %v9716_v13  ;;  %v9792_v11 = vld [vmem:[%s11425_s15 + $0xb54] ss:$8 sps:$4 sm:$0xff]   ;;  %v9787_v12 = vld [vmem:[%s11425_s15 + $0x350] ss:$8 sps:$4 sm:$0xff]  }
 0x1c2   : > { %v9790_v13 = vld [vmem:[%s11425_s15 + $0xb50] ss:$8 sps:$4 sm:$0xff]  }
 0x1c4   : > { %7859 = vmatpush1.bf16.msra.mxu1 %v9711_v14  ;;  %8267 = vmatpush1.bf16.msra.mxu0 %v9714_v15  ;;  %v9795_v14 = vld [vmem:[%s11425_s15 + $0x364] ss:$8 sps:$4 sm:$0xff]  }
 0x1c5   : > { %7860 = vmatprep.subr.bf16.mxu1 %v9719_v16  ;;  %8268 = vmatprep.subr.bf16.mxu0 %v9722_v17  ;;  %v9798_v15 = vld [vmem:[%s11425_s15 + $0xb64] ss:$8 sps:$4 sm:$0xff]   ;;  %v9793_v16 = vld [vmem:[%s11425_s15 + $0x360] ss:$8 sps:$4 sm:$0xff]  }
 0x1c6   : > { %v9796_v17 = vld [vmem:[%s11425_s15 + $0xb60] ss:$8 sps:$4 sm:$0xff]  }
 0x1c8   : > { %7861 = vmatpush1.bf16.msra.mxu1 %v9717_v18  ;;  %8269 = vmatpush1.bf16.msra.mxu0 %v9720_v19  ;;  %v9801_v18 = vld [vmem:[%s11425_s15 + $0x374] ss:$8 sps:$4 sm:$0xff]  }
 0x1c9   : > { %7862 = vmatprep.subr.bf16.mxu1 %v9725_v20  ;;  %8270 = vmatprep.subr.bf16.mxu0 %v9728_v21  ;;  %v9804_v19 = vld [vmem:[%s11425_s15 + $0xb74] ss:$8 sps:$4 sm:$0xff]   ;;  %v9799_v20 = vld [vmem:[%s11425_s15 + $0x370] ss:$8 sps:$4 sm:$0xff]  }
 0x1ca   : > { %v9802_v21 = vld [vmem:[%s11425_s15 + $0xb70] ss:$8 sps:$4 sm:$0xff]  }
 0x1cc   : > { %7863 = vmatpush1.bf16.msra.mxu1 %v9723_v22  ;;  %8271 = vmatpush1.bf16.msra.mxu0 %v9726_v23  ;;  %v9807_v22 = vld [vmem:[%s11425_s15 + $0x384] ss:$8 sps:$4 sm:$0xff]  }
 0x1cd   : > { %7864 = vmatprep.subr.bf16.mxu1 %v9731_v24  ;;  %8272 = vmatprep.subr.bf16.mxu0 %v9734_v25  ;;  %v9810_v23 = vld [vmem:[%s11425_s15 + $0xb84] ss:$8 sps:$4 sm:$0xff]   ;;  %v9805_v24 = vld [vmem:[%s11425_s15 + $0x380] ss:$8 sps:$4 sm:$0xff]  }
 0x1ce   : > { %v9808_v25 = vld [vmem:[%s11425_s15 + $0xb80] ss:$8 sps:$4 sm:$0xff]  }
 0x1d0   : > { %7865 = vmatpush1.bf16.msra.mxu1 %v9729_v26  ;;  %8273 = vmatpush1.bf16.msra.mxu0 %v9732_v27  ;;  %v9813_v26 = vld [vmem:[%s11425_s15 + $0x394] ss:$8 sps:$4 sm:$0xff]  }
 0x1d1   : > { %7866 = vmatprep.subr.bf16.mxu1 %v9737_v0  ;;  %8274 = vmatprep.subr.bf16.mxu0 %v9740_v1  ;;  %v9816_v27 = vld [vmem:[%s11425_s15 + $0xb94] ss:$8 sps:$4 sm:$0xff]   ;;  %v9811_v0 = vld [vmem:[%s11425_s15 + $0x390] ss:$8 sps:$4 sm:$0xff]  }
 0x1d2   : > { %v9814_v1 = vld [vmem:[%s11425_s15 + $0xb90] ss:$8 sps:$4 sm:$0xff]  }
 0x1d4   : > { %7867 = vmatpush1.bf16.msra.mxu1 %v9735_v3  ;;  %8275 = vmatpush1.bf16.msra.mxu0 %v9738_v2  ;;  %v9819_v3 = vld [vmem:[%s11425_s15 + $0x3a4] ss:$8 sps:$4 sm:$0xff]  }
 0x1d5   : > { %7868 = vmatprep.subr.bf16.mxu1 %v9744_v5  ;;  %8276 = vmatprep.subr.bf16.mxu0 %v9748_v6  ;;  %v9822_v2 = vld [vmem:[%s11425_s15 + $0xba4] ss:$8 sps:$4 sm:$0xff]   ;;  %v9817_v5 = vld [vmem:[%s11425_s15 + $0x3a0] ss:$8 sps:$4 sm:$0xff]  }
 0x1d6   : > { %v9820_v6 = vld [vmem:[%s11425_s15 + $0xba0] ss:$8 sps:$4 sm:$0xff]  }
 0x1d8   : > { %7869 = vmatpush1.bf16.msra.mxu1 %v9742_v28  ;;  %8277 = vmatpush1.bf16.msra.mxu0 %v9746_v29  ;;  %v9825_v28 = vld [vmem:[%s11425_s15 + $0x3b4] ss:$8 sps:$4 sm:$0xff]  }
 0x1d9   : > { %7870 = vmatprep.subr.bf16.mxu1 %v9753_v30  ;;  %8278 = vmatprep.subr.bf16.mxu0 %v9756_v31  ;;  %v9828_v29 = vld [vmem:[%s11425_s15 + $0xbb4] ss:$8 sps:$4 sm:$0xff]   ;;  %v9823_v30 = vld [vmem:[%s11425_s15 + $0x3b0] ss:$8 sps:$4 sm:$0xff]  }
 0x1da   : > { %v9826_v31 = vld [vmem:[%s11425_s15 + $0xbb0] ss:$8 sps:$4 sm:$0xff]  }
 0x1dc   : > { %7871 = vmatpush1.bf16.msra.mxu1 %v9751_v32  ;;  %8279 = vmatpush1.bf16.msra.mxu0 %v9754_v33  ;;  %v9831_v32 = vld [vmem:[%s11425_s15 + $0x3c4] ss:$8 sps:$4 sm:$0xff]  }
 0x1dd   : > { %7891 = vmatprep.subr.bf16.mxu1 %v9759_v34  ;;  %8299 = vmatprep.subr.bf16.mxu0 %v9762_v35  ;;  %v9834_v33 = vld [vmem:[%s11425_s15 + $0xbc4] ss:$8 sps:$4 sm:$0xff]   ;;  %v9829_v34 = vld [vmem:[%s11425_s15 + $0x3c0] ss:$8 sps:$4 sm:$0xff]  }
 0x1de   : > { %v9832_v35 = vld [vmem:[%s11425_s15 + $0xbc0] ss:$8 sps:$4 sm:$0xff]  }
 0x1df   : > { %7873 = vmatmul.mubr.bf16.vlgmr.msra.gmra.mrb[0].mxu1 %v8724_v42  ;;  %8281 = vmatmul.mubr.bf16.vlgmr.msra.gmra.mrb[0].mxu0 %v8740_v43  ;;  %v9835_v42 = vld [vmem:[%s11425_s15 + $0x3d0] ss:$8 sps:$4 sm:$0xff]  }
 0x1e0   : > { %7892 = vmatpush1.bf16.msra.mxu1 %v9757_v39  ;;  %8300 = vmatpush1.bf16.msra.mxu0 %v9760_v40  ;;  %v9837_v39 = vld [vmem:[%s11425_s15 + $0x3d4] ss:$8 sps:$4 sm:$0xff]   ;;  %v9838_v43 = vld [vmem:[%s11425_s15 + $0xbd0] ss:$8 sps:$4 sm:$0xff]  }
 0x1e1   : > { %7893 = vmatprep.subr.bf16.mxu1 %v9765_v46  ;;  %8301 = vmatprep.subr.bf16.mxu0 %v9768_v36  ;;  %v9840_v40 = vld [vmem:[%s11425_s15 + $0xbd4] ss:$8 sps:$4 sm:$0xff]   ;;  %v9842_v46 = vld [vmem:[%s11425_s15 + $0x3e0] ss:$8 sps:$4 sm:$0xff]  }
 0x1e2   : > { %7882 = vmatprep.mubr.bf16.mxu1 %v8757_v37  ;;  %8290 = vmatprep.mubr.bf16.mxu0 %v8773_v38  ;;  %v9846_v36 = vld [vmem:[%s11425_s15 + $0xbe0] ss:$8 sps:$4 sm:$0xff]   ;;  %v9853_v37 = vld [vmem:[%s11425_s15 + $0x3f4] ss:$8 sps:$4 sm:$0xff]  }
 0x1e3   : > { %v9856_v38 = vld [vmem:[%s11425_s15 + $0xbf4] ss:$8 sps:$4 sm:$0xff]  }
 0x1e4   : > { %7894 = vmatpush1.bf16.msra.mxu1 %v9763_v41  ;;  %8302 = vmatpush1.bf16.msra.mxu0 %v9766_v47  ;;  %v9851_v41 = vld [vmem:[%s11425_s15 + $0x3f0] ss:$8 sps:$4 sm:$0xff]  }
 0x1e5   : > { %7895 = vmatprep.subr.bf16.mxu1 %v9771_v48  ;;  %8303 = vmatprep.subr.bf16.mxu0 %v9774_v49  ;;  %v9854_v47 = vld [vmem:[%s11425_s15 + $0xbf0] ss:$8 sps:$4 sm:$0xff]   ;;  %v9859_v48 = vld [vmem:[%s11425_s15 + $0x404] ss:$8 sps:$4 sm:$0xff]  }
 0x1e6   : > { %v9862_v49 = vld [vmem:[%s11425_s15 + $0xc04] ss:$8 sps:$4 sm:$0xff]  }
 0x1e7   : > { %7883 = vmatmul.mubr.bf16.gmra.mrb[4].mxu1 %v8756_v54  ;;  %8291 = vmatmul.mubr.bf16.gmra.mrb[4].mxu0 %v8772_v55  ;;  %v8742_v54 = vcombine.low %v11724_v56, %v11729_v57  ;;  %v4389_v55 = vld [vmem:[%s12226_s0 + $0x158] sm:$0xff]  ;;  %v9871_v57 = vld [vmem:[%s11425_s15 + $0x424] ss:$8 sps:$4 sm:$0xff]  }
 0x1e8   : > { %7896 = vmatpush1.bf16.msra.mxu1 %v9769_v50  ;;  %8304 = vmatpush1.bf16.msra.mxu0 %v9772_v51  ;;  %v4381_v50 = vld [vmem:[%s12226_s0 + $0x118] sm:$0xff]  ;;  %v8726_v51 = vcombine.low %v11714_v52, %v11719_v53  ;;  %v8775_v52 = vcombine.high %v4389_v55, %v4389_v55 }
 0x1e9   : > { %7897 = vmatprep.subr.bf16.mxu1 %v9777_v58  ;;  %8305 = vmatprep.subr.bf16.mxu0 %v9780_v59  ;;  %v9857_v58 = vld [vmem:[%s11425_s15 + $0x400] ss:$8 sps:$4 sm:$0xff]   ;;  %v9863_v53 = vld [vmem:[%s11425_s15 + $0x410] ss:$8 sps:$4 sm:$0xff]  }
 0x1ea   : > { %7923 = vmatprep.mubr.bf16.mxu1 %v8727_v60  ;;  %8331 = vmatprep.mubr.bf16.mxu0 %v8743_v61  ;;  %v9860_v59 = vld [vmem:[%s11425_s15 + $0xc00] ss:$8 sps:$4 sm:$0xff]   ;;  %v9865_v60 = vld [vmem:[%s11425_s15 + $0x414] ss:$8 sps:$4 sm:$0xff]   ;;  %v9866_v56 = vld [vmem:[%s11425_s15 + $0xc10] ss:$8 sps:$4 sm:$0xff]  }
 0x1eb   : > { %v9868_v61 = vld [vmem:[%s11425_s15 + $0xc14] ss:$8 sps:$4 sm:$0xff]  }
 0x1ec   : > { %7898 = vmatpush1.bf16.msra.mxu1 %v9775_v62  ;;  %8306 = vmatpush1.bf16.msra.mxu0 %v9778_v63  ;;  %v8759_v62 = vcombine.high %v4381_v50, %v4381_v50  ;;  %v9874_v63 = vld [vmem:[%s11425_s15 + $0xc24] ss:$8 sps:$4 sm:$0xff]  }
 0x1ed   : > { %7899 = vmatprep.subr.bf16.mxu1 %v9783_v4  ;;  %8307 = vmatprep.subr.bf16.mxu0 %v9786_v7  ;;  %v11810_v4 = vld [vmem:[%s12226_s0 + $0x20] sm:$0xff] }
 0x1ee   : > { %v11815_v7 = vld [vmem:[%s12226_s0 + $0xa0] sm:$0xff] }
 0x1f0   : > { %7900 = vmatpush1.bf16.msra.mxu1 %v9781_v8  ;;  %8308 = vmatpush1.bf16.msra.mxu0 %v9784_v9  ;;  %v8758_v8 = vcombine.low %v4381_v50, %v4381_v50  ;;  %v8774_v9 = vcombine.low %v4389_v55, %v4389_v55  ;;  %v9937_v50 = vld [vmem:[%s11425_s15 + $0x4d4] ss:$8 sps:$4 sm:$0xff]   ;;  %v9938_v55 = vld [vmem:[%s11425_s15 + $0xcd0] ss:$8 sps:$4 sm:$0xff]  }
 0x1f1   : > { %7901 = vmatprep.subr.bf16.mxu1 %v9789_v10  ;;  %8309 = vmatprep.subr.bf16.mxu0 %v9792_v11  ;;  %v11820_v10 = vld [vmem:[%s12226_s0 + $0x60] sm:$0xff] }
 0x1f2   : > { %v11825_v11 = vld [vmem:[%s12226_s0 + $0xe0] sm:$0xff] }
 0x1f4   : > { %7902 = vmatpush1.bf16.msra.mxu1 %v9787_v12  ;;  %8310 = vmatpush1.bf16.msra.mxu0 %v9790_v13  ;;  %v9869_v12 = vld [vmem:[%s11425_s15 + $0x420] ss:$8 sps:$4 sm:$0xff]  }
 0x1f5   : > { %7903 = vmatprep.subr.bf16.mxu1 %v9795_v14  ;;  %8311 = vmatprep.subr.bf16.mxu0 %v9798_v15  ;;  %v9872_v13 = vld [vmem:[%s11425_s15 + $0xc20] ss:$8 sps:$4 sm:$0xff]   ;;  %v9877_v14 = vld [vmem:[%s11425_s15 + $0x434] ss:$8 sps:$4 sm:$0xff]  }
 0x1f6   : > { %v9880_v15 = vld [vmem:[%s11425_s15 + $0xc34] ss:$8 sps:$4 sm:$0xff]  }
 0x1f8   : > { %7904 = vmatpush1.bf16.msra.mxu1 %v9793_v16  ;;  %8312 = vmatpush1.bf16.msra.mxu0 %v9796_v17  ;;  %v8729_v16 = vcombine.high %v11810_v4, %v11815_v7  ;;  %v8745_v17 = vcombine.high %v11820_v10, %v11825_v11 }
 0x1f9   : > { %7905 = vmatprep.subr.bf16.mxu1 %v9801_v18  ;;  %8313 = vmatprep.subr.bf16.mxu0 %v9804_v19  ;;  %v9875_v18 = vld [vmem:[%s11425_s15 + $0x430] ss:$8 sps:$4 sm:$0xff]  }
 0x1fa   : > { %v9878_v19 = vld [vmem:[%s11425_s15 + $0xc30] ss:$8 sps:$4 sm:$0xff]  }
 0x1fc   : > { %7906 = vmatpush1.bf16.msra.mxu1 %v9799_v20  ;;  %8314 = vmatpush1.bf16.msra.mxu0 %v9802_v21  ;;  %v9883_v20 = vld [vmem:[%s11425_s15 + $0x444] ss:$8 sps:$4 sm:$0xff]  }
 0x1fd   : > { %7907 = vmatprep.subr.bf16.mxu1 %v9807_v22  ;;  %8315 = vmatprep.subr.bf16.mxu0 %v9810_v23  ;;  %v9886_v21 = vld [vmem:[%s11425_s15 + $0xc44] ss:$8 sps:$4 sm:$0xff]   ;;  %v9881_v22 = vld [vmem:[%s11425_s15 + $0x440] ss:$8 sps:$4 sm:$0xff]  }
 0x1fe   : > { %v9884_v23 = vld [vmem:[%s11425_s15 + $0xc40] ss:$8 sps:$4 sm:$0xff]  }
 0x200   : > { %7908 = vmatpush1.bf16.msra.mxu1 %v9805_v24  ;;  %8316 = vmatpush1.bf16.msra.mxu0 %v9808_v25  ;;  %v9889_v24 = vld [vmem:[%s11425_s15 + $0x454] ss:$8 sps:$4 sm:$0xff]  }
 0x201   : > { %7909 = vmatprep.subr.bf16.mxu1 %v9813_v26  ;;  %8317 = vmatprep.subr.bf16.mxu0 %v9816_v27  ;;  %v9892_v25 = vld [vmem:[%s11425_s15 + $0xc54] ss:$8 sps:$4 sm:$0xff]   ;;  %v9887_v26 = vld [vmem:[%s11425_s15 + $0x450] ss:$8 sps:$4 sm:$0xff]  }
 0x202   : > { %v9890_v27 = vld [vmem:[%s11425_s15 + $0xc50] ss:$8 sps:$4 sm:$0xff]  }
 0x204   : > { %7910 = vmatpush1.bf16.msra.mxu1 %v9811_v0  ;;  %8318 = vmatpush1.bf16.msra.mxu0 %v9814_v1  ;;  %v9895_v0 = vld [vmem:[%s11425_s15 + $0x464] ss:$8 sps:$4 sm:$0xff]  }
 0x205   : > { %7911 = vmatprep.subr.bf16.mxu1 %v9819_v3  ;;  %8319 = vmatprep.subr.bf16.mxu0 %v9822_v2  ;;  %v9898_v1 = vld [vmem:[%s11425_s15 + $0xc64] ss:$8 sps:$4 sm:$0xff]   ;;  %v9893_v3 = vld [vmem:[%s11425_s15 + $0x460] ss:$8 sps:$4 sm:$0xff]  }
 0x206   : > { %v9896_v2 = vld [vmem:[%s11425_s15 + $0xc60] ss:$8 sps:$4 sm:$0xff]  }
 0x208   : > { %7912 = vmatpush1.bf16.msra.mxu1 %v9817_v5  ;;  %8320 = vmatpush1.bf16.msra.mxu0 %v9820_v6  ;;  %v9901_v5 = vld [vmem:[%s11425_s15 + $0x474] ss:$8 sps:$4 sm:$0xff]  }
 0x209   : > { %7913 = vmatprep.subr.bf16.mxu1 %v9825_v28  ;;  %8321 = vmatprep.subr.bf16.mxu0 %v9828_v29  ;;  %v9904_v6 = vld [vmem:[%s11425_s15 + $0xc74] ss:$8 sps:$4 sm:$0xff]   ;;  %v9899_v28 = vld [vmem:[%s11425_s15 + $0x470] ss:$8 sps:$4 sm:$0xff]  }
 0x20a   : > { %v9902_v29 = vld [vmem:[%s11425_s15 + $0xc70] ss:$8 sps:$4 sm:$0xff]  }
 0x20c   : > { %7914 = vmatpush1.bf16.msra.mxu1 %v9823_v30  ;;  %8322 = vmatpush1.bf16.msra.mxu0 %v9826_v31  ;;  %v9907_v30 = vld [vmem:[%s11425_s15 + $0x484] ss:$8 sps:$4 sm:$0xff]  }
 0x20d   : > { %7915 = vmatprep.subr.bf16.mxu1 %v9831_v32  ;;  %8323 = vmatprep.subr.bf16.mxu0 %v9834_v33  ;;  %v9910_v31 = vld [vmem:[%s11425_s15 + $0xc84] ss:$8 sps:$4 sm:$0xff]   ;;  %v9905_v32 = vld [vmem:[%s11425_s15 + $0x480] ss:$8 sps:$4 sm:$0xff]  }
 0x20e   : > { %v9908_v33 = vld [vmem:[%s11425_s15 + $0xc80] ss:$8 sps:$4 sm:$0xff]  }
 0x210   : > { %7916 = vmatpush1.bf16.msra.mxu1 %v9829_v34  ;;  %8324 = vmatpush1.bf16.msra.mxu0 %v9832_v35  ;;  %v9913_v34 = vld [vmem:[%s11425_s15 + $0x494] ss:$8 sps:$4 sm:$0xff]  }
 0x211   : > { %7917 = vmatprep.subr.bf16.mxu1 %v9837_v39  ;;  %8325 = vmatprep.subr.bf16.mxu0 %v9840_v40  ;;  %v9916_v35 = vld [vmem:[%s11425_s15 + $0xc94] ss:$8 sps:$4 sm:$0xff]   ;;  %v9911_v39 = vld [vmem:[%s11425_s15 + $0x490] ss:$8 sps:$4 sm:$0xff]  }
 0x212   : > { %v9914_v40 = vld [vmem:[%s11425_s15 + $0xc90] ss:$8 sps:$4 sm:$0xff]  }
 0x214   : > { %7918 = vmatpush1.bf16.msra.mxu1 %v9835_v42  ;;  %8326 = vmatpush1.bf16.msra.mxu0 %v9838_v43  ;;  %v9919_v42 = vld [vmem:[%s11425_s15 + $0x4a4] ss:$8 sps:$4 sm:$0xff]  }
 0x215   : > { %7919 = vmatprep.subr.bf16.mxu1 %v9844_v44  ;;  %8327 = vmatprep.subr.bf16.mxu0 %v9848_v45  ;;  %v9922_v43 = vld [vmem:[%s11425_s15 + $0xca4] ss:$8 sps:$4 sm:$0xff]   ;;  %v9917_v44 = vld [vmem:[%s11425_s15 + $0x4a0] ss:$8 sps:$4 sm:$0xff]  }
 0x216   : > { %v9920_v45 = vld [vmem:[%s11425_s15 + $0xca0] ss:$8 sps:$4 sm:$0xff]  }
 0x218   : > { %7920 = vmatpush1.bf16.msra.mxu1 %v9842_v46  ;;  %8328 = vmatpush1.bf16.msra.mxu0 %v9846_v36  ;;  %v9925_v46 = vld [vmem:[%s11425_s15 + $0x4b4] ss:$8 sps:$4 sm:$0xff]  }
 0x219   : > { %7921 = vmatprep.subr.bf16.mxu1 %v9853_v37  ;;  %8329 = vmatprep.subr.bf16.mxu0 %v9856_v38  ;;  %v9928_v36 = vld [vmem:[%s11425_s15 + $0xcb4] ss:$8 sps:$4 sm:$0xff]   ;;  %v9923_v37 = vld [vmem:[%s11425_s15 + $0x4b0] ss:$8 sps:$4 sm:$0xff]  }
 0x21a   : > { %v9926_v38 = vld [vmem:[%s11425_s15 + $0xcb0] ss:$8 sps:$4 sm:$0xff]  }
 0x21c   : > { %7922 = vmatpush1.bf16.msra.mxu1 %v9851_v41  ;;  %8330 = vmatpush1.bf16.msra.mxu0 %v9854_v47  ;;  %v9931_v41 = vld [vmem:[%s11425_s15 + $0x4c4] ss:$8 sps:$4 sm:$0xff]  }
 0x21d   : > { %7942 = vmatprep.subr.bf16.mxu1 %v9859_v48  ;;  %8350 = vmatprep.subr.bf16.mxu0 %v9862_v49  ;;  %v9934_v47 = vld [vmem:[%s11425_s15 + $0xcc4] ss:$8 sps:$4 sm:$0xff]   ;;  %v9929_v48 = vld [vmem:[%s11425_s15 + $0x4c0] ss:$8 sps:$4 sm:$0xff]  }
 0x21e   : > { %v9932_v49 = vld [vmem:[%s11425_s15 + $0xcc0] ss:$8 sps:$4 sm:$0xff]  }
 0x21f   : > { %7924 = vmatmul.mubr.bf16.vlgmr.msra.gmra.mrb[0].mxu1 %v8726_v51  ;;  %8332 = vmatmul.mubr.bf16.vlgmr.msra.gmra.mrb[0].mxu0 %v8742_v54  ;;  %v9940_v51 = vld [vmem:[%s11425_s15 + $0xcd4] ss:$8 sps:$4 sm:$0xff]   ;;  %v9935_v54 = vld [vmem:[%s11425_s15 + $0x4d0] ss:$8 sps:$4 sm:$0xff]  }
 0x220   : > { %7943 = vmatpush1.bf16.msra.mxu1 %v9857_v58  ;;  %8351 = vmatpush1.bf16.msra.mxu0 %v9860_v59  ;;  %v9944_v58 = vld [vmem:[%s11425_s15 + $0x4e4] ss:$8 sps:$4 sm:$0xff]  }
 0x221   : > { %7944 = vmatprep.subr.bf16.mxu1 %v9865_v60  ;;  %8352 = vmatprep.subr.bf16.mxu0 %v9868_v61  ;;  %v9948_v59 = vld [vmem:[%s11425_s15 + $0xce4] ss:$8 sps:$4 sm:$0xff]   ;;  %v9942_v60 = vld [vmem:[%s11425_s15 + $0x4e0] ss:$8 sps:$4 sm:$0xff]  }
 0x222   : > { %7933 = vmatprep.mubr.bf16.mxu1 %v8759_v62  ;;  %8341 = vmatprep.mubr.bf16.mxu0 %v8775_v52  ;;  %v9946_v61 = vld [vmem:[%s11425_s15 + $0xce0] ss:$8 sps:$4 sm:$0xff]   ;;  %v9953_v62 = vld [vmem:[%s11425_s15 + $0x4f4] ss:$8 sps:$4 sm:$0xff]  }
 0x223   : > { %v9956_v52 = vld [vmem:[%s11425_s15 + $0xcf4] ss:$8 sps:$4 sm:$0xff]  }
 0x224   : > { %7945 = vmatpush1.bf16.msra.mxu1 %v9863_v53  ;;  %8353 = vmatpush1.bf16.msra.mxu0 %v9866_v56  ;;  %v9951_v53 = vld [vmem:[%s11425_s15 + $0x4f0] ss:$8 sps:$4 sm:$0xff]  }
 0x225   : > { %7946 = vmatprep.subr.bf16.mxu1 %v9871_v57  ;;  %8354 = vmatprep.subr.bf16.mxu0 %v9874_v63  ;;  %v9954_v56 = vld [vmem:[%s11425_s15 + $0xcf0] ss:$8 sps:$4 sm:$0xff]   ;;  %v9959_v57 = vld [vmem:[%s11425_s15 + $0x504] ss:$8 sps:$4 sm:$0xff]  }
 0x226   : > { %v9962_v63 = vld [vmem:[%s11425_s15 + $0xd04] ss:$8 sps:$4 sm:$0xff]  }
 0x227   : > { %7934 = vmatmul.mubr.bf16.gmra.mrb[4].mxu1 %v8758_v8  ;;  %8342 = vmatmul.mubr.bf16.gmra.mrb[4].mxu0 %v8774_v9  ;;  %v4382_v8 = vld [vmem:[%s12226_s0 + $0x120] sm:$0xff] }
 0x228   : > { %7947 = vmatpush1.bf16.msra.mxu1 %v9869_v12  ;;  %8355 = vmatpush1.bf16.msra.mxu0 %v9872_v13  ;;  %v4390_v9 = vld [vmem:[%s12226_s0 + $0x160] sm:$0xff]  ;;  %v8728_v12 = vcombine.low %v11810_v4, %v11815_v7  ;;  %v8744_v13 = vcombine.low %v11820_v10, %v11825_v11  ;;  %v11908_v10 = vld [vmem:[%s12226_s0 + $0x28] sm:$0xff] }
 0x229   : > { %7948 = vmatprep.subr.bf16.mxu1 %v9877_v14  ;;  %8356 = vmatprep.subr.bf16.mxu0 %v9880_v15  ;;  %v9957_v14 = vld [vmem:[%s11425_s15 + $0x500] ss:$8 sps:$4 sm:$0xff]   ;;  %v9971_v4 = vld [vmem:[%s11425_s15 + $0x524] ss:$8 sps:$4 sm:$0xff]  }
 0x22a   : > { %7974 = vmatprep.mubr.bf16.mxu1 %v8729_v16  ;;  %8382 = vmatprep.mubr.bf16.mxu0 %v8745_v17  ;;  %v9960_v15 = vld [vmem:[%s11425_s15 + $0xd00] ss:$8 sps:$4 sm:$0xff]   ;;  %v9965_v16 = vld [vmem:[%s11425_s15 + $0x514] ss:$8 sps:$4 sm:$0xff]   ;;  %v9974_v7 = vld [vmem:[%s11425_s15 + $0xd24] ss:$8 sps:$4 sm:$0xff]  }
 0x22b   : > { %v9968_v17 = vld [vmem:[%s11425_s15 + $0xd14] ss:$8 sps:$4 sm:$0xff]   ;;  %v11913_v11 = vld [vmem:[%s12226_s0 + $0xa8] sm:$0xff] }
 0x22c   : > { %7949 = vmatpush1.bf16.msra.mxu1 %v9875_v18  ;;  %8357 = vmatpush1.bf16.msra.mxu0 %v9878_v19  ;;  %v9963_v18 = vld [vmem:[%s11425_s15 + $0x510] ss:$8 sps:$4 sm:$0xff]  }
 0x22d   : > { %7950 = vmatprep.subr.bf16.mxu1 %v9883_v20  ;;  %8358 = vmatprep.subr.bf16.mxu0 %v9886_v21  ;;  %v9966_v19 = vld [vmem:[%s11425_s15 + $0xd10] ss:$8 sps:$4 sm:$0xff]   ;;  %v8761_v20 = vcombine.high %v4382_v8, %v4382_v8  ;;  %v8777_v21 = vcombine.high %v4390_v9, %v4390_v9 }
 0x230   : > { %7951 = vmatpush1.bf16.msra.mxu1 %v9881_v22  ;;  %8359 = vmatpush1.bf16.msra.mxu0 %v9884_v23  ;;  %v11918_v22 = vld [vmem:[%s12226_s0 + $0x68] sm:$0xff] }
 0x231   : > { %7952 = vmatprep.subr.bf16.mxu1 %v9889_v24  ;;  %8360 = vmatprep.subr.bf16.mxu0 %v9892_v25  ;;  %v11923_v23 = vld [vmem:[%s12226_s0 + $0xe8] sm:$0xff]  ;;  %v8760_v24 = vcombine.low %v4382_v8, %v4382_v8  ;;  %v8776_v25 = vcombine.low %v4390_v9, %v4390_v9  ;;  %v10037_v8 = vld [vmem:[%s11425_s15 + $0x5d4] ss:$8 sps:$4 sm:$0xff]  }
 0x232   : > { %v10040_v9 = vld [vmem:[%s11425_s15 + $0xdd4] ss:$8 sps:$4 sm:$0xff]  }
 0x234   : > { %7953 = vmatpush1.bf16.msra.mxu1 %v9887_v26  ;;  %8361 = vmatpush1.bf16.msra.mxu0 %v9890_v27  ;;  %v9969_v26 = vld [vmem:[%s11425_s15 + $0x520] ss:$8 sps:$4 sm:$0xff]  }
 0x235   : > { %7954 = vmatprep.subr.bf16.mxu1 %v9895_v0  ;;  %8362 = vmatprep.subr.bf16.mxu0 %v9898_v1  ;;  %v9972_v27 = vld [vmem:[%s11425_s15 + $0xd20] ss:$8 sps:$4 sm:$0xff]   ;;  %v9977_v0 = vld [vmem:[%s11425_s15 + $0x534] ss:$8 sps:$4 sm:$0xff]  }
 0x236   : > { %v9980_v1 = vld [vmem:[%s11425_s15 + $0xd34] ss:$8 sps:$4 sm:$0xff]  }
 0x238   : > { %7955 = vmatpush1.bf16.msra.mxu1 %v9893_v3  ;;  %8363 = vmatpush1.bf16.msra.mxu0 %v9896_v2  ;;  %v8731_v3 = vcombine.high %v11908_v10, %v11913_v11  ;;  %v8747_v2 = vcombine.high %v11918_v22, %v11923_v23 }
 0x239   : > { %7956 = vmatprep.subr.bf16.mxu1 %v9901_v5  ;;  %8364 = vmatprep.subr.bf16.mxu0 %v9904_v6  ;;  %v9975_v5 = vld [vmem:[%s11425_s15 + $0x530] ss:$8 sps:$4 sm:$0xff]  }
 0x23a   : > { %v9978_v6 = vld [vmem:[%s11425_s15 + $0xd30] ss:$8 sps:$4 sm:$0xff]  }
 0x23c   : > { %7957 = vmatpush1.bf16.msra.mxu1 %v9899_v28  ;;  %8365 = vmatpush1.bf16.msra.mxu0 %v9902_v29  ;;  %v9983_v28 = vld [vmem:[%s11425_s15 + $0x544] ss:$8 sps:$4 sm:$0xff]  }
 0x23d   : > { %7958 = vmatprep.subr.bf16.mxu1 %v9907_v30  ;;  %8366 = vmatprep.subr.bf16.mxu0 %v9910_v31  ;;  %v9986_v29 = vld [vmem:[%s11425_s15 + $0xd44] ss:$8 sps:$4 sm:$0xff]   ;;  %v9981_v30 = vld [vmem:[%s11425_s15 + $0x540] ss:$8 sps:$4 sm:$0xff]  }
 0x23e   : > { %v9984_v31 = vld [vmem:[%s11425_s15 + $0xd40] ss:$8 sps:$4 sm:$0xff]  }
 0x240   : > { %7959 = vmatpush1.bf16.msra.mxu1 %v9905_v32  ;;  %8367 = vmatpush1.bf16.msra.mxu0 %v9908_v33  ;;  %v9989_v32 = vld [vmem:[%s11425_s15 + $0x554] ss:$8 sps:$4 sm:$0xff]  }
 0x241   : > { %7960 = vmatprep.subr.bf16.mxu1 %v9913_v34  ;;  %8368 = vmatprep.subr.bf16.mxu0 %v9916_v35  ;;  %v9992_v33 = vld [vmem:[%s11425_s15 + $0xd54] ss:$8 sps:$4 sm:$0xff]   ;;  %v9987_v34 = vld [vmem:[%s11425_s15 + $0x550] ss:$8 sps:$4 sm:$0xff]  }
 0x242   : > { %v9990_v35 = vld [vmem:[%s11425_s15 + $0xd50] ss:$8 sps:$4 sm:$0xff]  }
 0x244   : > { %7961 = vmatpush1.bf16.msra.mxu1 %v9911_v39  ;;  %8369 = vmatpush1.bf16.msra.mxu0 %v9914_v40  ;;  %v9995_v39 = vld [vmem:[%s11425_s15 + $0x564] ss:$8 sps:$4 sm:$0xff]  }
 0x245   : > { %7962 = vmatprep.subr.bf16.mxu1 %v9919_v42  ;;  %8370 = vmatprep.subr.bf16.mxu0 %v9922_v43  ;;  %v9998_v40 = vld [vmem:[%s11425_s15 + $0xd64] ss:$8 sps:$4 sm:$0xff]   ;;  %v9993_v42 = vld [vmem:[%s11425_s15 + $0x560] ss:$8 sps:$4 sm:$0xff]  }
 0x246   : > { %v9996_v43 = vld [vmem:[%s11425_s15 + $0xd60] ss:$8 sps:$4 sm:$0xff]  }
 0x248   : > { %7963 = vmatpush1.bf16.msra.mxu1 %v9917_v44  ;;  %8371 = vmatpush1.bf16.msra.mxu0 %v9920_v45  ;;  %v10001_v44 = vld [vmem:[%s11425_s15 + $0x574] ss:$8 sps:$4 sm:$0xff]  }
 0x249   : > { %7964 = vmatprep.subr.bf16.mxu1 %v9925_v46  ;;  %8372 = vmatprep.subr.bf16.mxu0 %v9928_v36  ;;  %v10004_v45 = vld [vmem:[%s11425_s15 + $0xd74] ss:$8 sps:$4 sm:$0xff]   ;;  %v9999_v46 = vld [vmem:[%s11425_s15 + $0x570] ss:$8 sps:$4 sm:$0xff]  }
 0x24a   : > { %v10002_v36 = vld [vmem:[%s11425_s15 + $0xd70] ss:$8 sps:$4 sm:$0xff]  }
 0x24c   : > { %7965 = vmatpush1.bf16.msra.mxu1 %v9923_v37  ;;  %8373 = vmatpush1.bf16.msra.mxu0 %v9926_v38  ;;  %v10007_v37 = vld [vmem:[%s11425_s15 + $0x584] ss:$8 sps:$4 sm:$0xff]  }
 0x24d   : > { %7966 = vmatprep.subr.bf16.mxu1 %v9931_v41  ;;  %8374 = vmatprep.subr.bf16.mxu0 %v9934_v47  ;;  %v10010_v38 = vld [vmem:[%s11425_s15 + $0xd84] ss:$8 sps:$4 sm:$0xff]   ;;  %v10005_v41 = vld [vmem:[%s11425_s15 + $0x580] ss:$8 sps:$4 sm:$0xff]  }
 0x24e   : > { %v10008_v47 = vld [vmem:[%s11425_s15 + $0xd80] ss:$8 sps:$4 sm:$0xff]  }
 0x250   : > { %7967 = vmatpush1.bf16.msra.mxu1 %v9929_v48  ;;  %8375 = vmatpush1.bf16.msra.mxu0 %v9932_v49  ;;  %v10013_v48 = vld [vmem:[%s11425_s15 + $0x594] ss:$8 sps:$4 sm:$0xff]  }
 0x251   : > { %7968 = vmatprep.subr.bf16.mxu1 %v9937_v50  ;;  %8376 = vmatprep.subr.bf16.mxu0 %v9940_v51  ;;  %v10016_v49 = vld [vmem:[%s11425_s15 + $0xd94] ss:$8 sps:$4 sm:$0xff]   ;;  %v10011_v50 = vld [vmem:[%s11425_s15 + $0x590] ss:$8 sps:$4 sm:$0xff]  }
 0x252   : > { %v10014_v51 = vld [vmem:[%s11425_s15 + $0xd90] ss:$8 sps:$4 sm:$0xff]  }
 0x254   : > { %7969 = vmatpush1.bf16.msra.mxu1 %v9935_v54  ;;  %8377 = vmatpush1.bf16.msra.mxu0 %v9938_v55  ;;  %v10019_v54 = vld [vmem:[%s11425_s15 + $0x5a4] ss:$8 sps:$4 sm:$0xff]  }
 0x255   : > { %7970 = vmatprep.subr.bf16.mxu1 %v9944_v58  ;;  %8378 = vmatprep.subr.bf16.mxu0 %v9948_v59  ;;  %v10022_v55 = vld [vmem:[%s11425_s15 + $0xda4] ss:$8 sps:$4 sm:$0xff]   ;;  %v10017_v58 = vld [vmem:[%s11425_s15 + $0x5a0] ss:$8 sps:$4 sm:$0xff]  }
 0x256   : > { %v10020_v59 = vld [vmem:[%s11425_s15 + $0xda0] ss:$8 sps:$4 sm:$0xff]  }
 0x258   : > { %7971 = vmatpush1.bf16.msra.mxu1 %v9942_v60  ;;  %8379 = vmatpush1.bf16.msra.mxu0 %v9946_v61  ;;  %v10025_v60 = vld [vmem:[%s11425_s15 + $0x5b4] ss:$8 sps:$4 sm:$0xff]  }
 0x259   : > { %7972 = vmatprep.subr.bf16.mxu1 %v9953_v62  ;;  %8380 = vmatprep.subr.bf16.mxu0 %v9956_v52  ;;  %v10028_v61 = vld [vmem:[%s11425_s15 + $0xdb4] ss:$8 sps:$4 sm:$0xff]   ;;  %v10023_v62 = vld [vmem:[%s11425_s15 + $0x5b0] ss:$8 sps:$4 sm:$0xff]  }
 0x25a   : > { %v10026_v52 = vld [vmem:[%s11425_s15 + $0xdb0] ss:$8 sps:$4 sm:$0xff]  }
 0x25c   : > { %7973 = vmatpush1.bf16.msra.mxu1 %v9951_v53  ;;  %8381 = vmatpush1.bf16.msra.mxu0 %v9954_v56  ;;  %v10031_v53 = vld [vmem:[%s11425_s15 + $0x5c4] ss:$8 sps:$4 sm:$0xff]  }
 0x25d   : > { %7993 = vmatprep.subr.bf16.mxu1 %v9959_v57  ;;  %8401 = vmatprep.subr.bf16.mxu0 %v9962_v63  ;;  %v10034_v56 = vld [vmem:[%s11425_s15 + $0xdc4] ss:$8 sps:$4 sm:$0xff]   ;;  %v10029_v57 = vld [vmem:[%s11425_s15 + $0x5c0] ss:$8 sps:$4 sm:$0xff]  }
 0x25e   : > { %v10032_v63 = vld [vmem:[%s11425_s15 + $0xdc0] ss:$8 sps:$4 sm:$0xff]  }
 0x25f   : > { %7975 = vmatmul.mubr.bf16.vlgmr.msra.gmra.mrb[0].mxu1 %v8728_v12  ;;  %8383 = vmatmul.mubr.bf16.vlgmr.msra.gmra.mrb[0].mxu0 %v8744_v13  ;;  %v10035_v12 = vld [vmem:[%s11425_s15 + $0x5d0] ss:$8 sps:$4 sm:$0xff]  }
 0x260   : > { %7994 = vmatpush1.bf16.msra.mxu1 %v9957_v14  ;;  %8402 = vmatpush1.bf16.msra.mxu0 %v9960_v15  ;;  %v10038_v13 = vld [vmem:[%s11425_s15 + $0xdd0] ss:$8 sps:$4 sm:$0xff]   ;;  %v10044_v14 = vld [vmem:[%s11425_s15 + $0x5e4] ss:$8 sps:$4 sm:$0xff]  }
 0x261   : > { %7995 = vmatprep.subr.bf16.mxu1 %v9965_v16  ;;  %8403 = vmatprep.subr.bf16.mxu0 %v9968_v17  ;;  %v10048_v15 = vld [vmem:[%s11425_s15 + $0xde4] ss:$8 sps:$4 sm:$0xff]   ;;  %v10042_v16 = vld [vmem:[%s11425_s15 + $0x5e0] ss:$8 sps:$4 sm:$0xff]  }
 0x262   : > { %7984 = vmatprep.mubr.bf16.mxu1 %v8761_v20  ;;  %8392 = vmatprep.mubr.bf16.mxu0 %v8777_v21  ;;  %v10046_v17 = vld [vmem:[%s11425_s15 + $0xde0] ss:$8 sps:$4 sm:$0xff]   ;;  %v10051_v20 = vld [vmem:[%s11425_s15 + $0x5f0] ss:$8 sps:$4 sm:$0xff]  }
 0x263   : > { %v10054_v21 = vld [vmem:[%s11425_s15 + $0xdf0] ss:$8 sps:$4 sm:$0xff]  }
 0x264   : > { %7996 = vmatpush1.bf16.msra.mxu1 %v9963_v18  ;;  %8404 = vmatpush1.bf16.msra.mxu0 %v9966_v19  ;;  %v10053_v18 = vld [vmem:[%s11425_s15 + $0x5f4] ss:$8 sps:$4 sm:$0xff]  }
 0x265   : > { %7997 = vmatprep.subr.bf16.mxu1 %v9971_v4  ;;  %8405 = vmatprep.subr.bf16.mxu0 %v9974_v7  ;;  %v10056_v19 = vld [vmem:[%s11425_s15 + $0xdf4] ss:$8 sps:$4 sm:$0xff]   ;;  %v10059_v4 = vld [vmem:[%s11425_s15 + $0x604] ss:$8 sps:$4 sm:$0xff]  }
 0x266   : > { %v10062_v7 = vld [vmem:[%s11425_s15 + $0xe04] ss:$8 sps:$4 sm:$0xff]  }
 0x267   : > { %7985 = vmatmul.mubr.bf16.gmra.mrb[4].mxu1 %v8760_v24  ;;  %8393 = vmatmul.mubr.bf16.gmra.mrb[4].mxu0 %v8776_v25  ;;  %v8730_v24 = vcombine.low %v11908_v10, %v11913_v11  ;;  %v8746_v25 = vcombine.low %v11918_v22, %v11923_v23  ;;  %v10065_v10 = vld [vmem:[%s11425_s15 + $0x614] ss:$8 sps:$4 sm:$0xff]  }
 0x268   : > { %7998 = vmatpush1.bf16.msra.mxu1 %v9969_v26  ;;  %8406 = vmatpush1.bf16.msra.mxu0 %v9972_v27  ;;  %v4383_v26 = vld [vmem:[%s12226_s0 + $0x128] sm:$0xff]  ;;  %v10068_v11 = vld [vmem:[%s11425_s15 + $0xe14] ss:$8 sps:$4 sm:$0xff]  }
 0x269   : > { %7999 = vmatprep.subr.bf16.mxu1 %v9977_v0  ;;  %8407 = vmatprep.subr.bf16.mxu0 %v9980_v1  ;;  %v4391_v27 = vld [vmem:[%s12226_s0 + $0x168] sm:$0xff]  ;;  %v8763_v22 = vcombine.high %v4383_v26, %v4383_v26 }
 0x26a   : > { %8025 = vmatprep.mubr.bf16.mxu1 %v8731_v3  ;;  %8433 = vmatprep.mubr.bf16.mxu0 %v8747_v2  ;;  %v10057_v0 = vld [vmem:[%s11425_s15 + $0x600] ss:$8 sps:$4 sm:$0xff]   ;;  %v8779_v23 = vcombine.high %v4391_v27, %v4391_v27  ;;  %v10063_v3 = vld [vmem:[%s11425_s15 + $0x610] ss:$8 sps:$4 sm:$0xff]  }
 0x26b   : > { %v10060_v1 = vld [vmem:[%s11425_s15 + $0xe00] ss:$8 sps:$4 sm:$0xff]   ;;  %v10066_v2 = vld [vmem:[%s11425_s15 + $0xe10] ss:$8 sps:$4 sm:$0xff]  }
 0x26c   : > { %8000 = vmatpush1.bf16.msra.mxu1 %v9975_v5  ;;  %8408 = vmatpush1.bf16.msra.mxu0 %v9978_v6  ;;  %v10071_v5 = vld [vmem:[%s11425_s15 + $0x624] ss:$8 sps:$4 sm:$0xff]  }
 0x26d   : > { %8001 = vmatprep.subr.bf16.mxu1 %v9983_v28  ;;  %8409 = vmatprep.subr.bf16.mxu0 %v9986_v29  ;;  %v10074_v6 = vld [vmem:[%s11425_s15 + $0xe24] ss:$8 sps:$4 sm:$0xff]   ;;  %v12006_v28 = vld [vmem:[%s12226_s0 + $0x30] sm:$0xff]  ;;  %v8762_v29 = vcombine.low %v4383_v26, %v4383_v26 }
 0x26e   : > { %v10135_v26 = vld [vmem:[%s11425_s15 + $0x6d0] ss:$8 sps:$4 sm:$0xff]  }
 0x270   : > { %8002 = vmatpush1.bf16.msra.mxu1 %v9981_v30  ;;  %8410 = vmatpush1.bf16.msra.mxu0 %v9984_v31  ;;  %v8778_v30 = vcombine.low %v4391_v27, %v4391_v27  ;;  %v12011_v31 = vld [vmem:[%s12226_s0 + $0xb0] sm:$0xff] }
 0x271   : > { %8003 = vmatprep.subr.bf16.mxu1 %v9989_v32  ;;  %8411 = vmatprep.subr.bf16.mxu0 %v9992_v33  ;;  %v12016_v32 = vld [vmem:[%s12226_s0 + $0x70] sm:$0xff] }
 0x272   : > { %v12021_v33 = vld [vmem:[%s12226_s0 + $0xf0] sm:$0xff] }
 0x273   : > { %v10138_v27 = vld [vmem:[%s11425_s15 + $0xed0] ss:$8 sps:$4 sm:$0xff]  }
 0x274   : > { %8004 = vmatpush1.bf16.msra.mxu1 %v9987_v34  ;;  %8412 = vmatpush1.bf16.msra.mxu0 %v9990_v35  ;;  %v10069_v34 = vld [vmem:[%s11425_s15 + $0x620] ss:$8 sps:$4 sm:$0xff]  }
 0x275   : > { %8005 = vmatprep.subr.bf16.mxu1 %v9995_v39  ;;  %8413 = vmatprep.subr.bf16.mxu0 %v9998_v40  ;;  %v10072_v35 = vld [vmem:[%s11425_s15 + $0xe20] ss:$8 sps:$4 sm:$0xff]   ;;  %v10077_v39 = vld [vmem:[%s11425_s15 + $0x634] ss:$8 sps:$4 sm:$0xff]  }
 0x276   : > { %v10080_v40 = vld [vmem:[%s11425_s15 + $0xe34] ss:$8 sps:$4 sm:$0xff]  }
 0x278   : > { %8006 = vmatpush1.bf16.msra.mxu1 %v9993_v42  ;;  %8414 = vmatpush1.bf16.msra.mxu0 %v9996_v43  ;;  %v8733_v42 = vcombine.high %v12006_v28, %v12011_v31  ;;  %v8749_v43 = vcombine.high %v12016_v32, %v12021_v33 }
 0x279   : > { %8007 = vmatprep.subr.bf16.mxu1 %v10001_v44  ;;  %8415 = vmatprep.subr.bf16.mxu0 %v10004_v45  ;;  %v10075_v44 = vld [vmem:[%s11425_s15 + $0x630] ss:$8 sps:$4 sm:$0xff]  }
 0x27a   : > { %v10078_v45 = vld [vmem:[%s11425_s15 + $0xe30] ss:$8 sps:$4 sm:$0xff]  }
 0x27c   : > { %8008 = vmatpush1.bf16.msra.mxu1 %v9999_v46  ;;  %8416 = vmatpush1.bf16.msra.mxu0 %v10002_v36  ;;  %v10083_v46 = vld [vmem:[%s11425_s15 + $0x644] ss:$8 sps:$4 sm:$0xff]  }
 0x27d   : > { %8009 = vmatprep.subr.bf16.mxu1 %v10007_v37  ;;  %8417 = vmatprep.subr.bf16.mxu0 %v10010_v38  ;;  %v10086_v36 = vld [vmem:[%s11425_s15 + $0xe44] ss:$8 sps:$4 sm:$0xff]   ;;  %v10081_v37 = vld [vmem:[%s11425_s15 + $0x640] ss:$8 sps:$4 sm:$0xff]  }
 0x27e   : > { %v10084_v38 = vld [vmem:[%s11425_s15 + $0xe40] ss:$8 sps:$4 sm:$0xff]  }
 0x280   : > { %8010 = vmatpush1.bf16.msra.mxu1 %v10005_v41  ;;  %8418 = vmatpush1.bf16.msra.mxu0 %v10008_v47  ;;  %v10089_v41 = vld [vmem:[%s11425_s15 + $0x654] ss:$8 sps:$4 sm:$0xff]  }
 0x281   : > { %8011 = vmatprep.subr.bf16.mxu1 %v10013_v48  ;;  %8419 = vmatprep.subr.bf16.mxu0 %v10016_v49  ;;  %v10092_v47 = vld [vmem:[%s11425_s15 + $0xe54] ss:$8 sps:$4 sm:$0xff]   ;;  %v10087_v48 = vld [vmem:[%s11425_s15 + $0x650] ss:$8 sps:$4 sm:$0xff]  }
 0x282   : > { %v10090_v49 = vld [vmem:[%s11425_s15 + $0xe50] ss:$8 sps:$4 sm:$0xff]  }
 0x284   : > { %8012 = vmatpush1.bf16.msra.mxu1 %v10011_v50  ;;  %8420 = vmatpush1.bf16.msra.mxu0 %v10014_v51  ;;  %v10095_v50 = vld [vmem:[%s11425_s15 + $0x664] ss:$8 sps:$4 sm:$0xff]  }
 0x285   : > { %8013 = vmatprep.subr.bf16.mxu1 %v10019_v54  ;;  %8421 = vmatprep.subr.bf16.mxu0 %v10022_v55  ;;  %v10098_v51 = vld [vmem:[%s11425_s15 + $0xe64] ss:$8 sps:$4 sm:$0xff]   ;;  %v10093_v54 = vld [vmem:[%s11425_s15 + $0x660] ss:$8 sps:$4 sm:$0xff]  }
 0x286   : > { %v10096_v55 = vld [vmem:[%s11425_s15 + $0xe60] ss:$8 sps:$4 sm:$0xff]  }
 0x288   : > { %8014 = vmatpush1.bf16.msra.mxu1 %v10017_v58  ;;  %8422 = vmatpush1.bf16.msra.mxu0 %v10020_v59  ;;  %v10101_v58 = vld [vmem:[%s11425_s15 + $0x674] ss:$8 sps:$4 sm:$0xff]  }
 0x289   : > { %8015 = vmatprep.subr.bf16.mxu1 %v10025_v60  ;;  %8423 = vmatprep.subr.bf16.mxu0 %v10028_v61  ;;  %v10104_v59 = vld [vmem:[%s11425_s15 + $0xe74] ss:$8 sps:$4 sm:$0xff]   ;;  %v10099_v60 = vld [vmem:[%s11425_s15 + $0x670] ss:$8 sps:$4 sm:$0xff]  }
 0x28a   : > { %v10102_v61 = vld [vmem:[%s11425_s15 + $0xe70] ss:$8 sps:$4 sm:$0xff]  }
 0x28c   : > { %8016 = vmatpush1.bf16.msra.mxu1 %v10023_v62  ;;  %8424 = vmatpush1.bf16.msra.mxu0 %v10026_v52  ;;  %v10107_v62 = vld [vmem:[%s11425_s15 + $0x684] ss:$8 sps:$4 sm:$0xff]  }
 0x28d   : > { %8017 = vmatprep.subr.bf16.mxu1 %v10031_v53  ;;  %8425 = vmatprep.subr.bf16.mxu0 %v10034_v56  ;;  %v10110_v52 = vld [vmem:[%s11425_s15 + $0xe84] ss:$8 sps:$4 sm:$0xff]   ;;  %v10105_v53 = vld [vmem:[%s11425_s15 + $0x680] ss:$8 sps:$4 sm:$0xff]  }
 0x28e   : > { %v10108_v56 = vld [vmem:[%s11425_s15 + $0xe80] ss:$8 sps:$4 sm:$0xff]  }
 0x290   : > { %8018 = vmatpush1.bf16.msra.mxu1 %v10029_v57  ;;  %8426 = vmatpush1.bf16.msra.mxu0 %v10032_v63  ;;  %v10113_v57 = vld [vmem:[%s11425_s15 + $0x694] ss:$8 sps:$4 sm:$0xff]  }
 0x291   : > { %8019 = vmatprep.subr.bf16.mxu1 %v10037_v8  ;;  %8427 = vmatprep.subr.bf16.mxu0 %v10040_v9  ;;  %v10116_v63 = vld [vmem:[%s11425_s15 + $0xe94] ss:$8 sps:$4 sm:$0xff]   ;;  %v10111_v8 = vld [vmem:[%s11425_s15 + $0x690] ss:$8 sps:$4 sm:$0xff]  }
 0x292   : > { %v10114_v9 = vld [vmem:[%s11425_s15 + $0xe90] ss:$8 sps:$4 sm:$0xff]  }
 0x294   : > { %8020 = vmatpush1.bf16.msra.mxu1 %v10035_v12  ;;  %8428 = vmatpush1.bf16.msra.mxu0 %v10038_v13  ;;  %v10119_v12 = vld [vmem:[%s11425_s15 + $0x6a4] ss:$8 sps:$4 sm:$0xff]  }
 0x295   : > { %8021 = vmatprep.subr.bf16.mxu1 %v10044_v14  ;;  %8429 = vmatprep.subr.bf16.mxu0 %v10048_v15  ;;  %v10122_v13 = vld [vmem:[%s11425_s15 + $0xea4] ss:$8 sps:$4 sm:$0xff]   ;;  %v10117_v14 = vld [vmem:[%s11425_s15 + $0x6a0] ss:$8 sps:$4 sm:$0xff]  }
 0x296   : > { %v10120_v15 = vld [vmem:[%s11425_s15 + $0xea0] ss:$8 sps:$4 sm:$0xff]  }
 0x298   : > { %8022 = vmatpush1.bf16.msra.mxu1 %v10042_v16  ;;  %8430 = vmatpush1.bf16.msra.mxu0 %v10046_v17  ;;  %v10125_v16 = vld [vmem:[%s11425_s15 + $0x6b4] ss:$8 sps:$4 sm:$0xff]  }
 0x299   : > { %8023 = vmatprep.subr.bf16.mxu1 %v10053_v18  ;;  %8431 = vmatprep.subr.bf16.mxu0 %v10056_v19  ;;  %v10128_v17 = vld [vmem:[%s11425_s15 + $0xeb4] ss:$8 sps:$4 sm:$0xff]   ;;  %v10123_v18 = vld [vmem:[%s11425_s15 + $0x6b0] ss:$8 sps:$4 sm:$0xff]  }
 0x29a   : > { %v10126_v19 = vld [vmem:[%s11425_s15 + $0xeb0] ss:$8 sps:$4 sm:$0xff]  }
 0x29c   : > { %8024 = vmatpush1.bf16.msra.mxu1 %v10051_v20  ;;  %8432 = vmatpush1.bf16.msra.mxu0 %v10054_v21  ;;  %v10131_v20 = vld [vmem:[%s11425_s15 + $0x6c4] ss:$8 sps:$4 sm:$0xff]  }
 0x29d   : > { %8044 = vmatprep.subr.bf16.mxu1 %v10059_v4  ;;  %8452 = vmatprep.subr.bf16.mxu0 %v10062_v7  ;;  %v10134_v21 = vld [vmem:[%s11425_s15 + $0xec4] ss:$8 sps:$4 sm:$0xff]   ;;  %v10129_v4 = vld [vmem:[%s11425_s15 + $0x6c0] ss:$8 sps:$4 sm:$0xff]  }
 0x29e   : > { %v10132_v7 = vld [vmem:[%s11425_s15 + $0xec0] ss:$8 sps:$4 sm:$0xff]  }
 0x29f   : > { %8026 = vmatmul.mubr.bf16.vlgmr.msra.gmra.mrb[0].mxu1 %v8730_v24  ;;  %8434 = vmatmul.mubr.bf16.vlgmr.msra.gmra.mrb[0].mxu0 %v8746_v25  ;;  %v10137_v24 = vld [vmem:[%s11425_s15 + $0x6d4] ss:$8 sps:$4 sm:$0xff]  }
 0x2a0   : > { %8045 = vmatpush1.bf16.msra.mxu1 %v10057_v0  ;;  %8453 = vmatpush1.bf16.msra.mxu0 %v10060_v1  ;;  %v10140_v25 = vld [vmem:[%s11425_s15 + $0xed4] ss:$8 sps:$4 sm:$0xff]   ;;  %v10144_v0 = vld [vmem:[%s11425_s15 + $0x6e4] ss:$8 sps:$4 sm:$0xff]  }
 0x2a1   : > { %8046 = vmatprep.subr.bf16.mxu1 %v10065_v10  ;;  %8454 = vmatprep.subr.bf16.mxu0 %v10068_v11  ;;  %v10148_v1 = vld [vmem:[%s11425_s15 + $0xee4] ss:$8 sps:$4 sm:$0xff]   ;;  %v10142_v10 = vld [vmem:[%s11425_s15 + $0x6e0] ss:$8 sps:$4 sm:$0xff]  }
 0x2a2   : > { %8035 = vmatprep.mubr.bf16.mxu1 %v8763_v22  ;;  %8443 = vmatprep.mubr.bf16.mxu0 %v8779_v23  ;;  %v10146_v11 = vld [vmem:[%s11425_s15 + $0xee0] ss:$8 sps:$4 sm:$0xff]   ;;  %v10153_v22 = vld [vmem:[%s11425_s15 + $0x6f4] ss:$8 sps:$4 sm:$0xff]  }
 0x2a3   : > { %v10156_v23 = vld [vmem:[%s11425_s15 + $0xef4] ss:$8 sps:$4 sm:$0xff]  }
 0x2a4   : > { %8047 = vmatpush1.bf16.msra.mxu1 %v10063_v3  ;;  %8455 = vmatpush1.bf16.msra.mxu0 %v10066_v2  ;;  %v10151_v3 = vld [vmem:[%s11425_s15 + $0x6f0] ss:$8 sps:$4 sm:$0xff]  }
 0x2a5   : > { %8048 = vmatprep.subr.bf16.mxu1 %v10071_v5  ;;  %8456 = vmatprep.subr.bf16.mxu0 %v10074_v6  ;;  %v10154_v2 = vld [vmem:[%s11425_s15 + $0xef0] ss:$8 sps:$4 sm:$0xff]   ;;  %v10159_v5 = vld [vmem:[%s11425_s15 + $0x704] ss:$8 sps:$4 sm:$0xff]  }
 0x2a6   : > { %v10162_v6 = vld [vmem:[%s11425_s15 + $0xf04] ss:$8 sps:$4 sm:$0xff]  }
 0x2a7   : > { %8036 = vmatmul.mubr.bf16.gmra.mrb[4].mxu1 %v8762_v29  ;;  %8444 = vmatmul.mubr.bf16.gmra.mrb[4].mxu0 %v8778_v30  ;;  %v8732_v29 = vcombine.low %v12006_v28, %v12011_v31  ;;  %v8748_v30 = vcombine.low %v12016_v32, %v12021_v33  ;;  %v10165_v28 = vld [vmem:[%s11425_s15 + $0x714] ss:$8 sps:$4 sm:$0xff]  }
 0x2a8   : > { %8049 = vmatpush1.bf16.msra.mxu1 %v10069_v34  ;;  %8457 = vmatpush1.bf16.msra.mxu0 %v10072_v35  ;;  %v4384_v34 = vld [vmem:[%s12226_s0 + $0x130] sm:$0xff] }
 0x2a9   : > { %8050 = vmatprep.subr.bf16.mxu1 %v10077_v39  ;;  %8458 = vmatprep.subr.bf16.mxu0 %v10080_v40  ;;  %v4392_v35 = vld [vmem:[%s12226_s0 + $0x170] sm:$0xff]  ;;  %v10157_v39 = vld [vmem:[%s11425_s15 + $0x700] ss:$8 sps:$4 sm:$0xff]   ;;  %v8765_v32 = vcombine.high %v4384_v34, %v4384_v34 }
 0x2aa   : > { %8076 = vmatprep.mubr.bf16.mxu1 %v8733_v42  ;;  %8484 = vmatprep.mubr.bf16.mxu0 %v8749_v43  ;;  %v10160_v40 = vld [vmem:[%s11425_s15 + $0xf00] ss:$8 sps:$4 sm:$0xff]   ;;  %v10168_v31 = vld [vmem:[%s11425_s15 + $0xf14] ss:$8 sps:$4 sm:$0xff]   ;;  %v8781_v33 = vcombine.high %v4392_v35, %v4392_v35  ;;  %v10163_v42 = vld [vmem:[%s11425_s15 + $0x710] ss:$8 sps:$4 sm:$0xff]  }
 0x2ab   : > { %v10166_v43 = vld [vmem:[%s11425_s15 + $0xf10] ss:$8 sps:$4 sm:$0xff]  }
 0x2ac   : > { %8051 = vmatpush1.bf16.msra.mxu1 %v10075_v44  ;;  %8459 = vmatpush1.bf16.msra.mxu0 %v10078_v45  ;;  %v10171_v44 = vld [vmem:[%s11425_s15 + $0x724] ss:$8 sps:$4 sm:$0xff]  }
 0x2ad   : > { %8052 = vmatprep.subr.bf16.mxu1 %v10083_v46  ;;  %8460 = vmatprep.subr.bf16.mxu0 %v10086_v36  ;;  %v10174_v45 = vld [vmem:[%s11425_s15 + $0xf24] ss:$8 sps:$4 sm:$0xff]   ;;  %v12104_v46 = vld [vmem:[%s12226_s0 + $0x38] sm:$0xff]  ;;  %v8764_v36 = vcombine.low %v4384_v34, %v4384_v34 }
 0x2ae   : > { %v10235_v34 = vld [vmem:[%s11425_s15 + $0x7d0] ss:$8 sps:$4 sm:$0xff]  }
 0x2b0   : > { %8053 = vmatpush1.bf16.msra.mxu1 %v10081_v37  ;;  %8461 = vmatpush1.bf16.msra.mxu0 %v10084_v38  ;;  %v8780_v37 = vcombine.low %v4392_v35, %v4392_v35  ;;  %v12109_v38 = vld [vmem:[%s12226_s0 + $0xb8] sm:$0xff] }
 0x2b1   : > { %8054 = vmatprep.subr.bf16.mxu1 %v10089_v41  ;;  %8462 = vmatprep.subr.bf16.mxu0 %v10092_v47  ;;  %v12114_v41 = vld [vmem:[%s12226_s0 + $0x78] sm:$0xff] }
 0x2b2   : > { %v12119_v47 = vld [vmem:[%s12226_s0 + $0xf8] sm:$0xff] }
 0x2b3   : > { %v10238_v35 = vld [vmem:[%s11425_s15 + $0xfd0] ss:$8 sps:$4 sm:$0xff]  }
 0x2b4   : > { %8055 = vmatpush1.bf16.msra.mxu1 %v10087_v48  ;;  %8463 = vmatpush1.bf16.msra.mxu0 %v10090_v49  ;;  %v10169_v48 = vld [vmem:[%s11425_s15 + $0x720] ss:$8 sps:$4 sm:$0xff]  }
 0x2b5   : > { %8056 = vmatprep.subr.bf16.mxu1 %v10095_v50  ;;  %8464 = vmatprep.subr.bf16.mxu0 %v10098_v51  ;;  %v10172_v49 = vld [vmem:[%s11425_s15 + $0xf20] ss:$8 sps:$4 sm:$0xff]   ;;  %v10177_v50 = vld [vmem:[%s11425_s15 + $0x734] ss:$8 sps:$4 sm:$0xff]  }
 0x2b6   : > { %v10180_v51 = vld [vmem:[%s11425_s15 + $0xf34] ss:$8 sps:$4 sm:$0xff]  }
 0x2b8   : > { %8057 = vmatpush1.bf16.msra.mxu1 %v10093_v54  ;;  %8465 = vmatpush1.bf16.msra.mxu0 %v10096_v55  ;;  %v8735_v54 = vcombine.high %v12104_v46, %v12109_v38  ;;  %v8751_v55 = vcombine.high %v12114_v41, %v12119_v47 }
 0x2b9   : > { %8058 = vmatprep.subr.bf16.mxu1 %v10101_v58  ;;  %8466 = vmatprep.subr.bf16.mxu0 %v10104_v59  ;;  %v10175_v58 = vld [vmem:[%s11425_s15 + $0x730] ss:$8 sps:$4 sm:$0xff]  }
 0x2ba   : > { %v10178_v59 = vld [vmem:[%s11425_s15 + $0xf30] ss:$8 sps:$4 sm:$0xff]  }
 0x2bc   : > { %8059 = vmatpush1.bf16.msra.mxu1 %v10099_v60  ;;  %8467 = vmatpush1.bf16.msra.mxu0 %v10102_v61  ;;  %v10183_v60 = vld [vmem:[%s11425_s15 + $0x744] ss:$8 sps:$4 sm:$0xff]  }
 0x2bd   : > { %8060 = vmatprep.subr.bf16.mxu1 %v10107_v62  ;;  %8468 = vmatprep.subr.bf16.mxu0 %v10110_v52  ;;  %v10186_v61 = vld [vmem:[%s11425_s15 + $0xf44] ss:$8 sps:$4 sm:$0xff]   ;;  %v10181_v62 = vld [vmem:[%s11425_s15 + $0x740] ss:$8 sps:$4 sm:$0xff]  }
 0x2be   : > { %v10184_v52 = vld [vmem:[%s11425_s15 + $0xf40] ss:$8 sps:$4 sm:$0xff]  }
 0x2c0   : > { %8061 = vmatpush1.bf16.msra.mxu1 %v10105_v53  ;;  %8469 = vmatpush1.bf16.msra.mxu0 %v10108_v56  ;;  %v10189_v53 = vld [vmem:[%s11425_s15 + $0x754] ss:$8 sps:$4 sm:$0xff]  }
 0x2c1   : > { %8062 = vmatprep.subr.bf16.mxu1 %v10113_v57  ;;  %8470 = vmatprep.subr.bf16.mxu0 %v10116_v63  ;;  %v10192_v56 = vld [vmem:[%s11425_s15 + $0xf54] ss:$8 sps:$4 sm:$0xff]   ;;  %v10187_v57 = vld [vmem:[%s11425_s15 + $0x750] ss:$8 sps:$4 sm:$0xff]  }
 0x2c2   : > { %v10190_v63 = vld [vmem:[%s11425_s15 + $0xf50] ss:$8 sps:$4 sm:$0xff]  }
 0x2c4   : > { %8063 = vmatpush1.bf16.msra.mxu1 %v10111_v8  ;;  %8471 = vmatpush1.bf16.msra.mxu0 %v10114_v9  ;;  %v10195_v8 = vld [vmem:[%s11425_s15 + $0x764] ss:$8 sps:$4 sm:$0xff]  }
 0x2c5   : > { %8064 = vmatprep.subr.bf16.mxu1 %v10119_v12  ;;  %8472 = vmatprep.subr.bf16.mxu0 %v10122_v13  ;;  %v10198_v9 = vld [vmem:[%s11425_s15 + $0xf64] ss:$8 sps:$4 sm:$0xff]   ;;  %v10193_v12 = vld [vmem:[%s11425_s15 + $0x760] ss:$8 sps:$4 sm:$0xff]  }
 0x2c6   : > { %v10196_v13 = vld [vmem:[%s11425_s15 + $0xf60] ss:$8 sps:$4 sm:$0xff]  }
 0x2c8   : > { %8065 = vmatpush1.bf16.msra.mxu1 %v10117_v14  ;;  %8473 = vmatpush1.bf16.msra.mxu0 %v10120_v15  ;;  %v10201_v14 = vld [vmem:[%s11425_s15 + $0x774] ss:$8 sps:$4 sm:$0xff]  }
 0x2c9   : > { %8066 = vmatprep.subr.bf16.mxu1 %v10125_v16  ;;  %8474 = vmatprep.subr.bf16.mxu0 %v10128_v17  ;;  %v10204_v15 = vld [vmem:[%s11425_s15 + $0xf74] ss:$8 sps:$4 sm:$0xff]   ;;  %v10199_v16 = vld [vmem:[%s11425_s15 + $0x770] ss:$8 sps:$4 sm:$0xff]  }
 0x2ca   : > { %v10202_v17 = vld [vmem:[%s11425_s15 + $0xf70] ss:$8 sps:$4 sm:$0xff]  }
 0x2cc   : > { %8067 = vmatpush1.bf16.msra.mxu1 %v10123_v18  ;;  %8475 = vmatpush1.bf16.msra.mxu0 %v10126_v19  ;;  %v10207_v18 = vld [vmem:[%s11425_s15 + $0x784] ss:$8 sps:$4 sm:$0xff]  }
 0x2cd   : > { %8068 = vmatprep.subr.bf16.mxu1 %v10131_v20  ;;  %8476 = vmatprep.subr.bf16.mxu0 %v10134_v21  ;;  %v10210_v19 = vld [vmem:[%s11425_s15 + $0xf84] ss:$8 sps:$4 sm:$0xff]   ;;  %v10205_v20 = vld [vmem:[%s11425_s15 + $0x780] ss:$8 sps:$4 sm:$0xff]  }
 0x2ce   : > { %v10208_v21 = vld [vmem:[%s11425_s15 + $0xf80] ss:$8 sps:$4 sm:$0xff]  }
 0x2d0   : > { %8069 = vmatpush1.bf16.msra.mxu1 %v10129_v4  ;;  %8477 = vmatpush1.bf16.msra.mxu0 %v10132_v7  ;;  %v10213_v4 = vld [vmem:[%s11425_s15 + $0x794] ss:$8 sps:$4 sm:$0xff]  }
 0x2d1   : > { %8070 = vmatprep.subr.bf16.mxu1 %v10137_v24  ;;  %8478 = vmatprep.subr.bf16.mxu0 %v10140_v25  ;;  %v10216_v7 = vld [vmem:[%s11425_s15 + $0xf94] ss:$8 sps:$4 sm:$0xff]   ;;  %v10211_v24 = vld [vmem:[%s11425_s15 + $0x790] ss:$8 sps:$4 sm:$0xff]  }
 0x2d2   : > { %v10214_v25 = vld [vmem:[%s11425_s15 + $0xf90] ss:$8 sps:$4 sm:$0xff]  }
 0x2d4   : > { %8071 = vmatpush1.bf16.msra.mxu1 %v10135_v26  ;;  %8479 = vmatpush1.bf16.msra.mxu0 %v10138_v27  ;;  %v10219_v26 = vld [vmem:[%s11425_s15 + $0x7a4] ss:$8 sps:$4 sm:$0xff]  }
 0x2d5   : > { %8072 = vmatprep.subr.bf16.mxu1 %v10144_v0  ;;  %8480 = vmatprep.subr.bf16.mxu0 %v10148_v1  ;;  %v10222_v27 = vld [vmem:[%s11425_s15 + $0xfa4] ss:$8 sps:$4 sm:$0xff]   ;;  %v10217_v0 = vld [vmem:[%s11425_s15 + $0x7a0] ss:$8 sps:$4 sm:$0xff]  }
 0x2d6   : > { %v10220_v1 = vld [vmem:[%s11425_s15 + $0xfa0] ss:$8 sps:$4 sm:$0xff]  }
 0x2d8   : > { %8073 = vmatpush1.bf16.msra.mxu1 %v10142_v10  ;;  %8481 = vmatpush1.bf16.msra.mxu0 %v10146_v11  ;;  %v10225_v10 = vld [vmem:[%s11425_s15 + $0x7b4] ss:$8 sps:$4 sm:$0xff]  }
 0x2d9   : > { %8074 = vmatprep.subr.bf16.mxu1 %v10153_v22  ;;  %8482 = vmatprep.subr.bf16.mxu0 %v10156_v23  ;;  %v10228_v11 = vld [vmem:[%s11425_s15 + $0xfb4] ss:$8 sps:$4 sm:$0xff]   ;;  %v10223_v22 = vld [vmem:[%s11425_s15 + $0x7b0] ss:$8 sps:$4 sm:$0xff]  }
 0x2da   : > { %v10226_v23 = vld [vmem:[%s11425_s15 + $0xfb0] ss:$8 sps:$4 sm:$0xff]  }
 0x2dc   : > { %8075 = vmatpush1.bf16.msra.mxu1 %v10151_v3  ;;  %8483 = vmatpush1.bf16.msra.mxu0 %v10154_v2  ;;  %v10231_v3 = vld [vmem:[%s11425_s15 + $0x7c4] ss:$8 sps:$4 sm:$0xff]  }
 0x2dd   : > { %8095 = vmatprep.subr.bf16.mxu1 %v10159_v5  ;;  %8503 = vmatprep.subr.bf16.mxu0 %v10162_v6  ;;  %v10234_v2 = vld [vmem:[%s11425_s15 + $0xfc4] ss:$8 sps:$4 sm:$0xff]   ;;  %v10229_v5 = vld [vmem:[%s11425_s15 + $0x7c0] ss:$8 sps:$4 sm:$0xff]  }
 0x2de   : > { %v10232_v6 = vld [vmem:[%s11425_s15 + $0xfc0] ss:$8 sps:$4 sm:$0xff]  }
 0x2df   : > { %8077 = vmatmul.mubr.bf16.vlgmr.msra.gmra.mrb[0].mxu1 %v8732_v29  ;;  %8485 = vmatmul.mubr.bf16.vlgmr.msra.gmra.mrb[0].mxu0 %v8748_v30  ;;  %v10237_v29 = vld [vmem:[%s11425_s15 + $0x7d4] ss:$8 sps:$4 sm:$0xff]  }
 0x2e0   : > { %8096 = vmatpush1.bf16.msra.mxu1 %v10157_v39  ;;  %8504 = vmatpush1.bf16.msra.mxu0 %v10160_v40  ;;  %v10240_v30 = vld [vmem:[%s11425_s15 + $0xfd4] ss:$8 sps:$4 sm:$0xff]   ;;  %v10246_v39 = vld [vmem:[%s11425_s15 + $0x7e4] ss:$8 sps:$4 sm:$0xff]  }
 0x2e1   : > { %8097 = vmatprep.subr.bf16.mxu1 %v10165_v28  ;;  %8505 = vmatprep.subr.bf16.mxu0 %v10168_v31  ;;  %v10250_v40 = vld [vmem:[%s11425_s15 + $0xfe4] ss:$8 sps:$4 sm:$0xff]   ;;  %v10244_v28 = vld [vmem:[%s11425_s15 + $0x7e0] ss:$8 sps:$4 sm:$0xff]  }
 0x2e2   : > { %8086 = vmatprep.mubr.bf16.mxu1 %v8765_v32  ;;  %8494 = vmatprep.mubr.bf16.mxu0 %v8781_v33  ;;  %v10248_v31 = vld [vmem:[%s11425_s15 + $0xfe0] ss:$8 sps:$4 sm:$0xff]   ;;  %v10253_v32 = vld [vmem:[%s11425_s15 + $0x7f4] ss:$8 sps:$4 sm:$0xff]  }
 0x2e3   : > { %v10256_v33 = vld [vmem:[%s11425_s15 + $0xff4] ss:$8 sps:$4 sm:$0xff]  }
 0x2e4   : > { %8098 = vmatpush1.bf16.msra.mxu1 %v10163_v42  ;;  %8506 = vmatpush1.bf16.msra.mxu0 %v10166_v43  ;;  %v10251_v42 = vld [vmem:[%s11425_s15 + $0x7f0] ss:$8 sps:$4 sm:$0xff]  }
 0x2e5   : > { %8099 = vmatprep.subr.bf16.mxu1 %v10171_v44  ;;  %8507 = vmatprep.subr.bf16.mxu0 %v10174_v45  ;;  %v10254_v43 = vld [vmem:[%s11425_s15 + $0xff0] ss:$8 sps:$4 sm:$0xff]   ;;  %s9420_s15 = smul.u32 48, %s4310_s27  ;;  %s9301_s27 = sshll.u32 (%p10351_p6), %s10291_s11, 4 }
 0x2e6   : > { %v4385_v44 = vld [vmem:[%s12226_s0 + $0x138] sm:$0xff]  ;;  %s8590_s16 = scalar_lea.vmem (%p10351_p6), %s12228_s2, %s9301_s27 }
 0x2e7   : > { %8087 = vmatmul.mubr.bf16.gmra.mrb[4].mxu1 %v8764_v36  ;;  %8495 = vmatmul.mubr.bf16.gmra.mrb[4].mxu0 %v8780_v37  ;;  %v4393_v45 = vld [vmem:[%s12226_s0 + $0x178] sm:$0xff]  ;;  %v8734_v36 = vcombine.low %v12104_v46, %v12109_v38  ;;  %v8750_v37 = vcombine.low %v12114_v41, %v12119_v47  ;;  %s12191_s9 = scalar_lea.vmem [#allocation3], %s9420_s15 }
 0x2e8   : > { %8100 = vmatpush1.bf16.msra.mxu1 %v10169_v48  ;;  %8508 = vmatpush1.bf16.msra.mxu0 %v10172_v49  ;;  %v8767_v48 = vcombine.high %v4385_v44, %v4385_v44  ;;  %v8783_v49 = vcombine.high %v4393_v45, %v4393_v45 }
 0x2e9   : > { %8101 = vmatprep.subr.bf16.mxu1 %v10177_v50  ;;  %8509 = vmatprep.subr.bf16.mxu0 %v10180_v51  ;;  %v8766_v50 = vcombine.low %v4385_v44, %v4385_v44  ;;  %v8782_v51 = vcombine.low %v4393_v45, %v4393_v45 }
 0x2ea   : > { %8127 = vmatprep.mubr.bf16.mxu1 %v8735_v54  ;;  %8535 = vmatprep.mubr.bf16.mxu0 %v8751_v55 }
 0x2ec   : > { %8102 = vmatpush1.bf16.msra.mxu1 %v10175_v58  ;;  %8510 = vmatpush1.bf16.msra.mxu0 %v10178_v59 }
 0x2ed   : > { %8103 = vmatprep.subr.bf16.mxu1 %v10183_v60  ;;  %8511 = vmatprep.subr.bf16.mxu0 %v10186_v61 }
 0x2f0   : > { %8104 = vmatpush1.bf16.msra.mxu1 %v10181_v62  ;;  %8512 = vmatpush1.bf16.msra.mxu0 %v10184_v52 }
 0x2f1   : > { %8105 = vmatprep.subr.bf16.mxu1 %v10189_v53  ;;  %8513 = vmatprep.subr.bf16.mxu0 %v10192_v56 }
 0x2f4   : > { %8106 = vmatpush1.bf16.msra.mxu1 %v10187_v57  ;;  %8514 = vmatpush1.bf16.msra.mxu0 %v10190_v63 }
 0x2f5   : > { %8107 = vmatprep.subr.bf16.mxu1 %v10195_v8  ;;  %8515 = vmatprep.subr.bf16.mxu0 %v10198_v9 }
 0x2f8   : > { %8108 = vmatpush1.bf16.msra.mxu1 %v10193_v12  ;;  %8516 = vmatpush1.bf16.msra.mxu0 %v10196_v13 }
 0x2f9   : > { %8109 = vmatprep.subr.bf16.mxu1 %v10201_v14  ;;  %8517 = vmatprep.subr.bf16.mxu0 %v10204_v15 }
 0x2fc   : > { %8110 = vmatpush1.bf16.msra.mxu1 %v10199_v16  ;;  %8518 = vmatpush1.bf16.msra.mxu0 %v10202_v17 }
 0x2fd   : > { %8111 = vmatprep.subr.bf16.mxu1 %v10207_v18  ;;  %8519 = vmatprep.subr.bf16.mxu0 %v10210_v19 }
 0x300   : > { %8112 = vmatpush1.bf16.msra.mxu1 %v10205_v20  ;;  %8520 = vmatpush1.bf16.msra.mxu0 %v10208_v21 }
 0x301   : > { %8113 = vmatprep.subr.bf16.mxu1 %v10213_v4  ;;  %8521 = vmatprep.subr.bf16.mxu0 %v10216_v7 }
 0x304   : > { %8114 = vmatpush1.bf16.msra.mxu1 %v10211_v24  ;;  %8522 = vmatpush1.bf16.msra.mxu0 %v10214_v25 }
 0x305   : > { %8115 = vmatprep.subr.bf16.mxu1 %v10219_v26  ;;  %8523 = vmatprep.subr.bf16.mxu0 %v10222_v27 }
 0x308   : > { %8116 = vmatpush1.bf16.msra.mxu1 %v10217_v0  ;;  %8524 = vmatpush1.bf16.msra.mxu0 %v10220_v1 }
 0x309   : > { %8117 = vmatprep.subr.bf16.mxu1 %v10225_v10  ;;  %8525 = vmatprep.subr.bf16.mxu0 %v10228_v11 }
 0x30c   : > { %8118 = vmatpush1.bf16.msra.mxu1 %v10223_v22  ;;  %8526 = vmatpush1.bf16.msra.mxu0 %v10226_v23 }
 0x30d   : > { %8119 = vmatprep.subr.bf16.mxu1 %v10231_v3  ;;  %8527 = vmatprep.subr.bf16.mxu0 %v10234_v2 }
 0x310   : > { %8120 = vmatpush1.bf16.msra.mxu1 %v10229_v5  ;;  %8528 = vmatpush1.bf16.msra.mxu0 %v10232_v6 }
 0x311   : > { %8121 = vmatprep.subr.bf16.mxu1 %v10237_v29  ;;  %8529 = vmatprep.subr.bf16.mxu0 %v10240_v30 }
 0x314   : > { %8122 = vmatpush1.bf16.msra.mxu1 %v10235_v34  ;;  %8530 = vmatpush1.bf16.msra.mxu0 %v10238_v35 }
 0x315   : > { %8123 = vmatprep.subr.bf16.mxu1 %v10246_v39  ;;  %8531 = vmatprep.subr.bf16.mxu0 %v10250_v40 }
 0x318   : > { %8124 = vmatpush1.bf16.msra.mxu1 %v10244_v28  ;;  %8532 = vmatpush1.bf16.msra.mxu0 %v10248_v31 }
 0x319   : > { %8125 = vmatprep.subr.bf16.mxu1 %v10253_v32  ;;  %8533 = vmatprep.subr.bf16.mxu0 %v10256_v33 }
 0x31c   : > { %8126 = vmatpush1.bf16.msra.mxu1 %v10251_v42  ;;  %8534 = vmatpush1.bf16.msra.mxu0 %v10254_v43 }
 0x31f   : > { %8128 = vmatmul.mubr.bf16.vlgmr.msra.gmra.mrb[0].mxu1 %v8734_v36  ;;  %8536 = vmatmul.mubr.bf16.vlgmr.msra.gmra.mrb[0].mxu0 %v8750_v37 }
 0x320   : > { %8137 = vmatprep.mubr.bf16.mxu1 %v8767_v48  ;;  %8545 = vmatprep.mubr.bf16.mxu0 %v8783_v49 }
 0x327   : > { %8138 = vmatmul.mubr.bf16.gmra.mrb[4].mxu1 %v8766_v50  ;;  %8546 = vmatmul.mubr.bf16.gmra.mrb[4].mxu0 %v8782_v51 }
 0x3f2   : > { %v8129_v54 = vpop.f32.mrb[0].mxu1  ;;  %v8537_v55 = vpop.f32.mrb[0].mxu0 }
 0x3f3   : > { %v9302_v46 = vadd.f32 %v8537_v55, %v8129_v54  ;;  %v8131_v38 = vpop.f32.mrb[1].mxu1  ;;  %v8539_v58 = vpop.f32.mrb[1].mxu0 }
 0x3f4   : > { %v9303_v41 = vadd.f32 %v8539_v58, %v8131_v38  ;;  %v8133_v47 = vpop.f32.mrb[2].mxu1  ;;  %v8541_v59 = vpop.f32.mrb[2].mxu0 }
 0x3f5   : > { %vm8554_vm0 = vcmp.ge.f32.partialorder %v9302_v46, 0.0  ;;  %v8560_v60 = vmul.f32 0.2, %v9302_v46  ;;  %v9304_v61 = vadd.f32 %v8541_v59, %v8133_v47  ;;  %v8135_v62 = vpop.f32.mrb[3].mxu1  ;;  %v8543_v52 = vpop.f32.mrb[3].mxu0 }
 0x3f6   : > { %vm8555_vm1 = vcmp.ge.f32.partialorder %v9303_v41, 0.0  ;;  %v8561_v53 = vmul.f32 0.2, %v9303_v41  ;;  %v9305_v56 = vadd.f32 %v8543_v52, %v8135_v62 }
 0x3f7   : > { %v8566_v57 = vsel %vm8554_vm0, %v9302_v46, %v8560_v60  ;;  %vm8556_vm2 = vcmp.ge.f32.partialorder %v9304_v61, 0.0  ;;  %v8562_v63 = vmul.f32 0.2, %v9304_v61 }
 0x3f8   : > { %8572 = vst [vmem:[%s12191_s9] sm:$0xff] %v8566_v57  ;;  %v8567_v8 = vsel %vm8555_vm1, %v9303_v41, %v8561_v53  ;;  %vm8557_vm3 = vcmp.ge.f32.partialorder %v9305_v56, 0.0  ;;  %v8563_v9 = vmul.f32 0.2, %v9305_v56 }
 0x3f9   : > { %8573 = vst [vmem:[%s12191_s9 + $0x8] sm:$0xff] %v8567_v8  ;;  %v8568_v12 = vsel %vm8556_vm2, %v9304_v61, %v8562_v63 }
 0x3fa   : > { %8574 = vst [vmem:[%s12191_s9 + $0x10] sm:$0xff] %v8568_v12  ;;  %v8569_v13 = vsel %vm8557_vm3, %v9305_v56, %v8563_v9  ;;  %v8139_v14 = vpop.f32.mrb[4].mxu1  ;;  %v8547_v15 = vpop.f32.mrb[4].mxu0 }
 0x3fb   : > { %8575 = vst [vmem:[%s12191_s9 + $0x18] sm:$0xff] %v8569_v13  ;;  %v9306_v16 = vadd.f32 %v8547_v15, %v8139_v14  ;;  %v8141_v17 = vpop.f32.mrb[5].mxu1  ;;  %v8549_v18 = vpop.f32.mrb[5].mxu0  ;;  %8584 = sbr.rel (!%p10351_p6) target bundleno = 1034 (0x40a), region = 84 }
 0x3fc   : > { %v9307_v19 = vadd.f32 %v8549_v18, %v8141_v17  ;;  %v8143_v20 = vpop.f32.mrb[6].mxu1  ;;  %v8551_v21 = vpop.f32.mrb[6].mxu0 }
 0x3fd   : > { %vm8558_vm4 = vcmp.ge.f32.partialorder %v9306_v16, 0.0  ;;  %v8564_v4 = vmul.f32 0.2, %v9306_v16  ;;  %v8144_v7 = vpop.f32.mrb[7].mxu1  ;;  %v8552_v24 = vpop.f32.mrb[7].mxu0 }
 0x3fe   : > { %vm8559_vm5 = vcmp.ge.f32.partialorder %v9307_v19, 0.0  ;;  %v8565_v25 = vmul.f32 0.2, %v9307_v19 }
 0x3ff   : > { %v8570_v26 = vsel %vm8558_vm4, %v9306_v16, %v8564_v4  ;;  %v8603_v0 = vld [vmem:[%s12191_s9] sm:$0xff] (%p10351_p6) }
 0x400   : > { %8576 = vst [vmem:[%s12191_s9 + $0x20] sm:$0xff] %v8570_v26  ;;  %v8571_v27 = vsel %vm8559_vm5, %v9307_v19, %v8565_v25  ;;  %v8605_v1 = vld [vmem:[%s12191_s9 + $0x8] sm:$0xff] (%p10351_p6)  ;;  %8604 = vst [vmem:[%s8590_s16] sm:$0xff] (%p10351_p6), %v8603_v0 }
 0x401   : > { %8577 = vst [vmem:[%s12191_s9 + $0x28] sm:$0xff] %v8571_v27  ;;  %v8607_v10 = vld [vmem:[%s12191_s9 + $0x10] sm:$0xff] (%p10351_p6)  ;;  %8606 = vst [vmem:[%s8590_s16 + $0x8] sm:$0xff] (%p10351_p6), %v8605_v1 }
 0x402   : > { %v8609_v11 = vld [vmem:[%s12191_s9 + $0x18] sm:$0xff]  ;;  %8608 = vst [vmem:[%s8590_s16 + $0x20] sm:$0xff] %v8607_v10 }
 0x403   : > { %8610 = vst [vmem:[%s8590_s16 + $0x28] sm:$0xff] %v8609_v11 }
 0x407   : > { %v8611_v22 = vld [vmem:[%s12191_s9 + $0x20] sm:$0xff] }
 0x408   : > { %v8613_v23 = vld [vmem:[%s12191_s9 + $0x28] sm:$0xff]  ;;  %8612 = vst [vmem:[%s8590_s16 + $0x40] sm:$0xff] %v8611_v22 }
 0x409   : > { %8614 = vst [vmem:[%s8590_s16 + $0x48] sm:$0xff] %v8613_v23 }
 0x40a PF: > { %s12_s13 = sadd.s32 1, %s10299_s13   ;;  %s12230_s9 = smov %s10287_s10 }
 0x40b   : > { %p9_p11 = scmp.ge.s32.totalorder %s12_s13, 4   ;;  %s12231_s10 = smov %s10356_s19 }
 0x40c   : > { %s12232_s11 = smov %s10295_s12  ;;  %s12233_s12 = smov %s12235_s14 }
 0x40d   :  { %11 = sbr.rel (!%p9_p11) target bundleno = 3 (0x3), region = 147 }

// kernel: discriminator_forward.9
= control target key start
LH: loop header
LB: loop body
LE: loop exit
PB: predicated region body
PF: predicated region fallthrough
CT: control target
= control target key end

     0   :  { %vm5646_vm0 = vcmask 64512   ;;  %s9209_s1 = inlined_call_operand.vmem [shape: bf16[8192,8], index: 1, kind: input, shape index: {}]   ;;  %s9210_s0 = inlined_call_operand.vmem [shape: bf16[8,8192], index: 0, kind: input, shape index: {}]   ;;  %s9211_s2 = inlined_call_operand.vmem [shape: f32[8,8], index: 2, kind: output, shape index: {0}]   ;;  %s9212_s3 = inlined_call_operand.vmem [shape: f32[8,8], index: 3, kind: output, shape index: {1}]  }
   0x1   :  { %v6947_v0 = vld [vmem:[%s9209_s1 + $0x40] sm:$0xff]   ;;  %v6951_v4 = vld [vmem:[%s9209_s1 + $0x48] sm:$0xff]   ;;  %v6955_v8 = vld [vmem:[%s9209_s1 + $0x50] sm:$0xff]  }
   0x2   :  { %v6948_v1 = vld [vmem:[%s9209_s1 + $0xc0] sm:$0xff]   ;;  %6243 = vmatprep.subr.bf16.mxu0 %v6947_v0  ;;  %v6952_v5 = vld [vmem:[%s9209_s1 + $0xc8] sm:$0xff]   ;;  %v6956_v9 = vld [vmem:[%s9209_s1 + $0xd0] sm:$0xff]  }
   0x3   :  { %v6949_v2 = vld [vmem:[%s9209_s1] sm:$0xff]   ;;  %6265 = vmatprep.subr.bf16.mxu1 %v6948_v1  ;;  %v6953_v6 = vld [vmem:[%s9209_s1 + $0x8] sm:$0xff]   ;;  %v6957_v10 = vld [vmem:[%s9209_s1 + $0x10] sm:$0xff]  }
   0x4   :  { %v6950_v3 = vld [vmem:[%s9209_s1 + $0x80] sm:$0xff]   ;;  %6244 = vmatpush3.bf16.msra.mxu0 %v6949_v2  ;;  %v6954_v7 = vld [vmem:[%s9209_s1 + $0x88] sm:$0xff]   ;;  %v6958_v11 = vld [vmem:[%s9209_s1 + $0x90] sm:$0xff]  }
   0x5   :  { %6266 = vmatpush3.bf16.msra.mxu1 %v6950_v3  ;;  %6245 = vmatprep.subr.bf16.mxu0 %v6951_v4  ;;  %v6959_v12 = vld [vmem:[%s9209_s1 + $0x58] sm:$0xff]   ;;  %v6963_v16 = vld [vmem:[%s9209_s1 + $0x60] sm:$0xff]   ;;  %v6967_v20 = vld [vmem:[%s9209_s1 + $0x68] sm:$0xff]  }
   0x6   :  { %6267 = vmatprep.subr.bf16.mxu1 %v6952_v5  ;;  %v6960_v13 = vld [vmem:[%s9209_s1 + $0xd8] sm:$0xff]   ;;  %v6964_v17 = vld [vmem:[%s9209_s1 + $0xe0] sm:$0xff]   ;;  %v6968_v21 = vld [vmem:[%s9209_s1 + $0xe8] sm:$0xff]  }
   0x7   :  { %v6961_v14 = vld [vmem:[%s9209_s1 + $0x18] sm:$0xff]   ;;  %v6965_v18 = vld [vmem:[%s9209_s1 + $0x20] sm:$0xff]   ;;  %v6969_v22 = vld [vmem:[%s9209_s1 + $0x28] sm:$0xff]  }
   0x8   :  { %6246 = vmatpush3.bf16.msra.mxu0 %v6953_v6  ;;  %v6962_v15 = vld [vmem:[%s9209_s1 + $0x98] sm:$0xff]   ;;  %v6966_v19 = vld [vmem:[%s9209_s1 + $0xa0] sm:$0xff]   ;;  %v6970_v23 = vld [vmem:[%s9209_s1 + $0xa8] sm:$0xff]  }
   0x9   :  { %6268 = vmatpush3.bf16.msra.mxu1 %v6954_v7  ;;  %6247 = vmatprep.subr.bf16.mxu0 %v6955_v8  ;;  %v6971_v24 = vld [vmem:[%s9209_s1 + $0x70] sm:$0xff]   ;;  %v6975_v28 = vld [vmem:[%s9209_s1 + $0x78] sm:$0xff]   ;;  %v14_v32 = vld [vmem:[%s9210_s0] sm:$0xff] }
   0xa   :  { %6269 = vmatprep.subr.bf16.mxu1 %v6956_v9  ;;  %v6972_v25 = vld [vmem:[%s9209_s1 + $0xf0] sm:$0xff]   ;;  %v6976_v29 = vld [vmem:[%s9209_s1 + $0xf8] sm:$0xff]   ;;  %v15_v33 = vld [vmem:[%s9210_s0 + $0x8] sm:$0xff]  ;;  %v5667_v34 = vcombine.low %v14_v32, %v14_v32  ;;  %v5668_v35 = vcombine.high %v14_v32, %v14_v32 }
   0xb   :  { %v6973_v26 = vld [vmem:[%s9209_s1 + $0x30] sm:$0xff]   ;;  %v6977_v30 = vld [vmem:[%s9209_s1 + $0x38] sm:$0xff]   ;;  %v5669_v36 = vcombine.low %v15_v33, %v15_v33  ;;  %v5670_v37 = vcombine.high %v15_v33, %v15_v33  ;;  %v6983_v38 = vld [vmem:[%s9209_s1 + $0x140] sm:$0xff]  }
   0xc   :  { %6248 = vmatpush3.bf16.msra.mxu0 %v6957_v10  ;;  %v6974_v27 = vld [vmem:[%s9209_s1 + $0xb0] sm:$0xff]   ;;  %v6978_v31 = vld [vmem:[%s9209_s1 + $0xb8] sm:$0xff]   ;;  %v6984_v39 = vld [vmem:[%s9209_s1 + $0x1c0] sm:$0xff]   ;;  %4398 = vmatprep.mubr.bf16.mxu0 %v5668_v35 }
   0xd   :  { %6270 = vmatpush3.bf16.msra.mxu1 %v6958_v11  ;;  %6249 = vmatprep.subr.bf16.mxu0 %v6959_v12  ;;  %v6985_v40 = vld [vmem:[%s9209_s1 + $0x100] sm:$0xff]   ;;  %v6987_v42 = vld [vmem:[%s9209_s1 + $0x148] sm:$0xff]   ;;  %v6991_v46 = vld [vmem:[%s9209_s1 + $0x150] sm:$0xff]  }
   0xe   :  { %6271 = vmatprep.subr.bf16.mxu1 %v6960_v13  ;;  %4438 = vmatprep.mubr.bf16.mxu1 %v5670_v37  ;;  %v6986_v41 = vld [vmem:[%s9209_s1 + $0x180] sm:$0xff]   ;;  %v6988_v43 = vld [vmem:[%s9209_s1 + $0x1c8] sm:$0xff]   ;;  %v6992_v47 = vld [vmem:[%s9209_s1 + $0x1d0] sm:$0xff]  }
   0xf   :  { %v6989_v44 = vld [vmem:[%s9209_s1 + $0x108] sm:$0xff]   ;;  %v6993_v48 = vld [vmem:[%s9209_s1 + $0x110] sm:$0xff]   ;;  %v6995_v50 = vld [vmem:[%s9209_s1 + $0x158] sm:$0xff]  }
  0x10   :  { %6250 = vmatpush3.bf16.msra.mxu0 %v6961_v14  ;;  %v6990_v45 = vld [vmem:[%s9209_s1 + $0x188] sm:$0xff]   ;;  %v6994_v49 = vld [vmem:[%s9209_s1 + $0x190] sm:$0xff]   ;;  %v6996_v51 = vld [vmem:[%s9209_s1 + $0x1d8] sm:$0xff]  }
  0x11   :  { %6272 = vmatpush3.bf16.msra.mxu1 %v6962_v15  ;;  %6251 = vmatprep.subr.bf16.mxu0 %v6963_v16  ;;  %v6997_v52 = vld [vmem:[%s9209_s1 + $0x118] sm:$0xff]   ;;  %v6999_v54 = vld [vmem:[%s9209_s1 + $0x160] sm:$0xff]   ;;  %v7003_v58 = vld [vmem:[%s9209_s1 + $0x168] sm:$0xff]  }
  0x12   :  { %6273 = vmatprep.subr.bf16.mxu1 %v6964_v17  ;;  %v6998_v53 = vld [vmem:[%s9209_s1 + $0x198] sm:$0xff]   ;;  %v7000_v55 = vld [vmem:[%s9209_s1 + $0x1e0] sm:$0xff]   ;;  %v7004_v59 = vld [vmem:[%s9209_s1 + $0x1e8] sm:$0xff]  }
  0x13   :  { %v7001_v56 = vld [vmem:[%s9209_s1 + $0x120] sm:$0xff]   ;;  %v7005_v60 = vld [vmem:[%s9209_s1 + $0x128] sm:$0xff]   ;;  %v7007_v62 = vld [vmem:[%s9209_s1 + $0x170] sm:$0xff]  }
  0x14   :  { %6252 = vmatpush3.bf16.msra.mxu0 %v6965_v18  ;;  %v7002_v57 = vld [vmem:[%s9209_s1 + $0x1a0] sm:$0xff]   ;;  %v7006_v61 = vld [vmem:[%s9209_s1 + $0x1a8] sm:$0xff]   ;;  %v7008_v63 = vld [vmem:[%s9209_s1 + $0x1f0] sm:$0xff]  }
  0x15   :  { %6274 = vmatpush3.bf16.msra.mxu1 %v6966_v19  ;;  %6253 = vmatprep.subr.bf16.mxu0 %v6967_v20  ;;  %v7009_v0 = vld [vmem:[%s9209_s1 + $0x130] sm:$0xff]   ;;  %v7011_v2 = vld [vmem:[%s9209_s1 + $0x178] sm:$0xff]   ;;  %v7019_v12 = vld [vmem:[%s9209_s1 + $0x240] sm:$0xff]  }
  0x16   :  { %6275 = vmatprep.subr.bf16.mxu1 %v6968_v21  ;;  %v7010_v1 = vld [vmem:[%s9209_s1 + $0x1b0] sm:$0xff]   ;;  %v7012_v3 = vld [vmem:[%s9209_s1 + $0x1f8] sm:$0xff]   ;;  %v7020_v13 = vld [vmem:[%s9209_s1 + $0x2c0] sm:$0xff]  }
  0x17   :  { %v7013_v4 = vld [vmem:[%s9209_s1 + $0x138] sm:$0xff]   ;;  %v16_v6 = vld [vmem:[%s9210_s0 + $0x10] sm:$0xff]  ;;  %v7021_v14 = vld [vmem:[%s9209_s1 + $0x200] sm:$0xff]  }
  0x18   :  { %6254 = vmatpush3.bf16.msra.mxu0 %v6969_v22  ;;  %v7014_v5 = vld [vmem:[%s9209_s1 + $0x1b8] sm:$0xff]   ;;  %v5671_v7 = vcombine.low %v16_v6, %v16_v6  ;;  %v5672_v8 = vcombine.high %v16_v6, %v16_v6  ;;  %v7022_v15 = vld [vmem:[%s9209_s1 + $0x280] sm:$0xff]   ;;  %v7023_v16 = vld [vmem:[%s9209_s1 + $0x248] sm:$0xff]  }
  0x19   :  { %6276 = vmatpush3.bf16.msra.mxu1 %v6970_v23  ;;  %6255 = vmatprep.subr.bf16.mxu0 %v6971_v24  ;;  %v17_v9 = vld [vmem:[%s9210_s0 + $0x18] sm:$0xff]  ;;  %v7024_v17 = vld [vmem:[%s9209_s1 + $0x2c8] sm:$0xff]   ;;  %v7027_v20 = vld [vmem:[%s9209_s1 + $0x250] sm:$0xff]  }
  0x1a   :  { %6277 = vmatprep.subr.bf16.mxu1 %v6972_v25  ;;  %v5673_v10 = vcombine.low %v17_v9, %v17_v9  ;;  %v5674_v11 = vcombine.high %v17_v9, %v17_v9  ;;  %v7025_v18 = vld [vmem:[%s9209_s1 + $0x208] sm:$0xff]   ;;  %v7028_v21 = vld [vmem:[%s9209_s1 + $0x2d0] sm:$0xff]   ;;  %v7031_v24 = vld [vmem:[%s9209_s1 + $0x258] sm:$0xff]  }
  0x1b   :  { %v7026_v19 = vld [vmem:[%s9209_s1 + $0x288] sm:$0xff]   ;;  %v7029_v22 = vld [vmem:[%s9209_s1 + $0x210] sm:$0xff]   ;;  %v7032_v25 = vld [vmem:[%s9209_s1 + $0x2d8] sm:$0xff]  }
  0x1c   :  { %6256 = vmatpush3.bf16.msra.mxu0 %v6973_v26  ;;  %v7030_v23 = vld [vmem:[%s9209_s1 + $0x290] sm:$0xff]   ;;  %v7033_v26 = vld [vmem:[%s9209_s1 + $0x218] sm:$0xff]   ;;  %v7039_v32 = vld [vmem:[%s9209_s1 + $0x268] sm:$0xff]  }
  0x1d   :  { %6278 = vmatpush3.bf16.msra.mxu1 %v6974_v27  ;;  %6257 = vmatprep.subr.bf16.mxu0 %v6975_v28  ;;  %v7034_v27 = vld [vmem:[%s9209_s1 + $0x298] sm:$0xff]   ;;  %v7035_v28 = vld [vmem:[%s9209_s1 + $0x260] sm:$0xff]   ;;  %v7040_v33 = vld [vmem:[%s9209_s1 + $0x2e8] sm:$0xff]  }
  0x1e   :  { %6279 = vmatprep.subr.bf16.mxu1 %v6976_v29  ;;  %v7036_v29 = vld [vmem:[%s9209_s1 + $0x2e0] sm:$0xff]   ;;  %v7042_v35 = vld [vmem:[%s9209_s1 + $0x2a8] sm:$0xff]   ;;  %v7044_v37 = vld [vmem:[%s9209_s1 + $0x2f0] sm:$0xff]  }
  0x1f   :  { %v7075_v6 = vld [vmem:[%s9209_s1 + $0x368] sm:$0xff]  }
  0x20   :  { %6258 = vmatpush3.bf16.msra.mxu0 %v6977_v30  ;;  %v7037_v30 = vld [vmem:[%s9209_s1 + $0x220] sm:$0xff]   ;;  %v7078_v9 = vld [vmem:[%s9209_s1 + $0x3a8] sm:$0xff]  }
  0x21   :  { %6280 = vmatpush3.bf16.msra.mxu1 %v6978_v31  ;;  %6287 = vmatprep.subr.bf16.mxu0 %v6983_v38  ;;  %v7038_v31 = vld [vmem:[%s9209_s1 + $0x2a0] sm:$0xff]   ;;  %v7045_v38 = vld [vmem:[%s9209_s1 + $0x230] sm:$0xff]  }
  0x22   :  { %6309 = vmatprep.subr.bf16.mxu1 %v6984_v39  ;;  %v7046_v39 = vld [vmem:[%s9209_s1 + $0x2b0] sm:$0xff]  }
  0x23   :  { %4399 = vmatmul.mubr.bf16.vlgmr.msra.gmra.mrb[0].mxu0 %v5667_v34  ;;  %v7041_v34 = vld [vmem:[%s9209_s1 + $0x228] sm:$0xff]  }
  0x24   :  { %4439 = vmatmul.mubr.bf16.vlgmr.msra.gmra.mrb[0].mxu1 %v5669_v36  ;;  %6288 = vmatpush3.bf16.msra.mxu0 %v6985_v40  ;;  %v7043_v36 = vld [vmem:[%s9209_s1 + $0x270] sm:$0xff]   ;;  %v7047_v40 = vld [vmem:[%s9209_s1 + $0x278] sm:$0xff]  }
  0x25   :  { %6310 = vmatpush3.bf16.msra.mxu1 %v6986_v41  ;;  %6289 = vmatprep.subr.bf16.mxu0 %v6987_v42  ;;  %v7048_v41 = vld [vmem:[%s9209_s1 + $0x2f8] sm:$0xff]  }
  0x26   :  { %6311 = vmatprep.subr.bf16.mxu1 %v6988_v43  ;;  %4478 = vmatprep.mubr.bf16.mxu0 %v5672_v8  ;;  %v7049_v42 = vld [vmem:[%s9209_s1 + $0x238] sm:$0xff]   ;;  %v7077_v8 = vld [vmem:[%s9209_s1 + $0x328] sm:$0xff]  }
  0x27   :  { %4518 = vmatprep.mubr.bf16.mxu1 %v5674_v11  ;;  %v7050_v43 = vld [vmem:[%s9209_s1 + $0x2b8] sm:$0xff]   ;;  %v7080_v11 = vld [vmem:[%s9209_s1 + $0x3f0] sm:$0xff]  }
  0x28   :  { %6290 = vmatpush3.bf16.msra.mxu0 %v6989_v44  ;;  %v18_v44 = vld [vmem:[%s9210_s0 + $0x20] sm:$0xff] }
  0x29   :  { %6312 = vmatpush3.bf16.msra.mxu1 %v6990_v45  ;;  %6291 = vmatprep.subr.bf16.mxu0 %v6991_v46  ;;  %v19_v45 = vld [vmem:[%s9210_s0 + $0x28] sm:$0xff]  ;;  %v5675_v46 = vcombine.low %v18_v44, %v18_v44 }
  0x2a   :  { %6313 = vmatprep.subr.bf16.mxu1 %v6992_v47  ;;  %v5676_v47 = vcombine.high %v18_v44, %v18_v44  ;;  %v7111_v44 = vld [vmem:[%s9209_s1 + $0x468] sm:$0xff]  }
  0x2c   :  { %6292 = vmatpush3.bf16.msra.mxu0 %v6993_v48  ;;  %v5677_v48 = vcombine.low %v19_v45, %v19_v45 }
  0x2d   :  { %6314 = vmatpush3.bf16.msra.mxu1 %v6994_v49  ;;  %6293 = vmatprep.subr.bf16.mxu0 %v6995_v50  ;;  %v5678_v49 = vcombine.high %v19_v45, %v19_v45  ;;  %v7055_v50 = vld [vmem:[%s9209_s1 + $0x340] sm:$0xff]   ;;  %v7112_v45 = vld [vmem:[%s9209_s1 + $0x4e8] sm:$0xff]  }
  0x2e   :  { %6315 = vmatprep.subr.bf16.mxu1 %v6996_v51  ;;  %v7056_v51 = vld [vmem:[%s9209_s1 + $0x3c0] sm:$0xff]  }
  0x30   :  { %6294 = vmatpush3.bf16.msra.mxu0 %v6997_v52  ;;  %v7057_v52 = vld [vmem:[%s9209_s1 + $0x300] sm:$0xff]  }
  0x31   :  { %6316 = vmatpush3.bf16.msra.mxu1 %v6998_v53  ;;  %6295 = vmatprep.subr.bf16.mxu0 %v6999_v54  ;;  %v7058_v53 = vld [vmem:[%s9209_s1 + $0x380] sm:$0xff]   ;;  %v7059_v54 = vld [vmem:[%s9209_s1 + $0x348] sm:$0xff]  }
  0x32   :  { %6317 = vmatprep.subr.bf16.mxu1 %v7000_v55  ;;  %v7060_v55 = vld [vmem:[%s9209_s1 + $0x3c8] sm:$0xff]  }
  0x34   :  { %6296 = vmatpush3.bf16.msra.mxu0 %v7001_v56  ;;  %v7061_v56 = vld [vmem:[%s9209_s1 + $0x308] sm:$0xff]  }
  0x35   :  { %6318 = vmatpush3.bf16.msra.mxu1 %v7002_v57  ;;  %6297 = vmatprep.subr.bf16.mxu0 %v7003_v58  ;;  %v7062_v57 = vld [vmem:[%s9209_s1 + $0x388] sm:$0xff]   ;;  %v7063_v58 = vld [vmem:[%s9209_s1 + $0x350] sm:$0xff]  }
  0x36   :  { %6319 = vmatprep.subr.bf16.mxu1 %v7004_v59  ;;  %v7064_v59 = vld [vmem:[%s9209_s1 + $0x3d0] sm:$0xff]  }
  0x38   :  { %6298 = vmatpush3.bf16.msra.mxu0 %v7005_v60  ;;  %v7065_v60 = vld [vmem:[%s9209_s1 + $0x310] sm:$0xff]  }
  0x39   :  { %6320 = vmatpush3.bf16.msra.mxu1 %v7006_v61  ;;  %6299 = vmatprep.subr.bf16.mxu0 %v7007_v62  ;;  %v7066_v61 = vld [vmem:[%s9209_s1 + $0x390] sm:$0xff]   ;;  %v7067_v62 = vld [vmem:[%s9209_s1 + $0x358] sm:$0xff]  }
  0x3a   :  { %6321 = vmatprep.subr.bf16.mxu1 %v7008_v63  ;;  %v7068_v63 = vld [vmem:[%s9209_s1 + $0x3d8] sm:$0xff]  }
  0x3c   :  { %6300 = vmatpush3.bf16.msra.mxu0 %v7009_v0  ;;  %v7069_v0 = vld [vmem:[%s9209_s1 + $0x318] sm:$0xff]  }
  0x3d   :  { %6322 = vmatpush3.bf16.msra.mxu1 %v7010_v1  ;;  %6301 = vmatprep.subr.bf16.mxu0 %v7011_v2  ;;  %v7070_v1 = vld [vmem:[%s9209_s1 + $0x398] sm:$0xff]   ;;  %v7071_v2 = vld [vmem:[%s9209_s1 + $0x360] sm:$0xff]  }
  0x3e   :  { %6323 = vmatprep.subr.bf16.mxu1 %v7012_v3  ;;  %v7072_v3 = vld [vmem:[%s9209_s1 + $0x3e0] sm:$0xff]  }
  0x40   :  { %6302 = vmatpush3.bf16.msra.mxu0 %v7013_v4  ;;  %v7073_v4 = vld [vmem:[%s9209_s1 + $0x320] sm:$0xff]  }
  0x41   :  { %6324 = vmatpush3.bf16.msra.mxu1 %v7014_v5  ;;  %6331 = vmatprep.subr.bf16.mxu0 %v7019_v12  ;;  %v7074_v5 = vld [vmem:[%s9209_s1 + $0x3a0] sm:$0xff]   ;;  %v7081_v12 = vld [vmem:[%s9209_s1 + $0x330] sm:$0xff]  }
  0x42   :  { %6353 = vmatprep.subr.bf16.mxu1 %v7020_v13  ;;  %v7082_v13 = vld [vmem:[%s9209_s1 + $0x3b0] sm:$0xff]  }
  0x43   :  { %4479 = vmatmul.mubr.bf16.vlgmr.msra.gmra.mrb[4].mxu0 %v5671_v7  ;;  %v7076_v7 = vld [vmem:[%s9209_s1 + $0x3e8] sm:$0xff]  }
  0x44   :  { %4519 = vmatmul.mubr.bf16.vlgmr.msra.gmra.mrb[4].mxu1 %v5673_v10  ;;  %6332 = vmatpush3.bf16.msra.mxu0 %v7021_v14  ;;  %v7079_v10 = vld [vmem:[%s9209_s1 + $0x370] sm:$0xff]   ;;  %v7083_v14 = vld [vmem:[%s9209_s1 + $0x378] sm:$0xff]  }
  0x45   :  { %6354 = vmatpush3.bf16.msra.mxu1 %v7022_v15  ;;  %6333 = vmatprep.subr.bf16.mxu0 %v7023_v16  ;;  %v7084_v15 = vld [vmem:[%s9209_s1 + $0x3f8] sm:$0xff]  }
  0x46   :  { %6355 = vmatprep.subr.bf16.mxu1 %v7024_v17  ;;  %4558 = vmatprep.mubr.bf16.mxu0 %v5676_v47  ;;  %v7085_v16 = vld [vmem:[%s9209_s1 + $0x338] sm:$0xff]   ;;  %v7114_v47 = vld [vmem:[%s9209_s1 + $0x4a8] sm:$0xff]  }
  0x47   :  { %4598 = vmatprep.mubr.bf16.mxu1 %v5678_v49  ;;  %v7086_v17 = vld [vmem:[%s9209_s1 + $0x3b8] sm:$0xff]   ;;  %v7116_v49 = vld [vmem:[%s9209_s1 + $0x4f0] sm:$0xff]  }
  0x48   :  { %6334 = vmatpush3.bf16.msra.mxu0 %v7025_v18  ;;  %v20_v18 = vld [vmem:[%s9210_s0 + $0x30] sm:$0xff] }
  0x49   :  { %6356 = vmatpush3.bf16.msra.mxu1 %v7026_v19  ;;  %6335 = vmatprep.subr.bf16.mxu0 %v7027_v20  ;;  %v21_v19 = vld [vmem:[%s9210_s0 + $0x38] sm:$0xff]  ;;  %v5679_v20 = vcombine.low %v20_v18, %v20_v18 }
  0x4a   :  { %6357 = vmatprep.subr.bf16.mxu1 %v7028_v21  ;;  %v5680_v21 = vcombine.high %v20_v18, %v20_v18  ;;  %v7147_v18 = vld [vmem:[%s9209_s1 + $0x568] sm:$0xff]  }
  0x4c   :  { %6336 = vmatpush3.bf16.msra.mxu0 %v7029_v22  ;;  %v5681_v22 = vcombine.low %v21_v19, %v21_v19 }
  0x4d   :  { %6358 = vmatpush3.bf16.msra.mxu1 %v7030_v23  ;;  %6337 = vmatprep.subr.bf16.mxu0 %v7031_v24  ;;  %v7091_v23 = vld [vmem:[%s9209_s1 + $0x440] sm:$0xff]   ;;  %v5682_v24 = vcombine.high %v21_v19, %v21_v19  ;;  %v7148_v19 = vld [vmem:[%s9209_s1 + $0x5e8] sm:$0xff]  }
  0x4e   :  { %6359 = vmatprep.subr.bf16.mxu1 %v7032_v25  ;;  %v7092_v25 = vld [vmem:[%s9209_s1 + $0x4c0] sm:$0xff]  }
  0x50   :  { %6338 = vmatpush3.bf16.msra.mxu0 %v7033_v26  ;;  %v7093_v26 = vld [vmem:[%s9209_s1 + $0x400] sm:$0xff]  }
  0x51   :  { %6360 = vmatpush3.bf16.msra.mxu1 %v7034_v27  ;;  %6339 = vmatprep.subr.bf16.mxu0 %v7035_v28  ;;  %v7094_v27 = vld [vmem:[%s9209_s1 + $0x480] sm:$0xff]   ;;  %v7095_v28 = vld [vmem:[%s9209_s1 + $0x448] sm:$0xff]  }
  0x52   :  { %6361 = vmatprep.subr.bf16.mxu1 %v7036_v29  ;;  %v7096_v29 = vld [vmem:[%s9209_s1 + $0x4c8] sm:$0xff]  }
  0x54   :  { %6340 = vmatpush3.bf16.msra.mxu0 %v7037_v30  ;;  %v7097_v30 = vld [vmem:[%s9209_s1 + $0x408] sm:$0xff]  }
  0x55   :  { %6362 = vmatpush3.bf16.msra.mxu1 %v7038_v31  ;;  %6341 = vmatprep.subr.bf16.mxu0 %v7039_v32  ;;  %v7098_v31 = vld [vmem:[%s9209_s1 + $0x488] sm:$0xff]   ;;  %v7099_v32 = vld [vmem:[%s9209_s1 + $0x450] sm:$0xff]  }
  0x56   :  { %6363 = vmatprep.subr.bf16.mxu1 %v7040_v33  ;;  %v7100_v33 = vld [vmem:[%s9209_s1 + $0x4d0] sm:$0xff]  }
  0x58   :  { %6342 = vmatpush3.bf16.msra.mxu0 %v7041_v34  ;;  %v7101_v34 = vld [vmem:[%s9209_s1 + $0x410] sm:$0xff]  }
  0x59   :  { %6364 = vmatpush3.bf16.msra.mxu1 %v7042_v35  ;;  %6343 = vmatprep.subr.bf16.mxu0 %v7043_v36  ;;  %v7102_v35 = vld [vmem:[%s9209_s1 + $0x490] sm:$0xff]   ;;  %v7103_v36 = vld [vmem:[%s9209_s1 + $0x458] sm:$0xff]  }
  0x5a   :  { %6365 = vmatprep.subr.bf16.mxu1 %v7044_v37  ;;  %v7104_v37 = vld [vmem:[%s9209_s1 + $0x4d8] sm:$0xff]  }
  0x5c   :  { %6344 = vmatpush3.bf16.msra.mxu0 %v7045_v38  ;;  %v7105_v38 = vld [vmem:[%s9209_s1 + $0x418] sm:$0xff]  }
  0x5d   :  { %6366 = vmatpush3.bf16.msra.mxu1 %v7046_v39  ;;  %6345 = vmatprep.subr.bf16.mxu0 %v7047_v40  ;;  %v7106_v39 = vld [vmem:[%s9209_s1 + $0x498] sm:$0xff]   ;;  %v7107_v40 = vld [vmem:[%s9209_s1 + $0x460] sm:$0xff]  }
  0x5e   :  { %6367 = vmatprep.subr.bf16.mxu1 %v7048_v41  ;;  %v7108_v41 = vld [vmem:[%s9209_s1 + $0x4e0] sm:$0xff]  }
  0x60   :  { %6346 = vmatpush3.bf16.msra.mxu0 %v7049_v42  ;;  %v7109_v42 = vld [vmem:[%s9209_s1 + $0x420] sm:$0xff]  }
  0x61   :  { %6368 = vmatpush3.bf16.msra.mxu1 %v7050_v43  ;;  %6375 = vmatprep.subr.bf16.mxu0 %v7055_v50  ;;  %v7110_v43 = vld [vmem:[%s9209_s1 + $0x4a0] sm:$0xff]   ;;  %v7117_v50 = vld [vmem:[%s9209_s1 + $0x430] sm:$0xff]  }
  0x62   :  { %6397 = vmatprep.subr.bf16.mxu1 %v7056_v51  ;;  %v7118_v51 = vld [vmem:[%s9209_s1 + $0x4b0] sm:$0xff]  }
  0x63   :  { %4559 = vmatmul.mubr.bf16.vlgmr.msra.gmra.mrb[8].mxu0 %v5675_v46  ;;  %v7113_v46 = vld [vmem:[%s9209_s1 + $0x428] sm:$0xff]  }
  0x64   :  { %4599 = vmatmul.mubr.bf16.vlgmr.msra.gmra.mrb[8].mxu1 %v5677_v48  ;;  %6376 = vmatpush3.bf16.msra.mxu0 %v7057_v52  ;;  %v7115_v48 = vld [vmem:[%s9209_s1 + $0x470] sm:$0xff]   ;;  %v7119_v52 = vld [vmem:[%s9209_s1 + $0x478] sm:$0xff]  }
  0x65   :  { %6398 = vmatpush3.bf16.msra.mxu1 %v7058_v53  ;;  %6377 = vmatprep.subr.bf16.mxu0 %v7059_v54  ;;  %v7120_v53 = vld [vmem:[%s9209_s1 + $0x4f8] sm:$0xff]  }
  0x66   :  { %6399 = vmatprep.subr.bf16.mxu1 %v7060_v55  ;;  %4638 = vmatprep.mubr.bf16.mxu0 %v5680_v21  ;;  %v7121_v54 = vld [vmem:[%s9209_s1 + $0x438] sm:$0xff]   ;;  %v7150_v21 = vld [vmem:[%s9209_s1 + $0x5a8] sm:$0xff]  }
  0x67   :  { %4678 = vmatprep.mubr.bf16.mxu1 %v5682_v24  ;;  %v7122_v55 = vld [vmem:[%s9209_s1 + $0x4b8] sm:$0xff]   ;;  %v7153_v24 = vld [vmem:[%s9209_s1 + $0x530] sm:$0xff]  }
  0x68   :  { %6378 = vmatpush3.bf16.msra.mxu0 %v7061_v56  ;;  %v22_v56 = vld [vmem:[%s9210_s0 + $0x40] sm:$0xff] }
  0x69   :  { %6400 = vmatpush3.bf16.msra.mxu1 %v7062_v57  ;;  %6379 = vmatprep.subr.bf16.mxu0 %v7063_v58  ;;  %v5683_v57 = vcombine.low %v22_v56, %v22_v56  ;;  %v5684_v58 = vcombine.high %v22_v56, %v22_v56  ;;  %v7183_v56 = vld [vmem:[%s9209_s1 + $0x668] sm:$0xff]  }
  0x6a   :  { %6401 = vmatprep.subr.bf16.mxu1 %v7064_v59  ;;  %v23_v59 = vld [vmem:[%s9210_s0 + $0x48] sm:$0xff] }
  0x6c   :  { %6380 = vmatpush3.bf16.msra.mxu0 %v7065_v60  ;;  %v5685_v60 = vcombine.low %v23_v59, %v23_v59 }
  0x6d   :  { %6402 = vmatpush3.bf16.msra.mxu1 %v7066_v61  ;;  %6381 = vmatprep.subr.bf16.mxu0 %v7067_v62  ;;  %v5686_v61 = vcombine.high %v23_v59, %v23_v59  ;;  %v7127_v62 = vld [vmem:[%s9209_s1 + $0x540] sm:$0xff]   ;;  %v7186_v59 = vld [vmem:[%s9209_s1 + $0x6a8] sm:$0xff]  }
  0x6e   :  { %6403 = vmatprep.subr.bf16.mxu1 %v7068_v63  ;;  %v7128_v63 = vld [vmem:[%s9209_s1 + $0x5c0] sm:$0xff]  }
  0x70   :  { %6382 = vmatpush3.bf16.msra.mxu0 %v7069_v0  ;;  %v7129_v0 = vld [vmem:[%s9209_s1 + $0x500] sm:$0xff]  }
  0x71   :  { %6404 = vmatpush3.bf16.msra.mxu1 %v7070_v1  ;;  %6383 = vmatprep.subr.bf16.mxu0 %v7071_v2  ;;  %v7130_v1 = vld [vmem:[%s9209_s1 + $0x580] sm:$0xff]   ;;  %v7131_v2 = vld [vmem:[%s9209_s1 + $0x548] sm:$0xff]  }
  0x72   :  { %6405 = vmatprep.subr.bf16.mxu1 %v7072_v3  ;;  %v7132_v3 = vld [vmem:[%s9209_s1 + $0x5c8] sm:$0xff]  }
  0x74   :  { %6384 = vmatpush3.bf16.msra.mxu0 %v7073_v4  ;;  %v7133_v4 = vld [vmem:[%s9209_s1 + $0x508] sm:$0xff]  }
  0x75   :  { %6406 = vmatpush3.bf16.msra.mxu1 %v7074_v5  ;;  %6385 = vmatprep.subr.bf16.mxu0 %v7075_v6  ;;  %v7134_v5 = vld [vmem:[%s9209_s1 + $0x588] sm:$0xff]   ;;  %v7135_v6 = vld [vmem:[%s9209_s1 + $0x550] sm:$0xff]  }
  0x76   :  { %6407 = vmatprep.subr.bf16.mxu1 %v7076_v7  ;;  %v7136_v7 = vld [vmem:[%s9209_s1 + $0x5d0] sm:$0xff]  }
  0x78   :  { %6386 = vmatpush3.bf16.msra.mxu0 %v7077_v8  ;;  %v7137_v8 = vld [vmem:[%s9209_s1 + $0x510] sm:$0xff]  }
  0x79   :  { %6408 = vmatpush3.bf16.msra.mxu1 %v7078_v9  ;;  %6387 = vmatprep.subr.bf16.mxu0 %v7079_v10  ;;  %v7138_v9 = vld [vmem:[%s9209_s1 + $0x590] sm:$0xff]   ;;  %v7139_v10 = vld [vmem:[%s9209_s1 + $0x558] sm:$0xff]  }
  0x7a   :  { %6409 = vmatprep.subr.bf16.mxu1 %v7080_v11  ;;  %v7140_v11 = vld [vmem:[%s9209_s1 + $0x5d8] sm:$0xff]  }
  0x7c   :  { %6388 = vmatpush3.bf16.msra.mxu0 %v7081_v12  ;;  %v7141_v12 = vld [vmem:[%s9209_s1 + $0x518] sm:$0xff]  }
  0x7d   :  { %6410 = vmatpush3.bf16.msra.mxu1 %v7082_v13  ;;  %6389 = vmatprep.subr.bf16.mxu0 %v7083_v14  ;;  %v7142_v13 = vld [vmem:[%s9209_s1 + $0x598] sm:$0xff]   ;;  %v7143_v14 = vld [vmem:[%s9209_s1 + $0x560] sm:$0xff]  }
  0x7e   :  { %6411 = vmatprep.subr.bf16.mxu1 %v7084_v15  ;;  %v7144_v15 = vld [vmem:[%s9209_s1 + $0x5e0] sm:$0xff]  }
  0x80   :  { %6390 = vmatpush3.bf16.msra.mxu0 %v7085_v16  ;;  %v7145_v16 = vld [vmem:[%s9209_s1 + $0x520] sm:$0xff]  }
  0x81   :  { %6412 = vmatpush3.bf16.msra.mxu1 %v7086_v17  ;;  %6419 = vmatprep.subr.bf16.mxu0 %v7091_v23  ;;  %v7146_v17 = vld [vmem:[%s9209_s1 + $0x5a0] sm:$0xff]   ;;  %v7152_v23 = vld [vmem:[%s9209_s1 + $0x5f0] sm:$0xff]  }
  0x82   :  { %6441 = vmatprep.subr.bf16.mxu1 %v7092_v25  ;;  %v7154_v25 = vld [vmem:[%s9209_s1 + $0x5b0] sm:$0xff]  }
  0x83   :  { %4639 = vmatmul.mubr.bf16.vlgmr.msra.gmra.mrb[12].mxu0 %v5679_v20  ;;  %v7149_v20 = vld [vmem:[%s9209_s1 + $0x528] sm:$0xff]  }
  0x84   :  { %4679 = vmatmul.mubr.bf16.vlgmr.msra.gmra.mrb[12].mxu1 %v5681_v22  ;;  %6420 = vmatpush3.bf16.msra.mxu0 %v7093_v26  ;;  %v7151_v22 = vld [vmem:[%s9209_s1 + $0x570] sm:$0xff]   ;;  %v7155_v26 = vld [vmem:[%s9209_s1 + $0x578] sm:$0xff]  }
  0x85   :  { %6442 = vmatpush3.bf16.msra.mxu1 %v7094_v27  ;;  %6421 = vmatprep.subr.bf16.mxu0 %v7095_v28  ;;  %v7156_v27 = vld [vmem:[%s9209_s1 + $0x5f8] sm:$0xff]  }
  0x86   :  { %6443 = vmatprep.subr.bf16.mxu1 %v7096_v29  ;;  %4718 = vmatprep.mubr.bf16.mxu0 %v5684_v58  ;;  %v7157_v28 = vld [vmem:[%s9209_s1 + $0x538] sm:$0xff]   ;;  %v7185_v58 = vld [vmem:[%s9209_s1 + $0x628] sm:$0xff]  }
  0x87   :  { %4758 = vmatprep.mubr.bf16.mxu1 %v5686_v61  ;;  %v7158_v29 = vld [vmem:[%s9209_s1 + $0x5b8] sm:$0xff]   ;;  %v7188_v61 = vld [vmem:[%s9209_s1 + $0x6f0] sm:$0xff]  }
  0x88   :  { %6422 = vmatpush3.bf16.msra.mxu0 %v7097_v30  ;;  %v24_v30 = vld [vmem:[%s9210_s0 + $0x50] sm:$0xff] }
  0x89   :  { %6444 = vmatpush3.bf16.msra.mxu1 %v7098_v31  ;;  %6423 = vmatprep.subr.bf16.mxu0 %v7099_v32  ;;  %v25_v31 = vld [vmem:[%s9210_s0 + $0x58] sm:$0xff]  ;;  %v5687_v32 = vcombine.low %v24_v30, %v24_v30 }
  0x8a   :  { %6445 = vmatprep.subr.bf16.mxu1 %v7100_v33  ;;  %v5688_v33 = vcombine.high %v24_v30, %v24_v30  ;;  %v7218_v30 = vld [vmem:[%s9209_s1 + $0x7a0] sm:$0xff]  }
  0x8c   :  { %6424 = vmatpush3.bf16.msra.mxu0 %v7101_v34  ;;  %v5689_v34 = vcombine.low %v25_v31, %v25_v31 }
  0x8d   :  { %6446 = vmatpush3.bf16.msra.mxu1 %v7102_v35  ;;  %6425 = vmatprep.subr.bf16.mxu0 %v7103_v36  ;;  %v5690_v35 = vcombine.high %v25_v31, %v25_v31  ;;  %v7163_v36 = vld [vmem:[%s9209_s1 + $0x640] sm:$0xff]  }
  0x8e   :  { %6447 = vmatprep.subr.bf16.mxu1 %v7104_v37  ;;  %v7164_v37 = vld [vmem:[%s9209_s1 + $0x6c0] sm:$0xff]  }
  0x90   :  { %6426 = vmatpush3.bf16.msra.mxu0 %v7105_v38  ;;  %v7165_v38 = vld [vmem:[%s9209_s1 + $0x600] sm:$0xff]  }
  0x91   :  { %6448 = vmatpush3.bf16.msra.mxu1 %v7106_v39  ;;  %6427 = vmatprep.subr.bf16.mxu0 %v7107_v40  ;;  %v7166_v39 = vld [vmem:[%s9209_s1 + $0x680] sm:$0xff]   ;;  %v7167_v40 = vld [vmem:[%s9209_s1 + $0x648] sm:$0xff]  }
  0x92   :  { %6449 = vmatprep.subr.bf16.mxu1 %v7108_v41  ;;  %v7168_v41 = vld [vmem:[%s9209_s1 + $0x6c8] sm:$0xff]  }
  0x94   :  { %6428 = vmatpush3.bf16.msra.mxu0 %v7109_v42  ;;  %v7169_v42 = vld [vmem:[%s9209_s1 + $0x608] sm:$0xff]  }
  0x95   :  { %6450 = vmatpush3.bf16.msra.mxu1 %v7110_v43  ;;  %6429 = vmatprep.subr.bf16.mxu0 %v7111_v44  ;;  %v7170_v43 = vld [vmem:[%s9209_s1 + $0x688] sm:$0xff]   ;;  %v7171_v44 = vld [vmem:[%s9209_s1 + $0x650] sm:$0xff]  }
  0x96   :  { %6451 = vmatprep.subr.bf16.mxu1 %v7112_v45  ;;  %v7172_v45 = vld [vmem:[%s9209_s1 + $0x6d0] sm:$0xff]  }
  0x98   :  { %6430 = vmatpush3.bf16.msra.mxu0 %v7113_v46  ;;  %v7173_v46 = vld [vmem:[%s9209_s1 + $0x610] sm:$0xff]  }
  0x99   :  { %6452 = vmatpush3.bf16.msra.mxu1 %v7114_v47  ;;  %6431 = vmatprep.subr.bf16.mxu0 %v7115_v48  ;;  %v7174_v47 = vld [vmem:[%s9209_s1 + $0x690] sm:$0xff]   ;;  %v7175_v48 = vld [vmem:[%s9209_s1 + $0x658] sm:$0xff]  }
  0x9a   :  { %6453 = vmatprep.subr.bf16.mxu1 %v7116_v49  ;;  %v7176_v49 = vld [vmem:[%s9209_s1 + $0x6d8] sm:$0xff]  }
  0x9c   :  { %6432 = vmatpush3.bf16.msra.mxu0 %v7117_v50  ;;  %v7177_v50 = vld [vmem:[%s9209_s1 + $0x618] sm:$0xff]  }
  0x9d   :  { %6454 = vmatpush3.bf16.msra.mxu1 %v7118_v51  ;;  %6433 = vmatprep.subr.bf16.mxu0 %v7119_v52  ;;  %v7178_v51 = vld [vmem:[%s9209_s1 + $0x698] sm:$0xff]   ;;  %v7179_v52 = vld [vmem:[%s9209_s1 + $0x660] sm:$0xff]  }
  0x9e   :  { %6455 = vmatprep.subr.bf16.mxu1 %v7120_v53  ;;  %v7180_v53 = vld [vmem:[%s9209_s1 + $0x6e0] sm:$0xff]  }
  0xa0   :  { %6434 = vmatpush3.bf16.msra.mxu0 %v7121_v54  ;;  %v7181_v54 = vld [vmem:[%s9209_s1 + $0x620] sm:$0xff]  }
  0xa1   :  { %6456 = vmatpush3.bf16.msra.mxu1 %v7122_v55  ;;  %6463 = vmatprep.subr.bf16.mxu0 %v7127_v62  ;;  %v7182_v55 = vld [vmem:[%s9209_s1 + $0x6a0] sm:$0xff]   ;;  %v7189_v62 = vld [vmem:[%s9209_s1 + $0x630] sm:$0xff]  }
  0xa2   :  { %6485 = vmatprep.subr.bf16.mxu1 %v7128_v63  ;;  %v7190_v63 = vld [vmem:[%s9209_s1 + $0x6b0] sm:$0xff]  }
  0xa3   :  { %4719 = vmatmul.mubr.bf16.vlgmr.msra.gmra.mrb[16].mxu0 %v5683_v57  ;;  %v7184_v57 = vld [vmem:[%s9209_s1 + $0x6e8] sm:$0xff]  }
  0xa4   :  { %4759 = vmatmul.mubr.bf16.vlgmr.msra.gmra.mrb[16].mxu1 %v5685_v60  ;;  %6464 = vmatpush3.bf16.msra.mxu0 %v7129_v0  ;;  %v7187_v60 = vld [vmem:[%s9209_s1 + $0x670] sm:$0xff]   ;;  %v7191_v0 = vld [vmem:[%s9209_s1 + $0x678] sm:$0xff]  }
  0xa5   :  { %6486 = vmatpush3.bf16.msra.mxu1 %v7130_v1  ;;  %6465 = vmatprep.subr.bf16.mxu0 %v7131_v2  ;;  %v7192_v1 = vld [vmem:[%s9209_s1 + $0x6f8] sm:$0xff]  }
  0xa6   :  { %6487 = vmatprep.subr.bf16.mxu1 %v7132_v3  ;;  %4798 = vmatprep.mubr.bf16.mxu0 %v5688_v33  ;;  %v7193_v2 = vld [vmem:[%s9209_s1 + $0x638] sm:$0xff]   ;;  %v7219_v33 = vld [vmem:[%s9209_s1 + $0x768] sm:$0xff]  }
  0xa7   :  { %4838 = vmatprep.mubr.bf16.mxu1 %v5690_v35  ;;  %v7194_v3 = vld [vmem:[%s9209_s1 + $0x6b8] sm:$0xff]  }
  0xa8   :  { %6466 = vmatpush3.bf16.msra.mxu0 %v7133_v4  ;;  %v26_v4 = vld [vmem:[%s9210_s0 + $0x60] sm:$0xff] }
  0xa9   :  { %6488 = vmatpush3.bf16.msra.mxu1 %v7134_v5  ;;  %6467 = vmatprep.subr.bf16.mxu0 %v7135_v6  ;;  %v27_v5 = vld [vmem:[%s9210_s0 + $0x68] sm:$0xff]  ;;  %v5691_v6 = vcombine.low %v26_v4, %v26_v4 }
  0xaa   :  { %6489 = vmatprep.subr.bf16.mxu1 %v7136_v7  ;;  %v5692_v7 = vcombine.high %v26_v4, %v26_v4  ;;  %v7244_v4 = vld [vmem:[%s9209_s1 + $0x8d0] sm:$0xff]  }
  0xac   :  { %6468 = vmatpush3.bf16.msra.mxu0 %v7137_v8  ;;  %v5693_v8 = vcombine.low %v27_v5, %v27_v5 }
  0xad   :  { %6490 = vmatpush3.bf16.msra.mxu1 %v7138_v9  ;;  %6469 = vmatprep.subr.bf16.mxu0 %v7139_v10  ;;  %v7199_v9 = vld [vmem:[%s9209_s1 + $0x740] sm:$0xff]   ;;  %v5694_v10 = vcombine.high %v27_v5, %v27_v5  ;;  %v7245_v5 = vld [vmem:[%s9209_s1 + $0x810] sm:$0xff]  }
  0xae   :  { %6491 = vmatprep.subr.bf16.mxu1 %v7140_v11  ;;  %v7200_v11 = vld [vmem:[%s9209_s1 + $0x7c0] sm:$0xff]  }
  0xb0   :  { %6470 = vmatpush3.bf16.msra.mxu0 %v7141_v12  ;;  %v7201_v12 = vld [vmem:[%s9209_s1 + $0x700] sm:$0xff]  }
  0xb1   :  { %6492 = vmatpush3.bf16.msra.mxu1 %v7142_v13  ;;  %6471 = vmatprep.subr.bf16.mxu0 %v7143_v14  ;;  %v7202_v13 = vld [vmem:[%s9209_s1 + $0x780] sm:$0xff]   ;;  %v7203_v14 = vld [vmem:[%s9209_s1 + $0x748] sm:$0xff]  }
  0xb2   :  { %6493 = vmatprep.subr.bf16.mxu1 %v7144_v15  ;;  %v7204_v15 = vld [vmem:[%s9209_s1 + $0x7c8] sm:$0xff]  }
  0xb4   :  { %6472 = vmatpush3.bf16.msra.mxu0 %v7145_v16  ;;  %v7205_v16 = vld [vmem:[%s9209_s1 + $0x708] sm:$0xff]  }
  0xb5   :  { %6494 = vmatpush3.bf16.msra.mxu1 %v7146_v17  ;;  %6473 = vmatprep.subr.bf16.mxu0 %v7147_v18  ;;  %v7206_v17 = vld [vmem:[%s9209_s1 + $0x788] sm:$0xff]   ;;  %v7207_v18 = vld [vmem:[%s9209_s1 + $0x750] sm:$0xff]  }
  0xb6   :  { %6495 = vmatprep.subr.bf16.mxu1 %v7148_v19  ;;  %v7208_v19 = vld [vmem:[%s9209_s1 + $0x7d0] sm:$0xff]  }
  0xb8   :  { %6474 = vmatpush3.bf16.msra.mxu0 %v7149_v20  ;;  %v7209_v20 = vld [vmem:[%s9209_s1 + $0x710] sm:$0xff]  }
  0xb9   :  { %6496 = vmatpush3.bf16.msra.mxu1 %v7150_v21  ;;  %6475 = vmatprep.subr.bf16.mxu0 %v7151_v22  ;;  %v7210_v21 = vld [vmem:[%s9209_s1 + $0x790] sm:$0xff]   ;;  %v7211_v22 = vld [vmem:[%s9209_s1 + $0x758] sm:$0xff]  }
  0xba   :  { %6497 = vmatprep.subr.bf16.mxu1 %v7152_v23  ;;  %v7212_v23 = vld [vmem:[%s9209_s1 + $0x7d8] sm:$0xff]  }
  0xbc   :  { %6476 = vmatpush3.bf16.msra.mxu0 %v7153_v24  ;;  %v7213_v24 = vld [vmem:[%s9209_s1 + $0x718] sm:$0xff]  }
  0xbd   :  { %6498 = vmatpush3.bf16.msra.mxu1 %v7154_v25  ;;  %6477 = vmatprep.subr.bf16.mxu0 %v7155_v26  ;;  %v7214_v25 = vld [vmem:[%s9209_s1 + $0x798] sm:$0xff]   ;;  %v7215_v26 = vld [vmem:[%s9209_s1 + $0x760] sm:$0xff]  }
  0xbe   :  { %6499 = vmatprep.subr.bf16.mxu1 %v7156_v27  ;;  %v7216_v27 = vld [vmem:[%s9209_s1 + $0x7e0] sm:$0xff]  }
  0xc0   :  { %6478 = vmatpush3.bf16.msra.mxu0 %v7157_v28  ;;  %v7217_v28 = vld [vmem:[%s9209_s1 + $0x720] sm:$0xff]  }
  0xc1   :  { %6500 = vmatpush3.bf16.msra.mxu1 %v7158_v29  ;;  %6507 = vmatprep.subr.bf16.mxu0 %v7163_v36  ;;  %v7220_v36 = vld [vmem:[%s9209_s1 + $0x7e8] sm:$0xff]  }
  0xc2   :  { %6529 = vmatprep.subr.bf16.mxu1 %v7164_v37 }
  0xc3   :  { %4799 = vmatmul.mubr.bf16.vlgmr.msra.gmra.mrb[20].mxu0 %v5687_v32 }
  0xc4   :  { %4839 = vmatmul.mubr.bf16.vlgmr.msra.gmra.mrb[20].mxu1 %v5689_v34  ;;  %6508 = vmatpush3.bf16.msra.mxu0 %v7165_v38 }
  0xc5   :  { %6530 = vmatpush3.bf16.msra.mxu1 %v7166_v39  ;;  %6509 = vmatprep.subr.bf16.mxu0 %v7167_v40  ;;  %v7221_v40 = vld [vmem:[%s9209_s1 + $0x728] sm:$0xff]  }
  0xc6   :  { %6531 = vmatprep.subr.bf16.mxu1 %v7168_v41  ;;  %4878 = vmatprep.mubr.bf16.mxu0 %v5692_v7  ;;  %v7247_v7 = vld [vmem:[%s9209_s1 + $0x858] sm:$0xff]  }
  0xc7   :  { %4918 = vmatprep.mubr.bf16.mxu1 %v5694_v10  ;;  %v7250_v10 = vld [vmem:[%s9209_s1 + $0x898] sm:$0xff]  }
  0xc8   :  { %6510 = vmatpush3.bf16.msra.mxu0 %v7169_v42 }
  0xc9   :  { %6532 = vmatpush3.bf16.msra.mxu1 %v7170_v43  ;;  %6511 = vmatprep.subr.bf16.mxu0 %v7171_v44  ;;  %v7222_v43 = vld [vmem:[%s9209_s1 + $0x7a8] sm:$0xff]  }
  0xca   :  { %6533 = vmatprep.subr.bf16.mxu1 %v7172_v45  ;;  %v7223_v45 = vld [vmem:[%s9209_s1 + $0x770] sm:$0xff]  }
  0xcc   :  { %6512 = vmatpush3.bf16.msra.mxu0 %v7173_v46  ;;  %v7224_v46 = vld [vmem:[%s9209_s1 + $0x7f0] sm:$0xff]  }
  0xcd   :  { %6534 = vmatpush3.bf16.msra.mxu1 %v7174_v47  ;;  %6513 = vmatprep.subr.bf16.mxu0 %v7175_v48  ;;  %v7225_v47 = vld [vmem:[%s9209_s1 + $0x730] sm:$0xff]  }
  0xce   :  { %6535 = vmatprep.subr.bf16.mxu1 %v7176_v49  ;;  %v7226_v48 = vld [vmem:[%s9209_s1 + $0x7b0] sm:$0xff]   ;;  %v7227_v49 = vld [vmem:[%s9209_s1 + $0x778] sm:$0xff]  }
  0xd0   :  { %6514 = vmatpush3.bf16.msra.mxu0 %v7177_v50  ;;  %v7228_v50 = vld [vmem:[%s9209_s1 + $0x7f8] sm:$0xff]  }
  0xd1   :  { %6536 = vmatpush3.bf16.msra.mxu1 %v7178_v51  ;;  %6515 = vmatprep.subr.bf16.mxu0 %v7179_v52  ;;  %v7229_v51 = vld [vmem:[%s9209_s1 + $0x738] sm:$0xff]  }
  0xd2   :  { %6537 = vmatprep.subr.bf16.mxu1 %v7180_v53  ;;  %v7230_v52 = vld [vmem:[%s9209_s1 + $0x7b8] sm:$0xff]   ;;  %v28_v53 = vld [vmem:[%s9210_s0 + $0x70] sm:$0xff] }
  0xd4   :  { %6516 = vmatpush3.bf16.msra.mxu0 %v7181_v54  ;;  %v29_v54 = vld [vmem:[%s9210_s0 + $0x78] sm:$0xff] }
  0xd5   :  { %6538 = vmatpush3.bf16.msra.mxu1 %v7182_v55  ;;  %6517 = vmatprep.subr.bf16.mxu0 %v7183_v56  ;;  %v5695_v55 = vcombine.low %v28_v53, %v28_v53  ;;  %v5696_v56 = vcombine.high %v28_v53, %v28_v53  ;;  %v7279_v53 = vld [vmem:[%s9209_s1 + $0x950] sm:$0xff]  }
  0xd6   :  { %6539 = vmatprep.subr.bf16.mxu1 %v7184_v57  ;;  %v5697_v57 = vcombine.low %v29_v54, %v29_v54 }
  0xd8   :  { %6518 = vmatpush3.bf16.msra.mxu0 %v7185_v58  ;;  %v7235_v58 = vld [vmem:[%s9209_s1 + $0x840] sm:$0xff]  }
  0xd9   :  { %6540 = vmatpush3.bf16.msra.mxu1 %v7186_v59  ;;  %6519 = vmatprep.subr.bf16.mxu0 %v7187_v60  ;;  %v5698_v59 = vcombine.high %v29_v54, %v29_v54  ;;  %v7236_v60 = vld [vmem:[%s9209_s1 + $0x8c0] sm:$0xff]   ;;  %v7280_v54 = vld [vmem:[%s9209_s1 + $0x9d0] sm:$0xff]  }
  0xda   :  { %6541 = vmatprep.subr.bf16.mxu1 %v7188_v61  ;;  %v7237_v61 = vld [vmem:[%s9209_s1 + $0x800] sm:$0xff]  }
  0xdc   :  { %6520 = vmatpush3.bf16.msra.mxu0 %v7189_v62  ;;  %v7238_v62 = vld [vmem:[%s9209_s1 + $0x880] sm:$0xff]  }
  0xdd   :  { %6542 = vmatpush3.bf16.msra.mxu1 %v7190_v63  ;;  %6521 = vmatprep.subr.bf16.mxu0 %v7191_v0  ;;  %v7239_v63 = vld [vmem:[%s9209_s1 + $0x848] sm:$0xff]  }
  0xde   :  { %6543 = vmatprep.subr.bf16.mxu1 %v7192_v1  ;;  %v7240_v0 = vld [vmem:[%s9209_s1 + $0x8c8] sm:$0xff]  }
  0xdf   :  { %v7241_v1 = vld [vmem:[%s9209_s1 + $0x808] sm:$0xff]  }
  0xe0   :  { %6522 = vmatpush3.bf16.msra.mxu0 %v7193_v2  ;;  %v7242_v2 = vld [vmem:[%s9209_s1 + $0x888] sm:$0xff]  }
  0xe1   :  { %6544 = vmatpush3.bf16.msra.mxu1 %v7194_v3  ;;  %6551 = vmatprep.subr.bf16.mxu0 %v7199_v9  ;;  %v7243_v3 = vld [vmem:[%s9209_s1 + $0x850] sm:$0xff]   ;;  %v7249_v9 = vld [vmem:[%s9209_s1 + $0x818] sm:$0xff]  }
  0xe2   :  { %6573 = vmatprep.subr.bf16.mxu1 %v7200_v11  ;;  %v7251_v11 = vld [vmem:[%s9209_s1 + $0x860] sm:$0xff]  }
  0xe3   :  { %4879 = vmatmul.mubr.bf16.vlgmr.msra.gmra.mrb[24].mxu0 %v5691_v6  ;;  %v7246_v6 = vld [vmem:[%s9209_s1 + $0x890] sm:$0xff]  }
  0xe4   :  { %4919 = vmatmul.mubr.bf16.vlgmr.msra.gmra.mrb[24].mxu1 %v5693_v8  ;;  %6552 = vmatpush3.bf16.msra.mxu0 %v7201_v12  ;;  %v7248_v8 = vld [vmem:[%s9209_s1 + $0x8d8] sm:$0xff]   ;;  %v7252_v12 = vld [vmem:[%s9209_s1 + $0x8e0] sm:$0xff]  }
  0xe5   :  { %6574 = vmatpush3.bf16.msra.mxu1 %v7202_v13  ;;  %6553 = vmatprep.subr.bf16.mxu0 %v7203_v14  ;;  %v7253_v13 = vld [vmem:[%s9209_s1 + $0x820] sm:$0xff]  }
  0xe6   :  { %6575 = vmatprep.subr.bf16.mxu1 %v7204_v15  ;;  %4958 = vmatprep.mubr.bf16.mxu0 %v5696_v56  ;;  %v7254_v15 = vld [vmem:[%s9209_s1 + $0x8a0] sm:$0xff]   ;;  %v7282_v56 = vld [vmem:[%s9209_s1 + $0x990] sm:$0xff]  }
  0xe7   :  { %4998 = vmatprep.mubr.bf16.mxu1 %v5698_v59  ;;  %v7285_v59 = vld [vmem:[%s9209_s1 + $0x918] sm:$0xff]  }
  0xe8   :  { %6554 = vmatpush3.bf16.msra.mxu0 %v7205_v16 }
  0xe9   :  { %6576 = vmatpush3.bf16.msra.mxu1 %v7206_v17  ;;  %6555 = vmatprep.subr.bf16.mxu0 %v7207_v18  ;;  %v7255_v18 = vld [vmem:[%s9209_s1 + $0x868] sm:$0xff]  }
  0xea   :  { %6577 = vmatprep.subr.bf16.mxu1 %v7208_v19 }
  0xec   :  { %6556 = vmatpush3.bf16.msra.mxu0 %v7209_v20 }
  0xed   :  { %6578 = vmatpush3.bf16.msra.mxu1 %v7210_v21  ;;  %6557 = vmatprep.subr.bf16.mxu0 %v7211_v22  ;;  %v7256_v21 = vld [vmem:[%s9209_s1 + $0x8e8] sm:$0xff]  }
  0xee   :  { %6579 = vmatprep.subr.bf16.mxu1 %v7212_v23 }
  0xf0   :  { %6558 = vmatpush3.bf16.msra.mxu0 %v7213_v24 }
  0xf1   :  { %6580 = vmatpush3.bf16.msra.mxu1 %v7214_v25  ;;  %6559 = vmatprep.subr.bf16.mxu0 %v7215_v26  ;;  %v7257_v26 = vld [vmem:[%s9209_s1 + $0x828] sm:$0xff]  }
  0xf2   :  { %6581 = vmatprep.subr.bf16.mxu1 %v7216_v27 }
  0xf4   :  { %6560 = vmatpush3.bf16.msra.mxu0 %v7217_v28  ;;  %v7258_v28 = vld [vmem:[%s9209_s1 + $0x8a8] sm:$0xff]  }
  0xf5   :  { %6582 = vmatpush3.bf16.msra.mxu1 %v7218_v30  ;;  %6561 = vmatprep.subr.bf16.mxu0 %v7219_v33  ;;  %v7261_v33 = vld [vmem:[%s9209_s1 + $0x830] sm:$0xff]  }
  0xf6   :  { %v6259_v29 = vpop.f32.mrb[0].mxu0  ;;  %6583 = vmatprep.subr.bf16.mxu1 %v7220_v36  ;;  %v7264_v36 = vld [vmem:[%s9209_s1 + $0x8f8] sm:$0xff]  }
  0xf7   :  { %v6281_v31 = vpop.f32.mrb[0].mxu1  ;;  %v6260_v32 = vpop.f32.mrb[1].mxu0 }
  0xf8   :  { %v6261_v34 = vadd.f32 %v6260_v32, %v6259_v29  ;;  %v6282_v35 = vpop.f32.mrb[1].mxu1  ;;  %v6262_v38 = vpop.f32.mrb[2].mxu0  ;;  %6562 = vmatpush3.bf16.msra.mxu0 %v7221_v40  ;;  %v7260_v32 = vld [vmem:[%s9209_s1 + $0x8f0] sm:$0xff]   ;;  %v31_v40 = vld [vmem:[%s9210_s0 + $0x88] sm:$0xff] }
  0xf9   :  { %v6283_v37 = vadd.f32 %v6282_v35, %v6281_v31  ;;  %v6284_v39 = vpop.f32.mrb[2].mxu1  ;;  %v6263_v41 = vpop.f32.mrb[3].mxu0  ;;  %6584 = vmatpush3.bf16.msra.mxu1 %v7222_v43  ;;  %6563 = vmatprep.subr.bf16.mxu0 %v7223_v45  ;;  %v7259_v31 = vld [vmem:[%s9209_s1 + $0x870] sm:$0xff]   ;;  %v7263_v35 = vld [vmem:[%s9209_s1 + $0x878] sm:$0xff]   ;;  %v5701_v43 = vcombine.low %v31_v40, %v31_v40  ;;  %v5702_v45 = vcombine.high %v31_v40, %v31_v40 }
  0xfa   :  { %v6285_v44 = vpop.f32.mrb[3].mxu1  ;;  %6585 = vmatprep.subr.bf16.mxu1 %v7224_v46  ;;  %v7266_v38 = vld [vmem:[%s9209_s1 + $0x8b8] sm:$0xff]   ;;  %v30_v39 = vld [vmem:[%s9210_s0 + $0x80] sm:$0xff]  ;;  %v7316_v40 = vld [vmem:[%s9209_s1 + $0xad0] sm:$0xff]  }
  0xfb   :  { %v8330_v42 = vadd.f32 %v6283_v37, %v6261_v34  ;;  %v7262_v34 = vld [vmem:[%s9209_s1 + $0x8b0] sm:$0xff]   ;;  %v7265_v37 = vld [vmem:[%s9209_s1 + $0x838] sm:$0xff]   ;;  %v5699_v41 = vcombine.low %v30_v39, %v30_v39  ;;  %v7271_v44 = vld [vmem:[%s9209_s1 + $0x940] sm:$0xff]  }
  0xfc   :  { %6564 = vmatpush3.bf16.msra.mxu0 %v7225_v47  ;;  %v7272_v46 = vld [vmem:[%s9209_s1 + $0x9c0] sm:$0xff]  }
  0xfd   :  { %6586 = vmatpush3.bf16.msra.mxu1 %v7226_v48  ;;  %6565 = vmatprep.subr.bf16.mxu0 %v7227_v49  ;;  %v7273_v47 = vld [vmem:[%s9209_s1 + $0x900] sm:$0xff]   ;;  %v7275_v49 = vld [vmem:[%s9209_s1 + $0x948] sm:$0xff]  }
  0xfe   :  { %6587 = vmatprep.subr.bf16.mxu1 %v7228_v50  ;;  %v7274_v48 = vld [vmem:[%s9209_s1 + $0x980] sm:$0xff]   ;;  %v7276_v50 = vld [vmem:[%s9209_s1 + $0x9c8] sm:$0xff]  }
 0x100   :  { %6566 = vmatpush3.bf16.msra.mxu0 %v7229_v51  ;;  %v7277_v51 = vld [vmem:[%s9209_s1 + $0x908] sm:$0xff]  }
 0x101   :  { %6588 = vmatpush3.bf16.msra.mxu1 %v7230_v52  ;;  %6595 = vmatprep.subr.bf16.mxu0 %v7235_v58  ;;  %v7278_v52 = vld [vmem:[%s9209_s1 + $0x988] sm:$0xff]   ;;  %v7284_v58 = vld [vmem:[%s9209_s1 + $0x9d8] sm:$0xff]  }
 0x102   :  { %6617 = vmatprep.subr.bf16.mxu1 %v7236_v60  ;;  %v7286_v60 = vld [vmem:[%s9209_s1 + $0x998] sm:$0xff]  }
 0x103   :  { %4959 = vmatmul.mubr.bf16.vlgmr.msra.gmra.mrb[28].mxu0 %v5695_v55  ;;  %v7281_v55 = vld [vmem:[%s9209_s1 + $0x910] sm:$0xff]  }
 0x104   :  { %4999 = vmatmul.mubr.bf16.vlgmr.msra.gmra.mrb[28].mxu1 %v5697_v57  ;;  %6596 = vmatpush3.bf16.msra.mxu0 %v7237_v61  ;;  %v7283_v57 = vld [vmem:[%s9209_s1 + $0x958] sm:$0xff]   ;;  %v7287_v61 = vld [vmem:[%s9209_s1 + $0x960] sm:$0xff]  }
 0x105   :  { %6618 = vmatpush3.bf16.msra.mxu1 %v7238_v62  ;;  %6597 = vmatprep.subr.bf16.mxu0 %v7239_v63  ;;  %v7288_v62 = vld [vmem:[%s9209_s1 + $0x9e0] sm:$0xff]  }
 0x106   :  { %6619 = vmatprep.subr.bf16.mxu1 %v7240_v0  ;;  %5078 = vmatprep.mubr.bf16.mxu1 %v5702_v45  ;;  %v7289_v0 = vld [vmem:[%s9209_s1 + $0x920] sm:$0xff]   ;;  %v7321_v45 = vld [vmem:[%s9209_s1 + $0xa18] sm:$0xff]  }
 0x108   :  { %6598 = vmatpush3.bf16.msra.mxu0 %v7241_v1 }
 0x109   :  { %6620 = vmatpush3.bf16.msra.mxu1 %v7242_v2  ;;  %6599 = vmatprep.subr.bf16.mxu0 %v7243_v3  ;;  %v7290_v2 = vld [vmem:[%s9209_s1 + $0x9a0] sm:$0xff]  }
 0x10a   :  { %6621 = vmatprep.subr.bf16.mxu1 %v7244_v4 }
 0x10c   :  { %6600 = vmatpush3.bf16.msra.mxu0 %v7245_v5  ;;  %v7291_v5 = vld [vmem:[%s9209_s1 + $0x968] sm:$0xff]  }
 0x10d   :  { %6622 = vmatpush3.bf16.msra.mxu1 %v7246_v6  ;;  %6601 = vmatprep.subr.bf16.mxu0 %v7247_v7 }
 0x10e   :  { %6623 = vmatprep.subr.bf16.mxu1 %v7248_v8  ;;  %v7292_v8 = vld [vmem:[%s9209_s1 + $0x9e8] sm:$0xff]  }
 0x110   :  { %6602 = vmatpush3.bf16.msra.mxu0 %v7249_v9 }
 0x111   :  { %6624 = vmatpush3.bf16.msra.mxu1 %v7250_v10  ;;  %6603 = vmatprep.subr.bf16.mxu0 %v7251_v11  ;;  %v7293_v11 = vld [vmem:[%s9209_s1 + $0x928] sm:$0xff]  }
 0x112   :  { %6625 = vmatprep.subr.bf16.mxu1 %v7252_v12 }
 0x114   :  { %6604 = vmatpush3.bf16.msra.mxu0 %v7253_v13  ;;  %v7294_v13 = vld [vmem:[%s9209_s1 + $0x9a8] sm:$0xff]  }
 0x115   :  { %6626 = vmatpush3.bf16.msra.mxu1 %v7254_v15  ;;  %6605 = vmatprep.subr.bf16.mxu0 %v7255_v18  ;;  %v7296_v18 = vld [vmem:[%s9209_s1 + $0x9f0] sm:$0xff]  }
 0x116   :  { %v6303_v14 = vpop.f32.mrb[4].mxu0  ;;  %6627 = vmatprep.subr.bf16.mxu1 %v7256_v21  ;;  %v7299_v21 = vld [vmem:[%s9209_s1 + $0x978] sm:$0xff]  }
 0x117   :  { %v6325_v16 = vpop.f32.mrb[4].mxu1  ;;  %v6304_v17 = vpop.f32.mrb[5].mxu0 }
 0x118   :  { %v6305_v19 = vadd.f32 %v6304_v17, %v6303_v14  ;;  %v6326_v20 = vpop.f32.mrb[5].mxu1  ;;  %v6306_v23 = vpop.f32.mrb[6].mxu0  ;;  %6606 = vmatpush3.bf16.msra.mxu0 %v7257_v26 }
 0x119   :  { %v6327_v22 = vadd.f32 %v6326_v20, %v6325_v16  ;;  %v6328_v24 = vpop.f32.mrb[6].mxu1  ;;  %v6307_v27 = vpop.f32.mrb[7].mxu0  ;;  %6628 = vmatpush3.bf16.msra.mxu1 %v7258_v28  ;;  %6607 = vmatprep.subr.bf16.mxu0 %v7259_v31  ;;  %v7295_v16 = vld [vmem:[%s9209_s1 + $0x970] sm:$0xff]   ;;  %v7301_v23 = vld [vmem:[%s9209_s1 + $0x938] sm:$0xff]   ;;  %v7307_v31 = vld [vmem:[%s9209_s1 + $0xa40] sm:$0xff]  }
 0x11a   :  { %v4481_v25 = vadd.f32 %v6305_v19, %v8330_v42  ;;  %v6329_v29 = vpop.f32.mrb[7].mxu1  ;;  %6629 = vmatprep.subr.bf16.mxu1 %v7260_v32  ;;  %v5700_v42 = vcombine.high %v30_v39, %v30_v39  ;;  %v7297_v19 = vld [vmem:[%s9209_s1 + $0x930] sm:$0xff]   ;;  %v7302_v24 = vld [vmem:[%s9209_s1 + $0x9b8] sm:$0xff]   ;;  %v7308_v32 = vld [vmem:[%s9209_s1 + $0xac0] sm:$0xff]  }
 0x11b   :  { %v7298_v20 = vld [vmem:[%s9209_s1 + $0x9b0] sm:$0xff]   ;;  %v33_v28 = vld [vmem:[%s9210_s0 + $0x98] sm:$0xff] }
 0x11c   :  { %v8438_v30 = vadd.f32 %v6327_v22, %v4481_v25  ;;  %6608 = vmatpush3.bf16.msra.mxu0 %v7261_v33  ;;  %5038 = vmatprep.mubr.bf16.mxu0 %v5700_v42  ;;  %v7300_v22 = vld [vmem:[%s9209_s1 + $0x9f8] sm:$0xff]   ;;  %v32_v25 = vld [vmem:[%s9210_s0 + $0x90] sm:$0xff]  ;;  %v5705_v29 = vcombine.low %v33_v28, %v33_v28  ;;  %v7309_v33 = vld [vmem:[%s9209_s1 + $0xa00] sm:$0xff]  }
 0x11d   :  { %6630 = vmatpush3.bf16.msra.mxu1 %v7262_v34  ;;  %6609 = vmatprep.subr.bf16.mxu0 %v7263_v35  ;;  %v5703_v26 = vcombine.low %v32_v25, %v32_v25  ;;  %v5704_v27 = vcombine.high %v32_v25, %v32_v25  ;;  %v7310_v34 = vld [vmem:[%s9209_s1 + $0xa80] sm:$0xff]   ;;  %v7311_v35 = vld [vmem:[%s9209_s1 + $0xa48] sm:$0xff]   ;;  %v7315_v39 = vld [vmem:[%s9209_s1 + $0xa50] sm:$0xff]  }
 0x11e   :  { %6631 = vmatprep.subr.bf16.mxu1 %v7264_v36  ;;  %v7312_v36 = vld [vmem:[%s9209_s1 + $0xac8] sm:$0xff]   ;;  %v7318_v42 = vld [vmem:[%s9209_s1 + $0xa90] sm:$0xff]  }
 0x11f   :  { %v7351_v25 = vld [vmem:[%s9209_s1 + $0xb50] sm:$0xff]  }
 0x120   :  { %6610 = vmatpush3.bf16.msra.mxu0 %v7265_v37  ;;  %v7313_v37 = vld [vmem:[%s9209_s1 + $0xa08] sm:$0xff]  }
 0x121   :  { %6632 = vmatpush3.bf16.msra.mxu1 %v7266_v38  ;;  %6639 = vmatprep.subr.bf16.mxu0 %v7271_v44  ;;  %v7314_v38 = vld [vmem:[%s9209_s1 + $0xa88] sm:$0xff]   ;;  %v7320_v44 = vld [vmem:[%s9209_s1 + $0xad8] sm:$0xff]  }
 0x122   :  { %6661 = vmatprep.subr.bf16.mxu1 %v7272_v46  ;;  %v7322_v46 = vld [vmem:[%s9209_s1 + $0xa98] sm:$0xff]  }
 0x123   :  { %5039 = vmatmul.mubr.bf16.vlgmr.msra.gmra.mrb[32].mxu0 %v5699_v41  ;;  %v7317_v41 = vld [vmem:[%s9209_s1 + $0xa10] sm:$0xff]  }
 0x124   :  { %5079 = vmatmul.mubr.bf16.vlgmr.msra.gmra.mrb[32].mxu1 %v5701_v43  ;;  %6640 = vmatpush3.bf16.msra.mxu0 %v7273_v47  ;;  %v7319_v43 = vld [vmem:[%s9209_s1 + $0xa58] sm:$0xff]   ;;  %v7323_v47 = vld [vmem:[%s9209_s1 + $0xa60] sm:$0xff]  }
 0x125   :  { %6662 = vmatpush3.bf16.msra.mxu1 %v7274_v48  ;;  %6641 = vmatprep.subr.bf16.mxu0 %v7275_v49  ;;  %v7324_v48 = vld [vmem:[%s9209_s1 + $0xae0] sm:$0xff]  }
 0x126   :  { %6663 = vmatprep.subr.bf16.mxu1 %v7276_v50  ;;  %5118 = vmatprep.mubr.bf16.mxu0 %v5704_v27  ;;  %v7325_v50 = vld [vmem:[%s9209_s1 + $0xa20] sm:$0xff]   ;;  %v7353_v27 = vld [vmem:[%s9209_s1 + $0xb10] sm:$0xff]  }
 0x128   :  { %6642 = vmatpush3.bf16.msra.mxu0 %v7277_v51 }
 0x129   :  { %6664 = vmatpush3.bf16.msra.mxu1 %v7278_v52  ;;  %6643 = vmatprep.subr.bf16.mxu0 %v7279_v53  ;;  %v7326_v52 = vld [vmem:[%s9209_s1 + $0xaa0] sm:$0xff]  }
 0x12a   :  { %6665 = vmatprep.subr.bf16.mxu1 %v7280_v54 }
 0x12c   :  { %6644 = vmatpush3.bf16.msra.mxu0 %v7281_v55  ;;  %v7327_v55 = vld [vmem:[%s9209_s1 + $0xa68] sm:$0xff]  }
 0x12d   :  { %6666 = vmatpush3.bf16.msra.mxu1 %v7282_v56  ;;  %6645 = vmatprep.subr.bf16.mxu0 %v7283_v57 }
 0x12e   :  { %6667 = vmatprep.subr.bf16.mxu1 %v7284_v58  ;;  %v7328_v58 = vld [vmem:[%s9209_s1 + $0xae8] sm:$0xff]  }
 0x130   :  { %6646 = vmatpush3.bf16.msra.mxu0 %v7285_v59 }
 0x131   :  { %6668 = vmatpush3.bf16.msra.mxu1 %v7286_v60  ;;  %6647 = vmatprep.subr.bf16.mxu0 %v7287_v61  ;;  %v7329_v61 = vld [vmem:[%s9209_s1 + $0xa28] sm:$0xff]  }
 0x132   :  { %6669 = vmatprep.subr.bf16.mxu1 %v7288_v62 }
 0x134   :  { %6648 = vmatpush3.bf16.msra.mxu0 %v7289_v0 }
 0x135   :  { %6670 = vmatpush3.bf16.msra.mxu1 %v7290_v2  ;;  %6649 = vmatprep.subr.bf16.mxu0 %v7291_v5  ;;  %v7331_v2 = vld [vmem:[%s9209_s1 + $0xa70] sm:$0xff]  }
 0x136   :  { %v6347_v63 = vpop.f32.mrb[8].mxu0  ;;  %6671 = vmatprep.subr.bf16.mxu1 %v7292_v8  ;;  %v7333_v5 = vld [vmem:[%s9209_s1 + $0xa30] sm:$0xff]   ;;  %v7336_v8 = vld [vmem:[%s9209_s1 + $0xaf8] sm:$0xff]  }
 0x137   :  { %v6369_v1 = vpop.f32.mrb[8].mxu1  ;;  %v6348_v3 = vpop.f32.mrb[9].mxu0 }
 0x138   :  { %v6370_v4 = vpop.f32.mrb[9].mxu1  ;;  %v6349_v6 = vadd.f32 %v6348_v3, %v6347_v63  ;;  %v6350_v9 = vpop.f32.mrb[10].mxu0  ;;  %6650 = vmatpush3.bf16.msra.mxu0 %v7293_v11  ;;  %v7330_v63 = vld [vmem:[%s9209_s1 + $0xaa8] sm:$0xff]   ;;  %v34_v11 = vld [vmem:[%s9210_s0 + $0xa0] sm:$0xff] }
 0x139   :  { %v6371_v7 = vadd.f32 %v6370_v4, %v6369_v1  ;;  %v6372_v10 = vpop.f32.mrb[10].mxu1  ;;  %v6351_v14 = vpop.f32.mrb[11].mxu0  ;;  %6672 = vmatpush3.bf16.msra.mxu1 %v7294_v13  ;;  %6651 = vmatprep.subr.bf16.mxu0 %v7295_v16  ;;  %v7332_v4 = vld [vmem:[%s9209_s1 + $0xaf0] sm:$0xff]   ;;  %v7337_v9 = vld [vmem:[%s9209_s1 + $0xa38] sm:$0xff]   ;;  %v5707_v13 = vcombine.low %v34_v11, %v34_v11 }
 0x13a   :  { %v4561_v12 = vadd.f32 %v6349_v6, %v8438_v30  ;;  %v6373_v15 = vpop.f32.mrb[11].mxu1  ;;  %6673 = vmatprep.subr.bf16.mxu1 %v7296_v18  ;;  %v5706_v30 = vcombine.high %v33_v28, %v33_v28  ;;  %v7334_v6 = vld [vmem:[%s9209_s1 + $0xab0] sm:$0xff]   ;;  %v7338_v10 = vld [vmem:[%s9209_s1 + $0xab8] sm:$0xff]   ;;  %v5708_v14 = vcombine.high %v34_v11, %v34_v11  ;;  %v7344_v18 = vld [vmem:[%s9209_s1 + $0xbc0] sm:$0xff]  }
 0x13b   :  { %v7354_v28 = vld [vmem:[%s9209_s1 + $0xb90] sm:$0xff]  }
 0x13c   :  { %v8546_v17 = vadd.f32 %v6371_v7, %v4561_v12  ;;  %6652 = vmatpush3.bf16.msra.mxu0 %v7297_v19  ;;  %5158 = vmatprep.mubr.bf16.mxu1 %v5706_v30  ;;  %v7335_v7 = vld [vmem:[%s9209_s1 + $0xa78] sm:$0xff]   ;;  %v35_v12 = vld [vmem:[%s9210_s0 + $0xa8] sm:$0xff]  ;;  %v7345_v19 = vld [vmem:[%s9209_s1 + $0xb00] sm:$0xff]  }
 0x13d   :  { %6674 = vmatpush3.bf16.msra.mxu1 %v7298_v20  ;;  %6653 = vmatprep.subr.bf16.mxu0 %v7299_v21  ;;  %v5709_v15 = vcombine.low %v35_v12, %v35_v12  ;;  %v5710_v16 = vcombine.high %v35_v12, %v35_v12  ;;  %v7346_v20 = vld [vmem:[%s9209_s1 + $0xb80] sm:$0xff]   ;;  %v7347_v21 = vld [vmem:[%s9209_s1 + $0xb48] sm:$0xff]   ;;  %v7356_v30 = vld [vmem:[%s9209_s1 + $0xbd8] sm:$0xff]  }
 0x13e   :  { %6675 = vmatprep.subr.bf16.mxu1 %v7300_v22  ;;  %v7348_v22 = vld [vmem:[%s9209_s1 + $0xbc8] sm:$0xff]   ;;  %v7387_v11 = vld [vmem:[%s9209_s1 + $0xc50] sm:$0xff]  }
 0x13f   :  { %v7388_v12 = vld [vmem:[%s9209_s1 + $0xcd0] sm:$0xff]  }
 0x140   :  { %6654 = vmatpush3.bf16.msra.mxu0 %v7301_v23  ;;  %v7349_v23 = vld [vmem:[%s9209_s1 + $0xb08] sm:$0xff]  }
 0x141   :  { %6676 = vmatpush3.bf16.msra.mxu1 %v7302_v24  ;;  %6683 = vmatprep.subr.bf16.mxu0 %v7307_v31  ;;  %v7350_v24 = vld [vmem:[%s9209_s1 + $0xb88] sm:$0xff]   ;;  %v7357_v31 = vld [vmem:[%s9209_s1 + $0xb18] sm:$0xff]  }
 0x142   :  { %6705 = vmatprep.subr.bf16.mxu1 %v7308_v32  ;;  %v7358_v32 = vld [vmem:[%s9209_s1 + $0xb98] sm:$0xff]  }
 0x143   :  { %5119 = vmatmul.mubr.bf16.vlgmr.msra.gmra.mrb[36].mxu0 %v5703_v26  ;;  %v7352_v26 = vld [vmem:[%s9209_s1 + $0xbd0] sm:$0xff]  }
 0x144   :  { %5159 = vmatmul.mubr.bf16.vlgmr.msra.gmra.mrb[36].mxu1 %v5705_v29  ;;  %6684 = vmatpush3.bf16.msra.mxu0 %v7309_v33  ;;  %v7355_v29 = vld [vmem:[%s9209_s1 + $0xb58] sm:$0xff]   ;;  %v7359_v33 = vld [vmem:[%s9209_s1 + $0xb60] sm:$0xff]  }
 0x145   :  { %6706 = vmatpush3.bf16.msra.mxu1 %v7310_v34  ;;  %6685 = vmatprep.subr.bf16.mxu0 %v7311_v35  ;;  %v7360_v34 = vld [vmem:[%s9209_s1 + $0xbe0] sm:$0xff]  }
 0x146   :  { %6707 = vmatprep.subr.bf16.mxu1 %v7312_v36  ;;  %5198 = vmatprep.mubr.bf16.mxu0 %v5708_v14  ;;  %v7361_v35 = vld [vmem:[%s9209_s1 + $0xb20] sm:$0xff]   ;;  %v7390_v14 = vld [vmem:[%s9209_s1 + $0xc90] sm:$0xff]  }
 0x147   :  { %5238 = vmatprep.mubr.bf16.mxu1 %v5710_v16  ;;  %v7392_v16 = vld [vmem:[%s9209_s1 + $0xcd8] sm:$0xff]  }
 0x148   :  { %6686 = vmatpush3.bf16.msra.mxu0 %v7313_v37  ;;  %v7362_v37 = vld [vmem:[%s9209_s1 + $0xba0] sm:$0xff]  }
 0x149   :  { %6708 = vmatpush3.bf16.msra.mxu1 %v7314_v38  ;;  %6687 = vmatprep.subr.bf16.mxu0 %v7315_v39 }
 0x14a   :  { %6709 = vmatprep.subr.bf16.mxu1 %v7316_v40 }
 0x14c   :  { %6688 = vmatpush3.bf16.msra.mxu0 %v7317_v41 }
 0x14d   :  { %6710 = vmatpush3.bf16.msra.mxu1 %v7318_v42  ;;  %6689 = vmatprep.subr.bf16.mxu0 %v7319_v43  ;;  %v7363_v43 = vld [vmem:[%s9209_s1 + $0xb68] sm:$0xff]  }
 0x14e   :  { %6711 = vmatprep.subr.bf16.mxu1 %v7320_v44 }
 0x150   :  { %6690 = vmatpush3.bf16.msra.mxu0 %v7321_v45  ;;  %v7364_v45 = vld [vmem:[%s9209_s1 + $0xbe8] sm:$0xff]  }
 0x151   :  { %6712 = vmatpush3.bf16.msra.mxu1 %v7322_v46  ;;  %6691 = vmatprep.subr.bf16.mxu0 %v7323_v47 }
 0x152   :  { %6713 = vmatprep.subr.bf16.mxu1 %v7324_v48  ;;  %v7365_v48 = vld [vmem:[%s9209_s1 + $0xb28] sm:$0xff]  }
 0x154   :  { %6692 = vmatpush3.bf16.msra.mxu0 %v7325_v50  ;;  %v7366_v50 = vld [vmem:[%s9209_s1 + $0xba8] sm:$0xff]  }
 0x155   :  { %6714 = vmatpush3.bf16.msra.mxu1 %v7326_v52  ;;  %6693 = vmatprep.subr.bf16.mxu0 %v7327_v55  ;;  %v7369_v55 = vld [vmem:[%s9209_s1 + $0xb30] sm:$0xff]  }
 0x156   :  { %v6391_v49 = vpop.f32.mrb[12].mxu0  ;;  %6715 = vmatprep.subr.bf16.mxu1 %v7328_v58  ;;  %v7372_v58 = vld [vmem:[%s9209_s1 + $0xbf8] sm:$0xff]  }
 0x157   :  { %v6413_v51 = vpop.f32.mrb[12].mxu1  ;;  %v6392_v53 = vpop.f32.mrb[13].mxu0 }
 0x158   :  { %v6414_v54 = vpop.f32.mrb[13].mxu1  ;;  %v6393_v56 = vadd.f32 %v6392_v53, %v6391_v49  ;;  %v6394_v59 = vpop.f32.mrb[14].mxu0  ;;  %6694 = vmatpush3.bf16.msra.mxu0 %v7329_v61  ;;  %v7367_v53 = vld [vmem:[%s9209_s1 + $0xb70] sm:$0xff]  }
 0x159   :  { %v6415_v57 = vadd.f32 %v6414_v54, %v6413_v51  ;;  %v6416_v60 = vpop.f32.mrb[14].mxu1  ;;  %v6395_v0 = vpop.f32.mrb[15].mxu0  ;;  %6716 = vmatpush3.bf16.msra.mxu1 %v7330_v63  ;;  %6695 = vmatprep.subr.bf16.mxu0 %v7331_v2  ;;  %v7368_v54 = vld [vmem:[%s9209_s1 + $0xbf0] sm:$0xff]   ;;  %v7373_v59 = vld [vmem:[%s9209_s1 + $0xb38] sm:$0xff]  }
 0x15a   :  { %v4641_v62 = vadd.f32 %v6393_v56, %v8546_v17  ;;  %v6417_v1 = vpop.f32.mrb[15].mxu1  ;;  %6717 = vmatprep.subr.bf16.mxu1 %v7332_v4  ;;  %v7343_v17 = vld [vmem:[%s9209_s1 + $0xb40] sm:$0xff]   ;;  %v7370_v56 = vld [vmem:[%s9209_s1 + $0xbb0] sm:$0xff]   ;;  %v7374_v60 = vld [vmem:[%s9209_s1 + $0xbb8] sm:$0xff]  }
 0x15b   :  { %v36_v61 = vld [vmem:[%s9210_s0 + $0xb0] sm:$0xff]  ;;  %v7380_v4 = vld [vmem:[%s9209_s1 + $0xcc0] sm:$0xff]  }
 0x15c   :  { %v8651_v3 = vadd.f32 %v6415_v57, %v4641_v62  ;;  %6696 = vmatpush3.bf16.msra.mxu0 %v7333_v5  ;;  %v7371_v57 = vld [vmem:[%s9209_s1 + $0xb78] sm:$0xff]   ;;  %v5711_v63 = vcombine.low %v36_v61, %v36_v61  ;;  %v5712_v0 = vcombine.high %v36_v61, %v36_v61  ;;  %v7381_v5 = vld [vmem:[%s9209_s1 + $0xc00] sm:$0xff]   ;;  %v7423_v61 = vld [vmem:[%s9209_s1 + $0xd50] sm:$0xff]  }
 0x15d   :  { %6718 = vmatpush3.bf16.msra.mxu1 %v7334_v6  ;;  %6697 = vmatprep.subr.bf16.mxu0 %v7335_v7  ;;  %v37_v62 = vld [vmem:[%s9210_s0 + $0xb8] sm:$0xff]  ;;  %v7382_v6 = vld [vmem:[%s9209_s1 + $0xc80] sm:$0xff]   ;;  %v7383_v7 = vld [vmem:[%s9209_s1 + $0xc48] sm:$0xff]  }
 0x15e   :  { %6719 = vmatprep.subr.bf16.mxu1 %v7336_v8  ;;  %v5713_v1 = vcombine.low %v37_v62, %v37_v62  ;;  %v5714_v2 = vcombine.high %v37_v62, %v37_v62  ;;  %v7384_v8 = vld [vmem:[%s9209_s1 + $0xcc8] sm:$0xff]   ;;  %v7424_v62 = vld [vmem:[%s9209_s1 + $0xdd0] sm:$0xff]  }
 0x160   :  { %6698 = vmatpush3.bf16.msra.mxu0 %v7337_v9  ;;  %v7385_v9 = vld [vmem:[%s9209_s1 + $0xc08] sm:$0xff]  }
 0x161   :  { %6720 = vmatpush3.bf16.msra.mxu1 %v7338_v10  ;;  %6727 = vmatprep.subr.bf16.mxu0 %v7343_v17  ;;  %v7386_v10 = vld [vmem:[%s9209_s1 + $0xc88] sm:$0xff]   ;;  %v7393_v17 = vld [vmem:[%s9209_s1 + $0xc18] sm:$0xff]  }
 0x162   :  { %6749 = vmatprep.subr.bf16.mxu1 %v7344_v18  ;;  %v7394_v18 = vld [vmem:[%s9209_s1 + $0xc98] sm:$0xff]  }
 0x163   :  { %5199 = vmatmul.mubr.bf16.vlgmr.msra.gmra.mrb[40].mxu0 %v5707_v13  ;;  %v7389_v13 = vld [vmem:[%s9209_s1 + $0xc10] sm:$0xff]  }
 0x164   :  { %5239 = vmatmul.mubr.bf16.vlgmr.msra.gmra.mrb[40].mxu1 %v5709_v15  ;;  %6728 = vmatpush3.bf16.msra.mxu0 %v7345_v19  ;;  %v7391_v15 = vld [vmem:[%s9209_s1 + $0xc58] sm:$0xff]   ;;  %v7395_v19 = vld [vmem:[%s9209_s1 + $0xc60] sm:$0xff]  }
 0x165   :  { %6750 = vmatpush3.bf16.msra.mxu1 %v7346_v20  ;;  %6729 = vmatprep.subr.bf16.mxu0 %v7347_v21  ;;  %v7396_v20 = vld [vmem:[%s9209_s1 + $0xce0] sm:$0xff]  }
 0x166   :  { %6751 = vmatprep.subr.bf16.mxu1 %v7348_v22  ;;  %5278 = vmatprep.mubr.bf16.mxu0 %v5712_v0  ;;  %v7397_v22 = vld [vmem:[%s9209_s1 + $0xc20] sm:$0xff]   ;;  %v7426_v0 = vld [vmem:[%s9209_s1 + $0xd90] sm:$0xff]  }
 0x167   :  { %5318 = vmatprep.mubr.bf16.mxu1 %v5714_v2  ;;  %v7428_v2 = vld [vmem:[%s9209_s1 + $0xdd8] sm:$0xff]  }
 0x168   :  { %6730 = vmatpush3.bf16.msra.mxu0 %v7349_v23 }
 0x169   :  { %6752 = vmatpush3.bf16.msra.mxu1 %v7350_v24  ;;  %6731 = vmatprep.subr.bf16.mxu0 %v7351_v25  ;;  %v7398_v24 = vld [vmem:[%s9209_s1 + $0xca0] sm:$0xff]  }
 0x16a   :  { %6753 = vmatprep.subr.bf16.mxu1 %v7352_v26 }
 0x16c   :  { %6732 = vmatpush3.bf16.msra.mxu0 %v7353_v27 }
 0x16d   :  { %6754 = vmatpush3.bf16.msra.mxu1 %v7354_v28  ;;  %6733 = vmatprep.subr.bf16.mxu0 %v7355_v29  ;;  %v7399_v28 = vld [vmem:[%s9209_s1 + $0xc68] sm:$0xff]  }
 0x16e   :  { %6755 = vmatprep.subr.bf16.mxu1 %v7356_v30  ;;  %v7400_v30 = vld [vmem:[%s9209_s1 + $0xce8] sm:$0xff]  }
 0x170   :  { %6734 = vmatpush3.bf16.msra.mxu0 %v7357_v31 }
 0x171   :  { %6756 = vmatpush3.bf16.msra.mxu1 %v7358_v32  ;;  %6735 = vmatprep.subr.bf16.mxu0 %v7359_v33 }
 0x172   :  { %6757 = vmatprep.subr.bf16.mxu1 %v7360_v34  ;;  %v7401_v34 = vld [vmem:[%s9209_s1 + $0xc28] sm:$0xff]  }
 0x174   :  { %6736 = vmatpush3.bf16.msra.mxu0 %v7361_v35  ;;  %v7402_v35 = vld [vmem:[%s9209_s1 + $0xca8] sm:$0xff]  }
 0x175   :  { %6758 = vmatpush3.bf16.msra.mxu1 %v7362_v37  ;;  %6737 = vmatprep.subr.bf16.mxu0 %v7363_v43  ;;  %v7407_v43 = vld [vmem:[%s9209_s1 + $0xc78] sm:$0xff]  }
 0x176   :  { %v6435_v36 = vpop.f32.mrb[16].mxu0  ;;  %6759 = vmatprep.subr.bf16.mxu1 %v7364_v45  ;;  %v7409_v45 = vld [vmem:[%s9209_s1 + $0xc38] sm:$0xff]  }
 0x177   :  { %v6457_v38 = vpop.f32.mrb[16].mxu1  ;;  %v6436_v39 = vpop.f32.mrb[17].mxu0 }
 0x178   :  { %v6458_v40 = vpop.f32.mrb[17].mxu1  ;;  %v6437_v41 = vadd.f32 %v6436_v39, %v6435_v36  ;;  %v6438_v44 = vpop.f32.mrb[18].mxu0  ;;  %6738 = vmatpush3.bf16.msra.mxu0 %v7365_v48  ;;  %v7403_v39 = vld [vmem:[%s9209_s1 + $0xc70] sm:$0xff]   ;;  %v39_v48 = vld [vmem:[%s9210_s0 + $0xc8] sm:$0xff] }
 0x179   :  { %v6459_v42 = vadd.f32 %v6458_v40, %v6457_v38  ;;  %v6460_v46 = vpop.f32.mrb[18].mxu1  ;;  %v6439_v49 = vpop.f32.mrb[19].mxu0  ;;  %6760 = vmatpush3.bf16.msra.mxu1 %v7366_v50  ;;  %6739 = vmatprep.subr.bf16.mxu0 %v7367_v53  ;;  %v7404_v40 = vld [vmem:[%s9209_s1 + $0xcf0] sm:$0xff]   ;;  %v7408_v44 = vld [vmem:[%s9209_s1 + $0xcf8] sm:$0xff]   ;;  %v5718_v53 = vcombine.high %v39_v48, %v39_v48 }
 0x17a   :  { %v4721_v47 = vadd.f32 %v6437_v41, %v8651_v3  ;;  %v6461_v51 = vpop.f32.mrb[19].mxu1  ;;  %6761 = vmatprep.subr.bf16.mxu1 %v7368_v54  ;;  %v7379_v3 = vld [vmem:[%s9209_s1 + $0xc40] sm:$0xff]   ;;  %v7405_v41 = vld [vmem:[%s9209_s1 + $0xc30] sm:$0xff]   ;;  %v7410_v46 = vld [vmem:[%s9209_s1 + $0xcb8] sm:$0xff]  }
 0x17b   :  { %v5717_v51 = vcombine.low %v39_v48, %v39_v48  ;;  %v7416_v54 = vld [vmem:[%s9209_s1 + $0xdc0] sm:$0xff]   ;;  %v7460_v48 = vld [vmem:[%s9209_s1 + $0xed0] sm:$0xff]  }
 0x17c   :  { %v8753_v52 = vadd.f32 %v6459_v42, %v4721_v47  ;;  %6740 = vmatpush3.bf16.msra.mxu0 %v7369_v55  ;;  %v7406_v42 = vld [vmem:[%s9209_s1 + $0xcb0] sm:$0xff]   ;;  %v38_v47 = vld [vmem:[%s9210_s0 + $0xc0] sm:$0xff] }
 0x17d   :  { %6762 = vmatpush3.bf16.msra.mxu1 %v7370_v56  ;;  %6741 = vmatprep.subr.bf16.mxu0 %v7371_v57  ;;  %v5715_v49 = vcombine.low %v38_v47, %v38_v47  ;;  %v5716_v50 = vcombine.high %v38_v47, %v38_v47  ;;  %v7417_v55 = vld [vmem:[%s9209_s1 + $0xd00] sm:$0xff]   ;;  %v7419_v57 = vld [vmem:[%s9209_s1 + $0xd48] sm:$0xff]   ;;  %v7459_v47 = vld [vmem:[%s9209_s1 + $0xe50] sm:$0xff]  }
 0x17e   :  { %6763 = vmatprep.subr.bf16.mxu1 %v7372_v58  ;;  %v7418_v56 = vld [vmem:[%s9209_s1 + $0xd80] sm:$0xff]   ;;  %v7420_v58 = vld [vmem:[%s9209_s1 + $0xdc8] sm:$0xff]  }
 0x180   :  { %6742 = vmatpush3.bf16.msra.mxu0 %v7373_v59  ;;  %v7421_v59 = vld [vmem:[%s9209_s1 + $0xd08] sm:$0xff]  }
 0x181   :  { %6764 = vmatpush3.bf16.msra.mxu1 %v7374_v60  ;;  %6771 = vmatprep.subr.bf16.mxu0 %v7379_v3  ;;  %v7422_v60 = vld [vmem:[%s9209_s1 + $0xd88] sm:$0xff]   ;;  %v7429_v3 = vld [vmem:[%s9209_s1 + $0xd18] sm:$0xff]  }
 0x182   :  { %6793 = vmatprep.subr.bf16.mxu1 %v7380_v4  ;;  %v7430_v4 = vld [vmem:[%s9209_s1 + $0xd98] sm:$0xff]  }
 0x183   :  { %5279 = vmatmul.mubr.bf16.vlgmr.msra.gmra.mrb[44].mxu0 %v5711_v63  ;;  %v7425_v63 = vld [vmem:[%s9209_s1 + $0xd10] sm:$0xff]  }
 0x184   :  { %5319 = vmatmul.mubr.bf16.vlgmr.msra.gmra.mrb[44].mxu1 %v5713_v1  ;;  %6772 = vmatpush3.bf16.msra.mxu0 %v7381_v5  ;;  %v7427_v1 = vld [vmem:[%s9209_s1 + $0xd58] sm:$0xff]   ;;  %v7431_v5 = vld [vmem:[%s9209_s1 + $0xd60] sm:$0xff]  }
 0x185   :  { %6794 = vmatpush3.bf16.msra.mxu1 %v7382_v6  ;;  %6773 = vmatprep.subr.bf16.mxu0 %v7383_v7  ;;  %v7432_v6 = vld [vmem:[%s9209_s1 + $0xde0] sm:$0xff]  }
 0x186   :  { %6795 = vmatprep.subr.bf16.mxu1 %v7384_v8  ;;  %5358 = vmatprep.mubr.bf16.mxu0 %v5716_v50  ;;  %v7433_v8 = vld [vmem:[%s9209_s1 + $0xd20] sm:$0xff]   ;;  %v7462_v50 = vld [vmem:[%s9209_s1 + $0xe90] sm:$0xff]  }
 0x187   :  { %5398 = vmatprep.mubr.bf16.mxu1 %v5718_v53  ;;  %v7465_v53 = vld [vmem:[%s9209_s1 + $0xe18] sm:$0xff]  }
 0x188   :  { %6774 = vmatpush3.bf16.msra.mxu0 %v7385_v9 }
 0x189   :  { %6796 = vmatpush3.bf16.msra.mxu1 %v7386_v10  ;;  %6775 = vmatprep.subr.bf16.mxu0 %v7387_v11  ;;  %v7434_v10 = vld [vmem:[%s9209_s1 + $0xda0] sm:$0xff]  }
 0x18a   :  { %6797 = vmatprep.subr.bf16.mxu1 %v7388_v12 }
 0x18c   :  { %6776 = vmatpush3.bf16.msra.mxu0 %v7389_v13  ;;  %v7435_v13 = vld [vmem:[%s9209_s1 + $0xd68] sm:$0xff]  }
 0x18d   :  { %6798 = vmatpush3.bf16.msra.mxu1 %v7390_v14  ;;  %6777 = vmatprep.subr.bf16.mxu0 %v7391_v15 }
 0x18e   :  { %6799 = vmatprep.subr.bf16.mxu1 %v7392_v16  ;;  %v7436_v16 = vld [vmem:[%s9209_s1 + $0xde8] sm:$0xff]  }
 0x190   :  { %6778 = vmatpush3.bf16.msra.mxu0 %v7393_v17 }
 0x191   :  { %6800 = vmatpush3.bf16.msra.mxu1 %v7394_v18  ;;  %6779 = vmatprep.subr.bf16.mxu0 %v7395_v19  ;;  %v7437_v19 = vld [vmem:[%s9209_s1 + $0xd28] sm:$0xff]  }
 0x192   :  { %6801 = vmatprep.subr.bf16.mxu1 %v7396_v20 }
 0x194   :  { %6780 = vmatpush3.bf16.msra.mxu0 %v7397_v22 }
 0x195   :  { %6802 = vmatpush3.bf16.msra.mxu1 %v7398_v24  ;;  %6781 = vmatprep.subr.bf16.mxu0 %v7399_v28  ;;  %v7439_v24 = vld [vmem:[%s9209_s1 + $0xd70] sm:$0xff]  }
 0x196   :  { %v6479_v21 = vpop.f32.mrb[20].mxu0  ;;  %6803 = vmatprep.subr.bf16.mxu1 %v7400_v30  ;;  %v7442_v28 = vld [vmem:[%s9209_s1 + $0xdb0] sm:$0xff]   ;;  %v7444_v30 = vld [vmem:[%s9209_s1 + $0xdf8] sm:$0xff]  }
 0x197   :  { %v6501_v23 = vpop.f32.mrb[20].mxu1  ;;  %v6480_v25 = vpop.f32.mrb[21].mxu0 }
 0x198   :  { %v6481_v26 = vadd.f32 %v6480_v25, %v6479_v21  ;;  %v6502_v27 = vpop.f32.mrb[21].mxu1  ;;  %v6482_v31 = vpop.f32.mrb[22].mxu0  ;;  %6782 = vmatpush3.bf16.msra.mxu0 %v7401_v34  ;;  %v7438_v21 = vld [vmem:[%s9209_s1 + $0xda8] sm:$0xff]  }
 0x199   :  { %v6503_v29 = vadd.f32 %v6502_v27, %v6501_v23  ;;  %v6504_v33 = vpop.f32.mrb[22].mxu1  ;;  %v6483_v36 = vpop.f32.mrb[23].mxu0  ;;  %6804 = vmatpush3.bf16.msra.mxu1 %v7402_v35  ;;  %6783 = vmatprep.subr.bf16.mxu0 %v7403_v39  ;;  %v7441_v27 = vld [vmem:[%s9209_s1 + $0xd30] sm:$0xff]   ;;  %v7445_v31 = vld [vmem:[%s9209_s1 + $0xd38] sm:$0xff]   ;;  %v7451_v39 = vld [vmem:[%s9209_s1 + $0xe40] sm:$0xff]  }
 0x19a   :  { %v4801_v32 = vadd.f32 %v6481_v26, %v8753_v52  ;;  %v6505_v38 = vpop.f32.mrb[23].mxu1  ;;  %6805 = vmatprep.subr.bf16.mxu1 %v7404_v40  ;;  %v7415_v52 = vld [vmem:[%s9209_s1 + $0xd40] sm:$0xff]   ;;  %v7440_v26 = vld [vmem:[%s9209_s1 + $0xdf0] sm:$0xff]   ;;  %v41_v36 = vld [vmem:[%s9210_s0 + $0xd8] sm:$0xff] }
 0x19b   :  { %v40_v33 = vld [vmem:[%s9210_s0 + $0xd0] sm:$0xff]  ;;  %v5722_v38 = vcombine.high %v41_v36, %v41_v36  ;;  %v7452_v40 = vld [vmem:[%s9209_s1 + $0xec0] sm:$0xff]  }
 0x19c   :  { %v8858_v37 = vadd.f32 %v6503_v29, %v4801_v32  ;;  %6784 = vmatpush3.bf16.msra.mxu0 %v7405_v41  ;;  %v7443_v29 = vld [vmem:[%s9209_s1 + $0xd78] sm:$0xff]   ;;  %v5719_v34 = vcombine.low %v40_v33, %v40_v33  ;;  %v5720_v35 = vcombine.high %v40_v33, %v40_v33  ;;  %v7453_v41 = vld [vmem:[%s9209_s1 + $0xe00] sm:$0xff]   ;;  %v7495_v33 = vld [vmem:[%s9209_s1 + $0xf50] sm:$0xff]  }
 0x19d   :  { %6806 = vmatpush3.bf16.msra.mxu1 %v7406_v42  ;;  %6785 = vmatprep.subr.bf16.mxu0 %v7407_v43  ;;  %v7446_v32 = vld [vmem:[%s9209_s1 + $0xdb8] sm:$0xff]   ;;  %v7454_v42 = vld [vmem:[%s9209_s1 + $0xe80] sm:$0xff]   ;;  %v7455_v43 = vld [vmem:[%s9209_s1 + $0xe48] sm:$0xff]  }
 0x19e   :  { %6807 = vmatprep.subr.bf16.mxu1 %v7408_v44  ;;  %v7456_v44 = vld [vmem:[%s9209_s1 + $0xec8] sm:$0xff]  }
 0x1a0   :  { %6786 = vmatpush3.bf16.msra.mxu0 %v7409_v45  ;;  %v7457_v45 = vld [vmem:[%s9209_s1 + $0xe08] sm:$0xff]  }
 0x1a1   :  { %6808 = vmatpush3.bf16.msra.mxu1 %v7410_v46  ;;  %6815 = vmatprep.subr.bf16.mxu0 %v7415_v52  ;;  %v7458_v46 = vld [vmem:[%s9209_s1 + $0xe88] sm:$0xff]   ;;  %v7464_v52 = vld [vmem:[%s9209_s1 + $0xed8] sm:$0xff]  }
 0x1a2   :  { %6837 = vmatprep.subr.bf16.mxu1 %v7416_v54  ;;  %v7466_v54 = vld [vmem:[%s9209_s1 + $0xe98] sm:$0xff]  }
 0x1a3   :  { %5359 = vmatmul.mubr.bf16.vlgmr.msra.gmra.mrb[48].mxu0 %v5715_v49  ;;  %v7461_v49 = vld [vmem:[%s9209_s1 + $0xe10] sm:$0xff]  }
 0x1a4   :  { %5399 = vmatmul.mubr.bf16.vlgmr.msra.gmra.mrb[48].mxu1 %v5717_v51  ;;  %6816 = vmatpush3.bf16.msra.mxu0 %v7417_v55  ;;  %v7463_v51 = vld [vmem:[%s9209_s1 + $0xe58] sm:$0xff]   ;;  %v7467_v55 = vld [vmem:[%s9209_s1 + $0xe60] sm:$0xff]  }
 0x1a5   :  { %6838 = vmatpush3.bf16.msra.mxu1 %v7418_v56  ;;  %6817 = vmatprep.subr.bf16.mxu0 %v7419_v57  ;;  %v7468_v56 = vld [vmem:[%s9209_s1 + $0xee0] sm:$0xff]  }
 0x1a6   :  { %6839 = vmatprep.subr.bf16.mxu1 %v7420_v58  ;;  %5438 = vmatprep.mubr.bf16.mxu0 %v5720_v35  ;;  %v7469_v58 = vld [vmem:[%s9209_s1 + $0xe20] sm:$0xff]   ;;  %v7497_v35 = vld [vmem:[%s9209_s1 + $0xf10] sm:$0xff]  }
 0x1a7   :  { %5478 = vmatprep.mubr.bf16.mxu1 %v5722_v38  ;;  %v7500_v38 = vld [vmem:[%s9209_s1 + $0xfd8] sm:$0xff]  }
 0x1a8   :  { %6818 = vmatpush3.bf16.msra.mxu0 %v7421_v59 }
 0x1a9   :  { %6840 = vmatpush3.bf16.msra.mxu1 %v7422_v60  ;;  %6819 = vmatprep.subr.bf16.mxu0 %v7423_v61  ;;  %v7470_v60 = vld [vmem:[%s9209_s1 + $0xea0] sm:$0xff]  }
 0x1aa   :  { %6841 = vmatprep.subr.bf16.mxu1 %v7424_v62 }
 0x1ac   :  { %6820 = vmatpush3.bf16.msra.mxu0 %v7425_v63  ;;  %v7471_v63 = vld [vmem:[%s9209_s1 + $0xe68] sm:$0xff]  }
 0x1ad   :  { %6842 = vmatpush3.bf16.msra.mxu1 %v7426_v0  ;;  %6821 = vmatprep.subr.bf16.mxu0 %v7427_v1 }
 0x1ae   :  { %6843 = vmatprep.subr.bf16.mxu1 %v7428_v2  ;;  %v7472_v2 = vld [vmem:[%s9209_s1 + $0xee8] sm:$0xff]  }
 0x1b0   :  { %6822 = vmatpush3.bf16.msra.mxu0 %v7429_v3 }
 0x1b1   :  { %6844 = vmatpush3.bf16.msra.mxu1 %v7430_v4  ;;  %6823 = vmatprep.subr.bf16.mxu0 %v7431_v5  ;;  %v7473_v5 = vld [vmem:[%s9209_s1 + $0xe28] sm:$0xff]  }
 0x1b2   :  { %6845 = vmatprep.subr.bf16.mxu1 %v7432_v6 }
 0x1b4   :  { %6824 = vmatpush3.bf16.msra.mxu0 %v7433_v8 }
 0x1b5   :  { %6846 = vmatpush3.bf16.msra.mxu1 %v7434_v10  ;;  %6825 = vmatprep.subr.bf16.mxu0 %v7435_v13  ;;  %v7475_v10 = vld [vmem:[%s9209_s1 + $0xe70] sm:$0xff]  }
 0x1b6   :  { %v6523_v7 = vpop.f32.mrb[24].mxu0  ;;  %6847 = vmatprep.subr.bf16.mxu1 %v7436_v16  ;;  %v7477_v13 = vld [vmem:[%s9209_s1 + $0xe30] sm:$0xff]   ;;  %v7480_v16 = vld [vmem:[%s9209_s1 + $0xef8] sm:$0xff]  }
 0x1b7   :  { %v6545_v9 = vpop.f32.mrb[24].mxu1  ;;  %v6524_v11 = vpop.f32.mrb[25].mxu0 }
 0x1b8   :  { %v6546_v12 = vpop.f32.mrb[25].mxu1  ;;  %v6525_v14 = vadd.f32 %v6524_v11, %v6523_v7  ;;  %v6526_v17 = vpop.f32.mrb[26].mxu0  ;;  %6826 = vmatpush3.bf16.msra.mxu0 %v7437_v19  ;;  %v7474_v7 = vld [vmem:[%s9209_s1 + $0xea8] sm:$0xff]   ;;  %v42_v19 = vld [vmem:[%s9210_s0 + $0xe0] sm:$0xff] }
 0x1b9   :  { %v6547_v15 = vadd.f32 %v6546_v12, %v6545_v9  ;;  %v6548_v18 = vpop.f32.mrb[26].mxu1  ;;  %v6527_v22 = vpop.f32.mrb[27].mxu0  ;;  %6848 = vmatpush3.bf16.msra.mxu1 %v7438_v21  ;;  %6827 = vmatprep.subr.bf16.mxu0 %v7439_v24  ;;  %v7476_v12 = vld [vmem:[%s9209_s1 + $0xef0] sm:$0xff]   ;;  %v7481_v17 = vld [vmem:[%s9209_s1 + $0xe38] sm:$0xff]   ;;  %v5723_v21 = vcombine.low %v42_v19, %v42_v19 }
 0x1ba   :  { %v4881_v20 = vadd.f32 %v6525_v14, %v8858_v37  ;;  %v6549_v23 = vpop.f32.mrb[27].mxu1  ;;  %6849 = vmatprep.subr.bf16.mxu1 %v7440_v26  ;;  %v5721_v37 = vcombine.low %v41_v36, %v41_v36  ;;  %v7478_v14 = vld [vmem:[%s9209_s1 + $0xeb0] sm:$0xff]   ;;  %v7482_v18 = vld [vmem:[%s9209_s1 + $0xeb8] sm:$0xff]   ;;  %v5724_v22 = vcombine.high %v42_v19, %v42_v19  ;;  %v7488_v26 = vld [vmem:[%s9209_s1 + $0xfc0] sm:$0xff]  }
 0x1bb   :  { %v7498_v36 = vld [vmem:[%s9209_s1 + $0xf90] sm:$0xff]  }
 0x1bc   :  { %v8966_v25 = vadd.f32 %v6547_v15, %v4881_v20  ;;  %6828 = vmatpush3.bf16.msra.mxu0 %v7441_v27  ;;  %v7479_v15 = vld [vmem:[%s9209_s1 + $0xe78] sm:$0xff]   ;;  %v43_v20 = vld [vmem:[%s9210_s0 + $0xe8] sm:$0xff]  ;;  %v7489_v27 = vld [vmem:[%s9209_s1 + $0xf00] sm:$0xff]  }
 0x1bd   :  { %6850 = vmatpush3.bf16.msra.mxu1 %v7442_v28  ;;  %6829 = vmatprep.subr.bf16.mxu0 %v7443_v29  ;;  %v5725_v23 = vcombine.low %v43_v20, %v43_v20  ;;  %v5726_v24 = vcombine.high %v43_v20, %v43_v20  ;;  %v7490_v28 = vld [vmem:[%s9209_s1 + $0xf80] sm:$0xff]   ;;  %v7491_v29 = vld [vmem:[%s9209_s1 + $0xf48] sm:$0xff]  }
 0x1be   :  { %6851 = vmatprep.subr.bf16.mxu1 %v7444_v30  ;;  %v7492_v30 = vld [vmem:[%s9209_s1 + $0xfc8] sm:$0xff]  }
 0x1c0   :  { %6830 = vmatpush3.bf16.msra.mxu0 %v7445_v31  ;;  %v7493_v31 = vld [vmem:[%s9209_s1 + $0xf08] sm:$0xff]  }
 0x1c1   :  { %6852 = vmatpush3.bf16.msra.mxu1 %v7446_v32  ;;  %6859 = vmatprep.subr.bf16.mxu0 %v7451_v39  ;;  %v7494_v32 = vld [vmem:[%s9209_s1 + $0xf88] sm:$0xff]   ;;  %v7501_v39 = vld [vmem:[%s9209_s1 + $0xf18] sm:$0xff]  }
 0x1c2   :  { %6881 = vmatprep.subr.bf16.mxu1 %v7452_v40  ;;  %v7502_v40 = vld [vmem:[%s9209_s1 + $0xf98] sm:$0xff]  }
 0x1c3   :  { %5439 = vmatmul.mubr.bf16.vlgmr.msra.gmra.mrb[52].mxu0 %v5719_v34  ;;  %v7496_v34 = vld [vmem:[%s9209_s1 + $0xfd0] sm:$0xff]  }
 0x1c4   :  { %5479 = vmatmul.mubr.bf16.vlgmr.msra.gmra.mrb[52].mxu1 %v5721_v37  ;;  %6860 = vmatpush3.bf16.msra.mxu0 %v7453_v41  ;;  %v7499_v37 = vld [vmem:[%s9209_s1 + $0xf58] sm:$0xff]   ;;  %v7503_v41 = vld [vmem:[%s9209_s1 + $0xf60] sm:$0xff]  }
 0x1c5   :  { %6882 = vmatpush3.bf16.msra.mxu1 %v7454_v42  ;;  %6861 = vmatprep.subr.bf16.mxu0 %v7455_v43  ;;  %v7504_v42 = vld [vmem:[%s9209_s1 + $0xfe0] sm:$0xff]  }
 0x1c6   :  { %6883 = vmatprep.subr.bf16.mxu1 %v7456_v44  ;;  %5518 = vmatprep.mubr.bf16.mxu0 %v5724_v22  ;;  %v7505_v43 = vld [vmem:[%s9209_s1 + $0xf20] sm:$0xff]  }
 0x1c7   :  { %5558 = vmatprep.mubr.bf16.mxu1 %v5726_v24 }
 0x1c8   :  { %6862 = vmatpush3.bf16.msra.mxu0 %v7457_v45  ;;  %v7506_v45 = vld [vmem:[%s9209_s1 + $0xfa0] sm:$0xff]  }
 0x1c9   :  { %6884 = vmatpush3.bf16.msra.mxu1 %v7458_v46  ;;  %6863 = vmatprep.subr.bf16.mxu0 %v7459_v47 }
 0x1ca   :  { %6885 = vmatprep.subr.bf16.mxu1 %v7460_v48 }
 0x1cc   :  { %6864 = vmatpush3.bf16.msra.mxu0 %v7461_v49 }
 0x1cd   :  { %6886 = vmatpush3.bf16.msra.mxu1 %v7462_v50  ;;  %6865 = vmatprep.subr.bf16.mxu0 %v7463_v51  ;;  %v7507_v51 = vld [vmem:[%s9209_s1 + $0xf68] sm:$0xff]  }
 0x1ce   :  { %6887 = vmatprep.subr.bf16.mxu1 %v7464_v52 }
 0x1d0   :  { %6866 = vmatpush3.bf16.msra.mxu0 %v7465_v53  ;;  %v7508_v53 = vld [vmem:[%s9209_s1 + $0xfe8] sm:$0xff]  }
 0x1d1   :  { %6888 = vmatpush3.bf16.msra.mxu1 %v7466_v54  ;;  %6867 = vmatprep.subr.bf16.mxu0 %v7467_v55 }
 0x1d2   :  { %6889 = vmatprep.subr.bf16.mxu1 %v7468_v56  ;;  %v7509_v56 = vld [vmem:[%s9209_s1 + $0xf28] sm:$0xff]  }
 0x1d4   :  { %6868 = vmatpush3.bf16.msra.mxu0 %v7469_v58  ;;  %v7510_v58 = vld [vmem:[%s9209_s1 + $0xfa8] sm:$0xff]  }
 0x1d5   :  { %6890 = vmatpush3.bf16.msra.mxu1 %v7470_v60  ;;  %6869 = vmatprep.subr.bf16.mxu0 %v7471_v63  ;;  %v7513_v63 = vld [vmem:[%s9209_s1 + $0xf30] sm:$0xff]  }
 0x1d6   :  { %v6567_v57 = vpop.f32.mrb[28].mxu0  ;;  %6891 = vmatprep.subr.bf16.mxu1 %v7472_v2  ;;  %v7516_v2 = vld [vmem:[%s9209_s1 + $0xff8] sm:$0xff]  }
 0x1d7   :  { %v6589_v59 = vpop.f32.mrb[28].mxu1  ;;  %v6568_v61 = vpop.f32.mrb[29].mxu0 }
 0x1d8   :  { %v6590_v62 = vpop.f32.mrb[29].mxu1  ;;  %v6569_v0 = vadd.f32 %v6568_v61, %v6567_v57  ;;  %v6570_v3 = vpop.f32.mrb[30].mxu0  ;;  %6870 = vmatpush3.bf16.msra.mxu0 %v7473_v5  ;;  %v7511_v61 = vld [vmem:[%s9209_s1 + $0xf70] sm:$0xff]  }
 0x1d9   :  { %v6591_v1 = vadd.f32 %v6590_v62, %v6589_v59  ;;  %v6592_v4 = vpop.f32.mrb[30].mxu1  ;;  %v6571_v8 = vpop.f32.mrb[31].mxu0  ;;  %6892 = vmatpush3.bf16.msra.mxu1 %v7474_v7  ;;  %6871 = vmatprep.subr.bf16.mxu0 %v7475_v10  ;;  %v7512_v62 = vld [vmem:[%s9209_s1 + $0xff0] sm:$0xff]   ;;  %v7517_v3 = vld [vmem:[%s9209_s1 + $0xf38] sm:$0xff]  }
 0x1da   :  { %v4961_v6 = vadd.f32 %v6569_v0, %v8966_v25  ;;  %v6593_v9 = vpop.f32.mrb[31].mxu1  ;;  %6893 = vmatprep.subr.bf16.mxu1 %v7476_v12  ;;  %v7487_v25 = vld [vmem:[%s9209_s1 + $0xf40] sm:$0xff]   ;;  %v7514_v0 = vld [vmem:[%s9209_s1 + $0xfb0] sm:$0xff]   ;;  %v7518_v4 = vld [vmem:[%s9209_s1 + $0xfb8] sm:$0xff]  }
 0x1db   :  { %v44_v5 = vld [vmem:[%s9210_s0 + $0xf0] sm:$0xff] }
 0x1dc   :  { %v9071_v11 = vadd.f32 %v6591_v1, %v4961_v6  ;;  %6872 = vmatpush3.bf16.msra.mxu0 %v7477_v13  ;;  %v7515_v1 = vld [vmem:[%s9209_s1 + $0xf78] sm:$0xff]   ;;  %v5727_v7 = vcombine.low %v44_v5, %v44_v5  ;;  %v5728_v8 = vcombine.high %v44_v5, %v44_v5 }
 0x1dd   :  { %6894 = vmatpush3.bf16.msra.mxu1 %v7478_v14  ;;  %6873 = vmatprep.subr.bf16.mxu0 %v7479_v15  ;;  %v45_v6 = vld [vmem:[%s9210_s0 + $0xf8] sm:$0xff] }
 0x1de   :  { %6895 = vmatprep.subr.bf16.mxu1 %v7480_v16  ;;  %v5729_v9 = vcombine.low %v45_v6, %v45_v6  ;;  %v5730_v10 = vcombine.high %v45_v6, %v45_v6 }
 0x1e0   :  { %6874 = vmatpush3.bf16.msra.mxu0 %v7481_v17 }
 0x1e1   :  { %6896 = vmatpush3.bf16.msra.mxu1 %v7482_v18  ;;  %6903 = vmatprep.subr.bf16.mxu0 %v7487_v25 }
 0x1e2   :  { %6925 = vmatprep.subr.bf16.mxu1 %v7488_v26 }
 0x1e3   :  { %5519 = vmatmul.mubr.bf16.vlgmr.msra.gmra.mrb[56].mxu0 %v5723_v21 }
 0x1e4   :  { %5559 = vmatmul.mubr.bf16.vlgmr.msra.gmra.mrb[56].mxu1 %v5725_v23  ;;  %6904 = vmatpush3.bf16.msra.mxu0 %v7489_v27 }
 0x1e5   :  { %6926 = vmatpush3.bf16.msra.mxu1 %v7490_v28  ;;  %6905 = vmatprep.subr.bf16.mxu0 %v7491_v29 }
 0x1e6   :  { %6927 = vmatprep.subr.bf16.mxu1 %v7492_v30  ;;  %5598 = vmatprep.mubr.bf16.mxu0 %v5728_v8 }
 0x1e7   :  { %5638 = vmatprep.mubr.bf16.mxu1 %v5730_v10 }
 0x1e8   :  { %6906 = vmatpush3.bf16.msra.mxu0 %v7493_v31 }
 0x1e9   :  { %6928 = vmatpush3.bf16.msra.mxu1 %v7494_v32  ;;  %6907 = vmatprep.subr.bf16.mxu0 %v7495_v33 }
 0x1ea   :  { %6929 = vmatprep.subr.bf16.mxu1 %v7496_v34 }
 0x1ec   :  { %6908 = vmatpush3.bf16.msra.mxu0 %v7497_v35 }
 0x1ed   :  { %6930 = vmatpush3.bf16.msra.mxu1 %v7498_v36  ;;  %6909 = vmatprep.subr.bf16.mxu0 %v7499_v37 }
 0x1ee   :  { %6931 = vmatprep.subr.bf16.mxu1 %v7500_v38 }
 0x1f0   :  { %6910 = vmatpush3.bf16.msra.mxu0 %v7501_v39 }
 0x1f1   :  { %6932 = vmatpush3.bf16.msra.mxu1 %v7502_v40  ;;  %6911 = vmatprep.subr.bf16.mxu0 %v7503_v41 }
 0x1f2   :  { %6933 = vmatprep.subr.bf16.mxu1 %v7504_v42 }
 0x1f4   :  { %6912 = vmatpush3.bf16.msra.mxu0 %v7505_v43 }
 0x1f5   :  { %6934 = vmatpush3.bf16.msra.mxu1 %v7506_v45  ;;  %6913 = vmatprep.subr.bf16.mxu0 %v7507_v51 }
 0x1f6   :  { %v6611_v44 = vpop.f32.mrb[32].mxu0  ;;  %6935 = vmatprep.subr.bf16.mxu1 %v7508_v53 }
 0x1f7   :  { %v6633_v46 = vpop.f32.mrb[32].mxu1  ;;  %v6612_v47 = vpop.f32.mrb[33].mxu0 }
 0x1f8   :  { %v6634_v48 = vpop.f32.mrb[33].mxu1  ;;  %v6613_v49 = vadd.f32 %v6612_v47, %v6611_v44  ;;  %v6614_v52 = vpop.f32.mrb[34].mxu0  ;;  %6914 = vmatpush3.bf16.msra.mxu0 %v7509_v56 }
 0x1f9   :  { %v6635_v50 = vadd.f32 %v6634_v48, %v6633_v46  ;;  %v6636_v54 = vpop.f32.mrb[34].mxu1  ;;  %v6615_v57 = vpop.f32.mrb[35].mxu0  ;;  %6936 = vmatpush3.bf16.msra.mxu1 %v7510_v58  ;;  %6915 = vmatprep.subr.bf16.mxu0 %v7511_v61 }
 0x1fa   :  { %v5041_v55 = vadd.f32 %v6613_v49, %v9071_v11  ;;  %v6637_v59 = vpop.f32.mrb[35].mxu1  ;;  %6937 = vmatprep.subr.bf16.mxu1 %v7512_v62 }
 0x1fc   :  { %v5081_v60 = vadd.f32 %v6635_v50, %v5041_v55  ;;  %6916 = vmatpush3.bf16.msra.mxu0 %v7513_v63 }
 0x1fd   :  { %6938 = vmatpush3.bf16.msra.mxu1 %v7514_v0  ;;  %6917 = vmatprep.subr.bf16.mxu0 %v7515_v1 }
 0x1fe   :  { %6939 = vmatprep.subr.bf16.mxu1 %v7516_v2 }
 0x200   :  { %6918 = vmatpush3.bf16.msra.mxu0 %v7517_v3 }
 0x201   :  { %6940 = vmatpush3.bf16.msra.mxu1 %v7518_v4 }
 0x203   :  { %5599 = vmatmul.mubr.bf16.vlgmr.msra.gmra.mrb[60].mxu0 %v5727_v7 }
 0x204   :  { %5639 = vmatmul.mubr.bf16.vlgmr.msra.gmra.mrb[60].mxu1 %v5729_v9 }
 0x216   :  { %v6655_v11 = vpop.f32.mrb[36].mxu0 }
 0x217   :  { %v6677_v12 = vpop.f32.mrb[36].mxu1  ;;  %v6656_v13 = vpop.f32.mrb[37].mxu0 }
 0x218   :  { %v6678_v14 = vpop.f32.mrb[37].mxu1  ;;  %v6657_v15 = vadd.f32 %v6656_v13, %v6655_v11  ;;  %v6658_v17 = vpop.f32.mrb[38].mxu0 }
 0x219   :  { %v6679_v16 = vadd.f32 %v6678_v14, %v6677_v12  ;;  %v6680_v18 = vpop.f32.mrb[38].mxu1  ;;  %v6659_v19 = vpop.f32.mrb[39].mxu0 }
 0x21a   :  { %v6681_v20 = vpop.f32.mrb[39].mxu1  ;;  %v5121_v21 = vadd.f32 %v6657_v15, %v5081_v60 }
 0x21c   :  { %v5161_v22 = vadd.f32 %v6679_v16, %v5121_v21 }
 0x236   :  { %v6699_v23 = vpop.f32.mrb[40].mxu0 }
 0x237   :  { %v6721_v24 = vpop.f32.mrb[40].mxu1  ;;  %v6700_v25 = vpop.f32.mrb[41].mxu0 }
 0x238   :  { %v6701_v26 = vadd.f32 %v6700_v25, %v6699_v23  ;;  %v6722_v27 = vpop.f32.mrb[41].mxu1  ;;  %v6702_v28 = vpop.f32.mrb[42].mxu0 }
 0x239   :  { %v6723_v29 = vadd.f32 %v6722_v27, %v6721_v24  ;;  %v6724_v30 = vpop.f32.mrb[42].mxu1  ;;  %v6703_v31 = vpop.f32.mrb[43].mxu0 }
 0x23a   :  { %v5201_v32 = vadd.f32 %v6701_v26, %v5161_v22  ;;  %v6725_v33 = vpop.f32.mrb[43].mxu1 }
 0x23c   :  { %v5241_v34 = vadd.f32 %v6723_v29, %v5201_v32 }
 0x256   :  { %v6743_v35 = vpop.f32.mrb[44].mxu0 }
 0x257   :  { %v6765_v36 = vpop.f32.mrb[44].mxu1  ;;  %v6744_v37 = vpop.f32.mrb[45].mxu0 }
 0x258   :  { %v6745_v38 = vadd.f32 %v6744_v37, %v6743_v35  ;;  %v6766_v39 = vpop.f32.mrb[45].mxu1  ;;  %v6746_v40 = vpop.f32.mrb[46].mxu0 }
 0x259   :  { %v6767_v41 = vadd.f32 %v6766_v39, %v6765_v36  ;;  %v6768_v42 = vpop.f32.mrb[46].mxu1  ;;  %v6747_v43 = vpop.f32.mrb[47].mxu0 }
 0x25a   :  { %v5281_v44 = vadd.f32 %v6745_v38, %v5241_v34  ;;  %v6769_v45 = vpop.f32.mrb[47].mxu1 }
 0x25c   :  { %v5321_v46 = vadd.f32 %v6767_v41, %v5281_v44 }
 0x276   :  { %v6787_v47 = vpop.f32.mrb[48].mxu0 }
 0x277   :  { %v6809_v48 = vpop.f32.mrb[48].mxu1  ;;  %v6788_v49 = vpop.f32.mrb[49].mxu0 }
 0x278   :  { %v6789_v50 = vadd.f32 %v6788_v49, %v6787_v47  ;;  %v6810_v51 = vpop.f32.mrb[49].mxu1  ;;  %v6790_v52 = vpop.f32.mrb[50].mxu0 }
 0x279   :  { %v6811_v53 = vadd.f32 %v6810_v51, %v6809_v48  ;;  %v6812_v54 = vpop.f32.mrb[50].mxu1  ;;  %v6791_v55 = vpop.f32.mrb[51].mxu0 }
 0x27a   :  { %v5361_v56 = vadd.f32 %v6789_v50, %v5321_v46  ;;  %v6813_v57 = vpop.f32.mrb[51].mxu1 }
 0x27c   :  { %v5401_v58 = vadd.f32 %v6811_v53, %v5361_v56 }
 0x296   :  { %v6831_v59 = vpop.f32.mrb[52].mxu0 }
 0x297   :  { %v6853_v60 = vpop.f32.mrb[52].mxu1  ;;  %v6832_v61 = vpop.f32.mrb[53].mxu0 }
 0x298   :  { %v6854_v62 = vpop.f32.mrb[53].mxu1  ;;  %v6833_v63 = vadd.f32 %v6832_v61, %v6831_v59  ;;  %v6834_v1 = vpop.f32.mrb[54].mxu0 }
 0x299   :  { %v6855_v0 = vadd.f32 %v6854_v62, %v6853_v60  ;;  %v6856_v2 = vpop.f32.mrb[54].mxu1  ;;  %v6835_v3 = vpop.f32.mrb[55].mxu0 }
 0x29a   :  { %v6857_v4 = vpop.f32.mrb[55].mxu1  ;;  %v5441_v5 = vadd.f32 %v6833_v63, %v5401_v58 }
 0x29c   :  { %v5481_v6 = vadd.f32 %v6855_v0, %v5441_v5 }
 0x2b6   :  { %v6875_v7 = vpop.f32.mrb[56].mxu0 }
 0x2b7   :  { %v6897_v8 = vpop.f32.mrb[56].mxu1  ;;  %v6876_v9 = vpop.f32.mrb[57].mxu0 }
 0x2b8   :  { %v6877_v10 = vadd.f32 %v6876_v9, %v6875_v7  ;;  %v6898_v11 = vpop.f32.mrb[57].mxu1  ;;  %v6878_v12 = vpop.f32.mrb[58].mxu0 }
 0x2b9   :  { %v6899_v13 = vadd.f32 %v6898_v11, %v6897_v8  ;;  %v6900_v14 = vpop.f32.mrb[58].mxu1  ;;  %v6879_v15 = vpop.f32.mrb[59].mxu0 }
 0x2ba   :  { %v5521_v16 = vadd.f32 %v6877_v10, %v5481_v6  ;;  %v6901_v17 = vpop.f32.mrb[59].mxu1 }
 0x2bc   :  { %v5561_v18 = vadd.f32 %v6899_v13, %v5521_v16 }
 0x2d6   :  { %v6919_v19 = vpop.f32.mrb[60].mxu0 }
 0x2d7   :  { %v6941_v20 = vpop.f32.mrb[60].mxu1  ;;  %v6920_v21 = vpop.f32.mrb[61].mxu0 }
 0x2d8   :  { %v6921_v22 = vadd.f32 %v6920_v21, %v6919_v19  ;;  %v6942_v23 = vpop.f32.mrb[61].mxu1  ;;  %v6922_v24 = vpop.f32.mrb[62].mxu0 }
 0x2d9   :  { %v6943_v25 = vadd.f32 %v6942_v23, %v6941_v20  ;;  %v6944_v26 = vpop.f32.mrb[62].mxu1  ;;  %v6923_v27 = vpop.f32.mrb[63].mxu0 }
 0x2da   :  { %v5601_v28 = vadd.f32 %v6921_v22, %v5561_v18  ;;  %v6945_v29 = vpop.f32.mrb[63].mxu1 }
 0x2dc   :  { %v5641_v30 = vadd.f32 %v6943_v25, %v5601_v28 }
 0x2de   :  { %5647 = vst.msk [vmem:[%s9211_s2] sm:$0xff] %vm5646_vm0, %v5641_v30  ;;  %v5648_v31 = vand.u32 2147483647, %v5641_v30  ;;  %vm5652_vm1 = vcmp.ge.f32.partialorder %v5641_v30, 0.0 }
 0x2e0   :  { %v5649_v32 = vsub.f32 0.0, %v5648_v31 }
 0x2e2   :  { %v5650_v33 = vmul.f32 1.442695, %v5649_v32 }
 0x2e4   :  { %7523 = vpow2.f32 %v5650_v33 }
 0x2ee   :  { %v7524_v34 = vpop.eup %7523 }
 0x2ef   :  { %v5653_v35 = vadd.f32 1.0, %v7524_v34 }
 0x2f1   :  { %7525 = vrcp.f32 %v5653_v35 }
 0x2fb   :  { %v7526_v36 = vpop.eup %7525 }
 0x2fc   :  { %v5656_v37 = vmul.f32 %v7526_v36, %v7524_v34 }
 0x2fe   :  { %v5657_v38 = vsel %vm5652_vm1, %v7526_v36, %v5656_v37 }
 0x2ff   :  { %5658 = vst.msk [vmem:[%s9212_s3] sm:$0xff] %vm5646_vm0, %v5657_v38 }

</bundles_post_ra>
